<compile_context>
chip_gen: v6e
topology: v6e:2x2x1
jax: 0.10.0
libtpu: 0.0.40
codegen_flags: <defaults>
</compile_context>

<pallas_src>
import jax
import jax.numpy as jnp
from jax.experimental import pallas as pl
from jax.experimental.pallas import tpu as pltpu

HID = 56     # LSTM hidden size (nn.LSTM(1024, 56))
HPAD = 128   # per-gate lane padding: every gate slice is a full 128-lane slab
OPAD = 128   # head output padded to a lane-dense 128-wide slab


# ----------------------------- fused Pallas kernel ---------------------------

def _convnet_kernel(x_ref, w1_ref, sh1_ref, w2_ref, sh2_ref,
                    wih_ref, gb_ref, wh_ref, bh_ref, o_ref):
    B, L, _ = x_ref.shape        # (Bt, 128, 1) channels-last, Cin == 1
    l1 = L - 8                   # conv1 output length: 120
    p1 = l1 // 3                 # after MaxPool(3,3): 40
    l2 = p1 - 8                  # conv2 output length: 32
    p2 = l2 // 3                 # after MaxPool(3,3): 10 (drops last 2 rows)

    # ---- layer1: Conv1d(1,128,9) as 9 lane-dense VPU madds (BN scale folded)
    # Lane-broadcast of x is hoisted: done ONCE, not once per tap.
    xb = jnp.broadcast_to(x_ref[...], (B, L, 128))             # (B, L, 128) f32
    w1 = w1_ref[...]                                           # (9, 128)
    acc1 = xb[:, 0:l1, :] * w1[0:1, :].reshape(1, 1, 128)      # init with tap 0
    for k in range(1, 9):
        acc1 = acc1 + xb[:, k:k + l1, :] * w1[k:k + 1, :].reshape(1, 1, 128)
    y1 = jnp.maximum(acc1 + sh1_ref[...].reshape(1, 1, 128), 0.0)  # BN shift + ReLU
    # fused MaxPool1d(3,3)
    y1 = jnp.max(y1.reshape(B, p1, 3, 128), axis=2)            # (B, 40, 128)
    y1b = y1.astype(jnp.bfloat16)                              # single cast

    # ---- layer2: Conv1d(128,256,9) as ONE im2col MXU matmul (K = 9*128) -----
    cols = jnp.concatenate([y1b[:, k:k + l2, :] for k in range(9)],
                           axis=-1)                            # (B, 32, 1152) bf16
    a2 = cols.reshape(B * l2, 9 * 128)
    y2 = jnp.dot(a2, w2_ref[...], preferred_element_type=jnp.float32)
    y2 = jnp.maximum(y2 + sh2_ref[...], 0.0).reshape(B, l2, 256)   # BN shift + ReLU
    # fused MaxPool1d(3,3) (floor mode drops the trailing 2 positions)
    y2 = jnp.max(y2[:, 0:3 * p2, :].reshape(B, p2, 3, 256), axis=2)  # (B, 10, 256)

    # ---- AdaptiveMaxPool1d(4) over length 10: bins [0,3) [2,5) [5,8) [7,10) --
    pooled = [jnp.max(y2[:, lo:hi, :], axis=1)                 # 4 x (B, 256)
              for lo, hi in ((0, 3), (2, 5), (5, 8), (7, 10))]
    feat = jnp.concatenate(pooled, axis=-1)                    # (B, 1024) pos-major

    # ---- LSTM(1024,56) single step, zero initial state: ONE fused matmul -----
    # W_ih rows were regrouped position-major at init so the torch NCL flatten
    # order (feature = c*4 + pos) matches the pos-major concat above.
    gates = jnp.dot(feat.astype(jnp.bfloat16), wih_ref[...],
                    preferred_element_type=jnp.float32) + gb_ref[...]
    # PyTorch gate order: input, forget, cell(g), output.  f*c0 and W_hh@h0
    # vanish because h0 == c0 == 0.  Padded gate lanes stay exactly 0 in h.
    i_g = jax.nn.sigmoid(gates[:, 0 * HPAD:1 * HPAD])
    g_g = jnp.tanh(gates[:, 2 * HPAD:3 * HPAD])
    o_g = jax.nn.sigmoid(gates[:, 3 * HPAD:4 * HPAD])
    h = o_g * jnp.tanh(i_g * g_g)                              # (B, HPAD)

    # ---- fc1 + fc2 folded at init (no nonlinearity between them) -------------
    o_ref[...] = jnp.dot(h.astype(jnp.bfloat16), wh_ref[...],
                         preferred_element_type=jnp.float32) + bh_ref[...]


# ------------------------------- JAX wrapper ----------------------------------

def convnet_forward(x, params, *, batch_tile=32):
    """x: (B, 1, L) float32, NCL like the PyTorch module."""
    B, _, L = x.shape
    x_cl = x.reshape(B, L, 1)          # Cin == 1 -> pure reshape to channels-last

    # Batch tile: single step if B fits, else sublane-aligned tiles + padding.
    bt = min(batch_tile, B)
    if B > bt:
        bt = max(8, (bt // 8) * 8)
    nb = pl.cdiv(B, bt)
    Bp = nb * bt
    if Bp != B:
        x_cl = jnp.pad(x_cl, ((0, Bp - B), (0, 0), (0, 0)))

    out_pad = pl.pallas_call(
        _convnet_kernel,
        out_shape=jax.ShapeDtypeStruct((Bp, OPAD), jnp.float32),
        grid=(nb,),
        in_specs=[
            pl.BlockSpec((bt, L, 1), lambda b: (b, 0, 0)),           # x (batch-tiled)
            # weight index_maps are constant -> fetched once per call
            pl.BlockSpec((9, 128), lambda b: (0, 0)),                # conv1 taps (BN-scaled)
            pl.BlockSpec((1, 128), lambda b: (0, 0)),                # BN1 shift
            pl.BlockSpec((9 * 128, 256), lambda b: (0, 0)),          # conv2 im2col weight (bf16)
            pl.BlockSpec((1, 256), lambda b: (0, 0)),                # BN2 shift
            pl.BlockSpec((1024, 4 * HPAD), lambda b: (0, 0)),        # fused LSTM W_ih (bf16)
            pl.BlockSpec((1, 4 * HPAD), lambda b: (0, 0)),           # LSTM gate bias (padded)
            pl.BlockSpec((HPAD, OPAD), lambda b: (0, 0)),            # folded fc1@fc2 weight (bf16)
            pl.BlockSpec((1, OPAD), lambda b: (0, 0)),               # folded head bias (padded)
        ],
        out_specs=pl.BlockSpec((bt, OPAD), lambda b: (b, 0)),
        compiler_params=pltpu.CompilerParams(
            dimension_semantics=("parallel",),          # engage 2nd TC on v7x, pipeline DMA
            vmem_limit_bytes=48 * 1024 * 1024),         # < v7x 64 MiB physical, > v5e 16 MiB default
    )(x_cl, params["w1k"], params["shift1"], params["w2flat"], params["shift2"],
      params["wih"], params["gate_b"], params["w_head"], params["b_head"])

    # out.squeeze(-1) in PyTorch is a no-op (last dim is 3)
    return out_pad[:B, :3]


def init_params(key):
    ks = jax.random.split(key, 19)
    n = lambda k, shape, s=0.1: jax.random.normal(k, shape, jnp.float32) * s
    eps = 1e-5

    # ---- layer1: Conv1d(1, 128, 9) + BatchNorm1d(128), BN scale folded ----
    cw1 = n(ks[0], (128, 1, 9))
    cb1 = n(ks[1], (128,))
    g1 = 1.0 + n(ks[2], (128,))
    be1 = n(ks[3], (128,))
    mu1 = n(ks[4], (128,))
    var1 = jnp.abs(jax.random.normal(ks[5], (128,), jnp.float32)) + 0.5
    s1 = g1 / jnp.sqrt(var1 + eps)
    w1k = jnp.transpose(cw1[:, 0, :], (1, 0)) * s1[None, :]      # (9, 128)
    shift1 = ((cb1 - mu1) * s1 + be1).reshape(1, 128)

    # ---- layer2: Conv1d(128, 256, 9) + BatchNorm1d(256), packed for a single
    #      im2col matmul: row index = k*128 + cin ----
    cw2 = n(ks[6], (256, 128, 9), 0.05)
    cb2 = n(ks[7], (256,))
    g2 = 1.0 + n(ks[8], (256,))
    be2 = n(ks[9], (256,))
    mu2 = n(ks[10], (256,))
    var2 = jnp.abs(jax.random.normal(ks[11], (256,), jnp.float32)) + 0.5
    s2 = g2 / jnp.sqrt(var2 + eps)
    w2flat = (jnp.transpose(cw2, (2, 1, 0)) * s2[None, None, :]) \
        .reshape(9 * 128, 256).astype(jnp.bfloat16)              # (1152, 256)
    shift2 = ((cb2 - mu2) * s2 + be2).reshape(1, 256)

    # ---- LSTM(1024, 56): pad each gate 56 -> 128 lanes, regroup rows
    #      position-major (torch NCL flatten feature = c*4 + pos, kernel feeds
    #      pos*256 + c), fused into ONE (1024, 512) matmul weight ----
    w_ih = n(ks[12], (4 * HID, 1024), 0.05)
    b_ih = n(ks[13], (4 * HID,))
    b_hh = n(ks[14], (4 * HID,))
    gate_b_full = b_ih + b_hh
    wih_p = jnp.zeros((4 * HPAD, 1024), jnp.float32)
    gb_p = jnp.zeros((4 * HPAD,), jnp.float32)
    for g in range(4):
        wih_p = wih_p.at[g * HPAD:g * HPAD + HID].set(w_ih[g * HID:(g + 1) * HID])
        gb_p = gb_p.at[g * HPAD:g * HPAD + HID].set(gate_b_full[g * HID:(g + 1) * HID])
    wih_t = wih_p.T                                              # (1024, 512), row = c*4 + pos
    wih = jnp.transpose(wih_t.reshape(256, 4, 4 * HPAD), (1, 0, 2)) \
        .reshape(1024, 4 * HPAD).astype(jnp.bfloat16)            # row = pos*256 + c
    gate_b = gb_p.reshape(1, 4 * HPAD)

    # ---- head: fc1 (see TODO(synk): Linear(56, 512)) folded with fc2
    #      Linear(512, 3) in f32 at init; no activation between them ----
    fw1 = n(ks[15], (512, HID))
    fb1 = n(ks[16], (512,))
    fw2 = n(ks[17], (3, 512))
    fb2 = n(ks[18], (3,))
    fw1_pad = jnp.zeros((HPAD, 512), jnp.float32).at[:HID].set(fw1.T)
    fw2_pad = jnp.zeros((512, OPAD), jnp.float32).at[:, :3].set(fw2.T)
    w_head = (fw1_pad @ fw2_pad).astype(jnp.bfloat16)            # (128, 128)
    b_head = (fb1.reshape(1, 512) @ fw2_pad
              + jnp.zeros((1, OPAD), jnp.float32).at[0, :3].set(fb2))

    return dict(w1k=w1k, shift1=shift1, w2flat=w2flat, shift2=shift2,
                wih=wih, gate_b=gate_b, w_head=w_head, b_head=b_head)


if __name__ == "__main__":
    key = jax.random.PRNGKey(0)
    pkey, xkey = jax.random.split(key)
    params = init_params(pkey)
    x = jax.random.normal(xkey, (2, 1, 128), jnp.float32)        # (B, Cin=1, L)

    out = jax.jit(convnet_forward)(x, params)
    out = jax.block_until_ready(out)
    assert out.shape == (2, 3) and out.dtype == jnp.float32
    print("KERNEL_OK")
</pallas_src>

<mosaic_0001>
module attributes {stable_mosaic.version = 11 : i64} {
  func.func @_convnet_kernel(%arg0: i32, %arg1: memref<2x128x1xf32, #tpu.memory_space<vmem>>, %arg2: memref<9x128xf32, #tpu.memory_space<vmem>>, %arg3: memref<1x128xf32, #tpu.memory_space<vmem>>, %arg4: memref<1152x256xbf16, #tpu.memory_space<vmem>>, %arg5: memref<1x256xf32, #tpu.memory_space<vmem>>, %arg6: memref<1024x512xbf16, #tpu.memory_space<vmem>>, %arg7: memref<1x512xf32, #tpu.memory_space<vmem>>, %arg8: memref<128x128xbf16, #tpu.memory_space<vmem>>, %arg9: memref<1x128xf32, #tpu.memory_space<vmem>>, %arg10: memref<2x128xf32, #tpu.memory_space<vmem>>) attributes {dimension_semantics = [#tpu.dimension_semantics<parallel>], iteration_bounds = array<i64: 1>, scalar_prefetch = 0 : i64, scratch_operands = 0 : i64, tpu.core_type = #tpu.core_type<tc>, window_params = [{transform_indices = @transform_0, window_bounds = array<i64: 2, 128, 1>}, {pipeline_mode = #tpu.pipeline_mode<synchronous>, transform_indices = @transform_1, window_bounds = array<i64: 9, 128>}, {pipeline_mode = #tpu.pipeline_mode<synchronous>, transform_indices = @transform_2, window_bounds = array<i64: 1, 128>}, {pipeline_mode = #tpu.pipeline_mode<synchronous>, transform_indices = @transform_3, window_bounds = array<i64: 1152, 256>}, {pipeline_mode = #tpu.pipeline_mode<synchronous>, transform_indices = @transform_4, window_bounds = array<i64: 1, 256>}, {pipeline_mode = #tpu.pipeline_mode<synchronous>, transform_indices = @transform_5, window_bounds = array<i64: 1024, 512>}, {pipeline_mode = #tpu.pipeline_mode<synchronous>, transform_indices = @transform_6, window_bounds = array<i64: 1, 512>}, {pipeline_mode = #tpu.pipeline_mode<synchronous>, transform_indices = @transform_7, window_bounds = array<i64: 128, 128>}, {pipeline_mode = #tpu.pipeline_mode<synchronous>, transform_indices = @transform_8, window_bounds = array<i64: 1, 128>}, {transform_indices = @transform_9, window_bounds = array<i64: 2, 128>}]} {
    %c0 = arith.constant 0 : index
    %c0_0 = arith.constant 0 : index
    %c0_1 = arith.constant 0 : index
    %0 = vector.load %arg1[%c0, %c0_0, %c0_1] : memref<2x128x1xf32, #tpu.memory_space<vmem>>, vector<2x128x1xf32>
    %1 = vector.shape_cast %0 : vector<2x128x1xf32> to vector<2x128x1xf32>
    %2 = vector.broadcast %1 : vector<2x128x1xf32> to vector<2x128x128xf32>
    %c0_2 = arith.constant 0 : index
    %c0_3 = arith.constant 0 : index
    %3 = vector.load %arg2[%c0_2, %c0_3] : memref<9x128xf32, #tpu.memory_space<vmem>>, vector<9x128xf32>
    %4 = vector.extract_strided_slice %2 {offsets = [0, 0, 0], sizes = [2, 120, 128], strides = [1, 1, 1]} : vector<2x128x128xf32> to vector<2x120x128xf32>
    %5 = vector.extract_strided_slice %3 {offsets = [0, 0], sizes = [1, 128], strides = [1, 1]} : vector<9x128xf32> to vector<1x128xf32>
    %6 = vector.shape_cast %5 : vector<1x128xf32> to vector<1x1x128xf32>
    %7 = vector.broadcast %6 : vector<1x1x128xf32> to vector<2x120x128xf32>
    %8 = arith.mulf %4, %7 : vector<2x120x128xf32>
    %9 = vector.extract_strided_slice %2 {offsets = [0, 1, 0], sizes = [2, 120, 128], strides = [1, 1, 1]} : vector<2x128x128xf32> to vector<2x120x128xf32>
    %10 = vector.extract_strided_slice %3 {offsets = [1, 0], sizes = [1, 128], strides = [1, 1]} : vector<9x128xf32> to vector<1x128xf32>
    %11 = vector.shape_cast %10 : vector<1x128xf32> to vector<1x1x128xf32>
    %12 = vector.broadcast %11 : vector<1x1x128xf32> to vector<2x120x128xf32>
    %13 = arith.mulf %9, %12 : vector<2x120x128xf32>
    %14 = arith.addf %8, %13 : vector<2x120x128xf32>
    %15 = vector.extract_strided_slice %2 {offsets = [0, 2, 0], sizes = [2, 120, 128], strides = [1, 1, 1]} : vector<2x128x128xf32> to vector<2x120x128xf32>
    %16 = vector.extract_strided_slice %3 {offsets = [2, 0], sizes = [1, 128], strides = [1, 1]} : vector<9x128xf32> to vector<1x128xf32>
    %17 = vector.shape_cast %16 : vector<1x128xf32> to vector<1x1x128xf32>
    %18 = vector.broadcast %17 : vector<1x1x128xf32> to vector<2x120x128xf32>
    %19 = arith.mulf %15, %18 : vector<2x120x128xf32>
    %20 = arith.addf %14, %19 : vector<2x120x128xf32>
    %21 = vector.extract_strided_slice %2 {offsets = [0, 3, 0], sizes = [2, 120, 128], strides = [1, 1, 1]} : vector<2x128x128xf32> to vector<2x120x128xf32>
    %22 = vector.extract_strided_slice %3 {offsets = [3, 0], sizes = [1, 128], strides = [1, 1]} : vector<9x128xf32> to vector<1x128xf32>
    %23 = vector.shape_cast %22 : vector<1x128xf32> to vector<1x1x128xf32>
    %24 = vector.broadcast %23 : vector<1x1x128xf32> to vector<2x120x128xf32>
    %25 = arith.mulf %21, %24 : vector<2x120x128xf32>
    %26 = arith.addf %20, %25 : vector<2x120x128xf32>
    %27 = vector.extract_strided_slice %2 {offsets = [0, 4, 0], sizes = [2, 120, 128], strides = [1, 1, 1]} : vector<2x128x128xf32> to vector<2x120x128xf32>
    %28 = vector.extract_strided_slice %3 {offsets = [4, 0], sizes = [1, 128], strides = [1, 1]} : vector<9x128xf32> to vector<1x128xf32>
    %29 = vector.shape_cast %28 : vector<1x128xf32> to vector<1x1x128xf32>
    %30 = vector.broadcast %29 : vector<1x1x128xf32> to vector<2x120x128xf32>
    %31 = arith.mulf %27, %30 : vector<2x120x128xf32>
    %32 = arith.addf %26, %31 : vector<2x120x128xf32>
    %33 = vector.extract_strided_slice %2 {offsets = [0, 5, 0], sizes = [2, 120, 128], strides = [1, 1, 1]} : vector<2x128x128xf32> to vector<2x120x128xf32>
    %34 = vector.extract_strided_slice %3 {offsets = [5, 0], sizes = [1, 128], strides = [1, 1]} : vector<9x128xf32> to vector<1x128xf32>
    %35 = vector.shape_cast %34 : vector<1x128xf32> to vector<1x1x128xf32>
    %36 = vector.broadcast %35 : vector<1x1x128xf32> to vector<2x120x128xf32>
    %37 = arith.mulf %33, %36 : vector<2x120x128xf32>
    %38 = arith.addf %32, %37 : vector<2x120x128xf32>
    %39 = vector.extract_strided_slice %2 {offsets = [0, 6, 0], sizes = [2, 120, 128], strides = [1, 1, 1]} : vector<2x128x128xf32> to vector<2x120x128xf32>
    %40 = vector.extract_strided_slice %3 {offsets = [6, 0], sizes = [1, 128], strides = [1, 1]} : vector<9x128xf32> to vector<1x128xf32>
    %41 = vector.shape_cast %40 : vector<1x128xf32> to vector<1x1x128xf32>
    %42 = vector.broadcast %41 : vector<1x1x128xf32> to vector<2x120x128xf32>
    %43 = arith.mulf %39, %42 : vector<2x120x128xf32>
    %44 = arith.addf %38, %43 : vector<2x120x128xf32>
    %45 = vector.extract_strided_slice %2 {offsets = [0, 7, 0], sizes = [2, 120, 128], strides = [1, 1, 1]} : vector<2x128x128xf32> to vector<2x120x128xf32>
    %46 = vector.extract_strided_slice %3 {offsets = [7, 0], sizes = [1, 128], strides = [1, 1]} : vector<9x128xf32> to vector<1x128xf32>
    %47 = vector.shape_cast %46 : vector<1x128xf32> to vector<1x1x128xf32>
    %48 = vector.broadcast %47 : vector<1x1x128xf32> to vector<2x120x128xf32>
    %49 = arith.mulf %45, %48 : vector<2x120x128xf32>
    %50 = arith.addf %44, %49 : vector<2x120x128xf32>
    %51 = vector.extract_strided_slice %2 {offsets = [0, 8, 0], sizes = [2, 120, 128], strides = [1, 1, 1]} : vector<2x128x128xf32> to vector<2x120x128xf32>
    %52 = vector.extract_strided_slice %3 {offsets = [8, 0], sizes = [1, 128], strides = [1, 1]} : vector<9x128xf32> to vector<1x128xf32>
    %53 = vector.shape_cast %52 : vector<1x128xf32> to vector<1x1x128xf32>
    %54 = vector.broadcast %53 : vector<1x1x128xf32> to vector<2x120x128xf32>
    %55 = arith.mulf %51, %54 : vector<2x120x128xf32>
    %56 = arith.addf %50, %55 : vector<2x120x128xf32>
    %c0_4 = arith.constant 0 : index
    %c0_5 = arith.constant 0 : index
    %57 = vector.load %arg3[%c0_4, %c0_5] : memref<1x128xf32, #tpu.memory_space<vmem>>, vector<1x128xf32>
    %58 = vector.shape_cast %57 : vector<1x128xf32> to vector<1x1x128xf32>
    %59 = vector.broadcast %58 : vector<1x1x128xf32> to vector<2x120x128xf32>
    %60 = arith.addf %56, %59 : vector<2x120x128xf32>
    %cst = arith.constant 0.000000e+00 : f32
    %61 = vector.broadcast %cst : f32 to vector<2x120x128xf32>
    %62 = arith.maximumf %60, %61 : vector<2x120x128xf32>
    %63 = vector.shape_cast %62 : vector<2x120x128xf32> to vector<2x40x3x128xf32>
    %cst_6 = arith.constant dense<0xFF800000> : vector<2x40x128xf32>
    %64 = vector.multi_reduction <maximumf>, %63, %cst_6 [2] : vector<2x40x3x128xf32> to vector<2x40x128xf32>
    %65 = arith.truncf %64 : vector<2x40x128xf32> to vector<2x40x128xbf16>
    %66 = vector.extract_strided_slice %65 {offsets = [0, 0, 0], sizes = [2, 32, 128], strides = [1, 1, 1]} : vector<2x40x128xbf16> to vector<2x32x128xbf16>
    %67 = vector.extract_strided_slice %65 {offsets = [0, 1, 0], sizes = [2, 32, 128], strides = [1, 1, 1]} : vector<2x40x128xbf16> to vector<2x32x128xbf16>
    %68 = vector.extract_strided_slice %65 {offsets = [0, 2, 0], sizes = [2, 32, 128], strides = [1, 1, 1]} : vector<2x40x128xbf16> to vector<2x32x128xbf16>
    %69 = vector.extract_strided_slice %65 {offsets = [0, 3, 0], sizes = [2, 32, 128], strides = [1, 1, 1]} : vector<2x40x128xbf16> to vector<2x32x128xbf16>
    %70 = vector.extract_strided_slice %65 {offsets = [0, 4, 0], sizes = [2, 32, 128], strides = [1, 1, 1]} : vector<2x40x128xbf16> to vector<2x32x128xbf16>
    %71 = vector.extract_strided_slice %65 {offsets = [0, 5, 0], sizes = [2, 32, 128], strides = [1, 1, 1]} : vector<2x40x128xbf16> to vector<2x32x128xbf16>
    %72 = vector.extract_strided_slice %65 {offsets = [0, 6, 0], sizes = [2, 32, 128], strides = [1, 1, 1]} : vector<2x40x128xbf16> to vector<2x32x128xbf16>
    %73 = vector.extract_strided_slice %65 {offsets = [0, 7, 0], sizes = [2, 32, 128], strides = [1, 1, 1]} : vector<2x40x128xbf16> to vector<2x32x128xbf16>
    %74 = vector.extract_strided_slice %65 {offsets = [0, 8, 0], sizes = [2, 32, 128], strides = [1, 1, 1]} : vector<2x40x128xbf16> to vector<2x32x128xbf16>
    %75 = tpu.concatenate %66, %67, %68, %69, %70, %71, %72, %73, %74 in 2 : vector<2x32x128xbf16>, vector<2x32x128xbf16>, vector<2x32x128xbf16>, vector<2x32x128xbf16>, vector<2x32x128xbf16>, vector<2x32x128xbf16>, vector<2x32x128xbf16>, vector<2x32x128xbf16>, vector<2x32x128xbf16> -> vector<2x32x1152xbf16>
    %76 = vector.shape_cast %75 : vector<2x32x1152xbf16> to vector<64x1152xbf16>
    %c0_7 = arith.constant 0 : index
    %c0_8 = arith.constant 0 : index
    %77 = vector.load %arg4[%c0_7, %c0_8] : memref<1152x256xbf16, #tpu.memory_space<vmem>>, vector<1152x256xbf16>
    %cst_9 = arith.constant dense<0.000000e+00> : vector<64x256xf32>
    %78 = tpu.matmul %76, %77, %cst_9 {dimension_numbers = #tpu.dot_dimension_numbers<[1], [0], [0], [1], [0, 0, 1, 1], [], []>} : vector<64x1152xbf16>, vector<1152x256xbf16>, vector<64x256xf32> -> vector<64x256xf32>
    %c0_10 = arith.constant 0 : index
    %c0_11 = arith.constant 0 : index
    %79 = vector.load %arg5[%c0_10, %c0_11] : memref<1x256xf32, #tpu.memory_space<vmem>>, vector<1x256xf32>
    %80 = vector.broadcast %79 : vector<1x256xf32> to vector<64x256xf32>
    %81 = arith.addf %78, %80 : vector<64x256xf32>
    %cst_12 = arith.constant 0.000000e+00 : f32
    %82 = vector.broadcast %cst_12 : f32 to vector<64x256xf32>
    %83 = arith.maximumf %81, %82 : vector<64x256xf32>
    %84 = vector.shape_cast %83 : vector<64x256xf32> to vector<2x32x256xf32>
    %85 = vector.extract_strided_slice %84 {offsets = [0, 0, 0], sizes = [2, 30, 256], strides = [1, 1, 1]} : vector<2x32x256xf32> to vector<2x30x256xf32>
    %86 = vector.shape_cast %85 : vector<2x30x256xf32> to vector<2x10x3x256xf32>
    %cst_13 = arith.constant dense<0xFF800000> : vector<2x10x256xf32>
    %87 = vector.multi_reduction <maximumf>, %86, %cst_13 [2] : vector<2x10x3x256xf32> to vector<2x10x256xf32>
    %88 = vector.extract_strided_slice %87 {offsets = [0, 0, 0], sizes = [2, 3, 256], strides = [1, 1, 1]} : vector<2x10x256xf32> to vector<2x3x256xf32>
    %cst_14 = arith.constant dense<0xFF800000> : vector<2x256xf32>
    %89 = vector.multi_reduction <maximumf>, %88, %cst_14 [1] : vector<2x3x256xf32> to vector<2x256xf32>
    %90 = vector.extract_strided_slice %87 {offsets = [0, 2, 0], sizes = [2, 3, 256], strides = [1, 1, 1]} : vector<2x10x256xf32> to vector<2x3x256xf32>
    %cst_15 = arith.constant dense<0xFF800000> : vector<2x256xf32>
    %91 = vector.multi_reduction <maximumf>, %90, %cst_15 [1] : vector<2x3x256xf32> to vector<2x256xf32>
    %92 = vector.extract_strided_slice %87 {offsets = [0, 5, 0], sizes = [2, 3, 256], strides = [1, 1, 1]} : vector<2x10x256xf32> to vector<2x3x256xf32>
    %cst_16 = arith.constant dense<0xFF800000> : vector<2x256xf32>
    %93 = vector.multi_reduction <maximumf>, %92, %cst_16 [1] : vector<2x3x256xf32> to vector<2x256xf32>
    %94 = vector.extract_strided_slice %87 {offsets = [0, 7, 0], sizes = [2, 3, 256], strides = [1, 1, 1]} : vector<2x10x256xf32> to vector<2x3x256xf32>
    %cst_17 = arith.constant dense<0xFF800000> : vector<2x256xf32>
    %95 = vector.multi_reduction <maximumf>, %94, %cst_17 [1] : vector<2x3x256xf32> to vector<2x256xf32>
    %96 = tpu.concatenate %89, %91, %93, %95 in 1 : vector<2x256xf32>, vector<2x256xf32>, vector<2x256xf32>, vector<2x256xf32> -> vector<2x1024xf32>
    %97 = arith.truncf %96 : vector<2x1024xf32> to vector<2x1024xbf16>
    %c0_18 = arith.constant 0 : index
    %c0_19 = arith.constant 0 : index
    %98 = vector.load %arg6[%c0_18, %c0_19] : memref<1024x512xbf16, #tpu.memory_space<vmem>>, vector<1024x512xbf16>
    %cst_20 = arith.constant dense<0.000000e+00> : vector<2x512xf32>
    %99 = tpu.matmul %97, %98, %cst_20 {dimension_numbers = #tpu.dot_dimension_numbers<[1], [0], [0], [1], [0, 0, 1, 1], [], []>} : vector<2x1024xbf16>, vector<1024x512xbf16>, vector<2x512xf32> -> vector<2x512xf32>
    %c0_21 = arith.constant 0 : index
    %c0_22 = arith.constant 0 : index
    %100 = vector.load %arg7[%c0_21, %c0_22] : memref<1x512xf32, #tpu.memory_space<vmem>>, vector<1x512xf32>
    %101 = vector.broadcast %100 : vector<1x512xf32> to vector<2x512xf32>
    %102 = arith.addf %99, %101 : vector<2x512xf32>
    %103 = vector.extract_strided_slice %102 {offsets = [0, 0], sizes = [2, 128], strides = [1, 1]} : vector<2x512xf32> to vector<2x128xf32>
    %104 = arith.negf %103 : vector<2x128xf32>
    %105 = math.exp %104 : vector<2x128xf32>
    %cst_23 = arith.constant 1.000000e+00 : f32
    %106 = vector.broadcast %cst_23 : f32 to vector<2x128xf32>
    %107 = arith.addf %106, %105 : vector<2x128xf32>
    %108 = arith.divf %106, %107 : vector<2x128xf32>
    %109 = vector.extract_strided_slice %102 {offsets = [0, 256], sizes = [2, 128], strides = [1, 1]} : vector<2x512xf32> to vector<2x128xf32>
    %110 = math.tanh %109 : vector<2x128xf32>
    %111 = vector.extract_strided_slice %102 {offsets = [0, 384], sizes = [2, 128], strides = [1, 1]} : vector<2x512xf32> to vector<2x128xf32>
    %112 = arith.negf %111 : vector<2x128xf32>
    %113 = math.exp %112 : vector<2x128xf32>
    %cst_24 = arith.constant 1.000000e+00 : f32
    %114 = vector.broadcast %cst_24 : f32 to vector<2x128xf32>
    %115 = arith.addf %114, %113 : vector<2x128xf32>
    %116 = arith.divf %114, %115 : vector<2x128xf32>
    %117 = arith.mulf %108, %110 : vector<2x128xf32>
    %118 = math.tanh %117 : vector<2x128xf32>
    %119 = arith.mulf %116, %118 : vector<2x128xf32>
    %120 = arith.truncf %119 : vector<2x128xf32> to vector<2x128xbf16>
    %c0_25 = arith.constant 0 : index
    %c0_26 = arith.constant 0 : index
    %121 = vector.load %arg8[%c0_25, %c0_26] : memref<128x128xbf16, #tpu.memory_space<vmem>>, vector<128x128xbf16>
    %cst_27 = arith.constant dense<0.000000e+00> : vector<2x128xf32>
    %122 = tpu.matmul %120, %121, %cst_27 {dimension_numbers = #tpu.dot_dimension_numbers<[1], [0], [0], [1], [0, 0, 1, 1], [], []>} : vector<2x128xbf16>, vector<128x128xbf16>, vector<2x128xf32> -> vector<2x128xf32>
    %c0_28 = arith.constant 0 : index
    %c0_29 = arith.constant 0 : index
    %123 = vector.load %arg9[%c0_28, %c0_29] : memref<1x128xf32, #tpu.memory_space<vmem>>, vector<1x128xf32>
    %124 = vector.broadcast %123 : vector<1x128xf32> to vector<2x128xf32>
    %125 = arith.addf %122, %124 : vector<2x128xf32>
    %c0_30 = arith.constant 0 : index
    %c0_31 = arith.constant 0 : index
    %126 = vector.load %arg10[%c0_30, %c0_31] : memref<2x128xf32, #tpu.memory_space<vmem>>, vector<2x128xf32>
    tpu.vector_store %arg10[%c0_30, %c0_31], %125 {strides = array<i32>} : memref<2x128xf32, #tpu.memory_space<vmem>>, vector<2x128xf32>,
    return
  }
  func.func @transform_0(%arg0: i32) -> (i32, i32, i32) {
    %c0_i32 = arith.constant 0 : i32
    %c0_i32_0 = arith.constant 0 : i32
    %c0_i32_1 = arith.constant 0 : i32
    return %arg0, %c0_i32, %c0_i32_0 : i32, i32, i32
  }
  func.func @transform_1(%arg0: i32) -> (i32, i32) {
    %c0_i32 = arith.constant 0 : i32
    %c0_i32_0 = arith.constant 0 : i32
    %c0_i32_1 = arith.constant 0 : i32
    return %c0_i32, %c0_i32_0 : i32, i32
  }
  func.func @transform_2(%arg0: i32) -> (i32, i32) {
    %c0_i32 = arith.constant 0 : i32
    %c0_i32_0 = arith.constant 0 : i32
    %c0_i32_1 = arith.constant 0 : i32
    return %c0_i32, %c0_i32_0 : i32, i32
  }
  func.func @transform_3(%arg0: i32) -> (i32, i32) {
    %c0_i32 = arith.constant 0 : i32
    %c0_i32_0 = arith.constant 0 : i32
    %c0_i32_1 = arith.constant 0 : i32
    return %c0_i32, %c0_i32_0 : i32, i32
  }
  func.func @transform_4(%arg0: i32) -> (i32, i32) {
    %c0_i32 = arith.constant 0 : i32
    %c0_i32_0 = arith.constant 0 : i32
    %c0_i32_1 = arith.constant 0 : i32
    return %c0_i32, %c0_i32_0 : i32, i32
  }
  func.func @transform_5(%arg0: i32) -> (i32, i32) {
    %c0_i32 = arith.constant 0 : i32
    %c0_i32_0 = arith.constant 0 : i32
    %c0_i32_1 = arith.constant 0 : i32
    return %c0_i32, %c0_i32_0 : i32, i32
  }
  func.func @transform_6(%arg0: i32) -> (i32, i32) {
    %c0_i32 = arith.constant 0 : i32
    %c0_i32_0 = arith.constant 0 : i32
    %c0_i32_1 = arith.constant 0 : i32
    return %c0_i32, %c0_i32_0 : i32, i32
  }
  func.func @transform_7(%arg0: i32) -> (i32, i32) {
    %c0_i32 = arith.constant 0 : i32
    %c0_i32_0 = arith.constant 0 : i32
    %c0_i32_1 = arith.constant 0 : i32
    return %c0_i32, %c0_i32_0 : i32, i32
  }
  func.func @transform_8(%arg0: i32) -> (i32, i32) {
    %c0_i32 = arith.constant 0 : i32
    %c0_i32_0 = arith.constant 0 : i32
    %c0_i32_1 = arith.constant 0 : i32
    return %c0_i32, %c0_i32_0 : i32, i32
  }
  func.func @transform_9(%arg0: i32) -> (i32, i32) {
    %c0_i32 = arith.constant 0 : i32
    %c0_i32_0 = arith.constant 0 : i32
    return %arg0, %c0_i32 : i32, i32
  }
}

</mosaic_0001>

<bundles_post_ra>
// kernel: convnet_forward.1
= control target key start
LH: loop header
LB: loop body
LE: loop exit
PB: predicated region body
PF: predicated region fallthrough
CT: control target
= control target key end

     0   :  { %14 = vsyncpa [#allocation3], 0  ;;  %s17525_s0 = inlined_call_operand.vmem [shape: f32[2,128,1], index: 0, kind: input, shape index: {}]   ;;  %s17526_s1 = inlined_call_operand.vmem [shape: f32[9,128], index: 1, kind: input, shape index: {}]   ;;  %s17527_s2 = inlined_call_operand.vmem [shape: f32[1,128], index: 2, kind: input, shape index: {}]   ;;  %s17528_s3 = inlined_call_operand.hbm [shape: bf16[1152,256], index: 3, kind: input, shape index: {}]   ;;  %s17529_s4 = inlined_call_operand.vmem [shape: f32[1,256], index: 4, kind: input, shape index: {}]   ;;  %s17530_s5 = inlined_call_operand.hbm [shape: bf16[1024,512], index: 5, kind: input, shape index: {}]   ;;  %s17531_s6 = inlined_call_operand.vmem [shape: f32[1,512], index: 6, kind: input, shape index: {}]   ;;  %s17532_s7 = inlined_call_operand.vmem [shape: bf16[128,128], index: 7, kind: input, shape index: {}]   ;;  %s17533_s8 = inlined_call_operand.vmem [shape: f32[1,128], index: 8, kind: input, shape index: {}]   ;;  %s17534_s9 = inlined_call_operand.hbm [shape: f32[2,128], index: 9, kind: output, shape index: {}]  }
   0x1   :  { %15 = vsyncpa [#allocation6], 0 }
   0x2   :  { %16 = vsyncpa [#allocation4], 0  ;;  %s12393_s30 = smov [#allocation2]  }
   0x3   :  { %s28_s10 = sshll.u32 %s12393_s30, 4  ;;  %s29_s10 = int_to_ptr.vmem [resolvable:$true] %s28_s10 }
   0x4   :  { %s12335_s11 = scalar_lea.vmem %s29_s10, 18432  ;;  %p12340_p1 = scmp.lt.s32.totalorder %s29_s10, %s29_s10 }
   0x5   :  { %p12336_p0 = scmp.ne.s32.totalorder %s29_s10, %s12335_s11  ;;  %p12341_p2 = scmp.lt.s32.totalorder %s12335_s11, %s12335_s11 }
   0x7   :  { %p12342_p3 = por %p12341_p2, %p12340_p1 }
   0x9   :  { %p12343_p4 = pnand %p12342_p3, %p12336_p0 }
   0xb   :  { %12346 = shalt.err (!%p12343_p4)
}
   0xc   :  { %s12394_s12 = smov 128   ;;  %s12395_s13 = smov 8  }
   0xd   :  { %34 = dma.hbm_to_vmem [thread:$0]  %s17528_s3, 18432, %s29_s10, [#allocation3], %s12394_s12, %s12394_s12, %s12395_s13  }
   0xe   :  { %s12396_s16 = smov [#allocation5]  }
   0xf   :  { %s42_s17 = sshll.u32 %s12396_s16, 4  ;;  %s43_s17 = int_to_ptr.vmem [resolvable:$true] %s42_s17 }
  0x10   :  { %s12355_s18 = scalar_lea.vmem %s43_s17, 32768  ;;  %p12360_p6 = scmp.lt.s32.totalorder %s43_s17, %s43_s17 }
  0x11   :  { %p12356_p5 = scmp.ne.s32.totalorder %s43_s17, %s12355_s18  ;;  %p12361_p7 = scmp.lt.s32.totalorder %s12355_s18, %s12355_s18 }
  0x13   :  { %p12362_p8 = por %p12361_p7, %p12360_p6 }
  0x15   :  { %p12363_p9 = pnand %p12362_p8, %p12356_p5 }
  0x17   :  { %12366 = shalt.err (!%p12363_p9)
}
  0x18   :  { %s12397_s19 = smov 256   ;;  %s12398_s20 = smov 16  }
  0x19   :  { %48 = dma.hbm_to_vmem [thread:$0]  %s17530_s5, 32768, %s43_s17, [#allocation6], %s12397_s19, %s12397_s19, %s12398_s20  }
  0x1a   :  { %12387 = dma.done.wait [#allocation3], 18432  }
  0x1b   :  { %12388 = vsyncadd [#allocation3], 4294948864 }
  0x1c   :  { %12389 = dma.done.wait [#allocation6], 32768  }
  0x1d   :  { %12390 = vsyncadd [#allocation6], 4294934528  ;;  %v17538_v0 = vmov 0   ;;  %v65_v1 = vld [vmem:[%s17525_s0 + $0x18] sm:$0xff]  ;;  %v62_v2 = vld [vmem:[%s17525_s0] sm:$0xff]  ;;  %v246_v43 = vlaneseq  ;;  %vm358_vm0 = vcmask 1046528  }
  0x1e   :  { %11700 = vset.pattern.permute.xlu1 %v17538_v0  ;;  %11699 = vset.pattern.permute.xlu0 %v17538_v0  ;;  %v66_v3 = vld [vmem:[%s17525_s0 + $0x20] sm:$0xff]  ;;  %v63_v4 = vld [vmem:[%s17525_s0 + $0x8] sm:$0xff]  ;;  %v64_v6 = vld [vmem:[%s17525_s0 + $0x10] sm:$0xff]  ;;  %v12400_v54 = vmov 1966171168   ;;  %vm549_vm1 = vcmask 1045504  }
  0x1f   :  { %113 = vperm.xlu1 %11700, %v65_v1   ;;  %98 = vperm.xlu0 %11699, %v62_v2   ;;  %v67_v5 = vld [vmem:[%s17525_s0 + $0x28] sm:$0xff]  ;;  %v69_v7 = vld [vmem:[%s17525_s0 + $0x38] sm:$0xff]  ;;  %v68_v8 = vld [vmem:[%s17525_s0 + $0x30] sm:$0xff]  ;;  %v12558_v44 = vshrl.u32 %v246_v43, 7  ;;  %v1790_v55 = vunpack.c.l.s4 %v12400_v54  ;;  %vm740_vm2 = vcmask 1044480   ;;  %vm931_vm3 = vcmask 1043456  }
  0x20   :  { %v72_v9 = vld [vmem:[%s17525_s0 + $0x50] sm:$0xff]  ;;  %v71_v10 = vld [vmem:[%s17525_s0 + $0x48] sm:$0xff]  ;;  %v73_v11 = vld [vmem:[%s17525_s0 + $0x58] sm:$0xff]  ;;  %vm1122_vm4 = vcmask 1042432   ;;  %vm1313_vm5 = vcmask 1041408   ;;  %vm1504_vm6 = vcmask 1040384  }
  0x21   :  { %v70_v12 = vld [vmem:[%s17525_s0 + $0x40] sm:$0xff]  ;;  %v75_v13 = vld [vmem:[%s17525_s0 + $0x68] sm:$0xff]  ;;  %v81_v18 = vld [vmem:[%s17525_s0 + $0x98] sm:$0xff]  ;;  %17781 = vst [vmem:[#allocation11_spill] sm:$0xff] %v12558_v44  ;;  %v17537_v46 = vsub.s32 1, %v12558_v44  ;;  %v17536_v47 = vsub.s32 2, %v12558_v44  ;;  %v1791_v2 = vunpack.c.0.s8 %v1790_v55 }
  0x22   :  { %v74_v14 = vld [vmem:[%s17525_s0 + $0x60] sm:$0xff]  ;;  %v79_v15 = vld [vmem:[%s17525_s0 + $0x88] sm:$0xff]  ;;  %v80_v20 = vld [vmem:[%s17525_s0 + $0x90] sm:$0xff]  ;;  %v17535_v48 = vsub.s32 3, %v12558_v44  ;;  %v865_v49 = vsub.s32 4, %v12558_v44  ;;  %v1056_v50 = vsub.s32 5, %v12558_v44 }
  0x23   :  { %118 = vperm.xlu1 %11700, %v66_v3   ;;  %103 = vperm.xlu0 %11699, %v63_v4   ;;  %v78_v16 = vld [vmem:[%s17525_s0 + $0x80] sm:$0xff]  ;;  %v83_v19 = vld [vmem:[%s17525_s0 + $0xa8] sm:$0xff]  ;;  %v85_v21 = vld [vmem:[%s17525_s0 + $0xb8] sm:$0xff]  ;;  %v1247_v51 = vsub.s32 6, %v12558_v44  ;;  %v1438_v52 = vsub.s32 7, %v12558_v44  ;;  %v12571_v53 = vsub.s32 0, %v12558_v44 }
  0x24   :  { %v82_v17 = vld [vmem:[%s17525_s0 + $0xa0] sm:$0xff]  ;;  %v84_v22 = vld [vmem:[%s17525_s0 + $0xb0] sm:$0xff]  ;;  %v87_v24 = vld [vmem:[%s17525_s0 + $0xc8] sm:$0xff]  ;;  %vm5946_vm7 = vcmask 1041409   ;;  %vm5948_vm8 = vcmask 1042434   ;;  %vm5950_vm9 = vcmask 1043459  }
  0x25   :  { %v88_v23 = vld [vmem:[%s17525_s0 + $0xd0] sm:$0xff]  ;;  %v89_v25 = vld [vmem:[%s17525_s0 + $0xd8] sm:$0xff]  ;;  %v86_v26 = vld [vmem:[%s17525_s0 + $0xc0] sm:$0xff]  ;;  %17782 = vst [vmem:[#allocation12_spill] sm:$0xff] %v12571_v53  ;;  %vm5952_vm10 = vcmask 1044484   ;;  %vm5954_vm11 = vcmask 1045509  }
  0x26   :  { %v91_v27 = vld [vmem:[%s17525_s0 + $0xe8] sm:$0xff]  ;;  %v90_v28 = vld [vmem:[%s17525_s0 + $0xe0] sm:$0xff]  ;;  %v11701_v29 = vld [vmem:[#allocation2 + $0x74] ss:$8 sps:$4 sm:$0xff]   ;;  %vm5956_vm12 = vcmask 1046534   ;;  %vm5958_vm13 = vcmask 1047559  }
  0x27   :  { %123 = vperm.xlu1 %11700, %v67_v5   ;;  %108 = vperm.xlu0 %11699, %v64_v6   ;;  %v11703_v30 = vld [vmem:[#allocation2 + $0x70] ss:$8 sps:$4 sm:$0xff]   ;;  %v11704_v35 = vld [vmem:[#allocation2 + $0x174] ss:$8 sps:$4 sm:$0xff]   ;;  %v11707_v37 = vld [vmem:[#allocation2 + $0x64] ss:$8 sps:$4 sm:$0xff]  }
  0x28   :  { %7395 = vmatprep.subr.bf16.mxu0 %v11701_v29  ;;  %v92_v31 = vld [vmem:[%s17525_s0 + $0xf0] sm:$0xff]  ;;  %v93_v33 = vld [vmem:[%s17525_s0 + $0xf8] sm:$0xff]  ;;  %7468 = vmatprep.subr.bf16.mxu1 %v11704_v35  ;;  %v11709_v38 = vld [vmem:[#allocation2 + $0x60] ss:$8 sps:$4 sm:$0xff]   ;;  %vm12402_vm14 = vmmov 0   ;;  %s12403_s26 = smov [#allocation7]  }
  0x29   :  { %v76_v32 = vld [vmem:[%s17525_s0 + $0x70] sm:$0xff]  ;;  %7396 = vmatpush1.bf16.msra.mxu0 %v11703_v30  ;;  %v77_v34 = vld [vmem:[%s17525_s0 + $0x78] sm:$0xff]  ;;  %v11710_v39 = vld [vmem:[#allocation2 + $0x164] ss:$8 sps:$4 sm:$0xff]   ;;  %s11212_s27 = sshll.u32 %s12403_s26, 4  ;;  %s11213_s27 = int_to_ptr.vmem [resolvable:$true] %s11212_s27 }
  0x2a   :  { %v11706_v36 = vld [vmem:[#allocation2 + $0x170] ss:$8 sps:$4 sm:$0xff]   ;;  %7397 = vmatprep.subr.bf16.mxu0 %v11707_v37  ;;  %v11712_v40 = vld [vmem:[#allocation2 + $0x160] ss:$8 sps:$4 sm:$0xff]   ;;  %v11713_v41 = vld [vmem:[#allocation2 + $0x54] ss:$8 sps:$4 sm:$0xff]   ;;  %p12372_p11 = scmp.lt.s32.totalorder %s11213_s27, %s11213_s27 }
  0x2b   :  { %133 = vperm.xlu1 %11700, %v69_v7   ;;  %128 = vperm.xlu0 %11699, %v68_v8   ;;  %v11715_v42 = vld [vmem:[#allocation2 + $0x50] ss:$8 sps:$4 sm:$0xff]   ;;  %v94_v45 = vld [vmem:[%s17526_s1] sm:$0xff]  ;;  %v12596_v63 = vld [vmem:[%s17526_s1 + $0x8] ss:$0 sm:$0xff]  ;;  %s12367_s28 = scalar_lea.vmem %s11213_s27, 32 }
  0x2c   :  { %7469 = vmatpush1.bf16.msra.mxu1 %v11706_v36  ;;  %v12575_v56 = vrot.slane %v94_v45, %v17537_v46  ;;  %v12579_v57 = vrot.slane %v94_v45, %v17536_v47  ;;  %v12583_v58 = vrot.slane %v94_v45, %v17535_v48  ;;  %v12585_v59 = vrot.slane %v94_v45, %v865_v49  ;;  %v11718_v36 = vld [vmem:[#allocation2 + $0x150] ss:$8 sps:$4 sm:$0xff]   ;;  %p12368_p10 = scmp.ne.s32.totalorder %s11213_s27, %s12367_s28  ;;  %p12373_p12 = scmp.lt.s32.totalorder %s12367_s28, %s12367_s28 }
  0x2d   :  { %7398 = vmatpush1.bf16.msra.mxu0 %v11709_v38  ;;  %7470 = vmatprep.subr.bf16.mxu1 %v11710_v39  ;;  %v12587_v60 = vrot.slane %v94_v45, %v1056_v50  ;;  %v12589_v61 = vrot.slane %v94_v45, %v1247_v51  ;;  %v12591_v62 = vrot.slane %v94_v45, %v1438_v52  ;;  %v11721_v50 = vld [vmem:[#allocation2 + $0x40] ss:$8 sps:$4 sm:$0xff]  }
  0x2e   :  { %7399 = vmatprep.subr.bf16.mxu0 %v11713_v41  ;;  %v12599_v1 = vrot.slane %v94_v45, %v12571_v53  ;;  %v11719_v41 = vld [vmem:[#allocation2 + $0x44] ss:$8 sps:$4 sm:$0xff]   ;;  %p12374_p13 = por %p12373_p12, %p12372_p11 }
  0x2f   :  { %148 = vperm.xlu1 %11700, %v72_v9   ;;  %143 = vperm.xlu0 %11699, %v71_v10  }
  0x30   :  { %7471 = vmatpush1.bf16.msra.mxu1 %v11712_v40  ;;  %p12375_p0 = pnand %p12374_p13, %p12368_p10 }
  0x31   :  { %7400 = vmatpush1.bf16.msra.mxu0 %v11715_v42 }
  0x32   :  { %7401 = vmatprep.subr.bf16.mxu0 %v11719_v41 }
  0x33   :  { %153 = vperm.xlu1 %11700, %v73_v11   ;;  %138 = vperm.xlu0 %11699, %v70_v12  }
  0x35   :  { %7402 = vmatpush1.bf16.msra.mxu0 %v11721_v50 }
  0x37   :  { %163 = vperm.xlu1 %11700, %v75_v13   ;;  %158 = vperm.xlu0 %11699, %v74_v14   ;;  %v12624_v13 = vsub.s32 %v1791_v2, %v12558_v44 }
  0x39   :  { %17783 = vst [vmem:[#allocation13_spill] sm:$0xff] %v12624_v13 }
  0x3b   :  { %178 = vperm.xlu1 %11700, %v79_v15   ;;  %173 = vperm.xlu0 %11699, %v78_v16  }
  0x3f   :  { %193 = vperm.xlu1 %11700, %v82_v17   ;;  %188 = vperm.xlu0 %11699, %v81_v18  }
  0x43   :  { %198 = vperm.xlu1 %11700, %v83_v19   ;;  %183 = vperm.xlu0 %11699, %v80_v20  }
  0x47   :  { %208 = vperm.xlu1 %11700, %v85_v21   ;;  %203 = vperm.xlu0 %11699, %v84_v22  }
  0x4b   :  { %223 = vperm.xlu1 %11700, %v88_v23   ;;  %218 = vperm.xlu0 %11699, %v87_v24  }
  0x4f   :  { %228 = vperm.xlu1 %11700, %v89_v25   ;;  %213 = vperm.xlu0 %11699, %v86_v26  }
  0x53   :  { %238 = vperm.xlu1 %11700, %v91_v27   ;;  %233 = vperm.xlu0 %11699, %v90_v28  }
  0x57   :  { %243 = vperm.xlu1 %11700, %v92_v31   ;;  %168 = vperm.xlu0 %11699, %v76_v32   ;;  %v11716_v31 = vld [vmem:[#allocation2 + $0x154] ss:$8 sps:$4 sm:$0xff]  }
  0x58   :  { %7472 = vmatprep.subr.bf16.mxu1 %v11716_v31 }
  0x59   :  { %7473 = vmatpush1.bf16.msra.mxu1 %v11718_v36 }
  0x5b   :  { %287 = vperm.xlu1 %11700, %v93_v33   ;;  %282 = vperm.xlu0 %11699, %v77_v34  }
  0x9a   :  { %v114_v3 = vpop.permute.xlu1 %113  ;;  %v99_v11 = vpop.permute.xlu0 %98 }
  0x9b   :  { %v12602_v4 = vmul.f32 %v12575_v56, %v114_v3  ;;  %v12605_v5 = vmul.f32 %v12579_v57, %v114_v3  ;;  %v12608_v6 = vmul.f32 %v12583_v58, %v114_v3  ;;  %v12611_v7 = vmul.f32 %v12585_v59, %v114_v3 }
  0x9c   :  { %v12614_v8 = vmul.f32 %v12587_v60, %v114_v3  ;;  %v12617_v9 = vmul.f32 %v12589_v61, %v114_v3  ;;  %v12620_v10 = vmul.f32 %v12591_v62, %v114_v3  ;;  %v253_v12 = vmul.f32 %v12599_v1, %v114_v3 }
  0x9d   :  { %v17542_v14 = vrot.slane %v12602_v4, 1  ;;  %v17541_v15 = vrot.slane %v12605_v5, 2  ;;  %v17540_v16 = vrot.slane %v12608_v6, 3  ;;  %v12630_v17 = vmul.f32 %v12596_v63, %v114_v3 }
  0x9e   :  { %v17546_v18 = vrot.slane %v12611_v7, 4  ;;  %v12634_v19 = vmul.f32 %v12575_v56, %v99_v11  ;;  %v12637_v20 = vmul.f32 %v12579_v57, %v99_v11  ;;  %v12640_v21 = vmul.f32 %v12583_v58, %v99_v11  ;;  %v119_v22 = vpop.permute.xlu1 %118  ;;  %v12692_v2 = vpop.permute.xlu0 %103 }
  0x9f   :  { %v17545_v23 = vrot.slane %v12614_v8, 5  ;;  %v17549_v24 = vrot.slane %v12617_v9, 6  ;;  %v17551_v25 = vrot.slane %v12620_v10, 7  ;;  %v12646_v26 = vmul.f32 %v12585_v59, %v99_v11 }
  0xa0   :  { %v12649_v27 = vmul.f32 %v12599_v1, %v99_v11  ;;  %v12652_v28 = vmul.f32 %v12587_v60, %v99_v11  ;;  %v12655_v29 = vmul.f32 %v12589_v61, %v99_v11  ;;  %v12658_v30 = vmul.f32 %v12591_v62, %v99_v11 }
  0xa1   :  { %v359_v32 = vrot.slane %v12634_v19, 1  ;;  %v550_v33 = vrot.slane %v12637_v20, 2  ;;  %v741_v34 = vrot.slane %v12640_v21, 3  ;;  %v12664_v35 = vmul.f32 %v12599_v1, %v119_v22 }
  0xa2   :  { %v12667_v37 = vmul.f32 %v12575_v56, %v119_v22  ;;  %v12670_v38 = vmul.f32 %v12579_v57, %v119_v22  ;;  %v12673_v39 = vmul.f32 %v12583_v58, %v119_v22  ;;  %v12676_v40 = vmul.f32 %v12585_v59, %v119_v22 }
  0xa3   :  { %v932_v42 = vrot.slane %v12646_v26, 4  ;;  %v12680_v43 = vmul.f32 %v12587_v60, %v119_v22  ;;  %v12683_v45 = vmul.f32 %v12589_v61, %v119_v22  ;;  %v12686_v49 = vmul.f32 %v12591_v62, %v119_v22 }
  0xa4   :  { %v1123_v51 = vrot.slane %v12652_v28, 5  ;;  %v366_v52 = vrot.slane %v12667_v37, 1  ;;  %v17544_v54 = vrot.slane %v12670_v38, 2  ;;  %v17543_v55 = vrot.slane %v12673_v39, 3 }
  0xa5   :  { %v1314_v3 = vrot.slane %v12655_v29, 6  ;;  %v1505_v11 = vrot.slane %v12658_v30, 7  ;;  %v17548_v19 = vrot.slane %v12676_v40, 4  ;;  %v12698_v20 = vmul.f32 %v12596_v63, %v119_v22 }
  0xa6   :  { %v367_v21 = vsel %vm358_vm0, %v17542_v14, %v366_v52  ;;  %v17547_v26 = vrot.slane %v12680_v43, 5  ;;  %v17550_v28 = vrot.slane %v12683_v45, 6  ;;  %v17552_v31 = vrot.slane %v12686_v49, 7 }
  0xa7   :  { %v454_v36 = vadd.f32 %v367_v21, %v253_v12  ;;  %v558_v29 = vsel %vm549_vm1, %v17541_v15, %v17544_v54  ;;  %v749_v22 = vsel %vm740_vm2, %v17540_v16, %v17543_v55  ;;  %v12718_v30 = vmul.f32 %v12599_v1, %v12692_v2  ;;  %v12763_v16 = vpop.permute.xlu1 %123 }
  0xa8   :  { %v12722_v37 = vmul.f32 %v12575_v56, %v12692_v2  ;;  %v12726_v12 = vmul.f32 %v12579_v57, %v12692_v2  ;;  %v12730_v41 = vmul.f32 %v12583_v58, %v12692_v2  ;;  %v12734_v50 = vmul.f32 %v12585_v59, %v12692_v2 }
  0xa9   :  { %v645_v21 = vadd.f32 %v558_v29, %v454_v36  ;;  %v12738_v48 = vmul.f32 %v12587_v60, %v12692_v2  ;;  %v12742_v47 = vmul.f32 %v12589_v61, %v12692_v2  ;;  %v12746_v46 = vmul.f32 %v12591_v62, %v12692_v2 }
  0xaa   :  { %v17555_v0 = vrot.slane %v12722_v37, 1  ;;  %v17553_v15 = vrot.slane %v12730_v41, 3  ;;  %v940_v14 = vsel %vm931_vm3, %v17546_v18, %v17548_v19  ;;  %v1131_v55 = vsel %vm1122_vm4, %v17545_v23, %v17547_v26 }
  0xab   :  { %v836_v29 = vadd.f32 %v749_v22, %v645_v21  ;;  %v1322_v22 = vsel %vm1313_vm5, %v17549_v24, %v17550_v28  ;;  %v1513_v21 = vsel %vm1504_vm6, %v17551_v25, %v17552_v31  ;;  %v17554_v18 = vrot.slane %v12742_v47, 6 }
  0xac   :  { %v361_v23 = vsel %vm358_vm0, %v359_v32, %v17555_v0  ;;  %v17784_v54 = vrot.slane %v12726_v12, 2  ;;  %v17559_v24 = vrot.slane %v12746_v46, 7  ;;  %v743_v28 = vsel %vm740_vm2, %v741_v34, %v17553_v15 }
  0xad   :  { %v1027_v26 = vadd.f32 %v940_v14, %v836_v29  ;;  %v451_v19 = vadd.f32 %v361_v23, %v12649_v27  ;;  %v17785_v25 = vrot.slane %v12734_v50, 4  ;;  %v17786_v32 = vrot.slane %v12738_v48, 5  ;;  %v12837_v29 = vpop.permute.xlu0 %108 }
  0xae   :  { %v552_v36 = vsel %vm549_vm1, %v550_v33, %v17784_v54  ;;  %v12795_v23 = vmul.f32 %v12575_v56, %v12763_v16  ;;  %v12799_v54 = vmul.f32 %v12579_v57, %v12763_v16  ;;  %v12803_v34 = vmul.f32 %v12583_v58, %v12763_v16 }
  0xaf   :  { %v934_v31 = vsel %vm931_vm3, %v932_v42, %v17785_v25  ;;  %v1125_v14 = vsel %vm1122_vm4, %v1123_v51, %v17786_v32  ;;  %v1218_v27 = vadd.f32 %v1131_v55, %v1027_v26  ;;  %v642_v33 = vadd.f32 %v552_v36, %v451_v19  ;;  %v12825_v32 = vld [vmem:[%s17527_s2] ss:$0 sm:$0xff] }
  0xb0   :  { %v17558_v25 = vrot.slane %v12795_v23, 1  ;;  %v12808_v42 = vmul.f32 %v12585_v59, %v12763_v16  ;;  %v12812_v51 = vmul.f32 %v12587_v60, %v12763_v16  ;;  %v12816_v55 = vmul.f32 %v12589_v61, %v12763_v16 }
  0xb1   :  { %v1409_v19 = vadd.f32 %v1322_v22, %v1218_v27  ;;  %v833_v26 = vadd.f32 %v743_v28, %v642_v33  ;;  %v1316_v36 = vsel %vm1313_vm5, %v1314_v3, %v17554_v18  ;;  %v1507_v15 = vsel %vm1504_vm6, %v1505_v11, %v17559_v24 }
  0xb2   :  { %v369_v22 = vsel %vm358_vm0, %v366_v52, %v17558_v25  ;;  %v17564_v28 = vrot.slane %v12803_v34, 3  ;;  %v17562_v27 = vrot.slane %v12808_v42, 4  ;;  %v17560_v0 = vrot.slane %v12812_v51, 5 }
  0xb3   :  { %v1600_v3 = vadd.f32 %v1513_v21, %v1409_v19  ;;  %v1024_v33 = vadd.f32 %v934_v31, %v833_v26  ;;  %v455_v18 = vadd.f32 %v369_v22, %v12664_v35  ;;  %v1631_v44 = vmul.f32 %v12596_v63, %v12692_v2 }
  0xb4   :  { %v12843_v11 = vmul.f32 %v12599_v1, %v12763_v16  ;;  %v17787_v52 = vrot.slane %v12799_v54, 2  ;;  %v17788_v25 = vrot.slane %v12670_v38, 2  ;;  %v17561_v31 = vrot.slane %v12816_v55, 6 }
  0xb5   :  { %v1664_v35 = vadd.f32 %v12698_v20, %v1600_v3  ;;  %v1215_v19 = vadd.f32 %v1125_v14, %v1024_v33  ;;  %v12854_v22 = vmul.f32 %v12591_v62, %v12763_v16  ;;  %v17789_v2 = vrot.slane %v12673_v39, 3 }
  0xb6   :  { %v560_v21 = vsel %vm549_vm1, %v17788_v25, %v17787_v52  ;;  %v17790_v38 = vrot.slane %v12676_v40, 4  ;;  %v296_v20 = vmul.f32 %v12575_v56, %v12837_v29  ;;  %v17791_v39 = vrot.slane %v12680_v43, 5 }
  0xb7   :  { %v646_v26 = vadd.f32 %v560_v21, %v455_v18  ;;  %v751_v24 = vsel %vm740_vm2, %v17789_v2, %v17564_v28  ;;  %v487_v18 = vmul.f32 %v12579_v57, %v12837_v29  ;;  %v1701_v14 = vadd.f32 %v12825_v32, %v1664_v35 }
  0xb8   :  { %v942_v25 = vsel %vm931_vm3, %v17790_v38, %v17562_v27  ;;  %v1406_v3 = vadd.f32 %v1316_v36, %v1215_v19  ;;  %v1133_v52 = vsel %vm1122_vm4, %v17791_v39, %v17560_v0  ;;  %v17792_v40 = vrot.slane %v12683_v45, 6 }
  0xb9   :  { %v837_v33 = vadd.f32 %v751_v24, %v646_v26  ;;  %v17563_v2 = vrot.slane %v12854_v22, 7  ;;  %v252_v38 = vmul.f32 %v12599_v1, %v12837_v29  ;;  %v362_v35 = vrot.slane %v296_v20, 1 }
  0xba   :  { %v1324_v21 = vsel %vm1313_vm5, %v17792_v40, %v17561_v31  ;;  %v1731_v36 = vmax.f32 %v1701_v14, 0.0  ;;  %v1597_v24 = vadd.f32 %v1507_v15, %v1406_v3  ;;  %v553_v26 = vrot.slane %v487_v18, 2 }
  0xbb   :  { %v1028_v19 = vadd.f32 %v942_v25, %v837_v33  ;;  %v17793_v43 = vrot.slane %v12722_v37, 1  ;;  %v17794_v0 = vrot.slane %v12602_v4, 1  ;;  %v678_v40 = vmul.f32 %v12583_v58, %v12837_v29 }
  0xbc   :  { %v869_v31 = vmul.f32 %v12585_v59, %v12837_v29  ;;  %v1935_v27 = vcombine.high %v1731_v36, %v1731_v36  ;;  %v1942_v20 = vrot.slane %v1731_v36, %v12624_v13  ;;  %v1661_v15 = vadd.f32 %v1631_v44, %v1597_v24 }
  0xbd   :  { %v363_v39 = vsel %vm358_vm0, %v17793_v43, %v362_v35  ;;  %v365_v45 = vsel %vm358_vm0, %v362_v35, %v17794_v0  ;;  %v1219_v25 = vadd.f32 %v1133_v52, %v1028_v19  ;;  %v17795_v37 = vrot.slane %v12686_v49, 7 }
  0xbe   :  { %v1635_v0 = vmul.f32 %v12596_v63, %v12763_v16  ;;  %v452_v4 = vadd.f32 %v363_v39, %v12718_v30  ;;  %v453_v14 = vadd.f32 %v365_v45, %v252_v38  ;;  %v1949_v3 = vrot.slane %v1935_v27, %v12624_v13 }
  0xbf   :  { %v1515_v18 = vsel %vm1504_vm6, %v17795_v37, %v17563_v2  ;;  %v1950_v33 = vcombine.high %v1942_v20, %v1942_v20  ;;  %v1958_v35 = vrot.slane %v1942_v20, %v12624_v13  ;;  %v1698_v44 = vadd.f32 %v12825_v32, %v1661_v15 }
  0xc0   :  { %v1410_v52 = vadd.f32 %v1324_v21, %v1219_v25  ;;  %v17796_v36 = vrot.slane %v12726_v12, 2  ;;  %v17797_v24 = vrot.slane %v12605_v5, 2  ;;  %v744_v16 = vrot.slane %v678_v40, 3 }
  0xc1   :  { %v1951_v43 = vcombine.high %v1949_v3, %v1949_v3  ;;  %v1972_v30 = vrot.slane %v1950_v33, %v12624_v13  ;;  %v935_v27 = vrot.slane %v869_v31, 4  ;;  %v1980_v39 = vcombine.high %v1958_v35, %v1958_v35 }
  0xc2   :  { %v554_v49 = vsel %vm549_vm1, %v17796_v36, %v553_v26  ;;  %v556_v19 = vsel %vm549_vm1, %v553_v26, %v17797_v24  ;;  %v1728_v45 = vmax.f32 %v1698_v44, 0.0  ;;  %v1601_v20 = vadd.f32 %v1515_v18, %v1410_v52 }
  0xc3   :  { %v643_v38 = vadd.f32 %v554_v49, %v452_v4  ;;  %v644_v37 = vadd.f32 %v556_v19, %v453_v14  ;;  %v1965_v21 = vrot.slane %v1949_v3, %v12624_v13  ;;  %v1979_v12 = vrot.slane %v1951_v43, %v12624_v13 }
  0xc4   :  { %v1982_v15 = vcombine.high %v1972_v30, %v1972_v30  ;;  %v3442_v25 = vcombine.low %v1958_v35, %v1972_v30  ;;  %v1788_v36 = vcombine.high %v1728_v45, %v1728_v45  ;;  %v1795_v5 = vrot.slane %v1728_v45, %v12624_v13 }
  0xc5   :  { %v1665_v26 = vadd.f32 %v1635_v0, %v1601_v20  ;;  %v17798_v40 = vrot.slane %v12730_v41, 3  ;;  %v11226_v31 = vcombine.high %v1965_v21, %v1979_v12  ;;  %v17799_v44 = vrot.slane %v12608_v6, 3 }
  0xc6   :  { %v3465_v4 = vcombine.low %v1982_v15, %v1965_v21  ;;  %v12923_v3 = vrot.slane %v1980_v39, %v12624_v13  ;;  %v1803_v52 = vcombine.high %v1795_v5, %v1795_v5  ;;  %v12927_v0 = vrot.slane %v3442_v25, %v12624_v13 }
  0xc7   :  { %v745_v33 = vsel %vm740_vm2, %v17798_v40, %v744_v16  ;;  %v747_v18 = vsel %vm740_vm2, %v744_v16, %v17799_v44  ;;  %v1702_v35 = vadd.f32 %v12825_v32, %v1665_v26  ;;  %v3479_v24 = vrot.slane %v1979_v12, %v12624_v13 }
  0xc8   :  { %v834_v14 = vadd.f32 %v745_v33, %v643_v38  ;;  %17800 = vst [vmem:[#allocation14_spill] sm:$0xff] %v12923_v3  ;;  %v835_v49 = vadd.f32 %v747_v18, %v644_v37  ;;  %17801 = vst [vmem:[#allocation15_spill] sm:$0xff] %v12927_v0  ;;  %v3472_v41 = vrot.slane %v3465_v4, %v12624_v13  ;;  %v17804_v30 = vrot.slane %v12734_v50, 4  ;;  %v11724_v33 = vld [vmem:[#allocation2 + $0x140] ss:$8 sps:$4 sm:$0xff]  }
  0xc9   :  { %v12932_v19 = vrot.slane %v1788_v36, %v12624_v13  ;;  %v12935_v6 = vrot.slane %v1795_v5, %v12624_v13  ;;  %v3495_v16 = vrot.slane %v11226_v31, %v12624_v13  ;;  %v1732_v43 = vmax.f32 %v1702_v35, 0.0  ;;  %v11722_v36 = vld [vmem:[#allocation2 + $0x144] ss:$8 sps:$4 sm:$0xff]   ;;  %v11725_v18 = vld [vmem:[#allocation2 + $0x34] ss:$8 sps:$4 sm:$0xff]  }
  0xca   :  { %v936_v38 = vsel %vm931_vm3, %v17804_v30, %v935_v27  ;;  %v3480_v39 = vcombine.low %v3472_v41, %v3479_v24  ;;  %v12942_v45 = vrot.slane %v1803_v52, %v12624_v13  ;;  %v17806_v20 = vrot.slane %v12611_v7, 4  ;;  %7474 = vmatprep.subr.bf16.mxu1 %v11722_v36  ;;  %7403 = vmatprep.subr.bf16.mxu0 %v11725_v18 }
  0xcb   :  { %17802 = vst [vmem:[#allocation16_spill] sm:$0xff] %v12932_v19  ;;  %17803 = vst [vmem:[#allocation17_spill] sm:$0xff] %v12935_v6  ;;  %v1060_v21 = vmul.f32 %v12587_v60, %v12837_v29  ;;  %v1984_v12 = vcombine.high %v1732_v43, %v1732_v43  ;;  %v1991_v15 = vrot.slane %v1732_v43, %v12624_v13  ;;  %v17807_v52 = vrot.slane %v12738_v48, 5  ;;  %v11727_v43 = vld [vmem:[#allocation2 + $0x30] ss:$8 sps:$4 sm:$0xff]  }
  0xcc   :  { %17805 = vst [vmem:[#allocation18_spill] sm:$0xff] %v12942_v45  ;;  %v938_v37 = vsel %vm931_vm3, %v935_v27, %v17806_v20  ;;  %v1025_v25 = vadd.f32 %v936_v38, %v834_v14  ;;  %v1251_v50 = vmul.f32 %v12589_v61, %v12837_v29  ;;  %v3487_v5 = vrot.slane %v3480_v39, %v12624_v13 }
  0xcd   :  { %v1026_v26 = vadd.f32 %v938_v37, %v835_v49  ;;  %v1126_v40 = vrot.slane %v1060_v21, 5  ;;  %v1442_v7 = vmul.f32 %v12591_v62, %v12837_v29  ;;  %v1998_v27 = vrot.slane %v1984_v12, %v12624_v13  ;;  %7475 = vmatpush1.bf16.msra.mxu1 %v11724_v33  ;;  %7404 = vmatpush1.bf16.msra.mxu0 %v11727_v43 }
  0xce   :  { %v1999_v4 = vcombine.high %v1991_v15, %v1991_v15  ;;  %v2007_v31 = vrot.slane %v1991_v15, %v12624_v13  ;;  %v1317_v44 = vrot.slane %v1251_v50, 6  ;;  %v5241_v14 = vsel %vm1122_vm4, %v3487_v5, -inf }
  0xcf   :  { %v1127_v35 = vsel %vm1122_vm4, %v17807_v52, %v1126_v40  ;;  %v17808_v49 = vrot.slane %v12614_v8, 5  ;;  %v1508_v24 = vrot.slane %v1442_v7, 7  ;;  %v5242_v30 = vrot.slane %v5241_v14, 4 }
  0xd0   :  { %v2000_v38 = vcombine.high %v1998_v27, %v1998_v27  ;;  %v2014_v39 = vrot.slane %v1998_v27, %v12624_v13  ;;  %v2021_v20 = vrot.slane %v1999_v4, %v12624_v13  ;;  %v2029_v37 = vcombine.high %v2007_v31, %v2007_v31 }
  0xd1   :  { %v1129_v41 = vsel %vm1122_vm4, %v1126_v40, %v17808_v49  ;;  %v3502_v21 = vrot.slane %v2007_v31, %v12624_v13  ;;  %v1216_v48 = vadd.f32 %v1127_v35, %v1025_v25  ;;  %v5243_v15 = vmax.f32 %v5241_v14, %v5242_v30  ;;  %v12990_v30 = vpop.permute.xlu1 %133 }
  0xd2   :  { %v1217_v12 = vadd.f32 %v1129_v41, %v1026_v26  ;;  %v12968_v8 = vrot.slane %v2000_v38, %v12624_v13  ;;  %v2030_v50 = vcombine.high %v2014_v39, %v2014_v39  ;;  %v2031_v36 = vcombine.high %v2021_v20, %v2021_v20 }
  0xd3   :  { %v3503_v5 = vcombine.low %v3495_v16, %v3502_v21  ;;  %v3511_v40 = vcombine.low %v2021_v20, %v2029_v37  ;;  %v17809_v7 = vrot.slane %v12742_v47, 6  ;;  %v1632_v27 = vmul.f32 %v12596_v63, %v12837_v29 }
  0xd4   :  { %v5244_v4 = vrot.slane %v5243_v15, 2  ;;  %v3525_v25 = vrot.slane %v2031_v36, %v12624_v13  ;;  %v3534_v26 = vcombine.low %v2014_v39, %v12968_v8  ;;  %v17810_v31 = vrot.slane %v12617_v9, 6  ;;  %v11728_v36 = vld [vmem:[#allocation2 + $0x134] ss:$8 sps:$4 sm:$0xff]  }
  0xd5   :  { %v1318_v33 = vsel %vm1313_vm5, %v17809_v7, %v1317_v44  ;;  %v3510_v14 = vrot.slane %v3503_v5, %v12624_v13  ;;  %v3518_v16 = vrot.slane %v3511_v40, %v12624_v13  ;;  %v3548_v49 = vrot.slane %v2030_v50, %v12624_v13  ;;  %7476 = vmatprep.subr.bf16.mxu1 %v11728_v36 }
  0xd6   :  { %v1320_v18 = vsel %vm1313_vm5, %v1317_v44, %v17810_v31  ;;  %v1407_v52 = vadd.f32 %v1318_v33, %v1216_v48  ;;  %v3541_v35 = vrot.slane %v3534_v26, %v12624_v13  ;;  %v17811_v29 = vrot.slane %v12746_v46, 7 }
  0xd7   :  { %v1408_v47 = vadd.f32 %v1320_v18, %v1217_v12  ;;  %v17812_v43 = vrot.slane %v12620_v10, 7  ;;  %v3526_v44 = vcombine.low %v3518_v16, %v3525_v25  ;;  %v5248_v38 = vsel %vm1122_vm4, %v3510_v14, -inf  ;;  %v11730_v25 = vld [vmem:[#allocation2 + $0x130] ss:$8 sps:$4 sm:$0xff]  }
  0xd8   :  { %v1509_v41 = vsel %vm1504_vm6, %v17811_v29, %v1508_v24  ;;  %v3549_v46 = vcombine.low %v3541_v35, %v3548_v49  ;;  %v5249_v48 = vrot.slane %v5248_v38, 4  ;;  %v13001_v50 = vmul.f32 %v12575_v56, %v12990_v30  ;;  %7477 = vmatpush1.bf16.msra.mxu1 %v11730_v25 }
  0xd9   :  { %v1511_v9 = vsel %vm1504_vm6, %v1508_v24, %v17812_v43  ;;  %v1598_v39 = vadd.f32 %v1509_v41, %v1407_v52  ;;  %v3533_v12 = vrot.slane %v3526_v44, %v12624_v13  ;;  %v13003_v5 = vmax.f32 %v5243_v15, %v5244_v4  ;;  %v11731_v15 = vld [vmem:[#allocation2 + $0x24] ss:$8 sps:$4 sm:$0xff]   ;;  %v11733_v52 = vld [vmem:[#allocation2 + $0x20] ss:$8 sps:$4 sm:$0xff]  }
  0xda   :  { %v1599_v20 = vadd.f32 %v1511_v9, %v1408_v47  ;;  %v3556_v7 = vrot.slane %v3549_v46, %v12624_v13  ;;  %v5250_v33 = vmax.f32 %v5248_v38, %v5249_v48  ;;  %v13013_v31 = vmul.f32 %v12599_v1, %v12990_v30  ;;  %7405 = vmatprep.subr.bf16.mxu0 %v11731_v15 }
  0xdb   :  { %v1662_v10 = vadd.f32 %v1632_v27, %v1598_v39  ;;  %17813 = vst [vmem:[#allocation19_spill] sm:$0xff] %v13003_v5  ;;  %v5255_v26 = vsel %vm1122_vm4, %v3533_v12, -inf  ;;  %v13018_v16 = vmul.f32 %v12579_v57, %v12990_v30  ;;  %v13023_v29 = vmul.f32 %v12583_v58, %v12990_v30  ;;  %7406 = vmatpush1.bf16.msra.mxu0 %v11733_v52 }
  0xdc   :  { %v1663_v24 = vadd.f32 %v12630_v17, %v1599_v20  ;;  %v5251_v4 = vrot.slane %v5250_v33, 2  ;;  %v5256_v18 = vrot.slane %v5255_v26, 4  ;;  %v5262_v14 = vsel %vm1122_vm4, %v3556_v7, -inf }
  0xdd   :  { %v1699_v27 = vadd.f32 %v12825_v32, %v1662_v10  ;;  %v5263_v9 = vrot.slane %v5262_v14, 4  ;;  %v13029_v44 = vmul.f32 %v12585_v59, %v12990_v30  ;;  %v13036_v46 = vmul.f32 %v12587_v60, %v12990_v30 }
  0xde   :  { %v1700_v17 = vadd.f32 %v12825_v32, %v1663_v24  ;;  %v5252_v41 = vmax.f32 %v5250_v33, %v5251_v4  ;;  %v13025_v43 = vmax.f32 %v5255_v26, %v5256_v18  ;;  %v13044_v24 = vmul.f32 %v12589_v61, %v12990_v30 }
  0xdf   :  { %v1729_v47 = vmax.f32 %v1699_v27, 0.0  ;;  %v17825_v10 = vrot.slane %v12795_v23, 1  ;;  %v17826_v53 = vrot.slane %v13001_v50, 1 }
  0xe0   :  { %v1730_v35 = vmax.f32 %v1700_v17, 0.0  ;;  %17814 = vst [vmem:[#allocation20_spill] sm:$0xff] %v13025_v43  ;;  %v5253_v48 = vrot.slane %v5252_v41, 1  ;;  %v13054_v17 = vmax.f32 %v5262_v14, %v5263_v9 }
  0xe1   :  { %v1837_v38 = vcombine.high %v1729_v47, %v1729_v47  ;;  %v13032_v39 = vrot.slane %v1729_v47, %v12624_v13 }
  0xe2   :  { %v1886_v20 = vcombine.high %v1730_v35, %v1730_v35  ;;  %v13039_v12 = vrot.slane %v1730_v35, %v12624_v13  ;;  %v13051_v26 = vmax.f32 %v5252_v41, %v5253_v48  ;;  %17818 = vst [vmem:[#allocation24_spill] sm:$0xff] %v13054_v17  ;;  %v129_v35 = vpop.permute.xlu0 %128 }
  0xe3   :  { %17815 = vst [vmem:[#allocation21_spill] sm:$0xff] %v13032_v39  ;;  %v1851_v36 = vrot.slane %v1837_v38, %v12624_v13  ;;  %v1852_v7 = vcombine.high %v13032_v39, %v13032_v39  ;;  %v300_v27 = vmul.f32 %v12575_v56, %v129_v35  ;;  %v873_v18 = vmul.f32 %v12585_v59, %v129_v35 }
  0xe4   :  { %17816 = vst [vmem:[#allocation22_spill] sm:$0xff] %v13039_v12  ;;  %v1900_v33 = vrot.slane %v1886_v20, %v12624_v13  ;;  %17817 = vst [vmem:[#allocation23_spill] sm:$0xff] %v13051_v26  ;;  %v13065_v41 = vrot.slane %v13039_v12, %v12624_v13  ;;  %v491_v20 = vmul.f32 %v12579_v57, %v129_v35 }
  0xe5   :  { %v1853_v4 = vcombine.high %v1851_v36, %v1851_v36  ;;  %v13061_v38 = vrot.slane %v1851_v36, %v12624_v13  ;;  %v13074_v48 = vrot.slane %v1852_v7, %v12624_v13  ;;  %v13079_v36 = vmul.f32 %v12591_v62, %v12990_v30 }
  0xe6   :  { %v1902_v52 = vcombine.high %v1900_v33, %v1900_v33  ;;  %17820 = vst [vmem:[#allocation26_spill] sm:$0xff] %v13065_v41  ;;  %v13068_v14 = vrot.slane %v1900_v33, %v12624_v13  ;;  %v13085_v33 = vmul.f32 %v12596_v63, %v12990_v30  ;;  %v370_v9 = vrot.slane %v300_v27, 1 }
  0xe7   :  { %17819 = vst [vmem:[#allocation25_spill] sm:$0xff] %v13061_v38  ;;  %17822 = vst [vmem:[#allocation28_spill] sm:$0xff] %v13074_v48  ;;  %v13090_v7 = vrot.slane %v1853_v4, %v12624_v13  ;;  %v561_v47 = vrot.slane %v491_v20, 2  ;;  %v1064_v15 = vmul.f32 %v12587_v60, %v129_v35  ;;  %v256_v28 = vmul.f32 %v12599_v1, %v129_v35 }
  0xe8   :  { %17821 = vst [vmem:[#allocation27_spill] sm:$0xff] %v13068_v14  ;;  %v1930_v21 = vrot.slane %v1902_v52, %v12624_v13  ;;  %v1932_v40 = vcombine.high %v13068_v14, %v13068_v14  ;;  %v682_v52 = vmul.f32 %v12583_v58, %v129_v35  ;;  %v371_v49 = vsel %vm358_vm0, %v17825_v10, %v370_v9 }
  0xe9   :  { %17823 = vst [vmem:[#allocation29_spill] sm:$0xff] %v13090_v7  ;;  %v1255_v27 = vmul.f32 %v12589_v61, %v129_v35  ;;  %v456_v25 = vadd.f32 %v371_v49, %v12843_v11  ;;  %v17828_v10 = vrot.slane %v12799_v54, 2  ;;  %v149_v11 = vpop.permute.xlu1 %148  ;;  %v17831_v49 = vrot.slane %v13023_v29, 3 }
  0xea   :  { %v1934_v37 = vcombine.high %v1930_v21, %v1930_v21  ;;  %v13094_v2 = vcombine.low %v1930_v21, %v1932_v40  ;;  %v752_v4 = vrot.slane %v682_v52, 3  ;;  %v373_v21 = vsel %vm358_vm0, %v370_v9, %v17826_v53 }
  0xeb   :  { %v943_v40 = vrot.slane %v873_v18, 4  ;;  %v457_v52 = vadd.f32 %v373_v21, %v256_v28  ;;  %v562_v6 = vsel %vm549_vm1, %v17828_v10, %v561_v47  ;;  %v17829_v53 = vrot.slane %v13018_v16, 2 }
  0xec   :  { %17824 = vst [vmem:[#allocation30_spill] sm:$0xff] %v13094_v2  ;;  %v13111_v30 = vrot.slane %v1934_v37, %v12624_v13  ;;  %v1134_v9 = vrot.slane %v1064_v15, 5  ;;  %v647_v26 = vadd.f32 %v562_v6, %v456_v25  ;;  %v17830_v37 = vrot.slane %v12803_v34, 3 }
  0xed   :  { %v564_v18 = vsel %vm549_vm1, %v561_v47, %v17829_v53  ;;  %v1446_v28 = vmul.f32 %v12591_v62, %v129_v35  ;;  %v755_v54 = vsel %vm740_vm2, %v752_v4, %v17831_v49  ;;  %v17832_v21 = vrot.slane %v12808_v42, 4 }
  0xee   :  { %17827 = vst [vmem:[#allocation31_spill] sm:$0xff] %v13111_v30  ;;  %v648_v20 = vadd.f32 %v564_v18, %v457_v52  ;;  %v753_v17 = vsel %vm740_vm2, %v17830_v37, %v752_v4  ;;  %v17833_v47 = vrot.slane %v13029_v44, 4  ;;  %v1325_v25 = vrot.slane %v1255_v27, 6 }
  0xef   :  { %v944_v10 = vsel %vm931_vm3, %v17832_v21, %v943_v40  ;;  %v838_v15 = vadd.f32 %v753_v17, %v647_v26  ;;  %v17834_v52 = vrot.slane %v12812_v51, 5  ;;  %v17835_v18 = vrot.slane %v13036_v46, 5 }
  0xf0   :  { %v946_v6 = vsel %vm931_vm3, %v943_v40, %v17833_v47  ;;  %v839_v34 = vadd.f32 %v755_v54, %v648_v20  ;;  %v1516_v4 = vrot.slane %v1446_v28, 7  ;;  %v13142_v42 = vmul.f32 %v12575_v56, %v149_v11 }
  0xf1   :  { %v1135_v53 = vsel %vm1122_vm4, %v17834_v52, %v1134_v9  ;;  %v1137_v37 = vsel %vm1122_vm4, %v1134_v9, %v17835_v18  ;;  %v13145_v49 = vmul.f32 %v12579_v57, %v149_v11  ;;  %v13148_v40 = vmul.f32 %v12583_v58, %v149_v11  ;;  %v11739_v18 = vld [vmem:[#allocation2 + $0x10] ss:$8 sps:$4 sm:$0xff]  }
  0xf2   :  { %v1029_v26 = vadd.f32 %v944_v10, %v838_v15  ;;  %v1030_v17 = vadd.f32 %v946_v6, %v839_v34  ;;  %v1636_v51 = vmul.f32 %v12596_v63, %v129_v35  ;;  %v13152_v27 = vmul.f32 %v12585_v59, %v149_v11  ;;  %v13166_v10 = vpop.permute.xlu0 %143 }
  0xf3   :  { %v17836_v20 = vrot.slane %v12816_v55, 6  ;;  %v17837_v28 = vrot.slane %v13044_v24, 6  ;;  %v13161_v21 = vmul.f32 %v12599_v1, %v149_v11  ;;  %v13164_v47 = vmul.f32 %v12587_v60, %v149_v11 }
  0xf4   :  { %v1220_v63 = vadd.f32 %v1135_v53, %v1029_v26  ;;  %v1221_v35 = vadd.f32 %v1137_v37, %v1030_v17  ;;  %v17838_v6 = vrot.slane %v12854_v22, 7  ;;  %v17839_v15 = vrot.slane %v13079_v36, 7  ;;  %v11736_v26 = vld [vmem:[#allocation2 + $0x120] ss:$8 sps:$4 sm:$0xff]  }
  0xf5   :  { %v1326_v9 = vsel %vm1313_vm5, %v17836_v20, %v1325_v25  ;;  %v1328_v54 = vsel %vm1313_vm5, %v1325_v25, %v17837_v28  ;;  %v11734_v28 = vld [vmem:[#allocation2 + $0x124] ss:$8 sps:$4 sm:$0xff]   ;;  %v13179_v37 = vmul.f32 %v12589_v61, %v149_v11  ;;  %v13183_v22 = vmul.f32 %v12575_v56, %v13166_v10  ;;  %v13238_v25 = vpop.permute.xlu1 %153 }
  0xf6   :  { %v1517_v55 = vsel %vm1504_vm6, %v17838_v6, %v1516_v4  ;;  %v1519_v34 = vsel %vm1504_vm6, %v1516_v4, %v17839_v15  ;;  %v1411_v23 = vadd.f32 %v1326_v9, %v1220_v63  ;;  %v1412_v53 = vadd.f32 %v1328_v54, %v1221_v35  ;;  %7478 = vmatprep.subr.bf16.mxu1 %v11734_v28  ;;  %v11737_v54 = vld [vmem:[#allocation2 + $0x14] ss:$8 sps:$4 sm:$0xff]  }
  0xf7   :  { %v13186_v4 = vmul.f32 %v12591_v62, %v149_v11  ;;  %v259_v17 = vmul.f32 %v12599_v1, %v13166_v10  ;;  %v13192_v6 = vmul.f32 %v12579_v57, %v13166_v10  ;;  %v13196_v9 = vmul.f32 %v12583_v58, %v13166_v10  ;;  %7479 = vmatpush1.bf16.msra.mxu1 %v11736_v26 }
  0xf8   :  { %v1602_v63 = vadd.f32 %v1517_v55, %v1411_v23  ;;  %v1603_v35 = vadd.f32 %v1519_v34, %v1412_v53  ;;  %v17574_v15 = vrot.slane %v13183_v22, 1  ;;  %v13201_v20 = vmul.f32 %v12585_v59, %v13166_v10  ;;  %7407 = vmatprep.subr.bf16.mxu0 %v11737_v54  ;;  %v13225_v54 = vld [vmem:[%s17526_s1 + $0x8] ss:$0 sm:$0xff] }
  0xf9   :  { %v13207_v43 = vmul.f32 %v12587_v60, %v13166_v10  ;;  %v13211_v23 = vmul.f32 %v12589_v61, %v13166_v10  ;;  %v17840_v28 = vrot.slane %v13142_v42, 1  ;;  %7408 = vmatpush1.bf16.msra.mxu0 %v11739_v18  ;;  %v17841_v18 = vrot.slane %v13145_v49, 2 }
  0xfa   :  { %v1666_v55 = vadd.f32 %v1636_v51, %v1602_v63  ;;  %v1667_v34 = vadd.f32 %v13085_v33, %v1603_v35  ;;  %v13228_v33 = vmul.f32 %v13225_v54, %v149_v11  ;;  %v13259_v5 = vmul.f32 %v12575_v56, %v13238_v25 }
  0xfb   :  { %v379_v53 = vsel %vm358_vm0, %v17574_v15, %v17840_v28  ;;  %v17842_v15 = vrot.slane %v13192_v6, 2  ;;  %v17845_v28 = vrot.slane %v13196_v9, 3  ;;  %v17852_v11 = vrot.slane %v13211_v23, 6 }
  0xfc   :  { %v460_v51 = vadd.f32 %v379_v53, %v259_v17  ;;  %v1703_v63 = vadd.f32 %v12825_v32, %v1666_v55  ;;  %v1704_v35 = vadd.f32 %v12825_v32, %v1667_v34  ;;  %v13244_v17 = vmul.f32 %v12591_v62, %v13166_v10  ;;  %17848 = vst [vmem:[#allocation33_spill] sm:$0xff] %v13259_v5 }
  0xfd   :  { %v570_v52 = vsel %vm549_vm1, %v17842_v15, %v17841_v18  ;;  %v17844_v53 = vrot.slane %v13148_v40, 3  ;;  %v17846_v15 = vrot.slane %v13152_v27, 4  ;;  %v13279_v14 = vmul.f32 %v13225_v54, %v13166_v10 }
  0xfe   :  { %v651_v26 = vadd.f32 %v570_v52, %v460_v51  ;;  %17843 = vst [vmem:[#allocation32_spill] sm:$0xff] %v13244_v17  ;;  %v1733_v55 = vmax.f32 %v1703_v63, 0.0  ;;  %v1734_v34 = vmax.f32 %v1704_v35, 0.0  ;;  %v17847_v52 = vrot.slane %v13201_v20, 4 }
  0xff   :  { %v761_v3 = vsel %vm740_vm2, %v17845_v28, %v17844_v53  ;;  %v13263_v63 = vmul.f32 %v12579_v57, %v13238_v25  ;;  %17853 = vst [vmem:[#allocation34_spill] sm:$0xff] %v13279_v14  ;;  %v17856_v10 = vrot.slane %v13244_v17, 7 }
 0x100   :  { %v952_v51 = vsel %vm931_vm3, %v17847_v52, %v17846_v15  ;;  %v842_v18 = vadd.f32 %v761_v3, %v651_v26  ;;  %v2033_v35 = vcombine.high %v1733_v55, %v1733_v55  ;;  %v2040_v28 = vrot.slane %v1733_v55, %v12624_v13 }
 0x101   :  { %v2082_v53 = vcombine.high %v1734_v34, %v1734_v34  ;;  %v2089_v0 = vrot.slane %v1734_v34, %v12624_v13  ;;  %v17849_v15 = vrot.slane %v13164_v47, 5  ;;  %v17850_v3 = vrot.slane %v13207_v43, 5 }
 0x102   :  { %v1033_v2 = vadd.f32 %v952_v51, %v842_v18  ;;  %v17851_v52 = vrot.slane %v13179_v37, 6  ;;  %v2047_v55 = vrot.slane %v2033_v35, %v12624_v13  ;;  %v2048_v34 = vcombine.high %v2040_v28, %v2040_v28 }
 0x103   :  { %v1143_v26 = vsel %vm1122_vm4, %v17850_v3, %v17849_v15  ;;  %v13284_v51 = vmul.f32 %v12599_v1, %v13238_v25  ;;  %v2056_v15 = vrot.slane %v2040_v28, %v12624_v13  ;;  %v13289_v3 = vrot.slane %v2082_v53, %v12624_v13 }
 0x104   :  { %v1334_v30 = vsel %vm1313_vm5, %v17852_v11, %v17851_v52  ;;  %v2097_v41 = vcombine.high %v2089_v0, %v2089_v0  ;;  %v17855_v11 = vrot.slane %v13186_v4, 7  ;;  %v2049_v35 = vcombine.high %v2047_v55, %v2047_v55 }
 0x105   :  { %17854 = vst [vmem:[#allocation35_spill] sm:$0xff] %v13284_v51  ;;  %v2063_v7 = vrot.slane %v2047_v55, %v12624_v13  ;;  %v2070_v12 = vrot.slane %v2048_v34, %v12624_v13  ;;  %v2105_v18 = vrot.slane %v2089_v0, %v12624_v13  ;;  %v17857_v53 = vcombine.high %v12968_v8, %v12968_v8 }
 0x106   :  { %v1525_v52 = vsel %vm1504_vm6, %v17856_v10, %v17855_v11  ;;  %v2119_v28 = vrot.slane %v2097_v41, %v12624_v13  ;;  %v1224_v39 = vadd.f32 %v1143_v26, %v1033_v2  ;;  %v2077_v45 = vrot.slane %v2049_v35, %v12624_v13 }
 0x107   :  { %v3557_v38 = vcombine.low %v17857_v53, %v2056_v15  ;;  %v2079_v19 = vcombine.high %v2063_v7, %v2063_v7  ;;  %v11227_v11 = vcombine.high %v2056_v15, %v2070_v12  ;;  %v17858_v10 = vrot.slane %v13259_v5, 1 }
 0x108   :  { %v17859_v55 = vrot.slane %v13142_v42, 1  ;;  %v13312_v0 = vrot.slane %v13289_v3, %v12624_v13  ;;  %v2129_v41 = vcombine.high %v2119_v28, %v2119_v28  ;;  %v3571_v8 = vrot.slane %v2070_v12, %v12624_v13 }
 0x109   :  { %v3564_v48 = vrot.slane %v3557_v38, %v12624_v13  ;;  %v2081_v2 = vcombine.high %v2077_v45, %v2077_v45  ;;  %v3587_v26 = vrot.slane %v11227_v11, %v12624_v13  ;;  %v3594_v15 = vrot.slane %v2063_v7, %v12624_v13 }
 0x10a   :  { %v381_v34 = vsel %vm358_vm0, %v17859_v55, %v17858_v10  ;;  %v3603_v35 = vcombine.low %v2077_v45, %v2079_v19  ;;  %v2098_v42 = vcombine.high %v13289_v3, %v13289_v3  ;;  %v2127_v53 = vcombine.high %v2105_v18, %v2105_v18 }
 0x10b   :  { %v3572_v10 = vcombine.low %v3564_v48, %v3571_v8  ;;  %v1415_v55 = vadd.f32 %v1334_v30, %v1224_v39  ;;  %v3595_v51 = vcombine.low %v3587_v26, %v3594_v15  ;;  %v3626_v5 = vcombine.low %v2105_v18, %v2119_v28 }
 0x10c   :  { %v13321_v14 = vcombine.low %v2129_v41, %v13312_v0  ;;  %v461_v38 = vadd.f32 %v381_v34, %v13161_v21  ;;  %v3610_v11 = vrot.slane %v3603_v35, %v12624_v13  ;;  %v17861_v19 = vrot.slane %v13263_v63, 2 }
 0x10d   :  { %v3579_v12 = vrot.slane %v3572_v10, %v12624_v13  ;;  %v1606_v17 = vadd.f32 %v1525_v52, %v1415_v55  ;;  %v17862_v45 = vrot.slane %v13145_v49, 2  ;;  %v3602_v39 = vrot.slane %v3595_v51, %v12624_v13  ;;  %v11740_v51 = vld [vmem:[#allocation2 + $0x114] ss:$8 sps:$4 sm:$0xff]  }
 0x10e   :  { %17860 = vst [vmem:[#allocation36_spill] sm:$0xff] %v13321_v14  ;;  %v3617_v48 = vrot.slane %v2081_v2, %v12624_v13  ;;  %v13335_v18 = vmul.f32 %v12583_v58, %v13238_v25  ;;  %v13341_v52 = vmul.f32 %v12585_v59, %v13238_v25  ;;  %v13345_v49 = vmul.f32 %v12587_v60, %v13238_v25  ;;  %v11761_v14 = vld [vmem:[#allocation2 + $0xd4] ss:$8 sps:$4 sm:$0xff]  }
 0x10f   :  { %v572_v7 = vsel %vm549_vm1, %v17862_v45, %v17861_v19  ;;  %v5269_v21 = vsel %vm1122_vm4, %v3579_v12, -inf  ;;  %v1670_v3 = vadd.f32 %v13228_v33, %v1606_v17  ;;  %v13348_v28 = vrot.slane %v3626_v5, %v12624_v13  ;;  %v11742_v17 = vld [vmem:[#allocation2 + $0x110] ss:$8 sps:$4 sm:$0xff]   ;;  %7480 = vmatprep.subr.bf16.mxu1 %v11740_v51  ;;  %v11743_v5 = vld [vmem:[#allocation2 + $0x4] ss:$8 sps:$4 sm:$0xff]  }
 0x110   :  { %v652_v30 = vadd.f32 %v572_v7, %v461_v38  ;;  %v13351_v34 = vrot.slane %v2127_v53, %v12624_v13  ;;  %v17597_v41 = vrot.slane %v13335_v18, 3  ;;  %v13356_v33 = vmul.f32 %v12589_v61, %v13238_v25  ;;  %7481 = vmatpush1.bf16.msra.mxu1 %v11742_v17  ;;  %v11745_v12 = vld [vmem:[#allocation2] ss:$8 sps:$4 sm:$0xff]   ;;  %7409 = vmatprep.subr.bf16.mxu0 %v11743_v5 }
 0x111   :  { %17863 = vst [vmem:[#allocation37_spill] sm:$0xff] %v13348_v28  ;;  %v5270_v8 = vrot.slane %v5269_v21, 4  ;;  %v13359_v2 = vsel %vm1122_vm4, %v3602_v39, -inf  ;;  %v1707_v26 = vadd.f32 %v12825_v32, %v1670_v3  ;;  %v17596_v15 = vrot.slane %v13341_v52, 4  ;;  %7410 = vmatpush1.bf16.msra.mxu0 %v11745_v12 }
 0x112   :  { %17864 = vst [vmem:[#allocation38_spill] sm:$0xff] %v13351_v34  ;;  %17865 = vst [vmem:[#allocation39_spill] sm:$0xff] %v13359_v2  ;;  %v17866_v35 = vrot.slane %v13148_v40, 3  ;;  %v17595_v10 = vrot.slane %v13345_v49, 5  ;;  %v17594_v55 = vrot.slane %v13356_v33, 6  ;;  %v13372_v38 = vmul.f32 %v12591_v62, %v13238_v25  ;;  %v13378_v40 = vpop.permute.xlu0 %138 }
 0x113   :  { %v13374_v19 = vcombine.low %v3610_v11, %v3617_v48  ;;  %v1737_v7 = vmax.f32 %v1707_v26, 0.0  ;;  %v17868_v51 = vrot.slane %v13152_v27, 4  ;;  %v13388_v11 = vrot.slane %v2098_v42, %v12624_v13 }
 0x114   :  { %v763_v53 = vsel %vm740_vm2, %v17866_v35, %v17597_v41  ;;  %v17593_v17 = vrot.slane %v13372_v38, 7  ;;  %v13390_v48 = vmax.f32 %v5269_v21, %v5270_v8  ;;  %v1641_v21 = vmul.f32 %v13225_v54, %v13238_v25 }
 0x115   :  { %17867 = vst [vmem:[#allocation40_spill] sm:$0xff] %v13374_v19  ;;  %v843_v39 = vadd.f32 %v763_v53, %v652_v30  ;;  %v954_v35 = vsel %vm931_vm3, %v17868_v51, %v17596_v15  ;;  %17869 = vst [vmem:[#allocation41_spill] sm:$0xff] %v13388_v11  ;;  %v2229_v30 = vcombine.high %v1737_v7, %v1737_v7  ;;  %v17871_v53 = vrot.slane %v13164_v47, 5 }
 0x116   :  { %17870 = vst [vmem:[#allocation42_spill] sm:$0xff] %v13390_v48  ;;  %v2236_v26 = vrot.slane %v1737_v7, %v12624_v13  ;;  %v17872_v51 = vrot.slane %v13179_v37, 6  ;;  %v302_v8 = vmul.f32 %v12575_v56, %v13378_v40  ;;  %v258_v47 = vmul.f32 %v12599_v1, %v13378_v40 }
 0x117   :  { %v1034_v5 = vadd.f32 %v954_v35, %v843_v39  ;;  %v1145_v27 = vsel %vm1122_vm4, %v17871_v53, %v17595_v10  ;;  %v2243_v12 = vrot.slane %v2229_v30, %v12624_v13  ;;  %v17873_v35 = vrot.slane %v13186_v4, 7 }
 0x118   :  { %v1336_v42 = vsel %vm1313_vm5, %v17872_v51, %v17594_v55  ;;  %v2244_v7 = vcombine.high %v2236_v26, %v2236_v26  ;;  %v11228_v53 = vcombine.high %v13312_v0, %v13388_v11  ;;  %v374_v25 = vrot.slane %v302_v8, 1 }
 0x119   :  { %v1225_v39 = vadd.f32 %v1145_v27, %v1034_v5  ;;  %v1527_v37 = vsel %vm1504_vm6, %v17873_v35, %v17593_v17  ;;  %v493_v51 = vmul.f32 %v12579_v57, %v13378_v40  ;;  %v2245_v45 = vcombine.high %v2243_v12, %v2243_v12 }
 0x11a   :  { %v2252_v30 = vrot.slane %v2236_v26, %v12624_v13  ;;  %v2266_v5 = vrot.slane %v2244_v7, %v12624_v13  ;;  %v684_v27 = vmul.f32 %v12583_v58, %v13378_v40  ;;  %v17874_v4 = vrot.slane %v13001_v50, 1 }
 0x11b   :  { %v1416_v3 = vadd.f32 %v1336_v42, %v1225_v39  ;;  %v17875_v17 = vrot.slane %v13183_v22, 1  ;;  %v565_v8 = vrot.slane %v493_v51, 2  ;;  %v2259_v55 = vrot.slane %v2243_v12, %v12624_v13 }
 0x11c   :  { %v375_v35 = vsel %vm358_vm0, %v17874_v4, %v374_v25  ;;  %v2276_v10 = vcombine.high %v2266_v5, %v2266_v5  ;;  %v2273_v26 = vrot.slane %v2245_v45, %v12624_v13  ;;  %v13434_v42 = vrot.slane %v11228_v53, %v12624_v13 }
 0x11d   :  { %v377_v0 = vsel %vm358_vm0, %v374_v25, %v17875_v17  ;;  %v1607_v15 = vadd.f32 %v1527_v37, %v1416_v3  ;;  %v458_v50 = vadd.f32 %v375_v35, %v13013_v31  ;;  %v2274_v4 = vcombine.high %v2252_v30, %v2252_v30 }
 0x11e   :  { %v459_v39 = vadd.f32 %v377_v0, %v258_v47  ;;  %v3810_v22 = vcombine.low %v2252_v30, %v2266_v5  ;;  %v3833_v41 = vcombine.low %v2276_v10, %v2259_v55  ;;  %v17876_v17 = vrot.slane %v13018_v16, 2 }
 0x11f   :  { %v1671_v25 = vadd.f32 %v1641_v21, %v1607_v15  ;;  %v17877_v45 = vrot.slane %v13192_v6, 2  ;;  %v756_v3 = vrot.slane %v684_v27, 3  ;;  %v3847_v53 = vrot.slane %v2273_v26, %v12624_v13 }
 0x120   :  { %v566_v12 = vsel %vm549_vm1, %v17876_v17, %v565_v8  ;;  %v3840_v37 = vrot.slane %v3833_v41, %v12624_v13  ;;  %v11230_v31 = vcombine.high %v2259_v55, %v2273_v26  ;;  %v17878_v10 = vrot.slane %v13023_v29, 3 }
 0x121   :  { %v568_v51 = vsel %vm549_vm1, %v565_v8, %v17877_v45  ;;  %v649_v7 = vadd.f32 %v566_v12, %v458_v50  ;;  %v1708_v30 = vadd.f32 %v12825_v32, %v1671_v25  ;;  %v17879_v15 = vrot.slane %v13196_v9, 3 }
 0x122   :  { %v650_v47 = vadd.f32 %v568_v51, %v459_v39  ;;  %v757_v16 = vsel %vm740_vm2, %v17878_v10, %v756_v3  ;;  %v875_v21 = vmul.f32 %v12585_v59, %v13378_v40  ;;  %v3848_v5 = vcombine.low %v3840_v37, %v3847_v53 }
 0x123   :  { %v759_v6 = vsel %vm740_vm2, %v756_v3, %v17879_v15  ;;  %v840_v27 = vadd.f32 %v757_v16, %v649_v7  ;;  %v1066_v55 = vmul.f32 %v12587_v60, %v13378_v40  ;;  %v13457_v35 = vrot.slane %v3810_v22, %v12624_v13 }
 0x124   :  { %v841_v41 = vadd.f32 %v759_v6, %v650_v47  ;;  %v13460_v32 = vrot.slane %v2274_v4, %v12624_v13  ;;  %v1738_v29 = vmax.f32 %v1708_v30, 0.0  ;;  %v947_v0 = vrot.slane %v875_v21, 4 }
 0x125   :  { %17880 = vst [vmem:[#allocation43_spill] sm:$0xff] %v13457_v35  ;;  %v3855_v9 = vrot.slane %v3848_v5, %v12624_v13  ;;  %v3863_v8 = vrot.slane %v11230_v31, %v12624_v13  ;;  %v1138_v26 = vrot.slane %v1066_v55, 5  ;;  %v1257_v7 = vmul.f32 %v12589_v61, %v13378_v40 }
 0x126   :  { %17881 = vst [vmem:[#allocation44_spill] sm:$0xff] %v13460_v32  ;;  %v2278_v50 = vcombine.high %v1738_v29, %v1738_v29  ;;  %v2285_v39 = vrot.slane %v1738_v29, %v12624_v13  ;;  %v17882_v17 = vrot.slane %v13029_v44, 4  ;;  %v17883_v4 = vrot.slane %v13201_v20, 4 }
 0x127   :  { %v5353_v25 = vsel %vm1122_vm4, %v3855_v9, -inf  ;;  %v1448_v3 = vmul.f32 %v12591_v62, %v13378_v40  ;;  %v17884_v44 = vrot.slane %v13036_v46, 5  ;;  %v17885_v20 = vrot.slane %v13207_v43, 5 }
 0x128   :  { %v948_v22 = vsel %vm931_vm3, %v17882_v17, %v947_v0  ;;  %v950_v12 = vsel %vm931_vm3, %v947_v0, %v17883_v4  ;;  %v2292_v37 = vrot.slane %v2278_v50, %v12624_v13  ;;  %v2293_v53 = vcombine.high %v2285_v39, %v2285_v39 }
 0x129   :  { %v1031_v45 = vadd.f32 %v948_v22, %v840_v27  ;;  %v1032_v51 = vadd.f32 %v950_v12, %v841_v41  ;;  %v2301_v31 = vrot.slane %v2285_v39, %v12624_v13  ;;  %v1139_v47 = vsel %vm1122_vm4, %v17884_v44, %v1138_v26 }
 0x12a   :  { %v5354_v30 = vrot.slane %v5353_v25, 4  ;;  %v1141_v10 = vsel %vm1122_vm4, %v1138_v26, %v17885_v20  ;;  %v1329_v15 = vrot.slane %v1257_v7, 6  ;;  %v2294_v6 = vcombine.high %v2292_v37, %v2292_v37 }
 0x12b   :  { %v1222_v16 = vadd.f32 %v1139_v47, %v1031_v45  ;;  %v2308_v21 = vrot.slane %v2292_v37, %v12624_v13  ;;  %v2315_v5 = vrot.slane %v2293_v53, %v12624_v13  ;;  %v2323_v27 = vcombine.high %v2301_v31, %v2301_v31  ;;  %v17890_v47 = vld [vmem:[#allocation32_spill] sm:$0xff] }
 0x12c   :  { %v3870_v41 = vrot.slane %v2301_v31, %v12624_v13  ;;  %v1223_v55 = vadd.f32 %v1141_v10, %v1032_v51  ;;  %v17886_v46 = vrot.slane %v13044_v24, 6  ;;  %v1520_v0 = vrot.slane %v1448_v3, 7  ;;  %v13503_v3 = vpop.permute.xlu1 %163 }
 0x12d   :  { %v13491_v43 = vrot.slane %v2294_v6, %v12624_v13  ;;  %v2324_v9 = vcombine.high %v2308_v21, %v2308_v21  ;;  %v2325_v26 = vcombine.high %v2315_v5, %v2315_v5  ;;  %v3879_v7 = vcombine.low %v2315_v5, %v2323_v27 }
 0x12e   :  { %v1330_v29 = vsel %vm1313_vm5, %v17886_v46, %v1329_v15  ;;  %v3871_v50 = vcombine.low %v3863_v8, %v3870_v41  ;;  %v13493_v39 = vmax.f32 %v5353_v25, %v5354_v30  ;;  %v1638_v22 = vmul.f32 %v13225_v54, %v13378_v40  ;;  %v17894_v46 = vld [vmem:[#allocation34_spill] sm:$0xff] }
 0x12f   :  { %v1413_v17 = vadd.f32 %v1330_v29, %v1222_v16  ;;  %v3886_v4 = vrot.slane %v3879_v7, %v12624_v13  ;;  %v3893_v24 = vrot.slane %v2325_v26, %v12624_v13  ;;  %v3902_v12 = vcombine.low %v2308_v21, %v13491_v43 }
 0x130   :  { %17887 = vst [vmem:[#allocation45_spill] sm:$0xff] %v13493_v39  ;;  %v17888_v45 = vrot.slane %v13211_v23, 6  ;;  %v3878_v8 = vrot.slane %v3871_v50, %v12624_v13  ;;  %v3916_v25 = vrot.slane %v2324_v9, %v12624_v13  ;;  %v17889_v53 = vrot.slane %v13079_v36, 7  ;;  %v13537_v50 = vld [vmem:[%s17527_s2] ss:$0 sm:$0xff] }
 0x131   :  { %v3894_v31 = vcombine.low %v3886_v4, %v3893_v24  ;;  %v3909_v44 = vrot.slane %v3902_v12, %v12624_v13  ;;  %v17891_v30 = vrot.slane %v17890_v47, 7  ;;  %v13521_v36 = vmul.f32 %v12579_v57, %v13503_v3 }
 0x132   :  { %v1332_v51 = vsel %vm1313_vm5, %v1329_v15, %v17888_v45  ;;  %v1521_v40 = vsel %vm1504_vm6, %v17889_v53, %v1520_v0  ;;  %v5360_v10 = vsel %vm1122_vm4, %v3878_v8, -inf  ;;  %v13517_v15 = vmul.f32 %v12575_v56, %v13503_v3 }
 0x133   :  { %v1414_v37 = vadd.f32 %v1332_v51, %v1223_v55  ;;  %v1523_v23 = vsel %vm1504_vm6, %v1520_v0, %v17891_v30  ;;  %v1604_v20 = vadd.f32 %v1521_v40, %v1413_v17  ;;  %17893 = vst [vmem:[#allocation46_spill] sm:$0xff] %v13521_v36  ;;  %v3901_v6 = vrot.slane %v3894_v31, %v12624_v13  ;;  %v11748_v51 = vld [vmem:[#allocation2 + $0x100] ss:$8 sps:$4 sm:$0xff]   ;;  %v11749_v40 = vld [vmem:[#allocation2 + $0xf4] ss:$8 sps:$4 sm:$0xff]  }
 0x134   :  { %17892 = vst [vmem:[#allocation32_spill] sm:$0xff] %v13517_v15  ;;  %v3917_v21 = vcombine.low %v3909_v44, %v3916_v25  ;;  %v5361_v5 = vrot.slane %v5360_v10, 4  ;;  %v13530_v0 = vmul.f32 %v12599_v1, %v13503_v3  ;;  %v13544_v45 = vmul.f32 %v12583_v58, %v13503_v3  ;;  %7411 = vmatprep.subr.bf16.mxu0 %v11749_v40 }
 0x135   :  { %v1605_v16 = vadd.f32 %v1523_v23, %v1414_v37  ;;  %v1668_v27 = vadd.f32 %v1638_v22, %v1604_v20  ;;  %v5367_v7 = vsel %vm1122_vm4, %v3901_v6, -inf  ;;  %v11746_v22 = vld [vmem:[#allocation2 + $0x104] ss:$8 sps:$4 sm:$0xff]   ;;  %v13550_v30 = vmul.f32 %v12585_v59, %v13503_v3  ;;  %v11751_v23 = vld [vmem:[#allocation2 + $0xf0] ss:$8 sps:$4 sm:$0xff]  }
 0x136   :  { %17895 = vst [vmem:[#allocation34_spill] sm:$0xff] %v13530_v0  ;;  %v3924_v9 = vrot.slane %v3917_v21, %v12624_v13  ;;  %v5362_v26 = vmax.f32 %v5360_v10, %v5361_v5  ;;  %v5368_v4 = vrot.slane %v5367_v7, 4  ;;  %17896 = vst [vmem:[#allocation47_spill] sm:$0xff] %v13544_v45  ;;  %7482 = vmatprep.subr.bf16.mxu1 %v11746_v22  ;;  %7412 = vmatpush2.bf16.msra.mxu0 %v11751_v23 }
 0x137   :  { %v1669_v29 = vadd.f32 %v17894_v46, %v1605_v16  ;;  %v1705_v17 = vadd.f32 %v13537_v50, %v1668_v27  ;;  %17897 = vst [vmem:[#allocation48_spill] sm:$0xff] %v13550_v30  ;;  %7483 = vmatpush1.bf16.msra.mxu1 %v11748_v51  ;;  %v13555_v6 = vmul.f32 %v12587_v60, %v13503_v3 }
 0x138   :  { %v5363_v8 = vrot.slane %v5362_v26, 2  ;;  %v5374_v25 = vsel %vm1122_vm4, %v3924_v9, -inf  ;;  %v5369_v31 = vmax.f32 %v5367_v7, %v5368_v4 }
 0x139   :  { %v1706_v24 = vadd.f32 %v13537_v50, %v1669_v29  ;;  %v1735_v37 = vmax.f32 %v1705_v17, 0.0  ;;  %v5375_v44 = vrot.slane %v5374_v25, 4  ;;  %17898 = vst [vmem:[#allocation49_spill] sm:$0xff] %v13555_v6 }
 0x13a   :  { %v5364_v20 = vmax.f32 %v5362_v26, %v5363_v8  ;;  %v5370_v21 = vrot.slane %v5369_v31, 2 }
 0x13b   :  { %v1736_v47 = vmax.f32 %v1706_v24, 0.0  ;;  %v2131_v10 = vcombine.high %v1735_v37, %v1735_v37  ;;  %v2138_v16 = vrot.slane %v1735_v37, %v12624_v13  ;;  %v5376_v5 = vmax.f32 %v5374_v25, %v5375_v44 }
 0x13c   :  { %v5365_v29 = vrot.slane %v5364_v20, 1  ;;  %v13564_v24 = vmul.f32 %v12589_v61, %v13503_v3  ;;  %v13569_v40 = vmax.f32 %v5369_v31, %v5370_v21 }
 0x13d   :  { %v2180_v27 = vcombine.high %v1736_v47, %v1736_v47  ;;  %v2187_v46 = vrot.slane %v1736_v47, %v12624_v13  ;;  %v2145_v9 = vrot.slane %v2131_v10, %v12624_v13  ;;  %v2146_v7 = vcombine.high %v2138_v16, %v2138_v16 }
 0x13e   :  { %v2154_v26 = vrot.slane %v2138_v16, %v12624_v13  ;;  %17899 = vst [vmem:[#allocation50_spill] sm:$0xff] %v13564_v24  ;;  %17900 = vst [vmem:[#allocation51_spill] sm:$0xff] %v13569_v40  ;;  %v5366_v10 = vmax.f32 %v5364_v20, %v5365_v29  ;;  %v5377_v16 = vrot.slane %v5376_v5, 2  ;;  %v17914_v40 = vrot.slane %v13521_v36, 2 }
 0x13f   :  { %v2194_v17 = vrot.slane %v2180_v27, %v12624_v13  ;;  %v2195_v22 = vcombine.high %v2187_v46, %v2187_v46  ;;  %v2147_v51 = vcombine.high %v2145_v9, %v2145_v9  ;;  %v2161_v8 = vrot.slane %v2145_v9, %v12624_v13 }
 0x140   :  { %v2168_v25 = vrot.slane %v2146_v7, %v12624_v13  ;;  %v2176_v44 = vcombine.high %v2154_v26, %v2154_v26  ;;  %v2203_v31 = vrot.slane %v2187_v46, %v12624_v13  ;;  %v3686_v21 = vrot.slane %v2154_v26, %v12624_v13 }
 0x141   :  { %v2196_v47 = vcombine.high %v2194_v17, %v2194_v17  ;;  %v2175_v27 = vrot.slane %v2147_v51, %v12624_v13  ;;  %v2177_v41 = vcombine.high %v2161_v8, %v2161_v8  ;;  %v2210_v4 = vrot.slane %v2194_v17, %v12624_v13 }
 0x142   :  { %v2178_v55 = vcombine.high %v2168_v25, %v2168_v25  ;;  %v2217_v9 = vrot.slane %v2195_v22, %v12624_v13  ;;  %v3695_v37 = vcombine.low %v2168_v25, %v2176_v44  ;;  %v5764_v12 = vpack.c.bf16 %v5366_v10, %v5366_v10 }
 0x143   :  { %v2224_v7 = vrot.slane %v2196_v47, %v12624_v13  ;;  %v2179_v53 = vcombine.high %v2175_v27, %v2175_v27  ;;  %v2226_v20 = vcombine.high %v2210_v4, %v2210_v4  ;;  %v3718_v51 = vcombine.low %v2161_v8, %v2175_v27 }
 0x144   :  { %v3709_v29 = vrot.slane %v2178_v55, %v12624_v13  ;;  %v3702_v17 = vrot.slane %v3695_v37, %v12624_v13  ;;  %v13582_v22 = vcombine.low %v13434_v42, %v3686_v21  ;;  %v3732_v46 = vrot.slane %v2177_v41, %v12624_v13  ;;  %v11752_v42 = vld [vmem:[#allocation2 + $0x1f4] ss:$8 sps:$4 sm:$0xff]  }
 0x145   :  { %v2228_v39 = vcombine.high %v2224_v7, %v2224_v7  ;;  %v3741_v32 = vcombine.low %v2179_v53, %v2203_v31  ;;  %v3725_v47 = vrot.slane %v3718_v51, %v12624_v13  ;;  %v11229_v26 = vcombine.high %v2203_v31, %v2217_v9  ;;  %7484 = vmatprep.subr.bf16.mxu1 %v11752_v42  ;;  %v11757_v51 = vld [vmem:[#allocation2 + $0xe0] ss:$8 sps:$4 sm:$0xff]  }
 0x146   :  { %17901 = vst [vmem:[#allocation52_spill] sm:$0xff] %v13582_v22  ;;  %v3710_v25 = vcombine.low %v3702_v17, %v3709_v29  ;;  %v3755_v23 = vrot.slane %v2217_v9, %v12624_v13  ;;  %v3787_v55 = vcombine.low %v2224_v7, %v2226_v20  ;;  %v13588_v8 = vmax.f32 %v5376_v5, %v5377_v16  ;;  %v11754_v29 = vld [vmem:[#allocation2 + $0x1f0] ss:$8 sps:$4 sm:$0xff]   ;;  %v11755_v7 = vld [vmem:[#allocation2 + $0xe4] ss:$8 sps:$4 sm:$0xff]  }
 0x147   :  { %v3748_v44 = vrot.slane %v3741_v32, %v12624_v13  ;;  %v3733_v10 = vcombine.low %v3725_v47, %v3732_v46  ;;  %v3771_v37 = vrot.slane %v11229_v26, %v12624_v13  ;;  %v3778_v53 = vrot.slane %v2210_v4, %v12624_v13  ;;  %v159_v4 = vpop.permute.xlu0 %158  ;;  %7485 = vmatpush2.bf16.msra.mxu1 %v11754_v29 }
 0x148   :  { %17902 = vst [vmem:[#allocation53_spill] sm:$0xff] %v13588_v8  ;;  %v3717_v27 = vrot.slane %v3710_v25, %v12624_v13  ;;  %v3794_v41 = vrot.slane %v3787_v55, %v12624_v13  ;;  %v3801_v31 = vrot.slane %v2228_v39, %v12624_v13  ;;  %v13595_v32 = vunpack.c.l.b16 %v5764_v12  ;;  %7413 = vmatprep.subr.bf16.mxu0 %v11755_v7 }
 0x149   :  { %v3756_v21 = vcombine.low %v3748_v44, %v3755_v23  ;;  %v3740_v16 = vrot.slane %v3733_v10, %v12624_v13  ;;  %v13602_v9 = vmul.f32 %v12591_v62, %v13503_v3  ;;  %v13604_v23 = vcombine.low %v3771_v37, %v3778_v53  ;;  %7414 = vmatpush2.bf16.msra.mxu0 %v11757_v51 }
 0x14a   :  { %17903 = vst [vmem:[#allocation54_spill] sm:$0xff] %v13595_v32  ;;  %v5311_v20 = vsel %vm1122_vm4, %v3717_v27, -inf  ;;  %v13610_v12 = vmul.f32 %v13225_v54, %v13503_v3  ;;  %v13616_v25 = vcombine.low %v3794_v41, %v3801_v31  ;;  %v306_v55 = vmul.f32 %v12575_v56, %v159_v4  ;;  %7415 = vmatprep.subr.bf16.mxu0 %v11761_v14 }
 0x14b   :  { %17904 = vst [vmem:[#allocation55_spill] sm:$0xff] %v13602_v9  ;;  %17905 = vst [vmem:[#allocation56_spill] sm:$0xff] %v13604_v23  ;;  %v3763_v17 = vrot.slane %v3756_v21, %v12624_v13  ;;  %v5312_v47 = vrot.slane %v5311_v20, 4  ;;  %v5318_v46 = vsel %vm1122_vm4, %v3740_v16, -inf  ;;  %v497_v10 = vmul.f32 %v12579_v57, %v159_v4 }
 0x14c   :  { %17906 = vst [vmem:[#allocation57_spill] sm:$0xff] %v13616_v25  ;;  %v5319_v44 = vrot.slane %v5318_v46, 4  ;;  %v688_v53 = vmul.f32 %v12583_v58, %v159_v4  ;;  %v879_v42 = vmul.f32 %v12585_v59, %v159_v4  ;;  %v262_v21 = vmul.f32 %v12599_v1, %v159_v4 }
 0x14d   :  { %v5313_v3 = vmax.f32 %v5311_v20, %v5312_v47  ;;  %v382_v29 = vrot.slane %v306_v55, 1  ;;  %v573_v16 = vrot.slane %v497_v10, 2  ;;  %v13625_v31 = vsel %vm1122_vm4, %v3763_v17, -inf  ;;  %v17908_v20 = vld [vmem:[#allocation33_spill] sm:$0xff]  ;;  %v17912_v55 = vld [vmem:[#allocation35_spill] sm:$0xff] }
 0x14e   :  { %v5320_v27 = vmax.f32 %v5318_v46, %v5319_v44  ;;  %17907 = vst [vmem:[#allocation58_spill] sm:$0xff] %v13625_v31  ;;  %v764_v7 = vrot.slane %v688_v53, 3  ;;  %v1070_v5 = vmul.f32 %v12587_v60, %v159_v4  ;;  %v17909_v47 = vrot.slane %v17908_v20, 1 }
 0x14f   :  { %v5314_v41 = vrot.slane %v5313_v3, 2  ;;  %v17910_v37 = vrot.slane %v13517_v15, 1  ;;  %v955_v44 = vrot.slane %v879_v42, 4  ;;  %v1261_v17 = vmul.f32 %v12589_v61, %v159_v4 }
 0x150   :  { %v5321_v51 = vrot.slane %v5320_v27, 2  ;;  %v383_v26 = vsel %vm358_vm0, %v17909_v47, %v382_v29  ;;  %v17913_v20 = vrot.slane %v13263_v63, 2  ;;  %v1146_v53 = vrot.slane %v1070_v5, 5 }
 0x151   :  { %v385_v46 = vsel %vm358_vm0, %v382_v29, %v17910_v37  ;;  %v13634_v39 = vmax.f32 %v5313_v3, %v5314_v41  ;;  %v462_v10 = vadd.f32 %v383_v26, %v17912_v55  ;;  %v576_v37 = vsel %vm549_vm1, %v573_v16, %v17914_v40  ;;  %v13652_v41 = vpop.permute.xlu1 %178 }
 0x152   :  { %v463_v32 = vadd.f32 %v385_v46, %v262_v21  ;;  %v574_v47 = vsel %vm549_vm1, %v17913_v20, %v573_v16  ;;  %v13647_v3 = vmax.f32 %v5320_v27, %v5321_v51  ;;  %v17916_v21 = vrot.slane %v13335_v18, 3 }
 0x153   :  { %17911 = vst [vmem:[#allocation33_spill] sm:$0xff] %v13634_v39  ;;  %v653_v42 = vadd.f32 %v574_v47, %v462_v10  ;;  %v17917_v46 = vrot.slane %v13544_v45, 3  ;;  %v17918_v55 = vrot.slane %v13341_v52, 4  ;;  %v1452_v40 = vmul.f32 %v12591_v62, %v159_v4 }
 0x154   :  { %17915 = vst [vmem:[#allocation35_spill] sm:$0xff] %v13647_v3  ;;  %v654_v26 = vadd.f32 %v576_v37, %v463_v32  ;;  %v765_v29 = vsel %vm740_vm2, %v17916_v21, %v764_v7  ;;  %v1337_v18 = vrot.slane %v1261_v17, 6  ;;  %v17919_v51 = vrot.slane %v13550_v30, 4 }
 0x155   :  { %v767_v63 = vsel %vm740_vm2, %v764_v7, %v17917_v46  ;;  %v956_v20 = vsel %vm931_vm3, %v17918_v55, %v955_v44  ;;  %v844_v32 = vadd.f32 %v765_v29, %v653_v42  ;;  %v17920_v47 = vrot.slane %v13345_v49, 5 }
 0x156   :  { %v845_v16 = vadd.f32 %v767_v63, %v654_v26  ;;  %v958_v10 = vsel %vm931_vm3, %v955_v44, %v17919_v51  ;;  %v1642_v52 = vmul.f32 %v13225_v54, %v159_v4  ;;  %v13671_v5 = vmul.f32 %v12575_v56, %v13652_v41 }
 0x157   :  { %v1147_v7 = vsel %vm1122_vm4, %v17920_v47, %v1146_v53  ;;  %v1035_v37 = vadd.f32 %v956_v20, %v844_v32  ;;  %v17921_v42 = vrot.slane %v13555_v6, 5  ;;  %v1528_v26 = vrot.slane %v1452_v40, 7  ;;  %v174_v40 = vpop.permute.xlu0 %173 }
 0x158   :  { %v1036_v21 = vadd.f32 %v958_v10, %v845_v16  ;;  %v13678_v44 = vmul.f32 %v12579_v57, %v13652_v41  ;;  %v13682_v49 = vmul.f32 %v12583_v58, %v13652_v41  ;;  %v13686_v4 = vmul.f32 %v12585_v59, %v13652_v41 }
 0x159   :  { %v1149_v17 = vsel %vm1122_vm4, %v1146_v53, %v17921_v42  ;;  %v13690_v29 = vmul.f32 %v12587_v60, %v13652_v41  ;;  %v1226_v46 = vadd.f32 %v1147_v7, %v1035_v37  ;;  %v17922_v53 = vrot.slane %v13356_v33, 6 }
 0x15a   :  { %v1227_v63 = vadd.f32 %v1149_v17, %v1036_v21  ;;  %v13697_v20 = vmul.f32 %v12599_v1, %v13652_v41  ;;  %v17923_v32 = vrot.slane %v13564_v24, 6  ;;  %v17924_v51 = vrot.slane %v13372_v38, 7 }
 0x15b   :  { %v1338_v55 = vsel %vm1313_vm5, %v17922_v53, %v1337_v18  ;;  %v17925_v47 = vrot.slane %v13602_v9, 7  ;;  %v17613_v33 = vrot.slane %v13671_v5, 1  ;;  %v17612_v42 = vrot.slane %v13678_v44, 2 }
 0x15c   :  { %v1340_v16 = vsel %vm1313_vm5, %v1337_v18, %v17923_v32  ;;  %v1529_v10 = vsel %vm1504_vm6, %v17924_v51, %v1528_v26  ;;  %v1417_v37 = vadd.f32 %v1338_v55, %v1226_v46  ;;  %v310_v38 = vmul.f32 %v12575_v56, %v174_v40 }
 0x15d   :  { %v1531_v7 = vsel %vm1504_vm6, %v1528_v26, %v17925_v47  ;;  %v1418_v21 = vadd.f32 %v1340_v16, %v1227_v63  ;;  %v501_v32 = vmul.f32 %v12579_v57, %v174_v40  ;;  %v13717_v26 = vmul.f32 %v12589_v61, %v13652_v41 }
 0x15e   :  { %v1608_v51 = vadd.f32 %v1529_v10, %v1417_v37  ;;  %v265_v46 = vmul.f32 %v12599_v1, %v174_v40  ;;  %v390_v63 = vrot.slane %v310_v38, 1  ;;  %v692_v16 = vmul.f32 %v12583_v58, %v174_v40 }
 0x15f   :  { %v1609_v8 = vadd.f32 %v1531_v7, %v1418_v21  ;;  %v581_v55 = vrot.slane %v501_v32, 2  ;;  %v883_v47 = vmul.f32 %v12585_v59, %v174_v40  ;;  %v1074_v53 = vmul.f32 %v12587_v60, %v174_v40 }
 0x160   :  { %v1672_v27 = vadd.f32 %v1642_v52, %v1608_v51  ;;  %v1265_v10 = vmul.f32 %v12589_v61, %v174_v40  ;;  %v13727_v7 = vmul.f32 %v12591_v62, %v13652_v41  ;;  %v392_v37 = vsel %vm358_vm0, %v390_v63, %v17613_v33 }
 0x161   :  { %v1673_v18 = vadd.f32 %v13610_v12, %v1609_v8  ;;  %v772_v21 = vrot.slane %v692_v16, 3  ;;  %v963_v38 = vrot.slane %v883_v47, 4  ;;  %v466_v51 = vadd.f32 %v392_v37, %v265_v46 }
 0x162   :  { %v1709_v32 = vadd.f32 %v13537_v50, %v1672_v27  ;;  %v1154_v8 = vrot.slane %v1074_v53, 5  ;;  %v17611_v12 = vrot.slane %v13717_v26, 6  ;;  %v583_v17 = vsel %vm549_vm1, %v581_v55, %v17612_v42  ;;  %v13741_v27 = vpop.permute.xlu1 %193 }
 0x163   :  { %v1710_v52 = vadd.f32 %v13537_v50, %v1673_v18  ;;  %v1345_v23 = vrot.slane %v1265_v10, 6  ;;  %v1456_v31 = vmul.f32 %v12591_v62, %v174_v40  ;;  %v1646_v63 = vmul.f32 %v13225_v54, %v13652_v41 }
 0x164   :  { %v1739_v3 = vmax.f32 %v1709_v32, 0.0  ;;  %v657_v16 = vadd.f32 %v583_v17, %v466_v51  ;;  %v17614_v18 = vrot.slane %v13727_v7, 7  ;;  %v17926_v53 = vrot.slane %v13682_v49, 3 }
 0x165   :  { %v1740_v39 = vmax.f32 %v1710_v52, 0.0  ;;  %v17927_v47 = vrot.slane %v13686_v4, 4  ;;  %v1536_v10 = vrot.slane %v1456_v31, 7  ;;  %v17928_v41 = vrot.slane %v13690_v29, 5 }
 0x166   :  { %v774_v46 = vsel %vm740_vm2, %v772_v21, %v17926_v53  ;;  %v2327_v40 = vcombine.high %v1739_v3, %v1739_v3  ;;  %v2334_v37 = vrot.slane %v1739_v3, %v12624_v13  ;;  %v1347_v51 = vsel %vm1313_vm5, %v1345_v23, %v17611_v12 }
 0x167   :  { %v965_v55 = vsel %vm931_vm3, %v963_v38, %v17927_v47  ;;  %v2383_v32 = vrot.slane %v1740_v39, %v12624_v13  ;;  %v1156_v17 = vsel %vm1122_vm4, %v1154_v8, %v17928_v41  ;;  %v848_v52 = vadd.f32 %v774_v46, %v657_v16 }
 0x168   :  { %v13760_v21 = vmul.f32 %v12599_v1, %v13741_v27  ;;  %v13764_v31 = vmul.f32 %v12575_v56, %v13741_v27  ;;  %v2341_v3 = vrot.slane %v2327_v40, %v12624_v13  ;;  %v2342_v38 = vcombine.high %v2334_v37, %v2334_v37 }
 0x169   :  { %v2350_v53 = vrot.slane %v2334_v37, %v12624_v13  ;;  %v2376_v47 = vcombine.high %v1740_v39, %v1740_v39  ;;  %v2391_v8 = vcombine.high %v2383_v32, %v2383_v32  ;;  %v2399_v16 = vrot.slane %v2383_v32, %v12624_v13 }
 0x16a   :  { %v1039_v46 = vadd.f32 %v965_v55, %v848_v52  ;;  %v1538_v23 = vsel %vm1504_vm6, %v1536_v10, %v17614_v18  ;;  %v2343_v41 = vcombine.high %v2341_v3, %v2341_v3  ;;  %v2357_v12 = vrot.slane %v2341_v3, %v12624_v13 }
 0x16b   :  { %v2364_v42 = vrot.slane %v2342_v38, %v12624_v13  ;;  %v17929_v40 = vcombine.high %v13491_v43, %v13491_v43  ;;  %v13778_v37 = vrot.slane %v2391_v8, %v12624_v13  ;;  %v13783_v55 = vmul.f32 %v12579_v57, %v13741_v27 }
 0x16c   :  { %v1230_v39 = vadd.f32 %v1156_v17, %v1039_v46  ;;  %v2371_v10 = vrot.slane %v2343_v41, %v12624_v13  ;;  %v2373_v52 = vcombine.high %v2357_v12, %v2357_v12  ;;  %v2421_v18 = vcombine.high %v2399_v16, %v2399_v16 }
 0x16d   :  { %v3925_v33 = vcombine.low %v17929_v40, %v2350_v53  ;;  %17930 = vst [vmem:[#allocation59_spill] sm:$0xff] %v13778_v37  ;;  %v3939_v38 = vrot.slane %v2364_v42, %v12624_v13  ;;  %v11231_v43 = vcombine.high %v2350_v53, %v2364_v42  ;;  %v3994_v40 = vcombine.low %v2399_v16, %v13778_v37 }
 0x16e   :  { %v13791_v17 = vmul.f32 %v12583_v58, %v13741_v27  ;;  %v2375_v8 = vcombine.high %v2371_v10, %v2371_v10  ;;  %v3971_v32 = vcombine.low %v2371_v10, %v2373_v52  ;;  %v1421_v35 = vadd.f32 %v1347_v51, %v1230_v39 }
 0x16f   :  { %v3932_v3 = vrot.slane %v3925_v33, %v12624_v13  ;;  %v3955_v25 = vrot.slane %v11231_v43, %v12624_v13  ;;  %v3962_v41 = vrot.slane %v2357_v12, %v12624_v13  ;;  %v13796_v33 = vrot.slane %v3994_v40, %v12624_v13  ;;  %v13825_v40 = vpop.permute.xlu0 %188 }
 0x170   :  { %v13800_v42 = vmul.f32 %v12585_v59, %v13741_v27  ;;  %v3978_v16 = vrot.slane %v3971_v32, %v12624_v13  ;;  %v3985_v37 = vrot.slane %v2375_v8, %v12624_v13  ;;  %v13806_v51 = vrot.slane %v2376_v47, %v12624_v13 }
 0x171   :  { %v3940_v46 = vcombine.low %v3932_v3, %v3939_v38  ;;  %17931 = vst [vmem:[#allocation60_spill] sm:$0xff] %v13796_v33  ;;  %v1612_v3 = vadd.f32 %v1538_v23, %v1421_v35  ;;  %v3963_v39 = vcombine.low %v3955_v25, %v3962_v41  ;;  %v13811_v10 = vmul.f32 %v12587_v60, %v13741_v27 }
 0x172   :  { %17932 = vst [vmem:[#allocation61_spill] sm:$0xff] %v13806_v51  ;;  %v13813_v52 = vcombine.low %v3978_v16, %v3985_v37  ;;  %v13816_v38 = vrot.slane %v2421_v18, %v12624_v13  ;;  %v13823_v25 = vmul.f32 %v12589_v61, %v13741_v27  ;;  %v13837_v16 = vmul.f32 %v12591_v62, %v13741_v27 }
 0x173   :  { %v3947_v53 = vrot.slane %v3940_v46, %v12624_v13  ;;  %v1676_v43 = vadd.f32 %v1646_v63, %v1612_v3  ;;  %v3970_v35 = vrot.slane %v3963_v39, %v12624_v13  ;;  %v13841_v37 = vmul.f32 %v12575_v56, %v13825_v40 }
 0x174   :  { %17933 = vst [vmem:[#allocation62_spill] sm:$0xff] %v13813_v52  ;;  %17934 = vst [vmem:[#allocation63_spill] sm:$0xff] %v13816_v38  ;;  %v13862_v12 = vmul.f32 %v13225_v54, %v13741_v27  ;;  %v13868_v52 = vmul.f32 %v12587_v60, %v13825_v40  ;;  %v11758_v38 = vld [vmem:[#allocation2 + $0x1e4] ss:$8 sps:$4 sm:$0xff]   ;;  %v11760_v54 = vld [vmem:[#allocation2 + $0x1e0] ss:$8 sps:$4 sm:$0xff]   ;;  %v268_v51 = vmul.f32 %v12599_v1, %v13825_v40 }
 0x175   :  { %v5381_v32 = vsel %vm1122_vm4, %v3947_v53, -inf  ;;  %v1713_v18 = vadd.f32 %v13537_v50, %v1676_v43  ;;  %v5388_v53 = vsel %vm1122_vm4, %v3970_v35, -inf  ;;  %v13845_v43 = vmul.f32 %v12579_v57, %v13825_v40  ;;  %7486 = vmatprep.subr.bf16.mxu1 %v11758_v38 }
 0x176   :  { %v5382_v23 = vrot.slane %v5381_v32, 4  ;;  %v5389_v3 = vrot.slane %v5388_v53, 4  ;;  %v13854_v35 = vmul.f32 %v12585_v59, %v13825_v40  ;;  %v17939_v33 = vrot.slane %v13764_v31, 1  ;;  %7487 = vmatpush2.bf16.msra.mxu1 %v11760_v54 }
 0x177   :  { %v1743_v39 = vmax.f32 %v1713_v18, 0.0  ;;  %v17940_v22 = vrot.slane %v13841_v37, 1  ;;  %v17947_v54 = vrot.slane %v13800_v42, 4  ;;  %v17950_v14 = vrot.slane %v13868_v52, 5 }
 0x178   :  { %v5383_v41 = vmax.f32 %v5381_v32, %v5382_v23  ;;  %v13850_v32 = vmul.f32 %v12583_v58, %v13825_v40  ;;  %v13856_v23 = vmax.f32 %v5388_v53, %v5389_v3  ;;  %v17958_v9 = vrot.slane %v13783_v55, 2 }
 0x179   :  { %v2523_v18 = vcombine.high %v1743_v39, %v1743_v39  ;;  %v2530_v8 = vrot.slane %v1743_v39, %v12624_v13  ;;  %v17960_v30 = vrot.slane %v13791_v17, 3 }
 0x17a   :  { %v5384_v63 = vrot.slane %v5383_v41, 2  ;;  %17935 = vst [vmem:[#allocation64_spill] sm:$0xff] %v13856_v23  ;;  %v17945_v11 = vrot.slane %v13850_v32, 3 }
 0x17b   :  { %v13871_v53 = vrot.slane %v2523_v18, %v12624_v13  ;;  %v2538_v3 = vcombine.high %v2530_v8, %v2530_v8  ;;  %v13874_v39 = vrot.slane %v2530_v8, %v12624_v13  ;;  %v398_v18 = vsel %vm358_vm0, %v17940_v22, %v17939_v33  ;;  %v11763_v22 = vld [vmem:[#allocation2 + $0xd0] ss:$8 sps:$4 sm:$0xff]  }
 0x17c   :  { %v13877_v27 = vmax.f32 %v5383_v41, %v5384_v63  ;;  %v17942_v63 = vrot.slane %v13783_v55, 2  ;;  %v17943_v41 = vrot.slane %v13845_v43, 2  ;;  %v469_v33 = vadd.f32 %v398_v18, %v268_v51  ;;  %7416 = vmatpush2.bf16.msra.mxu0 %v11763_v22 }
 0x17d   :  { %17936 = vst [vmem:[#allocation65_spill] sm:$0xff] %v13871_v53  ;;  %17937 = vst [vmem:[#allocation66_spill] sm:$0xff] %v13874_v39  ;;  %v13889_v47 = vrot.slane %v2538_v3, %v12624_v13  ;;  %v13904_v3 = vmul.f32 %v12589_v61, %v13825_v40  ;;  %v13908_v8 = vmul.f32 %v12591_v62, %v13825_v40  ;;  %v17956_v39 = vrot.slane %v13764_v31, 1 }
 0x17e   :  { %17938 = vst [vmem:[#allocation67_spill] sm:$0xff] %v13877_v27  ;;  %v589_v46 = vsel %vm549_vm1, %v17943_v41, %v17942_v63  ;;  %v17944_v27 = vrot.slane %v13791_v17, 3  ;;  %v13910_v63 = vpop.permute.xlu1 %198 }
 0x17f   :  { %17941 = vst [vmem:[#allocation68_spill] sm:$0xff] %v13889_v47  ;;  %v660_v38 = vadd.f32 %v589_v46, %v469_v33  ;;  %v13935_v51 = vmul.f32 %v12579_v57, %v13910_v63  ;;  %v13943_v22 = vmul.f32 %v12585_v59, %v13910_v63  ;;  %v13954_v41 = vmul.f32 %v12587_v60, %v13910_v63 }
 0x180   :  { %v780_v2 = vsel %vm740_vm2, %v17945_v11, %v17944_v27  ;;  %v13916_v11 = vrot.slane %v13871_v53, %v12624_v13  ;;  %v17948_v27 = vrot.slane %v13854_v35, 4  ;;  %v17951_v53 = vrot.slane %v13823_v25, 6 }
 0x181   :  { %v851_v33 = vadd.f32 %v780_v2, %v660_v38  ;;  %v13963_v38 = vmul.f32 %v12589_v61, %v13910_v63  ;;  %v17952_v48 = vrot.slane %v13904_v3, 6  ;;  %v17957_v19 = vrot.slane %v13935_v51, 2 }
 0x182   :  { %17946 = vst [vmem:[#allocation69_spill] sm:$0xff] %v13916_v11  ;;  %v971_v18 = vsel %vm931_vm3, %v17948_v27, %v17947_v54  ;;  %v13931_v11 = vmul.f32 %v12575_v56, %v13910_v63  ;;  %v13939_v54 = vmul.f32 %v12583_v58, %v13910_v63  ;;  %v17949_v27 = vrot.slane %v13811_v10, 5 }
 0x183   :  { %v1042_v46 = vadd.f32 %v971_v18, %v851_v33  ;;  %v1353_v28 = vsel %vm1313_vm5, %v17952_v48, %v17951_v53  ;;  %v17953_v18 = vrot.slane %v13837_v16, 7  ;;  %v17954_v33 = vrot.slane %v13908_v8, 7 }
 0x184   :  { %v1162_v23 = vsel %vm1122_vm4, %v17950_v14, %v17949_v27  ;;  %v13967_v14 = vmul.f32 %v12591_v62, %v13910_v63  ;;  %v13969_v27 = vpop.permute.xlu0 %183  ;;  %v17955_v34 = vrot.slane %v13931_v11, 1  ;;  %v591_v24 = vsel %vm549_vm1, %v17958_v9, %v17957_v19 }
 0x185   :  { %v1544_v2 = vsel %vm1504_vm6, %v17954_v33, %v17953_v18  ;;  %v1233_v6 = vadd.f32 %v1162_v23, %v1042_v46  ;;  %v17959_v53 = vrot.slane %v13939_v54, 3  ;;  %v17644_v33 = vrot.slane %v13963_v38, 6  ;;  %v14014_v23 = vld [vmem:[%s17526_s1 + $0x8] ss:$0 sm:$0xff] }
 0x186   :  { %v400_v47 = vsel %vm358_vm0, %v17956_v39, %v17955_v34  ;;  %v17961_v31 = vrot.slane %v13943_v22, 4  ;;  %v17962_v34 = vrot.slane %v13800_v42, 4  ;;  %v17963_v55 = vrot.slane %v13954_v41, 5 }
 0x187   :  { %v470_v48 = vadd.f32 %v400_v47, %v13760_v21  ;;  %v782_v18 = vsel %vm740_vm2, %v17960_v30, %v17959_v53  ;;  %v17964_v19 = vrot.slane %v13811_v10, 5  ;;  %v312_v17 = vmul.f32 %v12575_v56, %v13969_v27 }
 0x188   :  { %v973_v39 = vsel %vm931_vm3, %v17962_v34, %v17961_v31  ;;  %v1424_v30 = vadd.f32 %v1353_v28, %v1233_v6  ;;  %v1650_v42 = vmul.f32 %v14014_v23, %v13910_v63  ;;  %v503_v10 = vmul.f32 %v12579_v57, %v13969_v27 }
 0x189   :  { %v1164_v9 = vsel %vm1122_vm4, %v17964_v19, %v17963_v55  ;;  %v661_v47 = vadd.f32 %v591_v24, %v470_v48  ;;  %v267_v46 = vmul.f32 %v12599_v1, %v13969_v27  ;;  %v393_v53 = vrot.slane %v312_v17, 1 }
 0x18a   :  { %v694_v31 = vmul.f32 %v12583_v58, %v13969_v27  ;;  %v885_v28 = vmul.f32 %v12585_v59, %v13969_v27  ;;  %v1615_v6 = vadd.f32 %v1544_v2, %v1424_v30  ;;  %v17965_v48 = vrot.slane %v13823_v25, 6 }
 0x18b   :  { %v852_v24 = vadd.f32 %v782_v18, %v661_v47  ;;  %v584_v55 = vrot.slane %v503_v10, 2  ;;  %v17966_v19 = vrot.slane %v13671_v5, 1  ;;  %v17967_v17 = vrot.slane %v13841_v37, 1 }
 0x18c   :  { %v1355_v34 = vsel %vm1313_vm5, %v17965_v48, %v17644_v33  ;;  %v775_v36 = vrot.slane %v694_v31, 3  ;;  %v1076_v2 = vmul.f32 %v12587_v60, %v13969_v27  ;;  %v1679_v18 = vadd.f32 %v13862_v12, %v1615_v6 }
 0x18d   :  { %v394_v21 = vsel %vm358_vm0, %v17966_v19, %v393_v53  ;;  %v396_v45 = vsel %vm358_vm0, %v393_v53, %v17967_v17  ;;  %v1043_v30 = vadd.f32 %v973_v39, %v852_v24  ;;  %v17968_v10 = vrot.slane %v13967_v14, 7 }
 0x18e   :  { %v467_v25 = vadd.f32 %v394_v21, %v13697_v20  ;;  %v468_v47 = vadd.f32 %v396_v45, %v267_v46  ;;  %v17969_v5 = vrot.slane %v13837_v16, 7  ;;  %v17970_v37 = vrot.slane %v13678_v44, 2 }
 0x18f   :  { %v17971_v31 = vrot.slane %v13845_v43, 2  ;;  %v966_v17 = vrot.slane %v885_v28, 4  ;;  %v1716_v12 = vadd.f32 %v13537_v50, %v1679_v18  ;;  %v1234_v39 = vadd.f32 %v1164_v9, %v1043_v30 }
 0x190   :  { %v1546_v48 = vsel %vm1504_vm6, %v17969_v5, %v17968_v10  ;;  %v585_v53 = vsel %vm549_vm1, %v17970_v37, %v584_v55  ;;  %v17972_v21 = vrot.slane %v13682_v49, 3  ;;  %v17973_v46 = vrot.slane %v13850_v32, 3 }
 0x191   :  { %v587_v19 = vsel %vm549_vm1, %v584_v55, %v17971_v31  ;;  %v658_v20 = vadd.f32 %v585_v53, %v467_v25  ;;  %v1157_v6 = vrot.slane %v1076_v2, 5  ;;  %v1267_v43 = vmul.f32 %v12589_v61, %v13969_v27 }
 0x192   :  { %v659_v45 = vadd.f32 %v587_v19, %v468_v47  ;;  %v776_v16 = vsel %vm740_vm2, %v17972_v21, %v775_v36  ;;  %v778_v44 = vsel %vm740_vm2, %v775_v36, %v17973_v46  ;;  %v1746_v24 = vmax.f32 %v1716_v12, 0.0 }
 0x193   :  { %v1425_v55 = vadd.f32 %v1355_v34, %v1234_v39  ;;  %v849_v28 = vadd.f32 %v776_v16, %v658_v20  ;;  %v17974_v9 = vrot.slane %v13686_v4, 4  ;;  %v17975_v49 = vrot.slane %v13854_v35, 4 }
 0x194   :  { %v850_v10 = vadd.f32 %v778_v44, %v659_v45  ;;  %v1348_v25 = vrot.slane %v1267_v43, 6  ;;  %v1458_v36 = vmul.f32 %v12591_v62, %v13969_v27  ;;  %v2670_v32 = vcombine.high %v1746_v24, %v1746_v24 }
 0x195   :  { %v967_v18 = vsel %vm931_vm3, %v17974_v9, %v966_v17  ;;  %v969_v30 = vsel %vm931_vm3, %v966_v17, %v17975_v49  ;;  %v2677_v2 = vrot.slane %v1746_v24, %v12624_v13  ;;  %v1616_v47 = vadd.f32 %v1546_v48, %v1425_v55 }
 0x196   :  { %v1040_v5 = vadd.f32 %v967_v18, %v849_v28  ;;  %v1041_v34 = vadd.f32 %v969_v30, %v850_v10  ;;  %v17976_v37 = vrot.slane %v13690_v29, 5  ;;  %v17977_v53 = vrot.slane %v13868_v52, 5 }
 0x197   :  { %v1539_v31 = vrot.slane %v1458_v36, 7  ;;  %v2684_v19 = vrot.slane %v2670_v32, %v12624_v13  ;;  %v2685_v17 = vcombine.high %v2677_v2, %v2677_v2  ;;  %v2693_v12 = vrot.slane %v2677_v2, %v12624_v13 }
 0x198   :  { %v1158_v4 = vsel %vm1122_vm4, %v17976_v37, %v1157_v6  ;;  %v1160_v35 = vsel %vm1122_vm4, %v1157_v6, %v17977_v53  ;;  %v1680_v39 = vadd.f32 %v1650_v42, %v1616_v47  ;;  %v1648_v48 = vmul.f32 %v14014_v23, %v13825_v40 }
 0x199   :  { %v1231_v20 = vadd.f32 %v1158_v4, %v1040_v5  ;;  %v1232_v45 = vadd.f32 %v1160_v35, %v1041_v34  ;;  %v17978_v29 = vrot.slane %v13717_v26, 6  ;;  %v2686_v16 = vcombine.high %v2684_v19, %v2684_v19 }
 0x19a   :  { %v2707_v52 = vrot.slane %v2685_v17, %v12624_v13  ;;  %v17979_v46 = vrot.slane %v13904_v3, 6  ;;  %v17980_v6 = vrot.slane %v13727_v7, 7  ;;  %v1717_v43 = vadd.f32 %v13537_v50, %v1680_v39  ;;  %v11766_v39 = vld [vmem:[#allocation2 + $0x1d0] ss:$8 sps:$4 sm:$0xff]  }
 0x19b   :  { %v1349_v21 = vsel %vm1313_vm5, %v17978_v29, %v1348_v25  ;;  %v17981_v55 = vrot.slane %v13908_v8, 7  ;;  %v2700_v28 = vrot.slane %v2684_v19, %v12624_v13  ;;  %v2715_v10 = vcombine.high %v2693_v12, %v2693_v12 }
 0x19c   :  { %v1351_v44 = vsel %vm1313_vm5, %v1348_v25, %v17979_v46  ;;  %v1540_v42 = vsel %vm1504_vm6, %v17980_v6, %v1539_v31  ;;  %v1422_v40 = vadd.f32 %v1349_v21, %v1231_v20  ;;  %v2717_v9 = vcombine.high %v2707_v52, %v2707_v52  ;;  %v14098_v25 = vpop.permute.xlu1 %208  ;;  %v11767_v21 = vld [vmem:[#allocation2 + $0xc4] ss:$8 sps:$4 sm:$0xff]   ;;  %v11769_v6 = vld [vmem:[#allocation2 + $0xc0] ss:$8 sps:$4 sm:$0xff]  }
 0x19d   :  { %v1423_v24 = vadd.f32 %v1351_v44, %v1232_v45  ;;  %v1542_v26 = vsel %vm1504_vm6, %v1539_v31, %v17981_v55  ;;  %v2714_v3 = vrot.slane %v2686_v16, %v12624_v13  ;;  %v1747_v18 = vmax.f32 %v1717_v43, 0.0  ;;  %v11764_v31 = vld [vmem:[#allocation2 + $0x1d4] ss:$8 sps:$4 sm:$0xff]   ;;  %7417 = vmatprep.subr.bf16.mxu0 %v11767_v21 }
 0x19e   :  { %v1613_v49 = vadd.f32 %v1540_v42, %v1422_v40  ;;  %v1647_v7 = vmul.f32 %v14014_v23, %v13969_v27  ;;  %v4362_v36 = vcombine.low %v2693_v12, %v2707_v52  ;;  %v4385_v32 = vcombine.low %v2717_v9, %v2700_v28  ;;  %7488 = vmatprep.subr.bf16.mxu1 %v11764_v31 }
 0x19f   :  { %v1614_v30 = vadd.f32 %v1542_v26, %v1423_v24  ;;  %v14102_v8 = vmul.f32 %v12599_v1, %v13910_v63  ;;  %v11236_v2 = vcombine.high %v2700_v28, %v2714_v3  ;;  %v2719_v47 = vcombine.high %v1747_v18, %v1747_v18  ;;  %7489 = vmatpush2.bf16.msra.mxu1 %v11766_v39 }
 0x1a0   :  { %v2726_v5 = vrot.slane %v1747_v18, %v12624_v13  ;;  %v1677_v34 = vadd.f32 %v1647_v7, %v1613_v49  ;;  %v14106_v4 = vrot.slane %v2715_v10, %v12624_v13  ;;  %v4392_v53 = vrot.slane %v4385_v32, %v12624_v13  ;;  %7418 = vmatpush2.bf16.msra.mxu0 %v11769_v6 }
 0x1a1   :  { %v1678_v37 = vadd.f32 %v1648_v48, %v1614_v30  ;;  %v4399_v27 = vrot.slane %v2714_v3, %v12624_v13  ;;  %v14112_v35 = vmul.f32 %v12599_v1, %v14098_v25  ;;  %v2733_v63 = vrot.slane %v2719_v47, %v12624_v13 }
 0x1a2   :  { %17982 = vst [vmem:[#allocation70_spill] sm:$0xff] %v14106_v4  ;;  %v2734_v19 = vcombine.high %v2726_v5, %v2726_v5  ;;  %v2742_v17 = vrot.slane %v2726_v5, %v12624_v13  ;;  %v1714_v12 = vadd.f32 %v13537_v50, %v1677_v34  ;;  %v14118_v48 = vrot.slane %v4362_v36, %v12624_v13  ;;  %v11770_v34 = vld [vmem:[#allocation2 + $0x1c4] ss:$8 sps:$4 sm:$0xff]  }
 0x1a3   :  { %v4400_v20 = vcombine.low %v4392_v53, %v4399_v27  ;;  %v4415_v45 = vrot.slane %v11236_v2, %v12624_v13  ;;  %v1715_v29 = vadd.f32 %v13537_v50, %v1678_v37  ;;  %v2735_v16 = vcombine.high %v2733_v63, %v2733_v63  ;;  %7490 = vmatprep.subr.bf16.mxu1 %v11770_v34 }
 0x1a4   :  { %17983 = vst [vmem:[#allocation71_spill] sm:$0xff] %v14118_v48  ;;  %v2749_v52 = vrot.slane %v2733_v63, %v12624_v13  ;;  %v2756_v46 = vrot.slane %v2734_v19, %v12624_v13  ;;  %v2764_v44 = vcombine.high %v2742_v17, %v2742_v17  ;;  %v4422_v43 = vrot.slane %v2742_v17, %v12624_v13  ;;  %v11772_v63 = vld [vmem:[#allocation2 + $0x1c0] ss:$8 sps:$4 sm:$0xff]  }
 0x1a5   :  { %v4407_v42 = vrot.slane %v4400_v20, %v12624_v13  ;;  %v1744_v40 = vmax.f32 %v1714_v12, 0.0  ;;  %v1745_v24 = vmax.f32 %v1715_v29, 0.0  ;;  %v14127_v55 = vrot.slane %v2735_v16, %v12624_v13  ;;  %v11773_v20 = vld [vmem:[#allocation2 + $0xb4] ss:$8 sps:$4 sm:$0xff]   ;;  %7491 = vmatpush2.bf16.msra.mxu1 %v11772_v63 }
 0x1a6   :  { %v2765_v50 = vcombine.high %v2749_v52, %v2749_v52  ;;  %v2766_v26 = vcombine.high %v2756_v46, %v2756_v46  ;;  %v4431_v28 = vcombine.low %v2756_v46, %v2764_v44  ;;  %v4423_v10 = vcombine.low %v4415_v45, %v4422_v43  ;;  %7419 = vmatprep.subr.bf16.mxu0 %v11773_v20 }
 0x1a7   :  { %v5521_v9 = vsel %vm1122_vm4, %v4407_v42, -inf  ;;  %v2572_v3 = vcombine.high %v1744_v40, %v1744_v40  ;;  %v2579_v18 = vrot.slane %v1744_v40, %v12624_v13  ;;  %v4454_v7 = vcombine.low %v2749_v52, %v14127_v55  ;;  %v11775_v52 = vld [vmem:[#allocation2 + $0xb0] ss:$8 sps:$4 sm:$0xff]  }
 0x1a8   :  { %v4438_v49 = vrot.slane %v4431_v28, %v12624_v13  ;;  %v4445_v30 = vrot.slane %v2766_v26, %v12624_v13  ;;  %v14136_v36 = vmul.f32 %v12575_v56, %v14098_v25  ;;  %v4430_v32 = vrot.slane %v4423_v10, %v12624_v13  ;;  %7420 = vmatpush2.bf16.msra.mxu0 %v11775_v52 }
 0x1a9   :  { %v5522_v2 = vrot.slane %v5521_v9, 4  ;;  %v2586_v47 = vrot.slane %v2572_v3, %v12624_v13  ;;  %v2587_v5 = vcombine.high %v2579_v18, %v2579_v18  ;;  %v4461_v53 = vrot.slane %v4454_v7, %v12624_v13 }
 0x1aa   :  { %v4446_v37 = vcombine.low %v4438_v49, %v4445_v30  ;;  %v4468_v27 = vrot.slane %v2765_v50, %v12624_v13  ;;  %v14143_v31 = vrot.slane %v2579_v18, %v12624_v13  ;;  %v5528_v17 = vsel %vm1122_vm4, %v4430_v32, -inf }
 0x1ab   :  { %v14145_v19 = vmax.f32 %v5521_v9, %v5522_v2  ;;  %v2588_v12 = vcombine.high %v2586_v47, %v2586_v47  ;;  %v2621_v39 = vcombine.high %v1745_v24, %v1745_v24  ;;  %v5529_v21 = vrot.slane %v5528_v17, 4 }
 0x1ac   :  { %17984 = vst [vmem:[#allocation72_spill] sm:$0xff] %v14143_v31  ;;  %v4453_v45 = vrot.slane %v4446_v37, %v12624_v13  ;;  %v4469_v29 = vcombine.low %v4461_v53, %v4468_v27  ;;  %v14150_v16 = vrot.slane %v2586_v47, %v12624_v13  ;;  %v14155_v44 = vrot.slane %v2587_v5, %v12624_v13 }
 0x1ad   :  { %17985 = vst [vmem:[#allocation73_spill] sm:$0xff] %v14145_v19  ;;  %v17652_v6 = vrot.slane %v14136_v36, 1  ;;  %v14160_v42 = vmul.f32 %v12579_v57, %v14098_v25  ;;  %v5530_v40 = vmax.f32 %v5528_v17, %v5529_v21  ;;  %v14165_v26 = vrot.slane %v2588_v12, %v12624_v13 }
 0x1ae   :  { %17986 = vst [vmem:[#allocation74_spill] sm:$0xff] %v14150_v16  ;;  %17987 = vst [vmem:[#allocation75_spill] sm:$0xff] %v14155_v44  ;;  %v4476_v43 = vrot.slane %v4469_v29, %v12624_v13  ;;  %v5535_v50 = vsel %vm1122_vm4, %v4453_v45, -inf  ;;  %v2628_v9 = vrot.slane %v1745_v24, %v12624_v13  ;;  %v2635_v3 = vrot.slane %v2621_v39, %v12624_v13 }
 0x1af   :  { %17988 = vst [vmem:[#allocation76_spill] sm:$0xff] %v14165_v26  ;;  %v5536_v10 = vrot.slane %v5535_v50, 4  ;;  %v5531_v18 = vrot.slane %v5530_v40, 2  ;;  %v2617_v30 = vcombine.high %v14143_v31, %v14143_v31  ;;  %v2620_v37 = vcombine.high %v14165_v26, %v14165_v26  ;;  %v11782_v26 = vld [vmem:[#allocation2 + $0x1a4] ss:$8 sps:$4 sm:$0xff]  }
 0x1b0   :  { %v5542_v49 = vsel %vm1122_vm4, %v4476_v43, -inf  ;;  %v2636_v47 = vcombine.high %v2628_v9, %v2628_v9  ;;  %v2637_v5 = vcombine.high %v2635_v3, %v2635_v3  ;;  %v2644_v24 = vrot.slane %v2628_v9, %v12624_v13  ;;  %v11785_v31 = vld [vmem:[#allocation2 + $0x94] ss:$8 sps:$4 sm:$0xff]  }
 0x1b1   :  { %v5537_v32 = vmax.f32 %v5535_v50, %v5536_v10  ;;  %v5543_v2 = vrot.slane %v5542_v49, 4  ;;  %v5532_v34 = vmax.f32 %v5530_v40, %v5531_v18  ;;  %v14179_v53 = vrot.slane %v2635_v3, %v12624_v13 }
 0x1b2   :  { %v14182_v17 = vrot.slane %v2636_v47, %v12624_v13  ;;  %v2665_v12 = vrot.slane %v2637_v5, %v12624_v13  ;;  %v14190_v29 = vcombine.low %v14155_v44, %v2617_v30  ;;  %v14197_v9 = vmul.f32 %v12583_v58, %v14098_v25 }
 0x1b3   :  { %17989 = vst [vmem:[#allocation77_spill] sm:$0xff] %v14179_v53  ;;  %v5538_v27 = vrot.slane %v5537_v32, 2  ;;  %v5544_v63 = vmax.f32 %v5542_v49, %v5543_v2  ;;  %v5533_v39 = vrot.slane %v5532_v34, 1  ;;  %v2667_v45 = vcombine.high %v14179_v53, %v14179_v53 }
 0x1b4   :  { %17990 = vst [vmem:[#allocation78_spill] sm:$0xff] %v14182_v17  ;;  %17991 = vst [vmem:[#allocation79_spill] sm:$0xff] %v14190_v29  ;;  %v2669_v43 = vcombine.high %v2665_v12, %v2665_v12  ;;  %v11235_v40 = vcombine.high %v2644_v24, %v14182_v17  ;;  %v14201_v3 = vmul.f32 %v12585_v59, %v14098_v25  ;;  %v18000_v20 = vrot.slane %v13935_v51, 2 }
 0x1b5   :  { %v14192_v21 = vmax.f32 %v5537_v32, %v5538_v27  ;;  %v5545_v52 = vrot.slane %v5544_v63, 2  ;;  %v5534_v50 = vmax.f32 %v5532_v34, %v5533_v39  ;;  %v4339_v10 = vcombine.low %v2665_v12, %v2667_v45  ;;  %v204_v27 = vpop.permute.xlu0 %203 }
 0x1b6   :  { %v14205_v49 = vcombine.low %v2620_v37, %v2644_v24  ;;  %v4353_v30 = vrot.slane %v2669_v43, %v12624_v13  ;;  %v14216_v39 = vrot.slane %v11235_v40, %v12624_v13  ;;  %v14222_v45 = vmul.f32 %v12587_v60, %v14098_v25 }
 0x1b7   :  { %17992 = vst [vmem:[#allocation80_spill] sm:$0xff] %v14192_v21  ;;  %v5788_v47 = vpack.c.bf16 %v5534_v50, %v5534_v50  ;;  %v4346_v34 = vrot.slane %v4339_v10, %v12624_v13  ;;  %v14213_v12 = vmax.f32 %v5544_v63, %v5545_v52  ;;  %v14226_v43 = vmul.f32 %v12589_v61, %v14098_v25 }
 0x1b8   :  { %17993 = vst [vmem:[#allocation81_spill] sm:$0xff] %v14205_v49  ;;  %17995 = vst [vmem:[#allocation83_spill] sm:$0xff] %v14216_v39  ;;  %v14230_v50 = vmul.f32 %v12591_v62, %v14098_v25  ;;  %v14234_v63 = vmul.f32 %v14014_v23, %v14098_v25  ;;  %v316_v2 = vmul.f32 %v12575_v56, %v204_v27  ;;  %v17999_v24 = vrot.slane %v13931_v11, 1 }
 0x1b9   :  { %17994 = vst [vmem:[#allocation82_spill] sm:$0xff] %v14213_v12  ;;  %v14236_v52 = vunpack.c.l.b16 %v5788_v47  ;;  %v14238_v40 = vcombine.low %v4346_v34, %v4353_v30  ;;  %v507_v28 = vmul.f32 %v12579_v57, %v204_v27  ;;  %v698_v46 = vmul.f32 %v12583_v58, %v204_v27 }
 0x1ba   :  { %17996 = vst [vmem:[#allocation84_spill] sm:$0xff] %v14230_v50  ;;  %v889_v5 = vmul.f32 %v12585_v59, %v204_v27  ;;  %v1080_v7 = vmul.f32 %v12587_v60, %v204_v27  ;;  %v271_v25 = vmul.f32 %v12599_v1, %v204_v27  ;;  %v401_v18 = vrot.slane %v316_v2, 1 }
 0x1bb   :  { %17997 = vst [vmem:[#allocation85_spill] sm:$0xff] %v14236_v52  ;;  %17998 = vst [vmem:[#allocation86_spill] sm:$0xff] %v14238_v40  ;;  %v1271_v47 = vmul.f32 %v12589_v61, %v204_v27  ;;  %v1462_v30 = vmul.f32 %v12591_v62, %v204_v27  ;;  %v592_v10 = vrot.slane %v507_v28, 2  ;;  %v783_v33 = vrot.slane %v698_v46, 3 }
 0x1bc   :  { %v402_v37 = vsel %vm358_vm0, %v17999_v24, %v401_v18  ;;  %v404_v32 = vsel %vm358_vm0, %v401_v18, %v17652_v6  ;;  %v974_v52 = vrot.slane %v889_v5, 4  ;;  %v1165_v2 = vrot.slane %v1080_v7, 5  ;;  %v224_v18 = vpop.permute.xlu1 %223 }
 0x1bd   :  { %v17653_v21 = vrot.slane %v14230_v50, 7  ;;  %v471_v19 = vadd.f32 %v402_v37, %v14102_v8  ;;  %v472_v4 = vadd.f32 %v404_v32, %v271_v25  ;;  %v1356_v34 = vrot.slane %v1271_v47, 6 }
 0x1be   :  { %v593_v46 = vsel %vm549_vm1, %v18000_v20, %v592_v10  ;;  %v18001_v11 = vrot.slane %v14160_v42, 2  ;;  %v1547_v24 = vrot.slane %v1462_v30, 7  ;;  %v1651_v48 = vmul.f32 %v14014_v23, %v204_v27 }
 0x1bf   :  { %v662_v5 = vadd.f32 %v593_v46, %v471_v19  ;;  %v18002_v6 = vrot.slane %v13939_v54, 3  ;;  %v18003_v32 = vrot.slane %v14197_v9, 3  ;;  %v18004_v20 = vrot.slane %v13943_v22, 4 }
 0x1c0   :  { %v595_v28 = vsel %vm549_vm1, %v592_v10, %v18001_v11  ;;  %v18005_v10 = vrot.slane %v14201_v3, 4  ;;  %v18006_v27 = vrot.slane %v13954_v41, 5  ;;  %v18007_v54 = vrot.slane %v14222_v45, 5 }
 0x1c1   :  { %v663_v7 = vadd.f32 %v595_v28, %v472_v4  ;;  %v784_v8 = vsel %vm740_vm2, %v18002_v6, %v783_v33  ;;  %v786_v51 = vsel %vm740_vm2, %v783_v33, %v18003_v32  ;;  %v975_v37 = vsel %vm931_vm3, %v18004_v20, %v974_v52  ;;  %v219_v32 = vpop.permute.xlu0 %218 }
 0x1c2   :  { %v977_v25 = vsel %vm931_vm3, %v974_v52, %v18005_v10  ;;  %v1166_v4 = vsel %vm1122_vm4, %v18006_v27, %v1165_v2  ;;  %v1168_v19 = vsel %vm1122_vm4, %v1165_v2, %v18007_v54  ;;  %v853_v6 = vadd.f32 %v784_v8, %v662_v5 }
 0x1c3   :  { %v854_v47 = vadd.f32 %v786_v51, %v663_v7  ;;  %v18008_v33 = vrot.slane %v13963_v38, 6  ;;  %v14289_v30 = vmul.f32 %v12575_v56, %v224_v18  ;;  %v14292_v46 = vmul.f32 %v12579_v57, %v224_v18 }
 0x1c4   :  { %v14295_v41 = vmul.f32 %v12583_v58, %v224_v18  ;;  %v14298_v52 = vmul.f32 %v12585_v59, %v224_v18  ;;  %v14301_v2 = vmul.f32 %v12587_v60, %v224_v18  ;;  %v1044_v11 = vadd.f32 %v975_v37, %v853_v6 }
 0x1c5   :  { %v1357_v22 = vsel %vm1313_vm5, %v18008_v33, %v1356_v34  ;;  %v1045_v28 = vadd.f32 %v977_v25, %v854_v47  ;;  %v18009_v38 = vrot.slane %v14226_v43, 6  ;;  %v18010_v7 = vrot.slane %v13967_v14, 7 }
 0x1c6   :  { %v1550_v51 = vsel %vm1504_vm6, %v1547_v24, %v17653_v21  ;;  %v14313_v20 = vmul.f32 %v12599_v1, %v224_v18  ;;  %v17655_v10 = vrot.slane %v14289_v30, 1  ;;  %v14317_v37 = vmul.f32 %v12589_v61, %v224_v18 }
 0x1c7   :  { %v1359_v5 = vsel %vm1313_vm5, %v1356_v34, %v18009_v38  ;;  %v1548_v8 = vsel %vm1504_vm6, %v18010_v7, %v1547_v24  ;;  %v1235_v25 = vadd.f32 %v1166_v4, %v1044_v11  ;;  %v1236_v27 = vadd.f32 %v1168_v19, %v1045_v28 }
 0x1c8   :  { %v14324_v24 = vmul.f32 %v12575_v56, %v219_v32  ;;  %v14327_v47 = vmul.f32 %v12579_v57, %v219_v32  ;;  %v14330_v7 = vmul.f32 %v12591_v62, %v224_v18  ;;  %v14333_v4 = vmul.f32 %v12583_v58, %v219_v32 }
 0x1c9   :  { %v1426_v33 = vadd.f32 %v1357_v22, %v1235_v25  ;;  %v1427_v38 = vadd.f32 %v1359_v5, %v1236_v27  ;;  %v14338_v28 = vmul.f32 %v12585_v59, %v219_v32  ;;  %v14341_v21 = vmul.f32 %v12587_v60, %v219_v32 }
 0x1ca   :  { %v17654_v19 = vrot.slane %v14324_v24, 1  ;;  %v274_v22 = vmul.f32 %v12599_v1, %v219_v32  ;;  %v14353_v11 = vmul.f32 %v12589_v61, %v219_v32  ;;  %v18012_v5 = vrot.slane %v14292_v46, 2 }
 0x1cb   :  { %v1617_v6 = vadd.f32 %v1548_v8, %v1426_v33  ;;  %v1618_v54 = vadd.f32 %v1550_v51, %v1427_v38  ;;  %v14357_v51 = vmul.f32 %v14014_v23, %v224_v18  ;;  %v14359_v38 = vpop.permute.xlu1 %228  ;;  %v18017_v25 = vrot.slane %v14298_v52, 4 }
 0x1cc   :  { %v410_v27 = vsel %vm358_vm0, %v17654_v19, %v17655_v10  ;;  %18011 = vst [vmem:[#allocation87_spill] sm:$0xff] %v14353_v11  ;;  %v18013_v19 = vrot.slane %v14327_v47, 2  ;;  %v18018_v14 = vrot.slane %v14338_v28, 4  ;;  %v14404_v39 = vmul.f32 %v14014_v23, %v219_v32 }
 0x1cd   :  { %v1681_v34 = vadd.f32 %v1651_v48, %v1617_v6  ;;  %v1682_v8 = vadd.f32 %v14234_v63, %v1618_v54  ;;  %v475_v33 = vadd.f32 %v410_v27, %v274_v22  ;;  %v14369_v48 = vmul.f32 %v12591_v62, %v219_v32  ;;  %v14374_v63 = vld [vmem:[%s17527_s2] ss:$0 sm:$0xff] }
 0x1ce   :  { %v601_v10 = vsel %vm549_vm1, %v18013_v19, %v18012_v5  ;;  %v18015_v22 = vrot.slane %v14295_v41, 3  ;;  %v18016_v27 = vrot.slane %v14333_v4, 3  ;;  %v11776_v5 = vld [vmem:[#allocation2 + $0x1b4] ss:$8 sps:$4 sm:$0xff]   ;;  %v983_v40 = vsel %vm931_vm3, %v18018_v14, %v18017_v25  ;;  %18022 = vst [vmem:[#allocation90_spill] sm:$0xff] %v14404_v39 }
 0x1cf   :  { %18014 = vst [vmem:[#allocation88_spill] sm:$0xff] %v14369_v48  ;;  %v1718_v18 = vadd.f32 %v14374_v63, %v1681_v34  ;;  %v1719_v54 = vadd.f32 %v14374_v63, %v1682_v8  ;;  %v666_v6 = vadd.f32 %v601_v10, %v475_v33  ;;  %v14392_v10 = vmul.f32 %v12575_v56, %v14359_v38  ;;  %v11778_v8 = vld [vmem:[#allocation2 + $0x1b0] ss:$8 sps:$4 sm:$0xff]  }
 0x1d0   :  { %v792_v19 = vsel %vm740_vm2, %v18016_v27, %v18015_v22  ;;  %v14396_v22 = vmul.f32 %v12579_v57, %v14359_v38  ;;  %7492 = vmatprep.subr.bf16.mxu1 %v11776_v5  ;;  %v11779_v27 = vld [vmem:[#allocation2 + $0xa4] ss:$8 sps:$4 sm:$0xff]   ;;  %v18020_v14 = vrot.slane %v14301_v2, 5  ;;  %v18021_v25 = vrot.slane %v14341_v21, 5 }
 0x1d1   :  { %18019 = vst [vmem:[#allocation89_spill] sm:$0xff] %v14392_v10  ;;  %v1748_v33 = vmax.f32 %v1718_v18, 0.0  ;;  %v1749_v53 = vmax.f32 %v1719_v54, 0.0  ;;  %v857_v17 = vadd.f32 %v792_v19, %v666_v6  ;;  %v14409_v18 = vmul.f32 %v12583_v58, %v14359_v38  ;;  %7493 = vmatpush2.bf16.msra.mxu1 %v11778_v8  ;;  %v11781_v54 = vld [vmem:[#allocation2 + $0xa0] ss:$8 sps:$4 sm:$0xff]   ;;  %7421 = vmatprep.subr.bf16.mxu0 %v11779_v27 }
 0x1d2   :  { %v1174_v34 = vsel %vm1122_vm4, %v18021_v25, %v18020_v14  ;;  %v18023_v32 = vrot.slane %v14317_v37, 6  ;;  %v18024_v25 = vrot.slane %v14353_v11, 6  ;;  %v18025_v16 = vrot.slane %v14330_v7, 7  ;;  %7422 = vmatpush2.bf16.msra.mxu0 %v11781_v54  ;;  %7494 = vmatprep.subr.bf16.mxu1 %v11782_v26  ;;  %v11788_v26 = vld [vmem:[#allocation2 + $0x194] ss:$8 sps:$4 sm:$0xff]  }
 0x1d3   :  { %v2768_v6 = vcombine.high %v1748_v33, %v1748_v33  ;;  %v2775_v19 = vrot.slane %v1748_v33, %v12624_v13  ;;  %v2817_v5 = vcombine.high %v1749_v53, %v1749_v53  ;;  %v2824_v12 = vrot.slane %v1749_v53, %v12624_v13  ;;  %v11784_v53 = vld [vmem:[#allocation2 + $0x1a0] ss:$8 sps:$4 sm:$0xff]   ;;  %7423 = vmatprep.subr.bf16.mxu0 %v11785_v31  ;;  %v11790_v54 = vld [vmem:[#allocation2 + $0x190] ss:$8 sps:$4 sm:$0xff]  }
 0x1d4   :  { %v1048_v14 = vadd.f32 %v983_v40, %v857_v17  ;;  %v1365_v49 = vsel %vm1313_vm5, %v18024_v25, %v18023_v32  ;;  %v18026_v8 = vrot.slane %v14369_v48, 7  ;;  %v14425_v33 = vmul.f32 %v12585_v59, %v14359_v38 }
 0x1d5   :  { %v2782_v17 = vrot.slane %v2768_v6, %v12624_v13  ;;  %v2783_v40 = vcombine.high %v2775_v19, %v2775_v19  ;;  %v18027_v27 = vrot.slane %v14392_v10, 1  ;;  %v18028_v29 = vrot.slane %v14289_v30, 1  ;;  %7495 = vmatpush2.bf16.msra.mxu1 %v11784_v53  ;;  %v11787_v6 = vld [vmem:[#allocation2 + $0x90] ss:$8 sps:$4 sm:$0xff]  }
 0x1d6   :  { %v1556_v44 = vsel %vm1504_vm6, %v18026_v8, %v18025_v16  ;;  %v2791_v16 = vrot.slane %v2775_v19, %v12624_v13  ;;  %v2832_v8 = vcombine.high %v2824_v12, %v2824_v12  ;;  %v2840_v0 = vrot.slane %v2824_v12, %v12624_v13  ;;  %7424 = vmatpush2.bf16.msra.mxu0 %v11787_v6 }
 0x1d7   :  { %v412_v32 = vsel %vm358_vm0, %v18028_v29, %v18027_v27  ;;  %v2784_v15 = vcombine.high %v2782_v17, %v2782_v17  ;;  %v2798_v10 = vrot.slane %v2782_v17, %v12624_v13  ;;  %v2805_v30 = vrot.slane %v2783_v40, %v12624_v13  ;;  %7496 = vmatprep.subr.bf16.mxu1 %v11788_v26 }
 0x1d8   :  { %v14440_v29 = vrot.slane %v2817_v5, %v12624_v13  ;;  %v2854_v27 = vrot.slane %v2832_v8, %v12624_v13  ;;  %v18029_v19 = vcombine.high %v14127_v55, %v14127_v55  ;;  %v1239_v25 = vadd.f32 %v1174_v34, %v1048_v14  ;;  %v11791_v5 = vld [vmem:[#allocation2 + $0x84] ss:$8 sps:$4 sm:$0xff]   ;;  %v11793_v55 = vld [vmem:[#allocation2 + $0x80] ss:$8 sps:$4 sm:$0xff]  }
 0x1d9   :  { %v476_v53 = vadd.f32 %v412_v32, %v14313_v20  ;;  %v2812_v17 = vrot.slane %v2784_v15, %v12624_v13  ;;  %v2814_v39 = vcombine.high %v2798_v10, %v2798_v10  ;;  %v2862_v40 = vcombine.high %v2840_v0, %v2840_v0  ;;  %7497 = vmatpush2.bf16.msra.mxu1 %v11790_v54  ;;  %v11794_v15 = vld [vmem:[#allocation2 + $0x184] ss:$8 sps:$4 sm:$0xff]  }
 0x1da   :  { %v4477_v12 = vcombine.low %v18029_v19, %v2791_v16  ;;  %v11237_v48 = vcombine.high %v2791_v16, %v2805_v30  ;;  %v2864_v31 = vcombine.high %v2854_v27, %v2854_v27  ;;  %v4491_v8 = vrot.slane %v2805_v30, %v12624_v13  ;;  %7425 = vmatprep.subr.bf16.mxu0 %v11791_v5 }
 0x1db   :  { %v4546_v11 = vcombine.low %v2840_v0, %v2854_v27  ;;  %v2816_v34 = vcombine.high %v2812_v17, %v2812_v17  ;;  %v4514_v14 = vrot.slane %v2798_v10, %v12624_v13  ;;  %v4523_v32 = vcombine.low %v2812_v17, %v2814_v39  ;;  %7426 = vmatpush2.bf16.msra.mxu0 %v11793_v55  ;;  %v11796_v0 = vld [vmem:[#allocation2 + $0x180] ss:$8 sps:$4 sm:$0xff]  }
 0x1dc   :  { %v4484_v50 = vrot.slane %v4477_v12, %v12624_v13  ;;  %v4507_v20 = vrot.slane %v11237_v48, %v12624_v13  ;;  %v2833_v16 = vcombine.high %v14440_v29, %v14440_v29  ;;  %v14456_v6 = vrot.slane %v14440_v29, %v12624_v13  ;;  %7498 = vmatprep.subr.bf16.mxu1 %v11794_v15 }
 0x1dd   :  { %v1430_v30 = vadd.f32 %v1365_v49, %v1239_v25  ;;  %v4530_v27 = vrot.slane %v4523_v32, %v12624_v13  ;;  %v4537_v48 = vrot.slane %v2816_v34, %v12624_v13  ;;  %v14461_v39 = vrot.slane %v2862_v40, %v12624_v13  ;;  %7499 = vmatpush2.bf16.msra.mxu1 %v11796_v0 }
 0x1de   :  { %v4492_v26 = vcombine.low %v4484_v50, %v4491_v8  ;;  %v4515_v54 = vcombine.low %v4507_v20, %v4514_v14  ;;  %v14465_v19 = vrot.slane %v4546_v11, %v12624_v13  ;;  %v18030_v50 = vrot.slane %v14396_v22, 2 }
 0x1df   :  { %v1621_v29 = vadd.f32 %v1556_v44, %v1430_v30  ;;  %v18031_v49 = vrot.slane %v14292_v46, 2  ;;  %v14474_v17 = vcombine.low %v2864_v31, %v14456_v6  ;;  %v18032_v5 = vrot.slane %v14409_v18, 3 }
 0x1e0   :  { %v4499_v10 = vrot.slane %v4492_v26, %v12624_v13  ;;  %v4522_v12 = vrot.slane %v4515_v54, %v12624_v13  ;;  %v18033_v8 = vrot.slane %v14295_v41, 3  ;;  %v17673_v46 = vrot.slane %v14425_v33, 4 }
 0x1e1   :  { %v603_v25 = vsel %vm549_vm1, %v18031_v49, %v18030_v50  ;;  %v1685_v55 = vadd.f32 %v14357_v51, %v1621_v29  ;;  %v14486_v34 = vmul.f32 %v12587_v60, %v14359_v38  ;;  %v14488_v20 = vcombine.low %v4530_v27, %v4537_v48 }
 0x1e2   :  { %v667_v40 = vadd.f32 %v603_v25, %v476_v53  ;;  %v794_v11 = vsel %vm740_vm2, %v18033_v8, %v18032_v5  ;;  %v5549_v44 = vsel %vm1122_vm4, %v4499_v10, -inf  ;;  %v5556_v53 = vsel %vm1122_vm4, %v4522_v12, -inf }
 0x1e3   :  { %v5550_v31 = vrot.slane %v5549_v44, 4  ;;  %v5557_v32 = vrot.slane %v5556_v53, 4  ;;  %v1722_v41 = vadd.f32 %v14374_v63, %v1685_v55  ;;  %v18034_v15 = vrot.slane %v14298_v52, 4  ;;  %v14524_v55 = vpop.permute.xlu0 %213 }
 0x1e4   :  { %v858_v14 = vadd.f32 %v794_v11, %v667_v40  ;;  %v17672_v26 = vrot.slane %v14486_v34, 5  ;;  %v14500_v54 = vmul.f32 %v12589_v61, %v14359_v38  ;;  %v14504_v27 = vmul.f32 %v12591_v62, %v14359_v38 }
 0x1e5   :  { %v985_v51 = vsel %vm931_vm3, %v18034_v15, %v17673_v46  ;;  %v5551_v30 = vmax.f32 %v5549_v44, %v5550_v31  ;;  %v1752_v10 = vmax.f32 %v1722_v41, 0.0  ;;  %v14510_v52 = vmul.f32 %v12599_v1, %v14359_v38 }
 0x1e6   :  { %v1049_v0 = vadd.f32 %v985_v51, %v858_v14  ;;  %v18035_v29 = vrot.slane %v14301_v2, 5  ;;  %v14517_v25 = vmax.f32 %v5556_v53, %v5557_v32  ;;  %v17670_v40 = vrot.slane %v14500_v54, 6 }
 0x1e7   :  { %v5552_v49 = vrot.slane %v5551_v30, 2  ;;  %v4576_v5 = vrot.slane %v14474_v17, %v12624_v13  ;;  %v2964_v8 = vcombine.high %v1752_v10, %v1752_v10  ;;  %v2971_v11 = vrot.slane %v1752_v10, %v12624_v13 }
 0x1e8   :  { %v1176_v50 = vsel %vm1122_vm4, %v18035_v29, %v17672_v26  ;;  %v17671_v44 = vrot.slane %v14504_v27, 7  ;;  %v18036_v31 = vrot.slane %v14317_v37, 6  ;;  %v1656_v14 = vmul.f32 %v14014_v23, %v14359_v38 }
 0x1e9   :  { %v1240_v12 = vadd.f32 %v1176_v50, %v1049_v0  ;;  %v14536_v32 = vrot.slane %v2833_v16, %v12624_v13  ;;  %v2978_v41 = vrot.slane %v2964_v8, %v12624_v13  ;;  %v2979_v15 = vcombine.high %v2971_v11, %v2971_v11 }
 0x1ea   :  { %v1367_v53 = vsel %vm1313_vm5, %v18036_v31, %v17670_v40  ;;  %v2987_v51 = vrot.slane %v2971_v11, %v12624_v13  ;;  %v14540_v10 = vmax.f32 %v5551_v30, %v5552_v49  ;;  %v318_v37 = vmul.f32 %v12575_v56, %v14524_v55 }
 0x1eb   :  { %v1431_v0 = vadd.f32 %v1367_v53, %v1240_v12  ;;  %v509_v50 = vmul.f32 %v12579_v57, %v14524_v55  ;;  %v2980_v23 = vcombine.high %v2978_v41, %v2978_v41  ;;  %v3001_v38 = vrot.slane %v2979_v15, %v12624_v13 }
 0x1ec   :  { %v3009_v16 = vcombine.high %v2987_v51, %v2987_v51  ;;  %v18037_v8 = vrot.slane %v14330_v7, 7  ;;  %v4583_v49 = vrot.slane %v14536_v32, %v12624_v13  ;;  %v273_v11 = vmul.f32 %v12599_v1, %v14524_v55 }
 0x1ed   :  { %v405_v31 = vrot.slane %v318_v37, 1  ;;  %v2994_v53 = vrot.slane %v2978_v41, %v12624_v13  ;;  %v3011_v2 = vcombine.high %v3001_v38, %v3001_v38  ;;  %v4730_v29 = vcombine.low %v2987_v51, %v3001_v38 }
 0x1ee   :  { %v1558_v12 = vsel %vm1504_vm6, %v18037_v8, %v17671_v44  ;;  %v3008_v15 = vrot.slane %v2980_v23, %v12624_v13  ;;  %v18038_v40 = vrot.slane %v14136_v36, 1  ;;  %v14566_v44 = vrot.slane %v3009_v16, %v12624_v13 }
 0x1ef   :  { %v1622_v30 = vadd.f32 %v1558_v12, %v1431_v0  ;;  %v18039_v0 = vrot.slane %v14324_v24, 1  ;;  %v596_v12 = vrot.slane %v509_v50, 2  ;;  %v4753_v37 = vcombine.low %v3011_v2, %v2994_v53 }
 0x1f0   :  { %v406_v7 = vsel %vm358_vm0, %v18038_v40, %v405_v31  ;;  %18040 = vst [vmem:[#allocation91_spill] sm:$0xff] %v14566_v44  ;;  %v11240_v26 = vcombine.high %v2994_v53, %v3008_v15  ;;  %v11238_v41 = vcombine.high %v14456_v6, %v14536_v32  ;;  %v14571_v51 = vrot.slane %v4730_v29, %v12624_v13 }
 0x1f1   :  { %v1686_v48 = vadd.f32 %v1656_v14, %v1622_v30  ;;  %v408_v8 = vsel %vm358_vm0, %v405_v31, %v18039_v0  ;;  %v473_v40 = vadd.f32 %v406_v7, %v14112_v35  ;;  %v4760_v24 = vrot.slane %v4753_v37, %v12624_v13 }
 0x1f2   :  { %v474_v14 = vadd.f32 %v408_v8, %v273_v11  ;;  %v4767_v50 = vrot.slane %v3008_v15, %v12624_v13  ;;  %v4783_v23 = vrot.slane %v11240_v26, %v12624_v13  ;;  %v18041_v2 = vrot.slane %v14160_v42, 2 }
 0x1f3   :  { %v1723_v36 = vadd.f32 %v14374_v63, %v1686_v48  ;;  %v18042_v30 = vrot.slane %v14327_v47, 2  ;;  %v700_v35 = vmul.f32 %v12583_v58, %v14524_v55  ;;  %v891_v53 = vmul.f32 %v12585_v59, %v14524_v55 }
 0x1f4   :  { %v597_v38 = vsel %vm549_vm1, %v18041_v2, %v596_v12  ;;  %v4768_v48 = vcombine.low %v4760_v24, %v4767_v50  ;;  %v1082_v26 = vmul.f32 %v12587_v60, %v14524_v55  ;;  %v1273_v47 = vmul.f32 %v12589_v61, %v14524_v55 }
 0x1f5   :  { %v1753_v16 = vmax.f32 %v1723_v36, 0.0  ;;  %v599_v29 = vsel %vm549_vm1, %v596_v12, %v18042_v30  ;;  %v664_v31 = vadd.f32 %v597_v38, %v473_v40  ;;  %v787_v7 = vrot.slane %v700_v35, 3 }
 0x1f6   :  { %v665_v11 = vadd.f32 %v599_v29, %v474_v14  ;;  %v4775_v0 = vrot.slane %v4768_v48, %v12624_v13  ;;  %v978_v8 = vrot.slane %v891_v53, 4  ;;  %v1169_v12 = vrot.slane %v1082_v26, 5 }
 0x1f7   :  { %v3013_v42 = vcombine.high %v1753_v16, %v1753_v16  ;;  %v3020_v15 = vrot.slane %v1753_v16, %v12624_v13  ;;  %v1464_v37 = vmul.f32 %v12591_v62, %v14524_v55  ;;  %v18043_v24 = vrot.slane %v14197_v9, 3 }
 0x1f8   :  { %v5633_v2 = vsel %vm1122_vm4, %v4775_v0, -inf  ;;  %v18044_v38 = vrot.slane %v14333_v4, 3  ;;  %v18045_v29 = vrot.slane %v14201_v3, 4  ;;  %v18046_v0 = vrot.slane %v14338_v28, 4 }
 0x1f9   :  { %v3027_v36 = vrot.slane %v3013_v42, %v12624_v13  ;;  %v3028_v40 = vcombine.high %v3020_v15, %v3020_v15  ;;  %v3036_v14 = vrot.slane %v3020_v15, %v12624_v13  ;;  %v788_v50 = vsel %vm740_vm2, %v18043_v24, %v787_v7 }
 0x1fa   :  { %v790_v16 = vsel %vm740_vm2, %v787_v7, %v18044_v38  ;;  %v855_v30 = vadd.f32 %v788_v50, %v664_v31  ;;  %v979_v35 = vsel %vm931_vm3, %v18045_v29, %v978_v8  ;;  %v5634_v15 = vrot.slane %v5633_v2, 4 }
 0x1fb   :  { %v3029_v48 = vcombine.high %v3027_v36, %v3027_v36  ;;  %v3043_v53 = vrot.slane %v3027_v36, %v12624_v13  ;;  %v3050_v26 = vrot.slane %v3028_v40, %v12624_v13  ;;  %v3058_v42 = vcombine.high %v3036_v14, %v3036_v14 }
 0x1fc   :  { %v4790_v9 = vrot.slane %v3036_v14, %v12624_v13  ;;  %v856_v24 = vadd.f32 %v790_v16, %v665_v11  ;;  %v981_v4 = vsel %vm931_vm3, %v978_v8, %v18046_v0  ;;  %v1046_v29 = vadd.f32 %v979_v35, %v855_v30 }
 0x1fd   :  { %v14615_v31 = vrot.slane %v3029_v48, %v12624_v13  ;;  %v3059_v3 = vcombine.high %v3043_v53, %v3043_v53  ;;  %v3060_v7 = vcombine.high %v3050_v26, %v3050_v26  ;;  %v4799_v50 = vcombine.low %v3050_v26, %v3058_v42 }
 0x1fe   :  { %v4791_v38 = vcombine.low %v4783_v23, %v4790_v9  ;;  %v1047_v36 = vadd.f32 %v981_v4, %v856_v24  ;;  %v1360_v46 = vrot.slane %v1273_v47, 6  ;;  %v14620_v16 = vmax.f32 %v5633_v2, %v5634_v15  ;;  %v18051_v24 = vld [vmem:[#allocation87_spill] sm:$0xff] }
 0x1ff   :  { %v4806_v40 = vrot.slane %v4799_v50, %v12624_v13  ;;  %v4813_v14 = vrot.slane %v3060_v7, %v12624_v13  ;;  %v4822_v11 = vcombine.low %v3043_v53, %v14615_v31  ;;  %v4836_v8 = vrot.slane %v3059_v3, %v12624_v13 }
 0x200   :  { %18047 = vst [vmem:[#allocation92_spill] sm:$0xff] %v14620_v16  ;;  %v4798_v28 = vrot.slane %v4791_v38, %v12624_v13  ;;  %v18048_v48 = vrot.slane %v14222_v45, 5  ;;  %v18049_v23 = vrot.slane %v14341_v21, 5  ;;  %v18050_v53 = vrot.slane %v14226_v43, 6  ;;  %v18053_v38 = vld [vmem:[#allocation84_spill] sm:$0xff] }
 0x201   :  { %v4814_v30 = vcombine.low %v4806_v40, %v4813_v14  ;;  %v4829_v35 = vrot.slane %v4822_v11, %v12624_v13  ;;  %v18052_v0 = vrot.slane %v18051_v24, 6  ;;  %v1551_v4 = vrot.slane %v1464_v37, 7  ;;  %v18055_v40 = vld [vmem:[#allocation88_spill] sm:$0xff]  ;;  %v14648_v11 = vld [vmem:[%s17526_s1 + $0x8] ss:$0 sm:$0xff]  ;;  %v18057_v24 = vld [vmem:[#allocation90_spill] sm:$0xff] }
 0x202   :  { %v1170_v26 = vsel %vm1122_vm4, %v18048_v48, %v1169_v12  ;;  %v1172_v47 = vsel %vm1122_vm4, %v1169_v12, %v18049_v23  ;;  %v5640_v2 = vsel %vm1122_vm4, %v4798_v28, -inf  ;;  %v1361_v15 = vsel %vm1313_vm5, %v18050_v53, %v1360_v46 }
 0x203   :  { %v1237_v42 = vadd.f32 %v1170_v26, %v1046_v29  ;;  %v1238_v9 = vadd.f32 %v1172_v47, %v1047_v36  ;;  %v1363_v45 = vsel %vm1313_vm5, %v1360_v46, %v18052_v0  ;;  %v4821_v21 = vrot.slane %v4814_v30, %v12624_v13  ;;  %v14654_v26 = vpop.permute.xlu1 %238 }
 0x204   :  { %v4837_v3 = vcombine.low %v4829_v35, %v4836_v8  ;;  %v5641_v12 = vrot.slane %v5640_v2, 4  ;;  %v18054_v29 = vrot.slane %v18053_v38, 7  ;;  %v18056_v14 = vrot.slane %v18055_v40, 7 }
 0x205   :  { %v1428_v7 = vadd.f32 %v1361_v15, %v1237_v42  ;;  %v1429_v50 = vadd.f32 %v1363_v45, %v1238_v9  ;;  %v1653_v46 = vmul.f32 %v14648_v11, %v14524_v55  ;;  %v5647_v8 = vsel %vm1122_vm4, %v4821_v21, -inf }
 0x206   :  { %v1552_v36 = vsel %vm1504_vm6, %v18054_v29, %v1551_v4  ;;  %v1554_v43 = vsel %vm1504_vm6, %v1551_v4, %v18056_v14  ;;  %v4844_v37 = vrot.slane %v4837_v3, %v12624_v13  ;;  %v5642_v28 = vmax.f32 %v5640_v2, %v5641_v12 }
 0x207   :  { %v1619_v48 = vadd.f32 %v1552_v36, %v1428_v7  ;;  %v5648_v23 = vrot.slane %v5647_v8, 4  ;;  %v14662_v47 = vcombine.low %v4576_v5, %v4583_v49  ;;  %v4599_v55 = vrot.slane %v11238_v41, %v12624_v13 }
 0x208   :  { %v1620_v30 = vadd.f32 %v1554_v43, %v1429_v50  ;;  %v5643_v42 = vrot.slane %v5642_v28, 2  ;;  %v5654_v9 = vsel %vm1122_vm4, %v4844_v37, -inf  ;;  %v14674_v17 = vmul.f32 %v12575_v56, %v14654_v26 }
 0x209   :  { %v1683_v2 = vadd.f32 %v1653_v46, %v1619_v48  ;;  %v5649_v53 = vmax.f32 %v5647_v8, %v5648_v23  ;;  %v5655_v15 = vrot.slane %v5654_v9, 4  ;;  %v14680_v49 = vmul.f32 %v12579_v57, %v14654_v26 }
 0x20a   :  { %v1684_v0 = vadd.f32 %v18057_v24, %v1620_v30  ;;  %v5644_v6 = vmax.f32 %v5642_v28, %v5643_v42  ;;  %v14687_v21 = vmul.f32 %v12583_v58, %v14654_v26  ;;  %v14691_v7 = vmul.f32 %v12599_v1, %v14654_v26 }
 0x20b   :  { %v1720_v32 = vadd.f32 %v14374_v63, %v1683_v2  ;;  %v5650_v41 = vrot.slane %v5649_v53, 2  ;;  %v14682_v45 = vmax.f32 %v5654_v9, %v5655_v15  ;;  %v14695_v50 = vmul.f32 %v12585_v59, %v14654_v26 }
 0x20c   :  { %v1721_v4 = vadd.f32 %v14374_v63, %v1684_v0  ;;  %v5645_v3 = vrot.slane %v5644_v6, 1  ;;  %v14702_v40 = vmul.f32 %v12587_v60, %v14654_v26 }
 0x20d   :  { %v1750_v12 = vmax.f32 %v1720_v32, 0.0  ;;  %v14697_v38 = vmax.f32 %v5649_v53, %v5650_v41  ;;  %v5657_v28 = vrot.slane %v14682_v45, 2 }
 0x20e   :  { %v1751_v29 = vmax.f32 %v1721_v4, 0.0  ;;  %v5646_v14 = vmax.f32 %v5644_v6, %v5645_v3  ;;  %v11799_v6 = vld [vmem:[#allocation2 + $0x274] ss:$8 sps:$4 sm:$0xff]  }
 0x20f   :  { %18058 = vst [vmem:[#allocation87_spill] sm:$0xff] %v14697_v38  ;;  %v2866_v43 = vcombine.high %v1750_v12, %v1750_v12  ;;  %v2873_v46 = vrot.slane %v1750_v12, %v12624_v13  ;;  %7541 = vmatprep.subr.bf16.mxu0 %v11799_v6 }
 0x210   :  { %v2915_v8 = vcombine.high %v1751_v29, %v1751_v29  ;;  %v2922_v48 = vrot.slane %v1751_v29, %v12624_v13  ;;  %v5804_v32 = vpack.c.bf16 %v5646_v14, %v5646_v14 }
 0x211   :  { %v2880_v30 = vrot.slane %v2866_v43, %v12624_v13  ;;  %v2881_v42 = vcombine.high %v2873_v46, %v2873_v46  ;;  %v2889_v9 = vrot.slane %v2873_v46, %v12624_v13 }
 0x212   :  { %v2929_v15 = vrot.slane %v2915_v8, %v12624_v13  ;;  %v2930_v24 = vcombine.high %v2922_v48, %v2922_v48  ;;  %v2938_v14 = vrot.slane %v2922_v48, %v12624_v13 }
 0x213   :  { %v2882_v41 = vcombine.high %v2880_v30, %v2880_v30  ;;  %v2896_v4 = vrot.slane %v2880_v30, %v12624_v13  ;;  %v2903_v3 = vrot.slane %v2881_v42, %v12624_v13  ;;  %v2911_v12 = vcombine.high %v2889_v9, %v2889_v9 }
 0x214   :  { %v2931_v29 = vcombine.high %v2929_v15, %v2929_v15  ;;  %v2945_v43 = vrot.slane %v2929_v15, %v12624_v13  ;;  %v2952_v46 = vrot.slane %v2930_v24, %v12624_v13  ;;  %v4606_v35 = vrot.slane %v2889_v9, %v12624_v13 }
 0x215   :  { %v2910_v53 = vrot.slane %v2882_v41, %v12624_v13  ;;  %v2912_v8 = vcombine.high %v2896_v4, %v2896_v4  ;;  %v2913_v5 = vcombine.high %v2903_v3, %v2903_v3  ;;  %v4615_v2 = vcombine.low %v2903_v3, %v2911_v12 }
 0x216   :  { %v2959_v0 = vrot.slane %v2931_v29, %v12624_v13  ;;  %v2961_v30 = vcombine.high %v2945_v43, %v2945_v43  ;;  %v4607_v23 = vcombine.low %v4599_v55, %v4606_v35  ;;  %v11239_v6 = vcombine.high %v2938_v14, %v2952_v46 }
 0x217   :  { %v2914_v42 = vcombine.high %v2910_v53, %v2910_v53  ;;  %v4629_v37 = vrot.slane %v2913_v5, %v12624_v13  ;;  %v4638_v15 = vcombine.low %v2896_v4, %v2910_v53  ;;  %v4622_v24 = vrot.slane %v4615_v2, %v12624_v13 }
 0x218   :  { %v2963_v36 = vcombine.high %v2959_v0, %v2959_v0  ;;  %v14727_v41 = vmul.f32 %v12589_v61, %v14654_v26  ;;  %v4614_v9 = vrot.slane %v4607_v23, %v12624_v13  ;;  %v4652_v29 = vrot.slane %v2912_v8, %v12624_v13 }
 0x219   :  { %v4645_v48 = vrot.slane %v4638_v15, %v12624_v13  ;;  %v4661_v3 = vcombine.low %v2914_v42, %v2938_v14  ;;  %v4630_v12 = vcombine.low %v4622_v24, %v4629_v37  ;;  %v4691_v55 = vrot.slane %v11239_v6, %v12624_v13 }
 0x21a   :  { %v4698_v35 = vrot.slane %v2945_v43, %v12624_v13  ;;  %v4707_v5 = vcombine.low %v2959_v0, %v2961_v30  ;;  %v4675_v4 = vrot.slane %v2952_v46, %v12624_v13  ;;  %v14737_v38 = vsel %vm1122_vm4, %v4614_v9, -inf  ;;  %v234_v46 = vpop.permute.xlu0 %233 }
 0x21b   :  { %v4653_v53 = vcombine.low %v4645_v48, %v4652_v29  ;;  %v4668_v2 = vrot.slane %v4661_v3, %v12624_v13  ;;  %v14740_v23 = vmax.f32 %v14682_v45, %v5657_v28  ;;  %v14742_v15 = vunpack.c.l.b16 %v5804_v32 }
 0x21c   :  { %v4637_v37 = vrot.slane %v4630_v12, %v12624_v13  ;;  %v14745_v8 = vcombine.low %v4691_v55, %v4698_v35  ;;  %v4714_v14 = vrot.slane %v4707_v5, %v12624_v13  ;;  %v4721_v30 = vrot.slane %v2963_v36, %v12624_v13 }
 0x21d   :  { %18059 = vst [vmem:[#allocation84_spill] sm:$0xff] %v14740_v23  ;;  %18060 = vst [vmem:[#allocation88_spill] sm:$0xff] %v14742_v15  ;;  %v4660_v43 = vrot.slane %v4653_v53, %v12624_v13  ;;  %v4676_v0 = vcombine.low %v4668_v2, %v4675_v4  ;;  %v14755_v28 = vmul.f32 %v12591_v62, %v14654_v26  ;;  %v18065_v45 = vrot.slane %v14674_v17, 1  ;;  %v244_v15 = vpop.permute.xlu1 %243 }
 0x21e   :  { %18061 = vst [vmem:[#allocation90_spill] sm:$0xff] %v14745_v8  ;;  %v5591_v24 = vsel %vm1122_vm4, %v4637_v37, -inf  ;;  %v14761_v48 = vmul.f32 %v14648_v11, %v14654_v26  ;;  %v322_v3 = vmul.f32 %v12575_v56, %v234_v46  ;;  %v513_v12 = vmul.f32 %v12579_v57, %v234_v46 }
 0x21f   :  { %v4683_v32 = vrot.slane %v4676_v0, %v12624_v13  ;;  %v5592_v6 = vrot.slane %v5591_v24, 4  ;;  %v5598_v9 = vsel %vm1122_vm4, %v4660_v43, -inf  ;;  %v14767_v55 = vcombine.low %v4714_v14, %v4721_v30  ;;  %v18063_v30 = vld [vmem:[#allocation89_spill] sm:$0xff] }
 0x220   :  { %v5599_v29 = vrot.slane %v5598_v9, 4  ;;  %v704_v5 = vmul.f32 %v12583_v58, %v234_v46  ;;  %v895_v53 = vmul.f32 %v12585_v59, %v234_v46  ;;  %v413_v4 = vrot.slane %v322_v3, 1 }
 0x221   :  { %v5593_v35 = vmax.f32 %v5591_v24, %v5592_v6  ;;  %v604_v37 = vrot.slane %v513_v12, 2  ;;  %v14774_v0 = vsel %vm1122_vm4, %v4683_v32, -inf  ;;  %v277_v36 = vmul.f32 %v12599_v1, %v234_v46 }
 0x222   :  { %v5600_v2 = vmax.f32 %v5598_v9, %v5599_v29  ;;  %18062 = vst [vmem:[#allocation93_spill] sm:$0xff] %v14774_v0  ;;  %v795_v42 = vrot.slane %v704_v5, 3  ;;  %v18064_v24 = vrot.slane %v18063_v30, 1  ;;  %v416_v9 = vsel %vm358_vm0, %v413_v4, %v18065_v45 }
 0x223   :  { %v5594_v43 = vrot.slane %v5593_v35, 2  ;;  %v1086_v29 = vmul.f32 %v12587_v60, %v234_v46  ;;  %v478_v32 = vadd.f32 %v416_v9, %v277_v36  ;;  %v986_v26 = vrot.slane %v895_v53, 4 }
 0x224   :  { %v5601_v14 = vrot.slane %v5600_v2, 2  ;;  %v414_v6 = vsel %vm358_vm0, %v18064_v24, %v413_v4  ;;  %v17678_v5 = vrot.slane %v14755_v28, 7  ;;  %v18067_v30 = vrot.slane %v14396_v22, 2 }
 0x225   :  { %v14784_v3 = vmax.f32 %v5593_v35, %v5594_v43  ;;  %v477_v12 = vadd.f32 %v414_v6, %v14510_v52  ;;  %v18068_v23 = vrot.slane %v14680_v49, 2  ;;  %v18070_v52 = vrot.slane %v14409_v18, 3 }
 0x226   :  { %v605_v24 = vsel %vm549_vm1, %v18067_v30, %v604_v37  ;;  %v14795_v4 = vmax.f32 %v5600_v2, %v5601_v14  ;;  %v18071_v53 = vrot.slane %v14687_v21, 3  ;;  %v1177_v9 = vrot.slane %v1086_v29, 5 }
 0x227   :  { %18066 = vst [vmem:[#allocation89_spill] sm:$0xff] %v14784_v3  ;;  %v607_v45 = vsel %vm549_vm1, %v604_v37, %v18068_v23  ;;  %v668_v35 = vadd.f32 %v605_v24, %v477_v12  ;;  %v796_v36 = vsel %vm740_vm2, %v18070_v52, %v795_v42  ;;  %v1277_v22 = vmul.f32 %v12589_v61, %v234_v46 }
 0x228   :  { %18069 = vst [vmem:[#allocation94_spill] sm:$0xff] %v14795_v4  ;;  %v669_v43 = vadd.f32 %v607_v45, %v478_v32  ;;  %v798_v6 = vsel %vm740_vm2, %v795_v42, %v18071_v53  ;;  %v1468_v30 = vmul.f32 %v12591_v62, %v234_v46  ;;  %v18072_v14 = vrot.slane %v14425_v33, 4 }
 0x229   :  { %v859_v2 = vadd.f32 %v796_v36, %v668_v35  ;;  %v18073_v12 = vrot.slane %v14695_v50, 4  ;;  %v1368_v24 = vrot.slane %v1277_v22, 6  ;;  %v1657_v29 = vmul.f32 %v14648_v11, %v234_v46 }
 0x22a   :  { %v860_v37 = vadd.f32 %v798_v6, %v669_v43  ;;  %v987_v18 = vsel %vm931_vm3, %v18072_v14, %v986_v26  ;;  %v1559_v42 = vrot.slane %v1468_v30, 7  ;;  %v14814_v53 = vmul.f32 %v12575_v56, %v244_v15  ;;  %v11802_v43 = vld [vmem:[#allocation2 + $0x374] ss:$8 sps:$4 sm:$0xff]  }
 0x22b   :  { %v989_v32 = vsel %vm931_vm3, %v986_v26, %v18073_v12  ;;  %v1050_v45 = vadd.f32 %v987_v18, %v859_v2  ;;  %v14817_v35 = vmul.f32 %v12579_v57, %v244_v15  ;;  %v18074_v33 = vrot.slane %v14486_v34, 5  ;;  %v14837_v12 = vpop.permute.xlu0 %168  ;;  %7614 = vmatprep.subr.bf16.mxu1 %v11802_v43 }
 0x22c   :  { %v1051_v52 = vadd.f32 %v989_v32, %v860_v37  ;;  %v18075_v6 = vrot.slane %v14702_v40, 5  ;;  %v14826_v22 = vmul.f32 %v12583_v58, %v244_v15  ;;  %v14829_v46 = vmul.f32 %v12585_v59, %v244_v15 }
 0x22d   :  { %v1178_v36 = vsel %vm1122_vm4, %v18074_v33, %v1177_v9  ;;  %v18076_v37 = vrot.slane %v14500_v54, 6  ;;  %v18077_v34 = vrot.slane %v14727_v41, 6  ;;  %v14849_v54 = vmul.f32 %v12589_v61, %v244_v15 }
 0x22e   :  { %v1180_v26 = vsel %vm1122_vm4, %v1177_v9, %v18075_v6  ;;  %v1241_v30 = vadd.f32 %v1178_v36, %v1050_v45  ;;  %v18078_v9 = vrot.slane %v14504_v27, 7  ;;  %v1562_v45 = vsel %vm1504_vm6, %v1559_v42, %v17678_v5 }
 0x22f   :  { %v1242_v2 = vadd.f32 %v1180_v26, %v1051_v52  ;;  %v1369_v14 = vsel %vm1313_vm5, %v18076_v37, %v1368_v24  ;;  %v1371_v18 = vsel %vm1313_vm5, %v1368_v24, %v18077_v34  ;;  %v14846_v52 = vmul.f32 %v12587_v60, %v244_v15 }
 0x230   :  { %v1560_v32 = vsel %vm1504_vm6, %v18078_v9, %v1559_v42  ;;  %v1432_v33 = vadd.f32 %v1369_v14, %v1241_v30  ;;  %v14852_v24 = vmul.f32 %v12591_v62, %v244_v15  ;;  %v14855_v43 = vmul.f32 %v14648_v11, %v244_v15 }
 0x231   :  { %v1433_v36 = vadd.f32 %v1371_v18, %v1242_v2  ;;  %v14859_v27 = vmul.f32 %v12575_v56, %v14837_v12  ;;  %v14863_v42 = vmul.f32 %v12579_v57, %v14837_v12  ;;  %v14867_v6 = vmul.f32 %v12583_v58, %v14837_v12 }
 0x232   :  { %v14871_v26 = vmul.f32 %v12585_v59, %v14837_v12  ;;  %v1623_v30 = vadd.f32 %v1560_v32, %v1432_v33  ;;  %v14875_v37 = vmul.f32 %v12587_v60, %v14837_v12  ;;  %v417_v14 = vrot.slane %v14814_v53, 1  ;;  %v14890_v53 = vpop.permute.xlu1 %287 }
 0x233   :  { %v1624_v2 = vadd.f32 %v1562_v45, %v1433_v36  ;;  %v14880_v34 = vmul.f32 %v12589_v61, %v14837_v12  ;;  %v608_v18 = vrot.slane %v14817_v35, 2  ;;  %v18079_v45 = vrot.slane %v14674_v17, 1 }
 0x234   :  { %v1687_v5 = vadd.f32 %v1657_v29, %v1623_v30  ;;  %v14894_v16 = vmul.f32 %v12591_v62, %v14837_v12  ;;  %v279_v35 = vmul.f32 %v12599_v1, %v244_v15  ;;  %v17685_v29 = vrot.slane %v14849_v54, 6 }
 0x235   :  { %v1688_v32 = vadd.f32 %v14761_v48, %v1624_v2  ;;  %v418_v33 = vsel %vm358_vm0, %v18079_v45, %v417_v14  ;;  %v18080_v30 = vmov %v18068_v23  ;;  %v18081_v45 = vrot.slane %v14826_v22, 3 }
 0x236   :  { %v479_v9 = vadd.f32 %v418_v33, %v14691_v7  ;;  %v1724_v48 = vadd.f32 %v14374_v63, %v1687_v5  ;;  %v609_v2 = vsel %vm549_vm1, %v18080_v30, %v608_v18  ;;  %v18082_v36 = vrot.slane %v14687_v21, 3 }
 0x237   :  { %v1725_v17 = vadd.f32 %v14374_v63, %v1688_v32  ;;  %v325_v7 = vmul.f32 %v12575_v56, %v14890_v53  ;;  %v516_v5 = vmul.f32 %v12579_v57, %v14890_v53  ;;  %v18083_v49 = vrot.slane %v14829_v46, 4 }
 0x238   :  { %v800_v23 = vsel %vm740_vm2, %v18082_v36, %v18081_v45  ;;  %v670_v8 = vadd.f32 %v609_v2, %v479_v9  ;;  %v1754_v32 = vmax.f32 %v1724_v48, 0.0  ;;  %v18084_v30 = vrot.slane %v14695_v50, 4 }
 0x239   :  { %v14914_v33 = vmax.f32 %v1725_v17, 0.0  ;;  %v18085_v36 = vrot.slane %v14846_v52, 5  ;;  %v18086_v9 = vrot.slane %v14702_v40, 5  ;;  %v18087_v15 = vrot.slane %v14727_v41, 6 }
 0x23a   :  { %v991_v21 = vsel %vm931_vm3, %v18084_v30, %v18083_v49  ;;  %v861_v45 = vadd.f32 %v800_v23, %v670_v8  ;;  %v419_v17 = vrot.slane %v325_v7, 1  ;;  %v610_v0 = vrot.slane %v516_v5, 2 }
 0x23b   :  { %v1182_v2 = vsel %vm1122_vm4, %v18086_v9, %v18085_v36  ;;  %v1373_v48 = vsel %vm1313_vm5, %v18087_v15, %v17685_v29  ;;  %v3062_v4 = vcombine.high %v1754_v32, %v1754_v32  ;;  %v3069_v50 = vrot.slane %v1754_v32, %v12624_v13 }
 0x23c   :  { %v3118_v49 = vrot.slane %v14914_v33, %v12624_v13  ;;  %v707_v40 = vmul.f32 %v12583_v58, %v14890_v53  ;;  %v1052_v30 = vadd.f32 %v991_v21, %v861_v45  ;;  %v18088_v8 = vrot.slane %v14852_v24, 7 }
 0x23d   :  { %v18089_v23 = vrot.slane %v14755_v28, 7  ;;  %v420_v15 = vsel %vm358_vm0, %v417_v14, %v419_v17  ;;  %v898_v7 = vmul.f32 %v12585_v59, %v14890_v53  ;;  %v3076_v5 = vrot.slane %v3062_v4, %v12624_v13 }
 0x23e   :  { %v3077_v32 = vcombine.high %v3069_v50, %v3069_v50  ;;  %v3085_v36 = vrot.slane %v3069_v50, %v12624_v13  ;;  %v611_v9 = vsel %vm549_vm1, %v608_v18, %v610_v0  ;;  %v3126_v29 = vcombine.high %v3118_v49, %v3118_v49 }
 0x23f   :  { %v1564_v41 = vsel %vm1504_vm6, %v18089_v23, %v18088_v8  ;;  %v3134_v21 = vrot.slane %v3118_v49, %v12624_v13  ;;  %v1243_v45 = vadd.f32 %v1182_v2, %v1052_v30  ;;  %v480_v3 = vadd.f32 %v420_v15, %v279_v35 }
 0x240   :  { %v3078_v28 = vcombine.high %v3076_v5, %v3076_v5  ;;  %v3092_v8 = vrot.slane %v3076_v5, %v12624_v13  ;;  %v3099_v14 = vrot.slane %v3077_v32, %v12624_v13  ;;  %v18090_v17 = vcombine.high %v14615_v31, %v14615_v31 }
 0x241   :  { %v14954_v4 = vrot.slane %v3126_v29, %v12624_v13  ;;  %v1434_v50 = vadd.f32 %v1373_v48, %v1243_v45  ;;  %v671_v44 = vadd.f32 %v611_v9, %v480_v3  ;;  %v801_v0 = vrot.slane %v707_v40, 3 }
 0x242   :  { %v4845_v23 = vcombine.low %v18090_v17, %v3085_v36  ;;  %v3106_v18 = vrot.slane %v3078_v28, %v12624_v13  ;;  %v3108_v49 = vcombine.high %v3092_v8, %v3092_v8  ;;  %v4859_v2 = vrot.slane %v3099_v14, %v12624_v13 }
 0x243   :  { %18091 = vst [vmem:[#allocation95_spill] sm:$0xff] %v14954_v4  ;;  %v3111_v30 = vcombine.high %v14914_v33, %v14914_v33  ;;  %v3156_v15 = vcombine.high %v3134_v21, %v3134_v21  ;;  %v11241_v5 = vcombine.high %v3085_v36, %v3099_v14  ;;  %v4914_v31 = vcombine.low %v3134_v21, %v14954_v4 }
 0x244   :  { %v4852_v35 = vrot.slane %v4845_v23, %v12624_v13  ;;  %v3110_v32 = vcombine.high %v3106_v18, %v3106_v18  ;;  %v4891_v17 = vcombine.low %v3106_v18, %v3108_v49  ;;  %v1625_v48 = vadd.f32 %v1564_v41, %v1434_v50 }
 0x245   :  { %v4875_v3 = vrot.slane %v11241_v5, %v12624_v13  ;;  %v4882_v40 = vrot.slane %v3092_v8, %v12624_v13  ;;  %v18092_v9 = vrot.slane %v14826_v22, 3  ;;  %v992_v28 = vrot.slane %v898_v7, 4 }
 0x246   :  { %v4860_v29 = vcombine.low %v4852_v35, %v4859_v2  ;;  %v4898_v33 = vrot.slane %v4891_v17, %v12624_v13  ;;  %v4905_v36 = vrot.slane %v3110_v32, %v12624_v13  ;;  %v1689_v21 = vadd.f32 %v14855_v43, %v1625_v48 }
 0x247   :  { %v802_v45 = vsel %vm740_vm2, %v18092_v9, %v801_v0  ;;  %v4883_v14 = vcombine.low %v4875_v3, %v4882_v40  ;;  %v14972_v41 = vrot.slane %v4914_v31, %v12624_v13  ;;  %v18093_v8 = vrot.slane %v14829_v46, 4 }
 0x248   :  { %v4867_v23 = vrot.slane %v4860_v29, %v12624_v13  ;;  %v862_v50 = vadd.f32 %v802_v45, %v671_v44  ;;  %v14977_v18 = vcombine.low %v4898_v33, %v4905_v36  ;;  %v1726_v0 = vadd.f32 %v14374_v63, %v1689_v21 }
 0x249   :  { %v993_v22 = vsel %vm931_vm3, %v18093_v8, %v992_v28  ;;  %v1089_v49 = vmul.f32 %v12587_v60, %v14890_v53  ;;  %v4890_v43 = vrot.slane %v4883_v14, %v12624_v13  ;;  %v1280_v44 = vmul.f32 %v12589_v61, %v14890_v53  ;;  %v18146_v28 = vld [vmem:[#allocation24_spill] sm:$0xff] }
 0x24a   :  { %18094 = vst [vmem:[#allocation96_spill] sm:$0xff] %v14977_v18  ;;  %v5661_v7 = vsel %vm1122_vm4, %v4867_v23, -inf  ;;  %v1053_v2 = vadd.f32 %v993_v22, %v862_v50  ;;  %v14987_v46 = vrot.slane %v3156_v15, %v12624_v13  ;;  %v14991_v5 = vmul.f32 %v14648_v11, %v14837_v12 }
 0x24b   :  { %v5662_v35 = vrot.slane %v5661_v7, 4  ;;  %v1183_v31 = vrot.slane %v1089_v49, 5  ;;  %v1471_v63 = vmul.f32 %v12591_v62, %v14890_v53  ;;  %v5668_v29 = vsel %vm1122_vm4, %v4890_v43, -inf  ;;  %v283_v49 = vpop.permute.xlu0 %282 }
 0x24c   :  { %v14996_v17 = vmax.f32 %v1726_v0, 0.0  ;;  %v1374_v48 = vrot.slane %v1280_v44, 6  ;;  %v14999_v3 = vrot.slane %v3111_v30, %v12624_v13  ;;  %v5669_v40 = vrot.slane %v5668_v29, 4 }
 0x24d   :  { %v5663_v32 = vmax.f32 %v5661_v7, %v5662_v35  ;;  %v18097_v15 = vrot.slane %v14846_v52, 5  ;;  %v1565_v45 = vrot.slane %v1471_v63, 7  ;;  %v18098_v21 = vrot.slane %v14849_v54, 6 }
 0x24e   :  { %18095 = vst [vmem:[#allocation97_spill] sm:$0xff] %v14996_v17  ;;  %18096 = vst [vmem:[#allocation98_spill] sm:$0xff] %v14999_v3  ;;  %v1660_v30 = vmul.f32 %v14648_v11, %v14890_v53  ;;  %v386_v52 = vrot.slane %v14859_v27, 1  ;;  %v577_v50 = vrot.slane %v14863_v42, 2  ;;  %v15017_v8 = vrot.slane %v14996_v17, %v12624_v13  ;;  %v18102_v42 = vld [vmem:[#allocation32_spill] sm:$0xff] }
 0x24f   :  { %v1184_v9 = vsel %vm1122_vm4, %v18097_v15, %v1183_v31  ;;  %v5664_v33 = vrot.slane %v5663_v32, 2  ;;  %v1375_v14 = vsel %vm1313_vm5, %v18098_v21, %v1374_v48  ;;  %v768_v7 = vrot.slane %v14867_v6, 3  ;;  %v18104_v6 = vld [vmem:[#allocation34_spill] sm:$0xff] }
 0x250   :  { %v1244_v36 = vadd.f32 %v1184_v9, %v1053_v2  ;;  %18099 = vst [vmem:[#allocation99_spill] sm:$0xff] %v15017_v8  ;;  %v959_v0 = vrot.slane %v14871_v26, 4  ;;  %v15021_v54 = vmax.f32 %v5668_v29, %v5669_v40  ;;  %v18101_v43 = vrot.slane %v14852_v24, 7  ;;  %v18105_v26 = vld [vmem:[#allocation46_spill] sm:$0xff]  ;;  %v18107_v40 = vld [vmem:[#allocation47_spill] sm:$0xff]  ;;  %v18109_v9 = vld [vmem:[#allocation48_spill] sm:$0xff] }
 0x251   :  { %v264_v27 = vmul.f32 %v12599_v1, %v14837_v12  ;;  %v18103_v35 = vrot.slane %v18102_v42, 1  ;;  %v15031_v44 = vmax.f32 %v5663_v32, %v5664_v33  ;;  %v18106_v48 = vrot.slane %v18105_v26, 2  ;;  %v18111_v26 = vld [vmem:[#allocation49_spill] sm:$0xff]  ;;  %v11803_v3 = vld [vmem:[#allocation2 + $0x260] ss:$8 sps:$4 sm:$0xff]  }
 0x252   :  { %v1435_v22 = vadd.f32 %v1375_v14, %v1244_v36  ;;  %18100 = vst [vmem:[#allocation100_spill] sm:$0xff] %v15021_v54  ;;  %v1566_v53 = vsel %vm1504_vm6, %v18101_v43, %v1565_v45  ;;  %v18108_v24 = vrot.slane %v18107_v40, 3  ;;  %v18110_v45 = vrot.slane %v18109_v9, 4 }
 0x253   :  { %v387_v2 = vsel %vm358_vm0, %v18103_v35, %v386_v52  ;;  %v578_v29 = vsel %vm549_vm1, %v18106_v48, %v577_v50  ;;  %v1150_v12 = vrot.slane %v14875_v37, 5  ;;  %v309_v32 = vmul.f32 %v12575_v56, %v283_v49  ;;  %v15053_v35 = vld [vmem:[%s17527_s2] ss:$0 sm:$0xff] }
 0x254   :  { %v1626_v31 = vadd.f32 %v1566_v53, %v1435_v22  ;;  %v464_v63 = vadd.f32 %v387_v2, %v18104_v6  ;;  %v769_v15 = vsel %vm740_vm2, %v18108_v24, %v768_v7  ;;  %v960_v1 = vsel %vm931_vm3, %v18110_v45, %v959_v0 }
 0x255   :  { %v500_v21 = vmul.f32 %v12579_v57, %v283_v49  ;;  %v691_v14 = vmul.f32 %v12583_v58, %v283_v49  ;;  %v1341_v22 = vrot.slane %v14880_v34, 6  ;;  %v1532_v43 = vrot.slane %v14894_v16, 7 }
 0x256   :  { %v1690_v33 = vadd.f32 %v1660_v30, %v1626_v31  ;;  %v655_v36 = vadd.f32 %v578_v29, %v464_v63  ;;  %v388_v53 = vrot.slane %v309_v32, 1  ;;  %v882_v42 = vmul.f32 %v12585_v59, %v283_v49  ;;  %v18115_v32 = vld [vmem:[#allocation55_spill] sm:$0xff] }
 0x257   :  { %v579_v30 = vrot.slane %v500_v21, 2  ;;  %v770_v2 = vrot.slane %v691_v14, 3  ;;  %v1073_v34 = vmul.f32 %v12587_v60, %v283_v49  ;;  %v1264_v16 = vmul.f32 %v12589_v61, %v283_v49 }
 0x258   :  { %v1727_v56 = vadd.f32 %v15053_v35, %v1690_v33  ;;  %v846_v37 = vadd.f32 %v769_v15, %v655_v36  ;;  %v389_v57 = vsel %vm358_vm0, %v386_v52, %v388_v53  ;;  %v961_v58 = vrot.slane %v882_v42, 4  ;;  %v18113_v52 = vld [vmem:[#allocation50_spill] sm:$0xff] }
 0x259   :  { %v465_v63 = vadd.f32 %v389_v57, %v264_v27  ;;  %v18112_v48 = vrot.slane %v18111_v26, 5  ;;  %v580_v40 = vsel %vm549_vm1, %v577_v50, %v579_v30  ;;  %v1152_v24 = vrot.slane %v1073_v34, 5  ;;  %v18118_v34 = vld [vmem:[#allocation16_spill] sm:$0xff] }
 0x25a   :  { %v1757_v59 = vmax.f32 %v1727_v56, 0.0  ;;  %v1037_v6 = vadd.f32 %v960_v1, %v846_v37  ;;  %v1343_v15 = vrot.slane %v1264_v16, 6  ;;  %v18114_v45 = vrot.slane %v18113_v52, 6 }
 0x25b   :  { %v1151_v29 = vsel %vm1122_vm4, %v18112_v48, %v1150_v12  ;;  %v18116_v61 = vrot.slane %v18115_v32, 7  ;;  %v656_v36 = vadd.f32 %v580_v40, %v465_v63  ;;  %v771_v27 = vsel %vm740_vm2, %v768_v7, %v770_v2  ;;  %v18121_v63 = vld [vmem:[#allocation25_spill] sm:$0xff]  ;;  %v18122_v48 = vld [vmem:[#allocation28_spill] sm:$0xff]  ;;  %v18123_v40 = vld [vmem:[#allocation22_spill] sm:$0xff] }
 0x25c   :  { %v1228_v9 = vadd.f32 %v1151_v29, %v1037_v6  ;;  %v1342_v60 = vsel %vm1313_vm5, %v18114_v45, %v1341_v22  ;;  %v3209_v1 = vcombine.high %v1757_v59, %v1757_v59  ;;  %v962_v21 = vsel %vm931_vm3, %v959_v0, %v961_v58  ;;  %v18120_v58 = vld [vmem:[#allocation21_spill] sm:$0xff] }
 0x25d   :  { %v1533_v33 = vsel %vm1504_vm6, %v18116_v61, %v1532_v43  ;;  %v1455_v14 = vmul.f32 %v12591_v62, %v283_v49  ;;  %v15074_v50 = vrot.slane %v1757_v59, %v12624_v13  ;;  %v1153_v42 = vsel %vm1122_vm4, %v1150_v12, %v1152_v24  ;;  %v18119_v62 = vld [vmem:[#allocation18_spill] sm:$0xff] }
 0x25e   :  { %v1419_v53 = vadd.f32 %v1342_v60, %v1228_v9  ;;  %v1344_v56 = vsel %vm1313_vm5, %v1341_v22, %v1343_v15  ;;  %v847_v37 = vadd.f32 %v771_v27, %v656_v36  ;;  %v1645_v57 = vmul.f32 %v14648_v11, %v283_v49 }
 0x25f   :  { %18117 = vst [vmem:[#allocation32_spill] sm:$0xff] %v15074_v50  ;;  %v1534_v30 = vrot.slane %v1455_v14, 7  ;;  %v1804_v16 = vcombine.high %v18118_v34, %v18118_v34  ;;  %v1818_v0 = vrot.slane %v18118_v34, %v12624_v13  ;;  %v1835_v2 = vcombine.high %v18119_v62, %v18119_v62 }
 0x260   :  { %v1610_v7 = vadd.f32 %v1533_v33, %v1419_v53  ;;  %v1860_v59 = vrot.slane %v18120_v58, %v12624_v13  ;;  %v1038_v12 = vadd.f32 %v962_v21, %v847_v37  ;;  %v1883_v11 = vcombine.high %v18121_v63, %v18121_v63  ;;  %v18125_v21 = vld [vmem:[#allocation29_spill] sm:$0xff] }
 0x261   :  { %v1535_v22 = vsel %vm1504_vm6, %v1532_v43, %v1534_v30  ;;  %v1832_v6 = vrot.slane %v1804_v16, %v12624_v13  ;;  %v1884_v29 = vcombine.high %v18122_v48, %v18122_v48  ;;  %v18124_v24 = vcombine.high %v18123_v40, %v18123_v40  ;;  %v18127_v30 = vld [vmem:[#allocation26_spill] sm:$0xff] }
 0x262   :  { %v1674_v49 = vadd.f32 %v14991_v5, %v1610_v7  ;;  %v1882_v26 = vcombine.high %v1860_v59, %v1860_v59  ;;  %v1229_v9 = vadd.f32 %v1153_v42, %v1038_v12  ;;  %v3281_v52 = vcombine.low %v1835_v2, %v1818_v0 }
 0x263   :  { %v1923_v15 = vrot.slane %v18124_v24, %v12624_v13  ;;  %v3295_v43 = vrot.slane %v1832_v6, %v12624_v13  ;;  %v11224_v45 = vcombine.high %v1818_v0, %v1832_v6  ;;  %v3318_v32 = vrot.slane %v1860_v59, %v12624_v13 }
 0x264   :  { %v1711_v60 = vadd.f32 %v15053_v35, %v1674_v49  ;;  %v3327_v5 = vcombine.low %v18122_v48, %v1882_v26  ;;  %v3341_v61 = vrot.slane %v1884_v29, %v12624_v13  ;;  %v1420_v33 = vadd.f32 %v1344_v56, %v1229_v9 }
 0x265   :  { %v3288_v36 = vrot.slane %v3281_v52, %v12624_v13  ;;  %v3311_v27 = vrot.slane %v11224_v45, %v12624_v13  ;;  %v3350_v14 = vcombine.low %v18121_v63, %v18125_v21  ;;  %v3364_v37 = vrot.slane %v1883_v11, %v12624_v13  ;;  %v18131_v52 = vld [vmem:[#allocation31_spill] sm:$0xff] }
 0x266   :  { %v15107_v53 = vmax.f32 %v1711_v60, 0.0  ;;  %v3334_v42 = vrot.slane %v3327_v5, %v12624_v13  ;;  %v18128_v34 = vcombine.high %v18125_v21, %v18125_v21  ;;  %v1611_v7 = vadd.f32 %v1535_v22, %v1420_v33  ;;  %v18135_v33 = vld [vmem:[#allocation14_spill] sm:$0xff] }
 0x267   :  { %v3296_v56 = vcombine.low %v3288_v36, %v3295_v43  ;;  %v3319_v0 = vcombine.low %v3311_v27, %v3318_v32  ;;  %v3357_v2 = vrot.slane %v3350_v14, %v12624_v13  ;;  %v15117_v58 = vrot.slane %v3209_v1, %v12624_v13  ;;  %v18132_v43 = vld [vmem:[#allocation30_spill] sm:$0xff] }
 0x268   :  { %18126 = vst [vmem:[#allocation34_spill] sm:$0xff] %v15107_v53  ;;  %v3373_v16 = vcombine.low %v18128_v34, %v18127_v30  ;;  %v3342_v59 = vcombine.low %v3334_v42, %v3341_v61  ;;  %v3387_v6 = vrot.slane %v1923_v15, %v12624_v13  ;;  %v1675_v63 = vadd.f32 %v1645_v57, %v1611_v7  ;;  %v18130_v57 = vld [vmem:[#allocation27_spill] sm:$0xff]  ;;  %v18138_v14 = vld [vmem:[#allocation38_spill] sm:$0xff]  ;;  %v18139_v42 = vld [vmem:[#allocation37_spill] sm:$0xff] }
 0x269   :  { %18129 = vst [vmem:[#allocation46_spill] sm:$0xff] %v15117_v58  ;;  %v3303_v11 = vrot.slane %v3296_v56, %v12624_v13  ;;  %v3326_v49 = vrot.slane %v3319_v0, %v12624_v13  ;;  %v3365_v26 = vcombine.low %v3357_v2, %v3364_v37  ;;  %v15125_v22 = vrot.slane %v15107_v53, %v12624_v13  ;;  %v18134_v61 = vld [vmem:[#allocation15_spill] sm:$0xff]  ;;  %v18179_v58 = vld [vmem:[#allocation60_spill] sm:$0xff] }
 0x26a   :  { %v3380_v12 = vrot.slane %v3373_v16, %v12624_v13  ;;  %v3349_v48 = vrot.slane %v3342_v59, %v12624_v13  ;;  %v11225_v1 = vcombine.high %v18127_v30, %v1923_v15  ;;  %v1712_v40 = vadd.f32 %v15053_v35, %v1675_v63  ;;  %v18137_v35 = vld [vmem:[#allocation40_spill] sm:$0xff] }
 0x26b   :  { %v3372_v24 = vrot.slane %v3365_v26, %v12624_v13  ;;  %v3410_v9 = vrot.slane %v18130_v57, %v12624_v13  ;;  %v18133_v45 = vrot.slane %v18132_v43, %v12624_v13  ;;  %v18136_v15 = vcombine.low %v18134_v61, %v18135_v33 }
 0x26c   :  { %v3388_v29 = vcombine.low %v3380_v12, %v3387_v6  ;;  %v3403_v5 = vrot.slane %v11225_v1, %v12624_v13  ;;  %v3625_v27 = vrot.slane %v18137_v35, %v12624_v13  ;;  %v1742_v21 = vmax.f32 %v1712_v40, 0.0 }
 0x26d   :  { %v3434_v60 = vcombine.low %v18133_v45, %v18131_v52  ;;  %v3464_v36 = vrot.slane %v18136_v15, %v12624_v13  ;;  %v3641_v37 = vcombine.low %v18139_v42, %v18138_v14  ;;  %v5185_v30 = vsel %vm1122_vm4, %v3303_v11, -inf }
 0x26e   :  { %v3395_v32 = vrot.slane %v3388_v29, %v12624_v13  ;;  %v5192_v34 = vsel %vm1122_vm4, %v3326_v49, -inf  ;;  %v3411_v16 = vcombine.low %v3403_v5, %v3410_v9  ;;  %v5186_v56 = vrot.slane %v5185_v30, 4 }
 0x26f   :  { %v3441_v7 = vrot.slane %v3434_v60, %v12624_v13  ;;  %v5193_v0 = vrot.slane %v5192_v34, 4  ;;  %v2474_v2 = vcombine.high %v1742_v21, %v1742_v21  ;;  %v15151_v59 = vrot.slane %v1742_v21, %v12624_v13 }
 0x270   :  { %v5199_v12 = vsel %vm1122_vm4, %v3349_v48, -inf  ;;  %v5206_v6 = vsel %vm1122_vm4, %v3372_v24, -inf  ;;  %v3418_v63 = vrot.slane %v3411_v16, %v12624_v13  ;;  %v5187_v26 = vmax.f32 %v5185_v30, %v5186_v56 }
 0x271   :  { %18140 = vst [vmem:[#allocation47_spill] sm:$0xff] %v15151_v59  ;;  %v5194_v29 = vmax.f32 %v5192_v34, %v5193_v0  ;;  %v5200_v11 = vrot.slane %v5199_v12, 4  ;;  %v15157_v49 = vrot.slane %v2474_v2, %v12624_v13  ;;  %v3648_v40 = vrot.slane %v3641_v37, %v12624_v13 }
 0x272   :  { %v5207_v57 = vrot.slane %v5206_v6, 4  ;;  %v5188_v9 = vrot.slane %v5187_v26, 2  ;;  %v5213_v48 = vsel %vm1122_vm4, %v3395_v32, -inf  ;;  %v15165_v24 = vrot.slane %v15151_v59, %v12624_v13 }
 0x273   :  { %18141 = vst [vmem:[#allocation48_spill] sm:$0xff] %v15157_v49  ;;  %v5195_v52 = vrot.slane %v5194_v29, 2  ;;  %v5201_v43 = vmax.f32 %v5199_v12, %v5200_v11  ;;  %v5214_v60 = vrot.slane %v5213_v48, 4  ;;  %v5220_v5 = vsel %vm1122_vm4, %v3418_v63, -inf }
 0x274   :  { %18142 = vst [vmem:[#allocation49_spill] sm:$0xff] %v15165_v24  ;;  %v5208_v45 = vmax.f32 %v5206_v6, %v5207_v57  ;;  %v5189_v61 = vmax.f32 %v5187_v26, %v5188_v9  ;;  %v5221_v21 = vrot.slane %v5220_v5, 4  ;;  %v5227_v37 = vsel %vm1122_vm4, %v3441_v7, -inf  ;;  %v18184_v24 = vld [vmem:[#allocation35_spill] sm:$0xff] }
 0x275   :  { %v5196_v33 = vmax.f32 %v5194_v29, %v5195_v52  ;;  %v5202_v15 = vrot.slane %v5201_v43, 2  ;;  %v5215_v42 = vmax.f32 %v5213_v48, %v5214_v60  ;;  %v5234_v30 = vsel %vm1122_vm4, %v3464_v36, -inf  ;;  %v18143_v60 = vld [vmem:[#allocation19_spill] sm:$0xff] }
 0x276   :  { %v5209_v14 = vrot.slane %v5208_v45, 2  ;;  %v5190_v34 = vrot.slane %v5189_v61, 1  ;;  %v5222_v56 = vmax.f32 %v5220_v5, %v5221_v21  ;;  %v5228_v12 = vrot.slane %v5227_v37, 4 }
 0x277   :  { %v5197_v32 = vrot.slane %v5196_v33, 1  ;;  %v5203_v16 = vmax.f32 %v5201_v43, %v5202_v15  ;;  %v5216_v2 = vrot.slane %v5215_v42, 2  ;;  %v5235_v6 = vrot.slane %v5234_v30, 4  ;;  %v18144_v43 = vld [vmem:[#allocation20_spill] sm:$0xff] }
 0x278   :  { %v5210_v0 = vmax.f32 %v5208_v45, %v5209_v14  ;;  %v15170_v11 = vmax.f32 %v5189_v61, %v5190_v34  ;;  %v5223_v29 = vrot.slane %v5222_v56, 2  ;;  %v5229_v52 = vmax.f32 %v5227_v37, %v5228_v12 }
 0x279   :  { %v15172_v63 = vmax.f32 %v5196_v33, %v5197_v32  ;;  %v5204_v26 = vrot.slane %v5203_v16, 1  ;;  %v5217_v9 = vmax.f32 %v5215_v42, %v5216_v2  ;;  %v5236_v7 = vmax.f32 %v5234_v30, %v5235_v6 }
 0x27a   :  { %v5211_v57 = vrot.slane %v5210_v0, 1  ;;  %v5224_v36 = vmax.f32 %v5222_v56, %v5223_v29  ;;  %v5246_v1 = vrot.slane %v18143_v60, 1  ;;  %v18145_v5 = vrot.slane %v18144_v43, 2  ;;  %v18147_v56 = vld [vmem:[#allocation42_spill] sm:$0xff]  ;;  %v18148_v29 = vld [vmem:[#allocation39_spill] sm:$0xff] }
 0x27b   :  { %v5205_v48 = vmax.f32 %v5203_v16, %v5204_v26  ;;  %v5218_v21 = vrot.slane %v5217_v9, 1  ;;  %v5230_v61 = vrot.slane %v5229_v52, 2  ;;  %v5237_v14 = vrot.slane %v5236_v7, 2 }
 0x27c   :  { %v5259_v45 = vmax.f32 %v18144_v43, %v18145_v5  ;;  %v5212_v15 = vmax.f32 %v5210_v0, %v5211_v57  ;;  %v5225_v33 = vrot.slane %v5224_v36, 1  ;;  %v5247_v34 = vmax.f32 %v18143_v60, %v5246_v1 }
 0x27d   :  { %v5265_v42 = vrot.slane %v18146_v28, 2  ;;  %v5219_v37 = vmax.f32 %v5217_v9, %v5218_v21  ;;  %v5231_v30 = vmax.f32 %v5229_v52, %v5230_v61  ;;  %v5238_v16 = vmax.f32 %v5236_v7, %v5237_v14 }
 0x27e   :  { %v5260_v32 = vrot.slane %v5259_v45, 1  ;;  %v5272_v2 = vrot.slane %v18147_v56, 2  ;;  %v5226_v12 = vmax.f32 %v5224_v36, %v5225_v33  ;;  %v18149_v0 = vrot.slane %v18148_v29, 4 }
 0x27f   :  { %v5266_v26 = vmax.f32 %v18146_v28, %v5265_v42  ;;  %v5232_v43 = vrot.slane %v5231_v30, 1  ;;  %v5239_v5 = vrot.slane %v5238_v16, 1  ;;  %v5283_v9 = vsel %vm1122_vm4, %v3625_v27, -inf }
 0x280   :  { %v5261_v6 = vmax.f32 %v5259_v45, %v5260_v32  ;;  %v5278_v57 = vmax.f32 %v18148_v29, %v18149_v0  ;;  %v5273_v1 = vmax.f32 %v18147_v56, %v5272_v2  ;;  %v5284_v60 = vrot.slane %v5283_v9, 4 }
 0x281   :  { %v5267_v52 = vrot.slane %v5266_v26, 1  ;;  %v5290_v36 = vsel %vm1122_vm4, %v3648_v40, -inf  ;;  %v5233_v45 = vmax.f32 %v5231_v30, %v5232_v43  ;;  %v5240_v28 = vmax.f32 %v5238_v16, %v5239_v5 }
 0x282   :  { %v5279_v7 = vrot.slane %v5278_v57, 2  ;;  %v5274_v21 = vrot.slane %v5273_v1, 1  ;;  %v5291_v61 = vrot.slane %v5290_v36, 4  ;;  %v5285_v32 = vmax.f32 %v5283_v9, %v5284_v60 }
 0x283   :  { %v5268_v14 = vmax.f32 %v5266_v26, %v5267_v52  ;;  %v5739_v42 = vpack.c.bf16 %v15170_v11, %v15170_v11  ;;  %v5740_v35 = vpack.c.bf16 %v15172_v63, %v15172_v63  ;;  %v5741_v27 = vpack.c.bf16 %v5205_v48, %v5205_v48 }
 0x284   :  { %v5280_v33 = vmax.f32 %v5278_v57, %v5279_v7  ;;  %v5275_v56 = vmax.f32 %v5273_v1, %v5274_v21  ;;  %v5292_v2 = vmax.f32 %v5290_v36, %v5291_v61  ;;  %v5286_v0 = vrot.slane %v5285_v32, 2 }
 0x285   :  { %v5742_v31 = vpack.c.bf16 %v5212_v15, %v5212_v15  ;;  %v5743_v40 = vpack.c.bf16 %v5219_v37, %v5219_v37  ;;  %v5744_v16 = vpack.c.bf16 %v5226_v12, %v5226_v12  ;;  %v5745_v43 = vpack.c.bf16 %v5233_v45, %v5233_v45 }
 0x286   :  { %v5281_v29 = vrot.slane %v5280_v33, 1  ;;  %v5293_v30 = vrot.slane %v5292_v2, 2  ;;  %v5746_v5 = vpack.c.bf16 %v5240_v28, %v5240_v28  ;;  %v5287_v57 = vmax.f32 %v5285_v32, %v5286_v0 }
 0x287   :  { %v5747_v9 = vpack.c.bf16 %v5247_v34, %v5247_v34  ;;  %v5749_v52 = vpack.c.bf16 %v5261_v6, %v5261_v6  ;;  %v5750_v11 = vpack.c.bf16 %v5268_v14, %v5268_v14  ;;  %v5751_v1 = vpack.c.bf16 %v5275_v56, %v5275_v56 }
 0x288   :  { %v5282_v26 = vmax.f32 %v5280_v33, %v5281_v29  ;;  %v5294_v7 = vmax.f32 %v5292_v2, %v5293_v30  ;;  %v15195_v60 = vunpack.c.l.b16 %v5739_v42  ;;  %v5288_v36 = vrot.slane %v5287_v57, 1  ;;  %v18156_v33 = vld [vmem:[#allocation23_spill] sm:$0xff] }
 0x289   :  { %v15197_v48 = vunpack.c.l.b16 %v5740_v35  ;;  %v15199_v21 = vunpack.c.l.b16 %v5741_v27  ;;  %v15201_v37 = vunpack.c.l.b16 %v5742_v31  ;;  %v15203_v12 = vunpack.c.l.b16 %v5743_v40 }
 0x28a   :  { %v5752_v63 = vpack.c.bf16 %v5282_v26, %v5282_v26  ;;  %v5295_v15 = vrot.slane %v5294_v7, 1  ;;  %v15205_v45 = vunpack.c.l.b16 %v5744_v16  ;;  %v5289_v34 = vmax.f32 %v5287_v57, %v5288_v36 }
 0x28b   :  { %18150 = vst [vmem:[#allocation50_spill] sm:$0xff] %v15201_v37  ;;  %18151 = vst [vmem:[#allocation55_spill] sm:$0xff] %v15203_v12  ;;  %v15207_v6 = vunpack.c.l.b16 %v5745_v43  ;;  %v15209_v28 = vunpack.c.l.b16 %v5746_v5  ;;  %v15211_v61 = vunpack.c.l.b16 %v5747_v9  ;;  %v18157_v32 = vpack.c.bf16 %v18156_v33, %v18156_v33  ;;  %v18165_v43 = vld [vmem:[#allocation17_spill] sm:$0xff] }
 0x28c   :  { %18152 = vst [vmem:[#allocation16_spill] sm:$0xff] %v15205_v45  ;;  %v5296_v14 = vmax.f32 %v5294_v7, %v5295_v15  ;;  %v15218_v56 = vunpack.c.l.b16 %v5749_v52  ;;  %v15220_v31 = vunpack.c.l.b16 %v5750_v11  ;;  %v5753_v2 = vpack.c.bf16 %v5289_v34, %v5289_v34  ;;  %v18170_v34 = vld [vmem:[#allocation36_spill] sm:$0xff] }
 0x28d   :  { %18153 = vst [vmem:[#allocation18_spill] sm:$0xff] %v15207_v6  ;;  %18154 = vst [vmem:[#allocation21_spill] sm:$0xff] %v15209_v28  ;;  %v15216_v42 = vunpack.c.l.b16 %v18157_v32  ;;  %v15222_v35 = vunpack.c.l.b16 %v5751_v1  ;;  %v15224_v27 = vunpack.c.l.b16 %v5752_v63  ;;  %v6021_v30 = vsel %vm5946_vm7, %v15197_v48, %v15195_v60  ;;  %v18168_v63 = vld [vmem:[#allocation41_spill] sm:$0xff] }
 0x28e   :  { %18155 = vst [vmem:[#allocation25_spill] sm:$0xff] %v15211_v61  ;;  %18159 = vst [vmem:[#allocation22_spill] sm:$0xff] %v15218_v56  ;;  %v5754_v29 = vpack.c.bf16 %v5296_v14, %v5296_v14  ;;  %v15226_v0 = vunpack.c.l.b16 %v5753_v2  ;;  %v18166_v5 = vcombine.low %v18165_v43, %v18119_v62  ;;  %v6022_v57 = vsel %vm5948_vm8, %v15199_v21, %v6021_v30 }
 0x28f   :  { %18158 = vst [vmem:[#allocation28_spill] sm:$0xff] %v15216_v42  ;;  %18160 = vst [vmem:[#allocation29_spill] sm:$0xff] %v15220_v31  ;;  %v6028_v16 = vsel %vm5946_vm7, %v15216_v42, %v15211_v61  ;;  %v18167_v52 = vcombine.high %v18165_v43, %v18165_v43  ;;  %v5960_v11 = vsel %vm5946_vm7, %v15211_v61, %v15209_v28 }
 0x290   :  { %18161 = vst [vmem:[#allocation26_spill] sm:$0xff] %v15222_v35  ;;  %18162 = vst [vmem:[#allocation27_spill] sm:$0xff] %v15224_v27  ;;  %v15228_v40 = vunpack.c.l.b16 %v5754_v29  ;;  %v3265_v26 = vrot.slane %v18166_v5, %v12624_v13  ;;  %v6029_v9 = vsel %vm5948_vm8, %v15218_v56, %v6028_v16  ;;  %v6023_v1 = vsel %vm5950_vm9, %v15201_v37, %v6022_v57 }
 0x291   :  { %18163 = vst [vmem:[#allocation31_spill] sm:$0xff] %v15226_v0  ;;  %v3272_v7 = vrot.slane %v18167_v52, %v12624_v13  ;;  %v6030_v62 = vsel %vm5950_vm9, %v15220_v31, %v6029_v9  ;;  %v5961_v36 = vsel %vm5948_vm8, %v15216_v42, %v5960_v11  ;;  %v18169_v15 = vrot.slane %v18168_v63, %v12624_v13 }
 0x292   :  { %18164 = vst [vmem:[#allocation30_spill] sm:$0xff] %v15228_v40  ;;  %v18171_v14 = vrot.slane %v18170_v34, %v12624_v13  ;;  %v6024_v32 = vsel %vm5952_vm10, %v15203_v12, %v6023_v1  ;;  %v6031_v2 = vsel %vm5952_vm10, %v15222_v35, %v6030_v62  ;;  %v5962_v30 = vsel %vm5950_vm9, %v15218_v56, %v5961_v36 }
 0x293   :  { %v3273_v29 = vcombine.low %v3265_v26, %v3272_v7  ;;  %v6025_v16 = vsel %vm5954_vm11, %v15205_v45, %v6024_v32  ;;  %v6032_v43 = vsel %vm5954_vm11, %v15224_v27, %v6031_v2  ;;  %v5963_v5 = vsel %vm5952_vm10, %v15220_v31, %v5962_v30  ;;  %v18173_v32 = vld [vmem:[#allocation52_spill] sm:$0xff] }
 0x294   :  { %v3664_v33 = vcombine.low %v18171_v14, %v18169_v15  ;;  %v6026_v9 = vsel %vm5956_vm12, %v15207_v6, %v6025_v16  ;;  %v6033_v26 = vsel %vm5956_vm12, %v15226_v0, %v6032_v43  ;;  %v5964_v7 = vsel %vm5954_vm11, %v15222_v35, %v5963_v5 }
 0x295   :  { %v3280_v52 = vrot.slane %v3273_v29, %v12624_v13  ;;  %v6027_v11 = vsel %vm5958_vm13, %v15209_v28, %v6026_v9  ;;  %v6034_v1 = vsel %vm5958_vm13, %v15228_v40, %v6033_v26  ;;  %v5965_v62 = vsel %vm5956_vm12, %v15224_v27, %v5964_v7 }
 0x296   :  { %v3671_v57 = vrot.slane %v3664_v33, %v12624_v13  ;;  %v6077_v63 = vpack.c.b16 %v6034_v1, %v6027_v11  ;;  %v15293_v34 = vsel %vm5958_vm13, %v15226_v0, %v5965_v62  ;;  %v18174_v2 = vrot.slane %v18173_v32, %v12624_v13 }
 0x297   :  { %v5178_v15 = vsel %vm1122_vm4, %v3280_v52, -inf  ;;  %18172 = vst [vmem:[#allocation15_spill] sm:$0xff] %v15293_v34  ;;  %v6157_v30 = vsel %vm5946_vm7, %v15201_v37, %v15199_v21  ;;  %v6164_v16 = vsel %vm5946_vm7, %v15220_v31, %v15218_v56  ;;  %v6089_v11 = vsel %vm5946_vm7, %v15199_v21, %v15197_v48 }
 0x298   :  { %v5297_v36 = vsel %vm1122_vm4, %v3671_v57, -inf  ;;  %v5179_v33 = vrot.slane %v5178_v15, 4  ;;  %v5304_v29 = vsel %vm1122_vm4, %v18174_v2, -inf  ;;  %7427 = vmatprep.mubr.bf16.mxu0 %v6077_v63  ;;  %v6158_v57 = vsel %vm5948_vm8, %v15203_v12, %v6157_v30 }
 0x299   :  { %v5298_v14 = vrot.slane %v5297_v36, 4  ;;  %v5305_v5 = vrot.slane %v5304_v29, 4  ;;  %v6165_v9 = vsel %vm5948_vm8, %v15222_v35, %v6164_v16  ;;  %v6159_v52 = vsel %vm5950_vm9, %v15205_v45, %v6158_v57 }
 0x29a   :  { %v5180_v26 = vmax.f32 %v5178_v15, %v5179_v33  ;;  %v6166_v7 = vsel %vm5950_vm9, %v15224_v27, %v6165_v9  ;;  %v6090_v32 = vsel %vm5948_vm8, %v15201_v37, %v6089_v11 }
 0x29b   :  { %v5299_v43 = vmax.f32 %v5297_v36, %v5298_v14  ;;  %v5306_v62 = vmax.f32 %v5304_v29, %v5305_v5  ;;  %v6160_v36 = vsel %vm5952_vm10, %v15207_v6, %v6159_v52  ;;  %v6167_v63 = vsel %vm5952_vm10, %v15226_v0, %v6166_v7 }
 0x29c   :  { %v5181_v14 = vrot.slane %v5180_v26, 2  ;;  %v6161_v15 = vsel %vm5954_vm11, %v15209_v28, %v6160_v36  ;;  %v6168_v33 = vsel %vm5954_vm11, %v15228_v40, %v6167_v63  ;;  %v6091_v16 = vsel %vm5950_vm9, %v15203_v12, %v6090_v32 }
 0x29d   :  { %v5300_v1 = vrot.slane %v5299_v43, 2  ;;  %v5307_v30 = vrot.slane %v5306_v62, 2  ;;  %v6162_v29 = vsel %vm5956_vm12, %v15211_v61, %v6161_v15  ;;  %v6092_v9 = vsel %vm5952_vm10, %v15205_v45, %v6091_v16 }
 0x29e   :  { %v5182_v5 = vmax.f32 %v5180_v26, %v5181_v14  ;;  %v6163_v57 = vsel %vm5958_vm13, %v15216_v42, %v6162_v29  ;;  %v6096_v52 = vsel %vm5946_vm7, %v15218_v56, %v15216_v42  ;;  %v6093_v11 = vsel %vm5954_vm11, %v15207_v6, %v6092_v9  ;;  %v18175_v14 = vld [vmem:[#allocation57_spill] sm:$0xff]  ;;  %v18198_v56 = vld [vmem:[#allocation62_spill] sm:$0xff] }
 0x29f   :  { %v5301_v2 = vmax.f32 %v5299_v43, %v5300_v1  ;;  %v5308_v43 = vmax.f32 %v5306_v62, %v5307_v30  ;;  %v6097_v1 = vsel %vm5948_vm8, %v15220_v31, %v6096_v52  ;;  %v6094_v26 = vsel %vm5956_vm12, %v15209_v28, %v6093_v11  ;;  %v18176_v52 = vld [vmem:[#allocation43_spill] sm:$0xff]  ;;  %v18177_v11 = vld [vmem:[#allocation44_spill] sm:$0xff] }
 0x2a0   :  { %v5183_v36 = vrot.slane %v5182_v5, 1  ;;  %v6098_v63 = vsel %vm5950_vm9, %v15222_v35, %v6097_v1  ;;  %v3809_v15 = vrot.slane %v18175_v14, %v12624_v13  ;;  %v6095_v62 = vsel %vm5958_vm13, %v15211_v61, %v6094_v26  ;;  %v18180_v14 = vld [vmem:[#allocation63_spill] sm:$0xff]  ;;  %v18225_v61 = vld [vmem:[#allocation77_spill] sm:$0xff] }
 0x2a1   :  { %v5302_v7 = vrot.slane %v5301_v2, 1  ;;  %v5309_v29 = vrot.slane %v5308_v43, 1  ;;  %v6099_v30 = vsel %vm5952_vm10, %v15224_v27, %v6098_v63  ;;  %v18178_v23 = vcombine.low %v18176_v52, %v18177_v11  ;;  %v11853_v35 = vld [vmem:[#allocation2 + $0x2e4] ss:$8 sps:$4 sm:$0xff]  }
 0x2a2   :  { %v5184_v16 = vmax.f32 %v5182_v5, %v5183_v36  ;;  %v6100_v9 = vsel %vm5954_vm11, %v15226_v0, %v6099_v30  ;;  %v18182_v5 = vld [vmem:[#allocation33_spill] sm:$0xff]  ;;  %v5323_v52 = vrot.slane %v18184_v24, 1  ;;  %v18230_v0 = vld [vmem:[#allocation70_spill] sm:$0xff] }
 0x2a3   :  { %v5303_v32 = vmax.f32 %v5301_v2, %v5302_v7  ;;  %v3832_v1 = vrot.slane %v18178_v23, %v12624_v13  ;;  %v18181_v2 = vcombine.low %v18179_v58, %v18180_v14  ;;  %v5310_v50 = vmax.f32 %v5308_v43, %v5309_v29  ;;  %v18185_v23 = vld [vmem:[#allocation58_spill] sm:$0xff]  ;;  %v18187_v58 = vld [vmem:[#allocation56_spill] sm:$0xff] }
 0x2a4   :  { %v6101_v63 = vsel %vm5956_vm12, %v15228_v40, %v6100_v9  ;;  %v18183_v36 = vrot.slane %v18182_v5, 1  ;;  %v5738_v17 = vpack.c.bf16 %v5184_v16, %v5184_v16  ;;  %v18186_v11 = vrot.slane %v18185_v23, 4 }
 0x2a5   :  { %v15361_v7 = vrot.slane %v18181_v2, %v12624_v13  ;;  %v5755_v26 = vpack.c.bf16 %v5303_v32, %v5303_v32  ;;  %v18188_v14 = vrot.slane %v18187_v58, %v12624_v13  ;;  %v5756_v32 = vpack.c.bf16 %v5310_v50, %v5310_v50 }
 0x2a6   :  { %v15368_v30 = vmax.f32 %v18182_v5, %v18183_v36  ;;  %v5327_v59 = vmax.f32 %v18185_v23, %v18186_v11  ;;  %v5339_v2 = vsel %vm1122_vm4, %v3809_v15, -inf  ;;  %v5882_v5 = vunpack.c.l.b16 %v5738_v17 }
 0x2a7   :  { %v5332_v43 = vsel %vm1122_vm4, %v18188_v14, -inf  ;;  %v15378_v29 = vunpack.c.l.b16 %v5755_v26  ;;  %v15382_v16 = vmax.f32 %v18184_v24, %v5323_v52  ;;  %v5340_v49 = vrot.slane %v5339_v2, 4 }
 0x2a8   :  { %v5333_v9 = vrot.slane %v5332_v43, 4  ;;  %v5328_v36 = vrot.slane %v5327_v59, 2  ;;  %v15384_v53 = vunpack.c.l.b16 %v5756_v32  ;;  %v5947_v26 = vsel %vm5946_vm7, %v15195_v60, %v5882_v5 }
 0x2a9   :  { %18189 = vst [vmem:[#allocation14_spill] sm:$0xff] %v15378_v29  ;;  %v6169_v23 = vsel %vm5956_vm12, %v15378_v29, %v6168_v33  ;;  %v6102_v11 = vsel %vm5958_vm13, %v15378_v29, %v6101_v63  ;;  %v5341_v17 = vmax.f32 %v5339_v2, %v5340_v49  ;;  %v5949_v24 = vsel %vm5948_vm8, %v15197_v48, %v5947_v26  ;;  %v11808_v49 = vld [vmem:[#allocation2 + $0x364] ss:$8 sps:$4 sm:$0xff]   ;;  %v18190_v48 = vld [vmem:[#allocation45_spill] sm:$0xff] }
 0x2aa   :  { %v5334_v50 = vmax.f32 %v5332_v43, %v5333_v9  ;;  %v6145_v58 = vpack.c.b16 %v6102_v11, %v6095_v62  ;;  %v5329_v15 = vmax.f32 %v5327_v59, %v5328_v36  ;;  %v6170_v52 = vsel %vm5958_vm13, %v15384_v53, %v6169_v23  ;;  %v11800_v43 = vld [vmem:[#allocation2 + $0x370] ss:$8 sps:$4 sm:$0xff]  }
 0x2ab   :  { %v5346_v32 = vsel %vm1122_vm4, %v3832_v1, -inf  ;;  %v5951_v33 = vsel %vm5950_vm9, %v15199_v21, %v5949_v24  ;;  %v6213_v63 = vpack.c.b16 %v6170_v52, %v6163_v57  ;;  %v5342_v8 = vrot.slane %v5341_v17, 2  ;;  %v18192_v57 = vld [vmem:[#allocation51_spill] sm:$0xff]  ;;  %v11797_v26 = vld [vmem:[#allocation2 + $0x270] ss:$8 sps:$4 sm:$0xff]  }
 0x2ac   :  { %v5335_v14 = vrot.slane %v5334_v50, 2  ;;  %v5330_v9 = vrot.slane %v5329_v15, 1  ;;  %v5953_v59 = vsel %vm5952_vm10, %v15201_v37, %v5951_v33  ;;  %v5347_v62 = vrot.slane %v5346_v32, 4 }
 0x2ad   :  { %v18191_v2 = vrot.slane %v18190_v48, 2  ;;  %v5955_v1 = vsel %vm5954_vm11, %v15203_v12, %v5953_v59  ;;  %7500 = vmatprep.mubr.bf16.mxu1 %v6213_v63  ;;  %v5343_v21 = vmax.f32 %v5341_v17, %v5342_v8  ;;  %v18193_v23 = vrot.slane %v18192_v57, 1  ;;  %v18194_v8 = vld [vmem:[#allocation53_spill] sm:$0xff] }
 0x2ae   :  { %v5336_v60 = vmax.f32 %v5334_v50, %v5335_v14  ;;  %v15406_v36 = vmax.f32 %v5329_v15, %v5330_v9  ;;  %v5957_v50 = vsel %vm5956_vm12, %v15205_v45, %v5955_v1  ;;  %7501 = vmatmul.mubr.bf16.vlgmr.msra.gmra.mxu1 %v6145_v58  ;;  %v5348_v52 = vmax.f32 %v5346_v32, %v5347_v62  ;;  %v11806_v15 = vld [vmem:[#allocation2 + $0x360] ss:$8 sps:$4 sm:$0xff]  }
 0x2af   :  { %v5357_v5 = vmax.f32 %v18190_v48, %v18191_v2  ;;  %v15411_v11 = vmax.f32 %v18192_v57, %v18193_v23  ;;  %v5959_v33 = vsel %vm5958_vm13, %v15207_v6, %v5957_v50  ;;  %7615 = vmatpush1.bf16.msra.mxu1 %v11800_v43  ;;  %v5344_v63 = vrot.slane %v5343_v21, 1  ;;  %v18195_v9 = vld [vmem:[#allocation67_spill] sm:$0xff]  ;;  %v11814_v57 = vld [vmem:[#allocation2 + $0x354] ss:$8 sps:$4 sm:$0xff]   ;;  %v18196_v43 = vld [vmem:[#allocation64_spill] sm:$0xff] }
 0x2b0   :  { %v5337_v24 = vrot.slane %v5336_v60, 1  ;;  %v5379_v17 = vrot.slane %v18194_v8, 1  ;;  %v5386_v59 = vrot.slane %v18195_v9, 1  ;;  %v6009_v48 = vpack.c.b16 %v15293_v34, %v5959_v33  ;;  %v11805_v2 = vld [vmem:[#allocation2 + $0x264] ss:$8 sps:$4 sm:$0xff]   ;;  %7616 = vmatprep.subr.bf16.mxu1 %v11808_v49  ;;  %v18218_v34 = vld [vmem:[#allocation74_spill] sm:$0xff] }
 0x2b1   :  { %v5358_v14 = vrot.slane %v5357_v5, 1  ;;  %v5349_v58 = vrot.slane %v5348_v52, 2  ;;  %v5345_v32 = vmax.f32 %v5343_v21, %v5344_v63  ;;  %v18197_v37 = vrot.slane %v18196_v43, 2  ;;  %v11812_v21 = vld [vmem:[#allocation2 + $0x350] ss:$8 sps:$4 sm:$0xff]  }
 0x2b2   :  { %v5338_v1 = vmax.f32 %v5336_v60, %v5337_v24  ;;  %v5380_v62 = vmax.f32 %v18194_v8, %v5379_v17  ;;  %v5387_v50 = vmax.f32 %v18195_v9, %v5386_v59  ;;  %7428 = vmatmul.mubr.bf16.vlgmr.msra.gmra.mxu0 %v6009_v48  ;;  %v18199_v33 = vrot.slane %v18198_v56, %v12624_v13  ;;  %v11811_v63 = vld [vmem:[#allocation2 + $0x254] ss:$8 sps:$4 sm:$0xff]   ;;  %v11820_v9 = vld [vmem:[#allocation2 + $0x344] ss:$8 sps:$4 sm:$0xff]  }
 0x2b3   :  { %v5359_v23 = vmax.f32 %v5357_v5, %v5358_v14  ;;  %v5392_v4 = vmax.f32 %v18196_v43, %v18197_v37  ;;  %v5350_v31 = vmax.f32 %v5348_v52, %v5349_v58  ;;  %v5402_v60 = vsel %vm1122_vm4, %v15361_v7, -inf  ;;  %7542 = vmatpush1.bf16.msra.mxu0 %v11797_v26  ;;  %7617 = vmatpush1.bf16.msra.mxu1 %v11806_v15 }
 0x2b4   :  { %v5395_v49 = vsel %vm1122_vm4, %v18199_v33, -inf  ;;  %v5757_v5 = vpack.c.bf16 %v15368_v30, %v15368_v30  ;;  %v5403_v37 = vrot.slane %v5402_v60, 4  ;;  %v5758_v52 = vpack.c.bf16 %v15382_v16, %v15382_v16  ;;  %7543 = vmatprep.subr.bf16.mxu0 %v11805_v2  ;;  %7618 = vmatprep.subr.bf16.mxu1 %v11814_v57  ;;  %v11809_v2 = vld [vmem:[#allocation2 + $0x250] ss:$8 sps:$4 sm:$0xff]  }
 0x2b5   :  { %v5393_v24 = vrot.slane %v5392_v4, 1  ;;  %v5396_v14 = vrot.slane %v5395_v49, 4  ;;  %v5351_v56 = vrot.slane %v5350_v31, 1  ;;  %v5759_v8 = vpack.c.bf16 %v15406_v36, %v15406_v36 }
 0x2b6   :  { %v5760_v7 = vpack.c.bf16 %v5338_v1, %v5338_v1  ;;  %v5761_v17 = vpack.c.bf16 %v5345_v32, %v5345_v32  ;;  %v5404_v15 = vmax.f32 %v5402_v60, %v5403_v37  ;;  %v5763_v59 = vpack.c.bf16 %v5359_v23, %v5359_v23  ;;  %v11818_v1 = vld [vmem:[#allocation2 + $0x340] ss:$8 sps:$4 sm:$0xff]   ;;  %v11826_v60 = vld [vmem:[#allocation2 + $0x334] ss:$8 sps:$4 sm:$0xff]  }
 0x2b7   :  { %v5394_v30 = vmax.f32 %v5392_v4, %v5393_v24  ;;  %v5397_v26 = vmax.f32 %v5395_v49, %v5396_v14  ;;  %v5352_v48 = vmax.f32 %v5350_v31, %v5351_v56  ;;  %v5765_v58 = vpack.c.bf16 %v15411_v11, %v15411_v11  ;;  %7544 = vmatpush1.bf16.msra.mxu0 %v11803_v3  ;;  %v11817_v11 = vld [vmem:[#allocation2 + $0x244] ss:$8 sps:$4 sm:$0xff]  }
 0x2b8   :  { %v5766_v43 = vpack.c.bf16 %v5380_v62, %v5380_v62  ;;  %v5767_v16 = vpack.c.bf16 %v5387_v50, %v5387_v50  ;;  %7619 = vmatpush1.bf16.msra.mxu1 %v11812_v21  ;;  %v5405_v33 = vrot.slane %v5404_v15, 2  ;;  %v15439_v36 = vunpack.c.l.b16 %v5757_v5  ;;  %7545 = vmatprep.subr.bf16.mxu0 %v11811_v63 }
 0x2b9   :  { %v5398_v57 = vrot.slane %v5397_v26, 2  ;;  %v5768_v42 = vpack.c.bf16 %v5394_v30, %v5394_v30  ;;  %v5762_v4 = vpack.c.bf16 %v5352_v48, %v5352_v48  ;;  %v15441_v32 = vunpack.c.l.b16 %v5758_v52  ;;  %7620 = vmatprep.subr.bf16.mxu1 %v11820_v9 }
 0x2ba   :  { %v15443_v23 = vunpack.c.l.b16 %v5759_v8  ;;  %v15445_v31 = vunpack.c.l.b16 %v5760_v7  ;;  %v5406_v3 = vmax.f32 %v5404_v15, %v5405_v33  ;;  %v15447_v50 = vunpack.c.l.b16 %v5761_v17  ;;  %v11815_v8 = vld [vmem:[#allocation2 + $0x240] ss:$8 sps:$4 sm:$0xff]  }
 0x2bb   :  { %v5399_v62 = vmax.f32 %v5397_v26, %v5398_v57  ;;  %v15449_v49 = vunpack.c.l.b16 %v5763_v59  ;;  %v15451_v5 = vunpack.c.l.b16 %v5762_v4  ;;  %v15453_v21 = vunpack.c.l.b16 %v5765_v58  ;;  %7546 = vmatpush1.bf16.msra.mxu0 %v11809_v2  ;;  %v18204_v17 = vld [vmem:[#allocation54_spill] sm:$0xff] }
 0x2bc   :  { %v15455_v24 = vunpack.c.l.b16 %v5766_v43  ;;  %v15457_v14 = vunpack.c.l.b16 %v5767_v16  ;;  %v5407_v52 = vrot.slane %v5406_v3, 1  ;;  %v15459_v63 = vunpack.c.l.b16 %v5768_v42  ;;  %7621 = vmatpush1.bf16.msra.mxu1 %v11818_v1  ;;  %7547 = vmatprep.subr.bf16.mxu0 %v11817_v11  ;;  %v11823_v26 = vld [vmem:[#allocation2 + $0x234] ss:$8 sps:$4 sm:$0xff]   ;;  %v11824_v43 = vld [vmem:[#allocation2 + $0x330] ss:$8 sps:$4 sm:$0xff]  }
 0x2bd   :  { %18200 = vst [vmem:[#allocation40_spill] sm:$0xff] %v15453_v21  ;;  %v5400_v37 = vrot.slane %v5399_v62, 1  ;;  %v6035_v56 = vsel %vm5946_vm7, %v15384_v53, %v15378_v29  ;;  %v6042_v9 = vsel %vm5946_vm7, %v18204_v17, %v15449_v49  ;;  %v5967_v30 = vsel %vm5946_vm7, %v15378_v29, %v15228_v40  ;;  %7622 = vmatprep.subr.bf16.mxu1 %v11826_v60  ;;  %v11832_v1 = vld [vmem:[#allocation2 + $0x324] ss:$8 sps:$4 sm:$0xff]   ;;  %v11821_v60 = vld [vmem:[#allocation2 + $0x230] ss:$8 sps:$4 sm:$0xff]  }
 0x2be   :  { %18201 = vst [vmem:[#allocation38_spill] sm:$0xff] %v15455_v24  ;;  %18202 = vst [vmem:[#allocation37_spill] sm:$0xff] %v15457_v14  ;;  %v6036_v7 = vsel %vm5948_vm8, %v15439_v36, %v6035_v56  ;;  %v5974_v42 = vsel %vm5946_vm7, %v15449_v49, %v15451_v5  ;;  %v5408_v59 = vmax.f32 %v5406_v3, %v5407_v52  ;;  %v11844_v29 = vld [vmem:[#allocation2 + $0x304] ss:$8 sps:$4 sm:$0xff]  }
 0x2bf   :  { %18203 = vst [vmem:[#allocation19_spill] sm:$0xff] %v15459_v63  ;;  %v5401_v15 = vmax.f32 %v5399_v62, %v5400_v37  ;;  %v6037_v48 = vsel %vm5950_vm9, %v15441_v32, %v6036_v7  ;;  %v6043_v58 = vsel %vm5948_vm8, %v15453_v21, %v6042_v9  ;;  %v5968_v57 = vsel %vm5948_vm8, %v15384_v53, %v5967_v30  ;;  %v11829_v9 = vld [vmem:[#allocation2 + $0x224] ss:$8 sps:$4 sm:$0xff]  }
 0x2c0   :  { %v6038_v16 = vsel %vm5952_vm10, %v15443_v23, %v6037_v48  ;;  %v6044_v2 = vsel %vm5950_vm9, %v15455_v24, %v6043_v58  ;;  %v5975_v33 = vsel %vm5948_vm8, %v18204_v17, %v5974_v42  ;;  %v5770_v11 = vpack.c.bf16 %v5408_v59, %v5408_v59  ;;  %7548 = vmatpush1.bf16.msra.mxu0 %v11815_v8  ;;  %v11830_v59 = vld [vmem:[#allocation2 + $0x320] ss:$8 sps:$4 sm:$0xff]  }
 0x2c1   :  { %v5769_v4 = vpack.c.bf16 %v5401_v15, %v5401_v15  ;;  %v6039_v62 = vsel %vm5954_vm11, %v15445_v31, %v6038_v16  ;;  %v6045_v3 = vsel %vm5952_vm10, %v15457_v14, %v6044_v2  ;;  %v5969_v56 = vsel %vm5950_vm9, %v15439_v36, %v5968_v57  ;;  %7549 = vmatprep.subr.bf16.mxu0 %v11823_v26  ;;  %v11838_v26 = vld [vmem:[#allocation2 + $0x314] ss:$8 sps:$4 sm:$0xff]   ;;  %v18219_v40 = vld [vmem:[#allocation76_spill] sm:$0xff] }
 0x2c2   :  { %v6040_v37 = vsel %vm5956_vm12, %v15447_v50, %v6039_v62  ;;  %v6046_v52 = vsel %vm5954_vm11, %v15459_v63, %v6045_v3  ;;  %v5976_v7 = vsel %vm5950_vm9, %v15453_v21, %v5975_v33  ;;  %v15501_v42 = vunpack.c.l.b16 %v5770_v11  ;;  %7623 = vmatpush1.bf16.msra.mxu1 %v11824_v43  ;;  %v18207_v16 = vld [vmem:[#allocation65_spill] sm:$0xff] }
 0x2c3   :  { %v15499_v30 = vunpack.c.l.b16 %v5769_v4  ;;  %v6041_v8 = vsel %vm5958_vm13, %v15451_v5, %v6040_v37  ;;  %v5970_v15 = vsel %vm5952_vm10, %v15441_v32, %v5969_v56  ;;  %v5977_v58 = vsel %vm5952_vm10, %v15455_v24, %v5976_v7  ;;  %7624 = vmatprep.subr.bf16.mxu1 %v11832_v1  ;;  %v18209_v33 = vld [vmem:[#allocation69_spill] sm:$0xff]  ;;  %v18210_v4 = vld [vmem:[#allocation68_spill] sm:$0xff] }
 0x2c4   :  { %18206 = vst [vmem:[#allocation24_spill] sm:$0xff] %v15501_v42  ;;  %v5971_v48 = vsel %vm5954_vm11, %v15443_v23, %v5970_v15  ;;  %v18208_v2 = vcombine.high %v18207_v16, %v18207_v16  ;;  %v18211_v11 = vcombine.high %v18210_v4, %v18210_v4  ;;  %v5978_v1 = vsel %vm5954_vm11, %v15457_v14, %v5977_v58  ;;  %v11827_v37 = vld [vmem:[#allocation2 + $0x220] ss:$8 sps:$4 sm:$0xff]  }
 0x2c5   :  { %18205 = vst [vmem:[#allocation20_spill] sm:$0xff] %v15499_v30  ;;  %v6047_v43 = vsel %vm5956_vm12, %v15499_v30, %v6046_v52  ;;  %v5972_v3 = vsel %vm5956_vm12, %v15445_v31, %v5971_v48  ;;  %7550 = vmatpush1.bf16.msra.mxu0 %v11821_v60  ;;  %v18212_v56 = vld [vmem:[#allocation72_spill] sm:$0xff]  ;;  %v5979_v52 = vsel %vm5956_vm12, %v15459_v63, %v5978_v1  ;;  %v11835_v48 = vld [vmem:[#allocation2 + $0x214] ss:$8 sps:$4 sm:$0xff]   ;;  %v18216_v1 = vld [vmem:[#allocation75_spill] sm:$0xff] }
 0x2c6   :  { %v2567_v57 = vrot.slane %v18208_v2, %v12624_v13  ;;  %v4201_v62 = vcombine.low %v18211_v11, %v18209_v33  ;;  %v4238_v7 = vrot.slane %v18212_v56, %v12624_v13  ;;  %v6048_v15 = vsel %vm5958_vm13, %v15501_v42, %v6047_v43  ;;  %7551 = vmatprep.subr.bf16.mxu0 %v11829_v9  ;;  %v11836_v43 = vld [vmem:[#allocation2 + $0x310] ss:$8 sps:$4 sm:$0xff]  }
 0x2c7   :  { %v15531_v16 = vsel %vm5958_vm13, %v15447_v50, %v5972_v3  ;;  %v6078_v58 = vpack.c.b16 %v6048_v15, %v6041_v8  ;;  %v15538_v60 = vsel %vm5958_vm13, %v15499_v30, %v5979_v52  ;;  %7625 = vmatpush1.bf16.msra.mxu1 %v11830_v59  ;;  %v18217_v15 = vcombine.high %v18216_v1, %v18216_v1  ;;  %v11833_v59 = vld [vmem:[#allocation2 + $0x210] ss:$8 sps:$4 sm:$0xff]  }
 0x2c8   :  { %18213 = vst [vmem:[#allocation42_spill] sm:$0xff] %v15531_v16  ;;  %v4208_v2 = vrot.slane %v4201_v62, %v12624_v13  ;;  %18214 = vst [vmem:[#allocation39_spill] sm:$0xff] %v15538_v60  ;;  %v4215_v3 = vrot.slane %v2567_v57, %v12624_v13  ;;  %v6010_v56 = vpack.c.b16 %v15538_v60, %v15531_v16  ;;  %7626 = vmatprep.subr.bf16.mxu1 %v11838_v26  ;;  %v18215_v62 = vld [vmem:[#allocation79_spill] sm:$0xff] }
 0x2c9   :  { %v11234_v9 = vcombine.high %v18209_v33, %v2567_v57  ;;  %v4254_v8 = vrot.slane %v18215_v62, %v12624_v13  ;;  %v4261_v52 = vrot.slane %v18217_v15, %v12624_v13  ;;  %7437 = vmatprep.mubr.bf16.mxu0 %v6078_v58  ;;  %7552 = vmatpush1.bf16.msra.mxu0 %v11827_v37  ;;  %v18222_v62 = vld [vmem:[#allocation82_spill] sm:$0xff]  ;;  %v18223_v37 = vld [vmem:[#allocation81_spill] sm:$0xff]  ;;  %v11841_v15 = vld [vmem:[#allocation2 + $0x204] ss:$8 sps:$4 sm:$0xff]  }
 0x2ca   :  { %v4216_v11 = vcombine.low %v4208_v2, %v4215_v3  ;;  %v18220_v60 = vcombine.low %v18218_v34, %v18219_v40  ;;  %v18221_v57 = vcombine.high %v18218_v34, %v18218_v34  ;;  %7438 = vmatmul.mubr.bf16.gmra.mxu0 %v6010_v56  ;;  %7553 = vmatprep.subr.bf16.mxu0 %v11835_v48  ;;  %v18224_v34 = vld [vmem:[#allocation78_spill] sm:$0xff]  ;;  %v18227_v48 = vld [vmem:[#allocation83_spill] sm:$0xff] }
 0x2cb   :  { %v4231_v1 = vrot.slane %v11234_v9, %v12624_v13  ;;  %v4262_v58 = vcombine.low %v4254_v8, %v4261_v52  ;;  %v4300_v2 = vrot.slane %v18223_v37, %v12624_v13  ;;  %7627 = vmatpush1.bf16.msra.mxu1 %v11836_v43  ;;  %v18226_v56 = vrot.slane %v18225_v61, %v12624_v13  ;;  %v11842_v9 = vld [vmem:[#allocation2 + $0x300] ss:$8 sps:$4 sm:$0xff]  }
 0x2cc   :  { %v4277_v26 = vrot.slane %v18220_v60, %v12624_v13  ;;  %v4284_v33 = vrot.slane %v18221_v57, %v12624_v13  ;;  %v4223_v40 = vrot.slane %v4216_v11, %v12624_v13  ;;  %v4307_v57 = vrot.slane %v18224_v34, %v12624_v13  ;;  %v18228_v37 = vld [vmem:[#allocation86_spill] sm:$0xff]  ;;  %v18229_v43 = vld [vmem:[#allocation71_spill] sm:$0xff]  ;;  %7628 = vmatprep.subr.bf16.mxu1 %v11844_v29 }
 0x2cd   :  { %v4331_v16 = vcombine.low %v18227_v48, %v18226_v56  ;;  %v4239_v8 = vcombine.low %v4231_v1, %v4238_v7  ;;  %v4269_v52 = vrot.slane %v4262_v58, %v12624_v13  ;;  %v4361_v3 = vrot.slane %v18228_v37, %v12624_v13  ;;  %7554 = vmatpush1.bf16.msra.mxu0 %v11833_v59  ;;  %v11839_v58 = vld [vmem:[#allocation2 + $0x200] ss:$8 sps:$4 sm:$0xff]  }
 0x2ce   :  { %v4285_v60 = vcombine.low %v4277_v26, %v4284_v33  ;;  %v18231_v11 = vcombine.low %v18229_v43, %v18230_v0  ;;  %v11850_v33 = vld [vmem:[#allocation2 + $0x3f4] ss:$8 sps:$4 sm:$0xff]   ;;  %v4308_v61 = vcombine.low %v4300_v2, %v4307_v57  ;;  %v18232_v7 = vcombine.low %v14465_v19, %v14461_v39  ;;  %7555 = vmatprep.subr.bf16.mxu0 %v11841_v15  ;;  %v11848_v39 = vld [vmem:[#allocation2 + $0x3f0] ss:$8 sps:$4 sm:$0xff]  }
 0x2cf   :  { %v4338_v56 = vrot.slane %v4331_v16, %v12624_v13  ;;  %v4246_v48 = vrot.slane %v4239_v8, %v12624_v13  ;;  %v5465_v0 = vsel %vm1122_vm4, %v4223_v40, -inf  ;;  %v5479_v29 = vsel %vm1122_vm4, %v4269_v52, -inf  ;;  %7629 = vmatpush1.bf16.msra.mxu1 %v11842_v9  ;;  %v11856_v52 = vld [vmem:[#allocation2 + $0x3e4] ss:$8 sps:$4 sm:$0xff]  }
 0x2d0   :  { %v4384_v26 = vrot.slane %v18231_v11, %v12624_v13  ;;  %v4292_v34 = vrot.slane %v4285_v60, %v12624_v13  ;;  %v15585_v1 = vrot.slane %v18232_v7, %v12624_v13  ;;  %v5507_v59 = vsel %vm1122_vm4, %v4361_v3, -inf  ;;  %v11847_v60 = vld [vmem:[#allocation2 + $0x2f4] ss:$8 sps:$4 sm:$0xff]   ;;  %7630 = vmatprep.subr.bf16.mxu1 %v11850_v33  ;;  %v11854_v33 = vld [vmem:[#allocation2 + $0x3e0] ss:$8 sps:$4 sm:$0xff]  }
 0x2d1   :  { %v4315_v2 = vrot.slane %v4308_v61, %v12624_v13  ;;  %v5466_v16 = vrot.slane %v5465_v0, 4  ;;  %v5480_v57 = vrot.slane %v5479_v29, 4  ;;  %v5472_v19 = vsel %vm1122_vm4, %v4246_v48, -inf  ;;  %7556 = vmatpush1.bf16.msra.mxu0 %v11839_v58  ;;  %v11845_v61 = vld [vmem:[#allocation2 + $0x2f0] ss:$8 sps:$4 sm:$0xff]  }
 0x2d2   :  { %v5486_v37 = vsel %vm1122_vm4, %v4292_v34, -inf  ;;  %v5500_v8 = vsel %vm1122_vm4, %v4338_v56, -inf  ;;  %v5508_v40 = vrot.slane %v5507_v59, 4  ;;  %v5473_v3 = vrot.slane %v5472_v19, 4  ;;  %7557 = vmatprep.subr.bf16.mxu0 %v11847_v60  ;;  %v11862_v58 = vld [vmem:[#allocation2 + $0x3d4] ss:$8 sps:$4 sm:$0xff]  }
 0x2d3   :  { %v5487_v43 = vrot.slane %v5486_v37, 4  ;;  %v5467_v11 = vmax.f32 %v5465_v0, %v5466_v16  ;;  %v5481_v15 = vmax.f32 %v5479_v29, %v5480_v57  ;;  %v5493_v7 = vsel %vm1122_vm4, %v4315_v2, -inf  ;;  %7631 = vmatpush2.bf16.msra.mxu1 %v11848_v39 }
 0x2d4   :  { %v5494_v27 = vrot.slane %v5493_v7, 4  ;;  %v5501_v34 = vrot.slane %v5500_v8, 4  ;;  %v5509_v9 = vmax.f32 %v5507_v59, %v5508_v40  ;;  %v5474_v6 = vmax.f32 %v5472_v19, %v5473_v3  ;;  %7632 = vmatprep.subr.bf16.mxu1 %v11856_v52  ;;  %v11851_v59 = vld [vmem:[#allocation2 + $0x2e0] ss:$8 sps:$4 sm:$0xff]  }
 0x2d5   :  { %v5488_v28 = vmax.f32 %v5486_v37, %v5487_v43  ;;  %v5468_v48 = vrot.slane %v5467_v11, 2  ;;  %v5482_v45 = vrot.slane %v5481_v15, 2  ;;  %v5514_v56 = vsel %vm1122_vm4, %v4384_v26, -inf  ;;  %7558 = vmatpush2.bf16.msra.mxu0 %v11845_v61  ;;  %v11859_v26 = vld [vmem:[#allocation2 + $0x2d4] ss:$8 sps:$4 sm:$0xff]  }
 0x2d6   :  { %v5495_v16 = vmax.f32 %v5493_v7, %v5494_v27  ;;  %v5502_v29 = vmax.f32 %v5500_v8, %v5501_v34  ;;  %v5510_v57 = vrot.slane %v5509_v9, 2  ;;  %v5475_v37 = vrot.slane %v5474_v6, 2  ;;  %7559 = vmatprep.subr.bf16.mxu0 %v11853_v35  ;;  %v11860_v8 = vld [vmem:[#allocation2 + $0x3d0] ss:$8 sps:$4 sm:$0xff]  }
 0x2d7   :  { %v5489_v0 = vrot.slane %v5488_v28, 2  ;;  %v5469_v2 = vmax.f32 %v5467_v11, %v5468_v48  ;;  %v5483_v43 = vmax.f32 %v5481_v15, %v5482_v45  ;;  %v5515_v12 = vrot.slane %v5514_v56, 4  ;;  %7633 = vmatpush2.bf16.msra.mxu1 %v11854_v33  ;;  %v11868_v45 = vld [vmem:[#allocation2 + $0x3c4] ss:$8 sps:$4 sm:$0xff]   ;;  %v11857_v35 = vld [vmem:[#allocation2 + $0x2d0] ss:$8 sps:$4 sm:$0xff]  }
 0x2d8   :  { %v5496_v40 = vrot.slane %v5495_v16, 2  ;;  %v5503_v19 = vrot.slane %v5502_v29, 2  ;;  %v5511_v3 = vmax.f32 %v5509_v9, %v5510_v57  ;;  %v5476_v18 = vmax.f32 %v5474_v6, %v5475_v37  ;;  %7634 = vmatprep.subr.bf16.mxu1 %v11862_v58  ;;  %v11865_v33 = vld [vmem:[#allocation2 + $0x2c4] ss:$8 sps:$4 sm:$0xff]  }
 0x2d9   :  { %v5490_v60 = vmax.f32 %v5488_v28, %v5489_v0  ;;  %v5470_v39 = vrot.slane %v5469_v2, 1  ;;  %v5484_v54 = vrot.slane %v5483_v43, 1  ;;  %v5516_v27 = vmax.f32 %v5514_v56, %v5515_v12  ;;  %7560 = vmatpush2.bf16.msra.mxu0 %v11851_v59 }
 0x2da   :  { %v5497_v7 = vmax.f32 %v5495_v16, %v5496_v40  ;;  %v5504_v11 = vmax.f32 %v5502_v29, %v5503_v19  ;;  %v5512_v34 = vrot.slane %v5511_v3, 1  ;;  %v5477_v28 = vrot.slane %v5476_v18, 1  ;;  %7561 = vmatprep.subr.bf16.mxu0 %v11859_v26  ;;  %v18233_v29 = vld [vmem:[#allocation73_spill] sm:$0xff] }
 0x2db   :  { %v5491_v52 = vrot.slane %v5490_v60, 1  ;;  %v15597_v15 = vmax.f32 %v5469_v2, %v5470_v39  ;;  %v15599_v61 = vmax.f32 %v5483_v43, %v5484_v54  ;;  %v5517_v9 = vrot.slane %v5516_v27, 2  ;;  %v18235_v2 = vld [vmem:[#allocation80_spill] sm:$0xff]  ;;  %7635 = vmatpush2.bf16.msra.mxu1 %v11860_v8  ;;  %v11874_v26 = vld [vmem:[#allocation2 + $0x3b4] ss:$8 sps:$4 sm:$0xff]  }
 0x2dc   :  { %v5498_v6 = vrot.slane %v5497_v7, 1  ;;  %v5505_v12 = vrot.slane %v5504_v11, 1  ;;  %v15603_v56 = vmax.f32 %v5511_v3, %v5512_v34  ;;  %v5478_v0 = vmax.f32 %v5476_v18, %v5477_v28  ;;  %v11866_v43 = vld [vmem:[#allocation2 + $0x3c0] ss:$8 sps:$4 sm:$0xff]   ;;  %7636 = vmatprep.subr.bf16.mxu1 %v11868_v45 }
 0x2dd   :  { %v15601_v48 = vmax.f32 %v5490_v60, %v5491_v52  ;;  %v5518_v16 = vmax.f32 %v5516_v27, %v5517_v9  ;;  %v18234_v57 = vrot.slane %v18233_v29, 2  ;;  %v18236_v54 = vrot.slane %v18235_v2, 1  ;;  %7562 = vmatpush2.bf16.msra.mxu0 %v11857_v35  ;;  %v11871_v9 = vld [vmem:[#allocation2 + $0x2b4] ss:$8 sps:$4 sm:$0xff]  }
 0x2de   :  { %v5499_v59 = vmax.f32 %v5497_v7, %v5498_v6  ;;  %v5506_v60 = vmax.f32 %v5504_v11, %v5505_v12  ;;  %v18237_v40 = vrot.slane %v18222_v62, 1  ;;  %v18238_v18 = vrot.slane %v14540_v10, 1  ;;  %7563 = vmatprep.subr.bf16.mxu0 %v11865_v33 }
 0x2df   :  { %v5525_v58 = vmax.f32 %v18233_v29, %v18234_v57  ;;  %v15611_v37 = vmax.f32 %v18235_v2, %v18236_v54  ;;  %v5519_v39 = vrot.slane %v5518_v16, 1  ;;  %v18239_v52 = vrot.slane %v14517_v25, 2  ;;  %7637 = vmatpush2.bf16.msra.mxu1 %v11866_v43  ;;  %v11880_v54 = vld [vmem:[#allocation2 + $0x3a4] ss:$8 sps:$4 sm:$0xff]  }
 0x2e0   :  { %v15616_v19 = vmax.f32 %v18222_v62, %v18237_v40  ;;  %v15621_v3 = vmax.f32 %v14540_v10, %v18238_v18  ;;  %v18240_v7 = vrot.slane %v14488_v20, %v12624_v13  ;;  %v11863_v62 = vld [vmem:[#allocation2 + $0x2c0] ss:$8 sps:$4 sm:$0xff]   ;;  %v5570_v10 = vsel %vm1122_vm4, %v15585_v1, -inf  ;;  %v11872_v20 = vld [vmem:[#allocation2 + $0x3b0] ss:$8 sps:$4 sm:$0xff]   ;;  %7638 = vmatprep.subr.bf16.mxu1 %v11874_v26 }
 0x2e1   :  { %v5526_v27 = vrot.slane %v5525_v58, 1  ;;  %v5560_v8 = vmax.f32 %v14517_v25, %v18239_v52  ;;  %v5779_v45 = vpack.c.bf16 %v15597_v15, %v15597_v15  ;;  %v5780_v28 = vpack.c.bf16 %v5478_v0, %v5478_v0  ;;  %7564 = vmatpush2.bf16.msra.mxu0 %v11863_v62 }
 0x2e2   :  { %v5563_v11 = vsel %vm1122_vm4, %v18240_v7, -inf  ;;  %v5520_v6 = vmax.f32 %v5518_v16, %v5519_v39  ;;  %v5571_v29 = vrot.slane %v5570_v10, 4  ;;  %v5781_v35 = vpack.c.bf16 %v15599_v61, %v15599_v61  ;;  %7565 = vmatprep.subr.bf16.mxu0 %v11871_v9  ;;  %v11877_v39 = vld [vmem:[#allocation2 + $0x2a4] ss:$8 sps:$4 sm:$0xff]  }
 0x2e3   :  { %v5564_v34 = vrot.slane %v5563_v11, 4  ;;  %v5527_v12 = vmax.f32 %v5525_v58, %v5526_v27  ;;  %v5561_v25 = vrot.slane %v5560_v8, 1  ;;  %v5782_v2 = vpack.c.bf16 %v15601_v48, %v15601_v48  ;;  %v11869_v58 = vld [vmem:[#allocation2 + $0x2b0] ss:$8 sps:$4 sm:$0xff]   ;;  %7639 = vmatpush2.bf16.msra.mxu1 %v11872_v20 }
 0x2e4   :  { %v5783_v1 = vpack.c.bf16 %v5499_v59, %v5499_v59  ;;  %v5572_v0 = vmax.f32 %v5570_v10, %v5571_v29  ;;  %v5784_v33 = vpack.c.bf16 %v5506_v60, %v5506_v60  ;;  %v5785_v16 = vpack.c.bf16 %v15603_v56, %v15603_v56  ;;  %v11878_v56 = vld [vmem:[#allocation2 + $0x3a0] ss:$8 sps:$4 sm:$0xff]   ;;  %7640 = vmatprep.subr.bf16.mxu1 %v11880_v54  ;;  %v18246_v54 = vld [vmem:[#allocation85_spill] sm:$0xff] }
 0x2e5   :  { %v5565_v57 = vmax.f32 %v5563_v11, %v5564_v34  ;;  %v5562_v15 = vmax.f32 %v5560_v8, %v5561_v25  ;;  %v5786_v40 = vpack.c.bf16 %v5520_v6, %v5520_v6  ;;  %v5787_v18 = vpack.c.bf16 %v5527_v12, %v5527_v12  ;;  %7566 = vmatpush2.bf16.msra.mxu0 %v11869_v58  ;;  %v11883_v6 = vld [vmem:[#allocation2 + $0x294] ss:$8 sps:$4 sm:$0xff]  }
 0x2e6   :  { %v5789_v61 = vpack.c.bf16 %v15611_v37, %v15611_v37  ;;  %v5573_v48 = vrot.slane %v5572_v0, 2  ;;  %v5790_v59 = vpack.c.bf16 %v15616_v19, %v15616_v19  ;;  %v5791_v60 = vpack.c.bf16 %v15621_v3, %v15621_v3  ;;  %v11886_v37 = vld [vmem:[#allocation2 + $0x394] ss:$8 sps:$4 sm:$0xff]   ;;  %v11875_v3 = vld [vmem:[#allocation2 + $0x2a0] ss:$8 sps:$4 sm:$0xff]   ;;  %7567 = vmatprep.subr.bf16.mxu0 %v11877_v39 }
 0x2e7   :  { %v5566_v43 = vrot.slane %v5565_v57, 2  ;;  %v5792_v26 = vpack.c.bf16 %v5562_v15, %v5562_v15  ;;  %v15646_v52 = vunpack.c.l.b16 %v5779_v45  ;;  %v15648_v8 = vunpack.c.l.b16 %v5780_v28  ;;  %7641 = vmatpush2.bf16.msra.mxu1 %v11878_v56  ;;  %v11889_v56 = vld [vmem:[#allocation2 + $0x284] ss:$8 sps:$4 sm:$0xff]  }
 0x2e8   :  { %v15650_v7 = vunpack.c.l.b16 %v5781_v35  ;;  %v5574_v11 = vmax.f32 %v5572_v0, %v5573_v48  ;;  %v15652_v62 = vunpack.c.l.b16 %v5782_v2  ;;  %v15654_v34 = vunpack.c.l.b16 %v5783_v1  ;;  %7642 = vmatprep.subr.bf16.mxu1 %v11886_v37  ;;  %v11892_v0 = vld [vmem:[#allocation2 + $0x384] ss:$8 sps:$4 sm:$0xff]  }
 0x2e9   :  { %v5567_v27 = vmax.f32 %v5565_v57, %v5566_v43  ;;  %v15656_v19 = vunpack.c.l.b16 %v5784_v33  ;;  %v15658_v9 = vunpack.c.l.b16 %v5785_v16  ;;  %v15660_v45 = vunpack.c.l.b16 %v5786_v40  ;;  %v11884_v57 = vld [vmem:[#allocation2 + $0x390] ss:$8 sps:$4 sm:$0xff]   ;;  %7568 = vmatpush2.bf16.msra.mxu0 %v11875_v3  ;;  %v11890_v3 = vld [vmem:[#allocation2 + $0x380] ss:$8 sps:$4 sm:$0xff]  }
 0x2ea   :  { %18241 = vst [vmem:[#allocation23_spill] sm:$0xff] %v15652_v62  ;;  %v15662_v28 = vunpack.c.l.b16 %v5787_v18  ;;  %v5575_v12 = vrot.slane %v5574_v11, 1  ;;  %v15664_v25 = vunpack.c.l.b16 %v5789_v61  ;;  %v15666_v29 = vunpack.c.l.b16 %v5790_v59  ;;  %v18247_v43 = vld [vmem:[#allocation66_spill] sm:$0xff]  ;;  %7569 = vmatprep.subr.bf16.mxu0 %v11883_v6 }
 0x2eb   :  { %v5568_v10 = vrot.slane %v5567_v27, 1  ;;  %18242 = vst [vmem:[#allocation17_spill] sm:$0xff] %v15660_v45  ;;  %v15668_v20 = vunpack.c.l.b16 %v5791_v60  ;;  %v15670_v2 = vunpack.c.l.b16 %v5792_v26  ;;  %v6049_v1 = vsel %vm5946_vm7, %v15648_v8, %v15646_v52  ;;  %v11881_v61 = vld [vmem:[#allocation2 + $0x290] ss:$8 sps:$4 sm:$0xff]   ;;  %7643 = vmatpush2.bf16.msra.mxu1 %v11884_v57 }
 0x2ec   :  { %18243 = vst [vmem:[#allocation41_spill] sm:$0xff] %v15662_v28  ;;  %18244 = vst [vmem:[#allocation36_spill] sm:$0xff] %v15664_v25  ;;  %v6056_v15 = vsel %vm5946_vm7, %v18246_v54, %v15662_v28  ;;  %v5576_v33 = vmax.f32 %v5574_v11, %v5575_v12  ;;  %v6050_v16 = vsel %vm5948_vm8, %v15650_v7, %v6049_v1  ;;  %7644 = vmatprep.subr.bf16.mxu1 %v11892_v0  ;;  %v18250_v57 = vld [vmem:[#allocation61_spill] sm:$0xff] }
 0x2ed   :  { %18245 = vst [vmem:[#allocation52_spill] sm:$0xff] %v15666_v29  ;;  %v5569_v35 = vmax.f32 %v5567_v27, %v5568_v10  ;;  %v6057_v58 = vsel %vm5948_vm8, %v15664_v25, %v6056_v15  ;;  %v18248_v40 = vcombine.low %v18247_v43, %v18210_v4  ;;  %v6051_v48 = vsel %vm5950_vm9, %v15652_v62, %v6050_v16 }
 0x2ee   :  { %v6058_v59 = vsel %vm5950_vm9, %v15666_v29, %v6057_v58  ;;  %v18249_v60 = vcombine.high %v18247_v43, %v18247_v43  ;;  %v5794_v27 = vpack.c.bf16 %v5576_v33, %v5576_v33  ;;  %v6052_v4 = vsel %vm5952_vm10, %v15654_v34, %v6051_v48  ;;  %7570 = vmatpush2.bf16.msra.mxu0 %v11881_v61  ;;  %v11887_v58 = vld [vmem:[#allocation2 + $0x280] ss:$8 sps:$4 sm:$0xff]  }
 0x2ef   :  { %v4185_v18 = vrot.slane %v18248_v40, %v12624_v13  ;;  %v5793_v39 = vpack.c.bf16 %v5569_v35, %v5569_v35  ;;  %v6059_v37 = vsel %vm5952_vm10, %v15668_v20, %v6058_v59  ;;  %v5988_v11 = vsel %vm5946_vm7, %v15662_v28, %v15660_v45  ;;  %7571 = vmatprep.subr.bf16.mxu0 %v11889_v56  ;;  %v18251_v56 = vld [vmem:[#allocation59_spill] sm:$0xff] }
 0x2f0   :  { %v4192_v26 = vrot.slane %v18249_v60, %v12624_v13  ;;  %v6053_v12 = vsel %vm5954_vm11, %v15656_v19, %v6052_v4  ;;  %v6060_v6 = vsel %vm5954_vm11, %v15670_v2, %v6059_v37  ;;  %v15707_v1 = vunpack.c.l.b16 %v5794_v27  ;;  %7645 = vmatpush2.bf16.msra.mxu1 %v11890_v3  ;;  %v11895_v60 = vld [vmem:[#allocation2 + $0x474] ss:$8 sps:$4 sm:$0xff]  }
 0x2f1   :  { %v15701_v10 = vunpack.c.l.b16 %v5793_v39  ;;  %v6054_v15 = vsel %vm5956_vm12, %v15658_v9, %v6053_v12  ;;  %v5989_v33 = vsel %vm5948_vm8, %v18246_v54, %v5988_v11  ;;  %v2392_v16 = vcombine.high %v18250_v57, %v18250_v57 }
 0x2f2   :  { %v4193_v35 = vcombine.low %v4185_v18, %v4192_v26  ;;  %v6055_v43 = vsel %vm5958_vm13, %v15660_v45, %v6054_v15  ;;  %v5990_v18 = vsel %vm5950_vm9, %v15664_v25, %v5989_v33  ;;  %v2406_v61 = vrot.slane %v18250_v57, %v12624_v13  ;;  %7572 = vmatpush2.bf16.msra.mxu0 %v11887_v58 }
 0x2f3   :  { %v6061_v40 = vsel %vm5956_vm12, %v15701_v10, %v6060_v6  ;;  %v5991_v48 = vsel %vm5952_vm10, %v15666_v29, %v5990_v18  ;;  %v2420_v59 = vrot.slane %v2392_v16, %v12624_v13  ;;  %v2423_v37 = vcombine.high %v18251_v56, %v18251_v56  ;;  %7687 = vmatprep.subr.bf16.mxu0 %v11895_v60 }
 0x2f4   :  { %v4200_v0 = vrot.slane %v4193_v35, %v12624_v13  ;;  %v6062_v39 = vsel %vm5958_vm13, %v15707_v1, %v6061_v40  ;;  %v5992_v4 = vsel %vm5954_vm11, %v15668_v20, %v5991_v48  ;;  %v15738_v6 = vrot.slane %v15125_v22, %v12624_v13 }
 0x2f5   :  { %v6079_v26 = vpack.c.b16 %v6062_v39, %v6055_v43  ;;  %v5993_v12 = vsel %vm5956_vm12, %v15670_v2, %v5992_v4  ;;  %v4031_v3 = vrot.slane %v2420_v59, %v12624_v13  ;;  %v4017_v15 = vcombine.low %v2423_v37, %v2406_v61 }
 0x2f6   :  { %v5458_v27 = vsel %vm1122_vm4, %v4200_v0, -inf  ;;  %v15743_v35 = vsel %vm5958_vm13, %v15701_v10, %v5993_v12  ;;  %v11232_v33 = vcombine.high %v2406_v61, %v2420_v59  ;;  %v6171_v57 = vsel %vm5946_vm7, %v15441_v32, %v15439_v36 }
 0x2f7   :  { %v5459_v11 = vrot.slane %v5458_v27, 4  ;;  %7447 = vmatprep.mubr.bf16.mxu0 %v6079_v26  ;;  %18252 = vst [vmem:[#allocation57_spill] sm:$0xff] %v15743_v35  ;;  %v4054_v43 = vrot.slane %v15738_v6, %v12624_v13  ;;  %v6172_v40 = vsel %vm5948_vm8, %v15443_v23, %v6171_v57  ;;  %v6178_v58 = vsel %vm5946_vm7, %v15455_v24, %v15453_v21 }
 0x2f8   :  { %v4024_v0 = vrot.slane %v4017_v15, %v12624_v13  ;;  %v4047_v18 = vrot.slane %v11232_v33, %v12624_v13  ;;  %v6173_v39 = vsel %vm5950_vm9, %v15445_v31, %v6172_v40  ;;  %v6179_v48 = vsel %vm5948_vm8, %v15457_v14, %v6178_v58 }
 0x2f9   :  { %v5460_v16 = vmax.f32 %v5458_v27, %v5459_v11  ;;  %v6174_v59 = vsel %vm5952_vm10, %v15447_v50, %v6173_v39  ;;  %v6180_v26 = vsel %vm5950_vm9, %v15459_v63, %v6179_v48  ;;  %v6103_v60 = vsel %vm5946_vm7, %v15439_v36, %v15384_v53 }
 0x2fa   :  { %v4032_v27 = vcombine.low %v4024_v0, %v4031_v3  ;;  %v4055_v4 = vcombine.low %v4047_v18, %v4054_v43  ;;  %v6175_v56 = vsel %vm5954_vm11, %v15451_v5, %v6174_v59  ;;  %v6181_v37 = vsel %vm5952_vm10, %v15499_v30, %v6180_v26 }
 0x2fb   :  { %v5461_v61 = vrot.slane %v5460_v16, 2  ;;  %v6176_v12 = vsel %vm5956_vm12, %v15449_v49, %v6175_v56  ;;  %v15776_v15 = vsel %vm5954_vm11, %v15501_v42, %v6181_v37  ;;  %v6104_v33 = vsel %vm5948_vm8, %v15441_v32, %v6103_v60 }
 0x2fc   :  { %v4039_v3 = vrot.slane %v4032_v27, %v12624_v13  ;;  %v4062_v57 = vrot.slane %v4055_v4, %v12624_v13  ;;  %v15784_v43 = vsel %vm5958_vm13, %v18204_v17, %v6176_v12  ;;  %v6110_v0 = vsel %vm5946_vm7, %v15453_v21, %v18204_v17 }
 0x2fd   :  { %v5462_v11 = vmax.f32 %v5460_v16, %v5461_v61  ;;  %v6105_v16 = vsel %vm5950_vm9, %v15443_v23, %v6104_v33  ;;  %v4591_v18 = vrot.slane %v14662_v47, %v12624_v13  ;;  %v6111_v59 = vsel %vm5948_vm8, %v15455_v24, %v6110_v0  ;;  %v18271_v24 = vld [vmem:[#allocation84_spill] sm:$0xff] }
 0x2fe   :  { %v6106_v58 = vsel %vm5952_vm10, %v15445_v31, %v6105_v16  ;;  %v5409_v39 = vsel %vm1122_vm4, %v4039_v3, -inf  ;;  %v5416_v48 = vsel %vm1122_vm4, %v4062_v57, -inf  ;;  %v6112_v47 = vsel %vm5950_vm9, %v15457_v14, %v6111_v59  ;;  %v18292_v14 = vld [vmem:[#allocation28_spill] sm:$0xff] }
 0x2ff   :  { %v5463_v40 = vrot.slane %v5462_v11, 1  ;;  %v6107_v61 = vsel %vm5954_vm11, %v15447_v50, %v6106_v58  ;;  %v5410_v60 = vrot.slane %v5409_v39, 4  ;;  %v5417_v27 = vrot.slane %v5416_v48, 4 }
 0x300   :  { %v6108_v4 = vsel %vm5956_vm12, %v15451_v5, %v6107_v61  ;;  %v5577_v37 = vsel %vm1122_vm4, %v4591_v18, -inf  ;;  %v18253_v12 = vrot.slane %v14737_v38, 4  ;;  %v6113_v16 = vsel %vm5952_vm10, %v15459_v63, %v6112_v47 }
 0x301   :  { %v5464_v26 = vmax.f32 %v5462_v11, %v5463_v40  ;;  %v15805_v56 = vsel %vm5958_vm13, %v15449_v49, %v6108_v4  ;;  %v5411_v11 = vmax.f32 %v5409_v39, %v5410_v60  ;;  %v5418_v57 = vmax.f32 %v5416_v48, %v5417_v27 }
 0x302   :  { %v5586_v33 = vmax.f32 %v14737_v38, %v18253_v12  ;;  %v6114_v40 = vsel %vm5954_vm11, %v15499_v30, %v6113_v16  ;;  %v5578_v58 = vrot.slane %v5577_v37, 4  ;;  %v6185_v61 = vsel %vm5946_vm7, %v15652_v62, %v15650_v7 }
 0x303   :  { %v5778_v3 = vpack.c.bf16 %v5464_v26, %v5464_v26  ;;  %v5412_v59 = vrot.slane %v5411_v11, 2  ;;  %v5419_v4 = vrot.slane %v5418_v57, 2  ;;  %v6115_v38 = vsel %vm5956_vm12, %v15501_v42, %v6114_v40 }
 0x304   :  { %v5587_v0 = vrot.slane %v5586_v33, 2  ;;  %v5579_v39 = vmax.f32 %v5577_v37, %v5578_v58  ;;  %v6186_v26 = vsel %vm5948_vm8, %v15654_v34, %v6185_v61  ;;  %v6192_v60 = vsel %vm5946_vm7, %v15666_v29, %v15664_v25 }
 0x305   :  { %v5914_v18 = vunpack.c.l.b16 %v5778_v3  ;;  %v5413_v47 = vmax.f32 %v5411_v11, %v5412_v59  ;;  %v5420_v12 = vmax.f32 %v5418_v57, %v5419_v4  ;;  %v6187_v3 = vsel %vm5950_vm9, %v15656_v19, %v6186_v26 }
 0x306   :  { %v5588_v48 = vmax.f32 %v5586_v33, %v5587_v0  ;;  %v5580_v37 = vrot.slane %v5579_v39, 2  ;;  %v6188_v40 = vsel %vm5952_vm10, %v15658_v9, %v6187_v3 }
 0x307   :  { %v5981_v27 = vsel %vm5946_vm7, %v15646_v52, %v5914_v18  ;;  %v5414_v0 = vrot.slane %v5413_v47, 1  ;;  %v5421_v61 = vrot.slane %v5420_v12, 1  ;;  %v6189_v52 = vsel %vm5954_vm11, %v15660_v45, %v6188_v40 }
 0x308   :  { %v5982_v16 = vsel %vm5948_vm8, %v15648_v8, %v5981_v27  ;;  %v5589_v33 = vrot.slane %v5588_v48, 1  ;;  %v5581_v57 = vmax.f32 %v5579_v39, %v5580_v37  ;;  %v6190_v59 = vsel %vm5956_vm12, %v15662_v28, %v6189_v52 }
 0x309   :  { %v5983_v58 = vsel %vm5950_vm9, %v15650_v7, %v5982_v16  ;;  %v5415_v26 = vmax.f32 %v5413_v47, %v5414_v0  ;;  %v5422_v27 = vmax.f32 %v5420_v12, %v5421_v61  ;;  %v6191_v3 = vsel %vm5958_vm13, %v18246_v54, %v6190_v59 }
 0x30a   :  { %v5984_v11 = vsel %vm5952_vm10, %v15652_v62, %v5983_v58  ;;  %v5590_v18 = vmax.f32 %v5588_v48, %v5589_v33  ;;  %v5582_v40 = vrot.slane %v5581_v57, 1  ;;  %v6193_v39 = vsel %vm5948_vm8, %v15668_v20, %v6192_v60 }
 0x30b   :  { %v5985_v4 = vsel %vm5954_vm11, %v15654_v34, %v5984_v11  ;;  %v5771_v37 = vpack.c.bf16 %v5415_v26, %v5415_v26  ;;  %v5772_v33 = vpack.c.bf16 %v5422_v27, %v5422_v27  ;;  %v6194_v47 = vsel %vm5950_vm9, %v15670_v2, %v6193_v39 }
 0x30c   :  { %v5986_v16 = vsel %vm5956_vm12, %v15656_v19, %v5985_v4  ;;  %v5796_v42 = vpack.c.bf16 %v5590_v18, %v5590_v18  ;;  %v5583_v58 = vmax.f32 %v5581_v57, %v5582_v40  ;;  %v6195_v61 = vsel %vm5952_vm10, %v15701_v10, %v6194_v47  ;;  %v18257_v57 = vld [vmem:[#allocation91_spill] sm:$0xff] }
 0x30d   :  { %v5987_v48 = vsel %vm5958_vm13, %v15658_v9, %v5986_v16  ;;  %v15860_v52 = vunpack.c.l.b16 %v5771_v37  ;;  %v15862_v11 = vunpack.c.l.b16 %v5772_v33  ;;  %v6196_v60 = vsel %vm5954_vm11, %v15707_v1, %v6195_v61  ;;  %v18260_v16 = vld [vmem:[#allocation89_spill] sm:$0xff]  ;;  %v18262_v37 = vld [vmem:[#allocation94_spill] sm:$0xff] }
 0x30e   :  { %v6011_v12 = vpack.c.b16 %v15743_v35, %v5987_v48  ;;  %v15856_v0 = vunpack.c.l.b16 %v5796_v42  ;;  %v4729_v18 = vrot.slane %v14767_v55, %v12624_v13  ;;  %v5795_v59 = vpack.c.bf16 %v5583_v58, %v5583_v58  ;;  %v18263_v33 = vld [vmem:[#allocation93_spill] sm:$0xff]  ;;  %v18265_v61 = vld [vmem:[#allocation90_spill] sm:$0xff] }
 0x30f   :  { %18255 = vst [vmem:[#allocation44_spill] sm:$0xff] %v15860_v52  ;;  %18256 = vst [vmem:[#allocation60_spill] sm:$0xff] %v15862_v11  ;;  %v18258_v42 = vcombine.low %v14571_v51, %v18257_v57  ;;  %v18259_v26 = vcombine.low %v14972_v41, %v14987_v46  ;;  %v18261_v40 = vrot.slane %v18260_v16, 1  ;;  %v6183_v55 = vsel %vm5956_vm12, %v15860_v52, %v15776_v15 }
 0x310   :  { %18254 = vst [vmem:[#allocation43_spill] sm:$0xff] %v15856_v0  ;;  %7448 = vmatmul.mubr.bf16.gmra.mxu0 %v6011_v12  ;;  %v6116_v48 = vsel %vm5958_vm13, %v15860_v52, %v6115_v38  ;;  %v5603_v51 = vrot.slane %v18262_v37, 1  ;;  %v18264_v47 = vrot.slane %v18263_v33, 4  ;;  %v6184_v41 = vsel %vm5958_vm13, %v15862_v11, %v6183_v55 }
 0x311   :  { %v4752_v4 = vrot.slane %v18258_v42, %v12624_v13  ;;  %v4936_v27 = vrot.slane %v18259_v26, %v12624_v13  ;;  %v15879_v39 = vmax.f32 %v18260_v16, %v18261_v40  ;;  %v6146_v46 = vpack.c.b16 %v6116_v48, %v15805_v56 }
 0x312   :  { %v5607_v12 = vmax.f32 %v18263_v33, %v18264_v47  ;;  %v15893_v58 = vunpack.c.l.b16 %v5795_v59  ;;  %v18266_v57 = vrot.slane %v18265_v61, %v12624_v13  ;;  %v6214_v38 = vpack.c.b16 %v6184_v41, %v15784_v43  ;;  %v18267_v59 = vld [vmem:[#allocation92_spill] sm:$0xff] }
 0x313   :  { %v15901_v42 = vmax.f32 %v18262_v37, %v5603_v51  ;;  %v5619_v55 = vsel %vm1122_vm4, %v4729_v18, -inf  ;;  %v5626_v56 = vsel %vm1122_vm4, %v4752_v4, -inf  ;;  %v18268_v48 = vrot.slane %v18267_v59, 2 }
 0x314   :  { %v5612_v15 = vsel %vm1122_vm4, %v18266_v57, -inf  ;;  %v5608_v26 = vrot.slane %v5607_v12, 2  ;;  %v6197_v40 = vsel %vm5956_vm12, %v15893_v58, %v6196_v60  ;;  %7510 = vmatprep.mubr.bf16.mxu1 %v6214_v38  ;;  %v5620_v51 = vrot.slane %v5619_v55, 4  ;;  %v18269_v60 = vld [vmem:[#allocation87_spill] sm:$0xff] }
 0x315   :  { %v5613_v16 = vrot.slane %v5612_v15, 4  ;;  %v5637_v33 = vmax.f32 %v18267_v59, %v18268_v48  ;;  %v6198_v43 = vsel %vm5958_vm13, %v15856_v0, %v6197_v40  ;;  %7511 = vmatmul.mubr.bf16.gmra.mxu1 %v6146_v46  ;;  %v5627_v61 = vrot.slane %v5626_v56, 4 }
 0x316   :  { %v5609_v47 = vmax.f32 %v5607_v12, %v5608_v26  ;;  %v6215_v41 = vpack.c.b16 %v6198_v43, %v6191_v3  ;;  %v18270_v35 = vrot.slane %v18269_v60, 1  ;;  %v5621_v52 = vmax.f32 %v5619_v55, %v5620_v51  ;;  %v18274_v51 = vld [vmem:[#allocation96_spill] sm:$0xff] }
 0x317   :  { %v5614_v37 = vmax.f32 %v5612_v15, %v5613_v16  ;;  %v5638_v57 = vrot.slane %v5637_v33, 1  ;;  %v5659_v59 = vrot.slane %v18271_v24, 1  ;;  %v5628_v38 = vmax.f32 %v5626_v56, %v5627_v61  ;;  %v18272_v15 = vld [vmem:[#allocation100_spill] sm:$0xff] }
 0x318   :  { %v5653_v18 = vmax.f32 %v18269_v60, %v18270_v35  ;;  %v5610_v4 = vrot.slane %v5609_v47, 1  ;;  %7520 = vmatprep.mubr.bf16.mxu1 %v6215_v41  ;;  %v5666_v12 = vrot.slane %v15031_v44, 1  ;;  %v18273_v26 = vrot.slane %v18272_v15, 2 }
 0x319   :  { %v5615_v11 = vrot.slane %v5614_v37, 2  ;;  %v5639_v48 = vmax.f32 %v5637_v33, %v5638_v57  ;;  %v5622_v40 = vrot.slane %v5621_v52, 2  ;;  %v5660_v43 = vmax.f32 %v18271_v24, %v5659_v59 }
 0x31a   :  { %v5672_v3 = vmax.f32 %v18272_v15, %v18273_v26  ;;  %v5611_v46 = vmax.f32 %v5609_v47, %v5610_v4  ;;  %v5629_v35 = vrot.slane %v5628_v38, 2  ;;  %v5667_v60 = vmax.f32 %v15031_v44, %v5666_v12 }
 0x31b   :  { %v5616_v16 = vmax.f32 %v5614_v37, %v5615_v11  ;;  %v18275_v41 = vrot.slane %v18274_v51, %v12624_v13  ;;  %v5623_v61 = vmax.f32 %v5621_v52, %v5622_v40  ;;  %v5682_v30 = vsel %vm1122_vm4, %v4936_v27, -inf }
 0x31c   :  { %v5673_v55 = vrot.slane %v5672_v3, 1  ;;  %v5630_v15 = vmax.f32 %v5628_v38, %v5629_v35  ;;  %v5683_v11 = vrot.slane %v5682_v30, 4  ;;  %v5797_v24 = vpack.c.bf16 %v15879_v39, %v15879_v39 }
 0x31d   :  { %v5675_v56 = vsel %vm1122_vm4, %v18275_v41, -inf  ;;  %v5617_v33 = vrot.slane %v5616_v16, 1  ;;  %v5624_v4 = vrot.slane %v5623_v61, 1  ;;  %v5798_v59 = vpack.c.bf16 %v15901_v42, %v15901_v42 }
 0x31e   :  { %v5676_v57 = vrot.slane %v5675_v56, 4  ;;  %v5674_v47 = vmax.f32 %v5672_v3, %v5673_v55  ;;  %v5631_v12 = vrot.slane %v5630_v15, 1  ;;  %v5684_v26 = vmax.f32 %v5682_v30, %v5683_v11 }
 0x31f   :  { %v5618_v37 = vmax.f32 %v5616_v16, %v5617_v33  ;;  %v5799_v51 = vpack.c.bf16 %v5611_v46, %v5611_v46  ;;  %v5803_v41 = vpack.c.bf16 %v5639_v48, %v5639_v48  ;;  %v5625_v52 = vmax.f32 %v5623_v61, %v5624_v4 }
 0x320   :  { %v5677_v44 = vmax.f32 %v5675_v56, %v5676_v57  ;;  %v5805_v27 = vpack.c.bf16 %v5653_v18, %v5653_v18  ;;  %v5632_v38 = vmax.f32 %v5630_v15, %v5631_v12  ;;  %v5685_v3 = vrot.slane %v5684_v26, 2 }
 0x321   :  { %v5800_v21 = vpack.c.bf16 %v5618_v37, %v5618_v37  ;;  %v5806_v35 = vpack.c.bf16 %v5660_v43, %v5660_v43  ;;  %v5807_v55 = vpack.c.bf16 %v5667_v60, %v5667_v60  ;;  %v5801_v39 = vpack.c.bf16 %v5625_v52, %v5625_v52 }
 0x322   :  { %v5678_v40 = vrot.slane %v5677_v44, 2  ;;  %v5808_v16 = vpack.c.bf16 %v5674_v47, %v5674_v47  ;;  %v15931_v33 = vunpack.c.l.b16 %v5797_v24  ;;  %v5686_v56 = vmax.f32 %v5684_v26, %v5685_v3 }
 0x323   :  { %v5802_v57 = vpack.c.bf16 %v5632_v38, %v5632_v38  ;;  %v15933_v42 = vunpack.c.l.b16 %v5798_v59  ;;  %v15935_v30 = vunpack.c.l.b16 %v5799_v51  ;;  %v15937_v46 = vunpack.c.l.b16 %v5800_v21  ;;  %v18279_v59 = vld [vmem:[#allocation88_spill] sm:$0xff] }
 0x324   :  { %v5679_v63 = vmax.f32 %v5677_v44, %v5678_v40  ;;  %18276 = vst [vmem:[#allocation63_spill] sm:$0xff] %v15931_v33  ;;  %v15939_v61 = vunpack.c.l.b16 %v5801_v39  ;;  %v15941_v18 = vunpack.c.l.b16 %v5803_v41  ;;  %v5687_v43 = vrot.slane %v5686_v56, 1 }
 0x325   :  { %v15943_v60 = vunpack.c.l.b16 %v5802_v57  ;;  %v15945_v15 = vunpack.c.l.b16 %v5805_v27  ;;  %v15947_v47 = vunpack.c.l.b16 %v5806_v35  ;;  %v15949_v24 = vunpack.c.l.b16 %v5807_v55 }
 0x326   :  { %v5680_v48 = vrot.slane %v5679_v63, 1  ;;  %v15951_v37 = vunpack.c.l.b16 %v5808_v16  ;;  %v6063_v21 = vsel %vm5946_vm7, %v15856_v0, %v15893_v58  ;;  %v5688_v4 = vmax.f32 %v5686_v56, %v5687_v43 }
 0x327   :  { %18277 = vst [vmem:[#allocation33_spill] sm:$0xff] %v15945_v15  ;;  %18278 = vst [vmem:[#allocation35_spill] sm:$0xff] %v15947_v47  ;;  %v6064_v44 = vsel %vm5948_vm8, %v15931_v33, %v6063_v21  ;;  %v6070_v12 = vsel %vm5946_vm7, %v18279_v59, %v15941_v18 }
 0x328   :  { %v5681_v11 = vmax.f32 %v5679_v63, %v5680_v48  ;;  %v5995_v63 = vsel %vm5946_vm7, %v15893_v58, %v15707_v1  ;;  %v6065_v51 = vsel %vm5950_vm9, %v15933_v42, %v6064_v44  ;;  %v6071_v41 = vsel %vm5948_vm8, %v15945_v15, %v6070_v12 }
 0x329   :  { %v5996_v52 = vsel %vm5948_vm8, %v15856_v0, %v5995_v63  ;;  %v5810_v40 = vpack.c.bf16 %v5688_v4, %v5688_v4  ;;  %v6066_v27 = vsel %vm5952_vm10, %v15935_v30, %v6065_v51  ;;  %v6072_v38 = vsel %vm5950_vm9, %v15947_v47, %v6071_v41  ;;  %v18283_v51 = vld [vmem:[#allocation55_spill] sm:$0xff]  ;;  %v18284_v41 = vld [vmem:[#allocation16_spill] sm:$0xff] }
 0x32a   :  { %v5809_v26 = vpack.c.bf16 %v5681_v11, %v5681_v11  ;;  %v5997_v3 = vsel %vm5950_vm9, %v15931_v33, %v5996_v52  ;;  %v6067_v55 = vsel %vm5954_vm11, %v15937_v46, %v6066_v27  ;;  %v6073_v39 = vsel %vm5952_vm10, %v15949_v24, %v6072_v38  ;;  %v18285_v38 = vld [vmem:[#allocation18_spill] sm:$0xff] }
 0x32b   :  { %v5998_v16 = vsel %vm5952_vm10, %v15933_v42, %v5997_v3  ;;  %v15984_v56 = vunpack.c.l.b16 %v5810_v40  ;;  %v6068_v57 = vsel %vm5956_vm12, %v15939_v61, %v6067_v55  ;;  %v6074_v48 = vsel %vm5954_vm11, %v15951_v37, %v6073_v39  ;;  %v18286_v55 = vld [vmem:[#allocation26_spill] sm:$0xff]  ;;  %v18287_v39 = vld [vmem:[#allocation27_spill] sm:$0xff] }
 0x32c   :  { %v15976_v35 = vunpack.c.l.b16 %v5809_v26  ;;  %v5999_v43 = vsel %vm5954_vm11, %v15935_v30, %v5998_v16  ;;  %v6069_v11 = vsel %vm5958_vm13, %v15943_v60, %v6068_v57  ;;  %v6002_v44 = vsel %vm5946_vm7, %v15941_v18, %v15943_v60 }
 0x32d   :  { %18281 = vst [vmem:[#allocation56_spill] sm:$0xff] %v15984_v56  ;;  %v6000_v4 = vsel %vm5956_vm12, %v15937_v46, %v5999_v43  ;;  %v6003_v26 = vsel %vm5948_vm8, %v18279_v59, %v6002_v44  ;;  %v6293_v52 = vsel %vm5946_vm7, %v18284_v41, %v18283_v51  ;;  %v6300_v16 = vsel %vm5946_vm7, %v18287_v39, %v18286_v55 }
 0x32e   :  { %18280 = vst [vmem:[#allocation58_spill] sm:$0xff] %v15976_v35  ;;  %v6075_v21 = vsel %vm5956_vm12, %v15976_v35, %v6074_v48  ;;  %v16005_v63 = vsel %vm5958_vm13, %v15939_v61, %v6000_v4  ;;  %v6004_v27 = vsel %vm5950_vm9, %v15945_v15, %v6003_v26  ;;  %v6294_v3 = vsel %vm5948_vm8, %v18285_v38, %v6293_v52  ;;  %v18288_v48 = vld [vmem:[#allocation21_spill] sm:$0xff]  ;;  %v18291_v52 = vld [vmem:[#allocation30_spill] sm:$0xff] }
 0x32f   :  { %v6076_v12 = vsel %vm5958_vm13, %v15984_v56, %v6075_v21  ;;  %18282 = vst [vmem:[#allocation45_spill] sm:$0xff] %v16005_v63  ;;  %v6005_v57 = vsel %vm5952_vm10, %v15947_v47, %v6004_v27  ;;  %v6295_v43 = vsel %vm5950_vm9, %v18288_v48, %v6294_v3  ;;  %v18289_v21 = vld [vmem:[#allocation31_spill] sm:$0xff] }
 0x330   :  { %v6080_v40 = vpack.c.b16 %v6076_v12, %v6069_v11  ;;  %v6301_v4 = vsel %vm5948_vm8, %v18289_v21, %v6300_v16  ;;  %v6117_v11 = vsel %vm5946_vm7, %v15650_v7, %v15648_v8  ;;  %v6006_v44 = vsel %vm5954_vm11, %v15949_v24, %v6005_v57  ;;  %v18290_v12 = vld [vmem:[#allocation25_spill] sm:$0xff]  ;;  %v18293_v8 = vld [vmem:[#allocation14_spill] sm:$0xff] }
 0x331   :  { %v6296_v26 = vsel %vm5952_vm10, %v18290_v12, %v6295_v43  ;;  %v6302_v27 = vsel %vm5950_vm9, %v18291_v52, %v6301_v4  ;;  %v6118_v3 = vsel %vm5948_vm8, %v15652_v62, %v6117_v11  ;;  %v6007_v16 = vsel %vm5956_vm12, %v15951_v37, %v6006_v44  ;;  %v18295_v43 = vld [vmem:[#allocation22_spill] sm:$0xff] }
 0x332   :  { %7457 = vmatprep.mubr.bf16.mxu0 %v6080_v40  ;;  %v6297_v17 = vsel %vm5954_vm11, %v18292_v14, %v6296_v26  ;;  %v6303_v7 = vsel %vm5952_vm10, %v18293_v8, %v6302_v27  ;;  %v6119_v40 = vsel %vm5950_vm9, %v15654_v34, %v6118_v3  ;;  %v16046_v57 = vsel %vm5958_vm13, %v15976_v35, %v6007_v16  ;;  %v18296_v27 = vld [vmem:[#allocation29_spill] sm:$0xff] }
 0x333   :  { %18294 = vst [vmem:[#allocation51_spill] sm:$0xff] %v16046_v57  ;;  %v6298_v4 = vsel %vm5956_vm12, %v18295_v43, %v6297_v17  ;;  %v6304_v11 = vsel %vm5954_vm11, %v15384_v53, %v6303_v7  ;;  %v6120_v44 = vsel %vm5952_vm10, %v15656_v19, %v6119_v40  ;;  %v6012_v26 = vpack.c.b16 %v16046_v57, %v16005_v63  ;;  %v18297_v57 = vld [vmem:[#allocation98_spill] sm:$0xff] }
 0x334   :  { %v6299_v62 = vsel %vm5958_vm13, %v18296_v27, %v6298_v4  ;;  %v6305_v3 = vsel %vm5956_vm12, %v15439_v36, %v6304_v11  ;;  %v6121_v16 = vsel %vm5954_vm11, %v15658_v9, %v6120_v44  ;;  %v6124_v40 = vsel %vm5946_vm7, %v15664_v25, %v18246_v54  ;;  %v18298_v25 = vld [vmem:[#allocation95_spill] sm:$0xff] }
 0x335   :  { %v6306_v17 = vsel %vm5958_vm13, %v15441_v32, %v6305_v3  ;;  %v6122_v7 = vsel %vm5956_vm12, %v15660_v45, %v6121_v16  ;;  %v3127_v63 = vcombine.high %v18297_v57, %v18297_v57  ;;  %7458 = vmatmul.mubr.bf16.gmra.mxu0 %v6012_v26  ;;  %v6125_v44 = vsel %vm5948_vm8, %v15666_v29, %v6124_v40  ;;  %v18299_v26 = vld [vmem:[#allocation99_spill] sm:$0xff] }
 0x336   :  { %v6349_v4 = vpack.c.b16 %v6306_v17, %v6299_v62  ;;  %v6123_v11 = vsel %vm5958_vm13, %v15662_v28, %v6122_v7  ;;  %v3141_v3 = vrot.slane %v18297_v57, %v12624_v13  ;;  %v6126_v16 = vsel %vm5950_vm9, %v15668_v20, %v6125_v44 }
 0x337   :  { %v3155_v45 = vrot.slane %v3127_v63, %v12624_v13  ;;  %v3158_v54 = vcombine.high %v18298_v25, %v18298_v25  ;;  %v16084_v62 = vrot.slane %v18299_v26, %v12624_v13  ;;  %v6127_v17 = vsel %vm5952_vm10, %v15670_v2, %v6126_v16 }
 0x338   :  { %7573 = vmatprep.mubr.bf16.mxu0 %v6349_v4  ;;  %v6199_v57 = vsel %vm5946_vm7, %v15933_v42, %v15931_v33  ;;  %v6206_v7 = vsel %vm5946_vm7, %v15947_v47, %v15945_v15  ;;  %v6131_v25 = vsel %vm5946_vm7, %v15931_v33, %v15856_v0  ;;  %v6128_v63 = vsel %vm5954_vm11, %v15701_v10, %v6127_v17 }
 0x339   :  { %18300 = vst [vmem:[#allocation53_spill] sm:$0xff] %v16084_v62  ;;  %v4937_v40 = vcombine.low %v3158_v54, %v3141_v3  ;;  %v4951_v4 = vrot.slane %v3155_v45, %v12624_v13  ;;  %v11242_v44 = vcombine.high %v3141_v3, %v3155_v45  ;;  %v6129_v16 = vsel %vm5956_vm12, %v15707_v1, %v6128_v63 }
 0x33a   :  { %v4974_v26 = vrot.slane %v16084_v62, %v12624_v13  ;;  %v6200_v29 = vsel %vm5948_vm8, %v15935_v30, %v6199_v57  ;;  %v6207_v28 = vsel %vm5948_vm8, %v15949_v24, %v6206_v7  ;;  %v6130_v33 = vsel %vm5958_vm13, %v15893_v58, %v6129_v16 }
 0x33b   :  { %v4944_v54 = vrot.slane %v4937_v40, %v12624_v13  ;;  %v4967_v17 = vrot.slane %v11242_v44, %v12624_v13  ;;  %v6201_v45 = vsel %vm5950_vm9, %v15937_v46, %v6200_v29  ;;  %v6147_v3 = vpack.c.b16 %v6130_v33, %v6123_v11 }
 0x33c   :  { %v6202_v63 = vsel %vm5952_vm10, %v15939_v61, %v6201_v45  ;;  %v6208_v57 = vsel %vm5950_vm9, %v15951_v37, %v6207_v28  ;;  %v6132_v7 = vsel %vm5948_vm8, %v15933_v42, %v6131_v25  ;;  %v6138_v11 = vsel %vm5946_vm7, %v15945_v15, %v18279_v59 }
 0x33d   :  { %v4952_v62 = vcombine.low %v4944_v54, %v4951_v4  ;;  %v4975_v0 = vcombine.low %v4967_v17, %v4974_v26  ;;  %v6203_v40 = vsel %vm5954_vm11, %v15943_v60, %v6202_v63  ;;  %v6209_v44 = vsel %vm5952_vm10, %v15976_v35, %v6208_v57  ;;  %7521 = vmatmul.mubr.bf16.gmra.mxu1 %v6147_v3 }
 0x33e   :  { %v6204_v29 = vsel %vm5956_vm12, %v15941_v18, %v6203_v40  ;;  %v16128_v33 = vsel %vm5954_vm11, %v15984_v56, %v6209_v44  ;;  %v6133_v28 = vsel %vm5950_vm9, %v15935_v30, %v6132_v7  ;;  %v6139_v17 = vsel %vm5948_vm8, %v15947_v47, %v6138_v11 }
 0x33f   :  { %v4959_v26 = vrot.slane %v4952_v62, %v12624_v13  ;;  %v4982_v25 = vrot.slane %v4975_v0, %v12624_v13  ;;  %v16139_v4 = vsel %vm5958_vm13, %v18279_v59, %v6204_v29  ;;  %v6134_v16 = vsel %vm5952_vm10, %v15937_v46, %v6133_v28 }
 0x340   :  { %v6135_v54 = vsel %vm5954_vm11, %v15939_v61, %v6134_v16  ;;  %v6429_v45 = vsel %vm5946_vm7, %v18288_v48, %v18285_v38  ;;  %v6436_v0 = vsel %vm5946_vm7, %v18291_v52, %v18289_v21  ;;  %v6140_v57 = vsel %vm5950_vm9, %v15949_v24, %v6139_v17 }
 0x341   :  { %v5689_v62 = vsel %vm1122_vm4, %v4959_v26, -inf  ;;  %v5696_v3 = vsel %vm1122_vm4, %v4982_v25, -inf  ;;  %v6136_v63 = vsel %vm5956_vm12, %v15943_v60, %v6135_v54  ;;  %v6141_v29 = vsel %vm5952_vm10, %v15951_v37, %v6140_v57  ;;  %v18301_v25 = vld [vmem:[#allocation50_spill] sm:$0xff] }
 0x342   :  { %v5690_v7 = vrot.slane %v5689_v62, 4  ;;  %v5697_v40 = vrot.slane %v5696_v3, 4  ;;  %v16161_v44 = vsel %vm5958_vm13, %v15941_v18, %v6136_v63  ;;  %v6142_v28 = vsel %vm5954_vm11, %v15976_v35, %v6141_v29 }
 0x343   :  { %v6430_v11 = vsel %vm5948_vm8, %v18290_v12, %v6429_v45  ;;  %v6437_v26 = vsel %vm5948_vm8, %v18293_v8, %v6436_v0  ;;  %v6225_v16 = vsel %vm5946_vm7, %v18283_v51, %v18301_v25  ;;  %v6143_v63 = vsel %vm5956_vm12, %v15984_v56, %v6142_v28 }
 0x344   :  { %v5691_v54 = vmax.f32 %v5689_v62, %v5690_v7  ;;  %v5698_v17 = vmax.f32 %v5696_v3, %v5697_v40  ;;  %v6431_v57 = vsel %vm5950_vm9, %v18292_v14, %v6430_v11  ;;  %v6438_v45 = vsel %vm5950_vm9, %v15384_v53, %v6437_v26 }
 0x345   :  { %v6432_v29 = vsel %vm5952_vm10, %v18295_v43, %v6431_v57  ;;  %v6226_v0 = vsel %vm5948_vm8, %v18284_v41, %v6225_v16  ;;  %v6232_v51 = vsel %vm5946_vm7, %v18286_v55, %v18296_v27  ;;  %v6439_v40 = vsel %vm5952_vm10, %v15439_v36, %v6438_v45 }
 0x346   :  { %v5692_v62 = vrot.slane %v5691_v54, 2  ;;  %v5699_v3 = vrot.slane %v5698_v17, 2  ;;  %v6433_v7 = vsel %vm5954_vm11, %v18296_v27, %v6432_v29  ;;  %v6440_v11 = vsel %vm5954_vm11, %v15441_v32, %v6439_v40 }
 0x347   :  { %v6434_v28 = vsel %vm5956_vm12, %v18286_v55, %v6433_v7  ;;  %v6227_v26 = vsel %vm5950_vm9, %v18285_v38, %v6226_v0  ;;  %v6233_v25 = vsel %vm5948_vm8, %v18287_v39, %v6232_v51  ;;  %v6441_v45 = vsel %vm5956_vm12, %v15443_v23, %v6440_v11  ;;  %v18302_v51 = vld [vmem:[#allocation34_spill] sm:$0xff] }
 0x348   :  { %v5693_v16 = vmax.f32 %v5691_v54, %v5692_v62  ;;  %v5700_v57 = vmax.f32 %v5698_v17, %v5699_v3  ;;  %v16201_v29 = vsel %vm5958_vm13, %v18287_v39, %v6434_v28  ;;  %v16207_v7 = vsel %vm5958_vm13, %v15445_v31, %v6441_v45 }
 0x349   :  { %v6228_v40 = vsel %vm5952_vm10, %v18288_v48, %v6227_v26  ;;  %v6234_v0 = vsel %vm5950_vm9, %v18289_v21, %v6233_v25  ;;  %v2425_v54 = vcombine.high %v18302_v51, %v18302_v51  ;;  %v2440_v25 = vcombine.high %v15125_v22, %v15125_v22 }
 0x34a   :  { %v5694_v17 = vrot.slane %v5693_v16, 1  ;;  %v5701_v62 = vrot.slane %v5700_v57, 1  ;;  %v6229_v28 = vsel %vm5954_vm11, %v18290_v12, %v6228_v40  ;;  %v6235_v26 = vsel %vm5952_vm10, %v18291_v52, %v6234_v0 }
 0x34b   :  { %v6230_v11 = vsel %vm5956_vm12, %v18292_v14, %v6229_v28  ;;  %v2439_v45 = vrot.slane %v2425_v54, %v12624_v13  ;;  %v6236_v3 = vsel %vm5954_vm11, %v18293_v8, %v6235_v26  ;;  %v2462_v0 = vrot.slane %v2440_v25, %v12624_v13  ;;  %v11898_v26 = vld [vmem:[#allocation2 + $0x464] ss:$8 sps:$4 sm:$0xff]  }
 0x34c   :  { %v5695_v51 = vmax.f32 %v5693_v16, %v5694_v17  ;;  %v5702_v47 = vmax.f32 %v5700_v57, %v5701_v62  ;;  %v6231_v56 = vsel %vm5958_vm13, %v18295_v43, %v6230_v11  ;;  %v6237_v40 = vsel %vm5956_vm12, %v15384_v53, %v6236_v3  ;;  %v11893_v16 = vld [vmem:[#allocation2 + $0x470] ss:$8 sps:$4 sm:$0xff]  }
 0x34d   :  { %v2441_v28 = vcombine.high %v2439_v45, %v2439_v45  ;;  %v2455_v15 = vrot.slane %v2439_v45, %v12624_v13  ;;  %v6238_v22 = vsel %vm5958_vm13, %v15439_v36, %v6237_v40  ;;  %v2470_v57 = vcombine.high %v15738_v6, %v15738_v6 }
 0x34e   :  { %v5811_v54 = vpack.c.bf16 %v5695_v51, %v5695_v51  ;;  %v5812_v35 = vpack.c.bf16 %v5702_v47, %v5702_v47  ;;  %v6281_v17 = vpack.c.b16 %v6238_v22, %v6231_v56  ;;  %v2472_v3 = vcombine.high %v2462_v0, %v2462_v0 }
 0x34f   :  { %v16239_v62 = vrot.slane %v2441_v28, %v12624_v13  ;;  %v2471_v11 = vcombine.high %v2455_v15, %v2455_v15  ;;  %v4063_v25 = vcombine.low %v2462_v0, %v2470_v57  ;;  %v6307_v47 = vsel %vm5946_vm7, %v15445_v31, %v15443_v23 }
 0x350   :  { %v16241_v59 = vunpack.c.l.b16 %v5811_v54  ;;  %v16243_v45 = vunpack.c.l.b16 %v5812_v35  ;;  %7574 = vmatmul.mubr.bf16.vlgmr.msra.gmra.mxu0 %v6281_v17  ;;  %v4077_v51 = vrot.slane %v2472_v3, %v12624_v13  ;;  %v6308_v40 = vsel %vm5948_vm8, %v15447_v50, %v6307_v47  ;;  %v18306_v47 = vld [vmem:[#allocation19_spill] sm:$0xff] }
 0x351   :  { %v4086_v6 = vcombine.low %v2455_v15, %v16239_v62  ;;  %v4100_v56 = vrot.slane %v2471_v11, %v12624_v13  ;;  %v4070_v0 = vrot.slane %v4063_v25, %v12624_v13  ;;  %v6309_v54 = vsel %vm5950_vm9, %v15451_v5, %v6308_v40  ;;  %7688 = vmatpush1.bf16.msra.mxu0 %v11893_v16  ;;  %v18304_v11 = vld [vmem:[#allocation54_spill] sm:$0xff]  ;;  %v18305_v25 = vld [vmem:[#allocation37_spill] sm:$0xff] }
 0x352   :  { %18303 = vst [vmem:[#allocation67_spill] sm:$0xff] %v16243_v45  ;;  %v6211_v35 = vsel %vm5956_vm12, %v16241_v59, %v16128_v33  ;;  %v6144_v28 = vsel %vm5958_vm13, %v16241_v59, %v6143_v63  ;;  %v6310_v17 = vsel %vm5952_vm10, %v15449_v49, %v6309_v54  ;;  %7689 = vmatprep.subr.bf16.mxu0 %v11898_v26  ;;  %v11896_v40 = vld [vmem:[#allocation2 + $0x460] ss:$8 sps:$4 sm:$0xff]   ;;  %v11901_v26 = vld [vmem:[#allocation2 + $0x454] ss:$8 sps:$4 sm:$0xff]  }
 0x353   :  { %v6212_v15 = vsel %vm5958_vm13, %v16243_v45, %v6211_v35  ;;  %v6148_v22 = vpack.c.b16 %v6144_v28, %v16161_v44  ;;  %v4093_v57 = vrot.slane %v4086_v6, %v12624_v13  ;;  %v4078_v63 = vcombine.low %v4070_v0, %v4077_v51  ;;  %v18307_v45 = vld [vmem:[#allocation40_spill] sm:$0xff]  ;;  %v18309_v0 = vld [vmem:[#allocation38_spill] sm:$0xff] }
 0x354   :  { %v6216_v33 = vpack.c.b16 %v6212_v15, %v16139_v4  ;;  %v6311_v3 = vsel %vm5954_vm11, %v18304_v11, %v6310_v17  ;;  %v6314_v16 = vsel %vm5946_vm7, %v18306_v47, %v18305_v25  ;;  %v18308_v6 = vld [vmem:[#allocation20_spill] sm:$0xff]  ;;  %v6361_v4 = vsel %vm5946_vm7, %v18285_v38, %v18284_v41 }
 0x355   :  { %v4101_v35 = vcombine.low %v4093_v57, %v4100_v56  ;;  %v6312_v44 = vsel %vm5956_vm12, %v18307_v45, %v6311_v3  ;;  %v6315_v28 = vsel %vm5948_vm8, %v18308_v6, %v6314_v16  ;;  %v4085_v51 = vrot.slane %v4078_v63, %v12624_v13  ;;  %v18310_v15 = vld [vmem:[#allocation24_spill] sm:$0xff]  ;;  %7690 = vmatpush1.bf16.msra.mxu0 %v11896_v40 }
 0x356   :  { %7530 = vmatprep.mubr.bf16.mxu1 %v6216_v33  ;;  %v16283_v54 = vsel %vm5958_vm13, %v18309_v0, %v6312_v44  ;;  %v6316_v56 = vsel %vm5950_vm9, %v18310_v15, %v6315_v28  ;;  %v6362_v57 = vsel %vm5948_vm8, %v18288_v48, %v6361_v4  ;;  %v18311_v3 = vld [vmem:[#allocation44_spill] sm:$0xff]  ;;  %v6368_v33 = vsel %vm5946_vm7, %v18289_v21, %v18287_v39 }
 0x357   :  { %7531 = vmatmul.mubr.bf16.gmra.mxu1 %v6148_v22  ;;  %v4108_v17 = vrot.slane %v4101_v35, %v12624_v13  ;;  %v6317_v41 = vsel %vm5952_vm10, %v18311_v3, %v6316_v56  ;;  %v6363_v38 = vsel %vm5950_vm9, %v18290_v12, %v6362_v57  ;;  %v18312_v63 = vpack.c.b16 %v16207_v7, %v16201_v29  ;;  %v18313_v48 = vld [vmem:[#allocation60_spill] sm:$0xff] }
 0x358   :  { %v5423_v16 = vsel %vm1122_vm4, %v4085_v51, -inf  ;;  %v16303_v22 = vsel %vm5954_vm11, %v18313_v48, %v6317_v41  ;;  %v6364_v35 = vsel %vm5952_vm10, %v18292_v14, %v6363_v38  ;;  %v6369_v12 = vsel %vm5948_vm8, %v18291_v52, %v6368_v33  ;;  %v11899_v44 = vld [vmem:[#allocation2 + $0x450] ss:$8 sps:$4 sm:$0xff]   ;;  %7691 = vmatprep.subr.bf16.mxu0 %v11901_v26  ;;  %v11904_v7 = vld [vmem:[#allocation2 + $0x444] ss:$8 sps:$4 sm:$0xff]  }
 0x359   :  { %7646 = vmatprep.mubr.bf16.mxu1 %v18312_v63  ;;  %v5424_v28 = vrot.slane %v5423_v16, 4  ;;  %v5430_v39 = vsel %vm1122_vm4, %v4108_v17, -inf  ;;  %v6365_v21 = vsel %vm5954_vm11, %v18295_v43, %v6364_v35  ;;  %v6370_v29 = vsel %vm5950_vm9, %v18293_v8, %v6369_v12  ;;  %v18314_v8 = vld [vmem:[#allocation48_spill] sm:$0xff]  ;;  %v18317_v41 = vld [vmem:[#allocation49_spill] sm:$0xff]  ;;  %7692 = vmatpush1.bf16.msra.mxu0 %v11899_v44 }
 0x35a   :  { %v5431_v4 = vrot.slane %v5430_v39, 4  ;;  %v6366_v14 = vsel %vm5956_vm12, %v18296_v27, %v6365_v21  ;;  %v6371_v52 = vsel %vm5952_vm10, %v15384_v53, %v6370_v29  ;;  %v2473_v40 = vcombine.high %v16239_v62, %v16239_v62  ;;  %v18315_v53 = vld [vmem:[#allocation47_spill] sm:$0xff]  ;;  %7693 = vmatprep.subr.bf16.mxu0 %v11904_v7  ;;  %v11907_v44 = vld [vmem:[#allocation2 + $0x434] ss:$8 sps:$4 sm:$0xff]  }
 0x35b   :  { %v5425_v51 = vmax.f32 %v5423_v16, %v5424_v28  ;;  %v6367_v56 = vsel %vm5958_vm13, %v18286_v55, %v6366_v14  ;;  %v6372_v43 = vsel %vm5954_vm11, %v15439_v36, %v6371_v52  ;;  %v16326_v26 = vrot.slane %v18314_v8, %v12624_v13  ;;  %v11902_v16 = vld [vmem:[#allocation2 + $0x440] ss:$8 sps:$4 sm:$0xff]  }
 0x35c   :  { %v5432_v57 = vmax.f32 %v5430_v39, %v5431_v4  ;;  %v6373_v27 = vsel %vm5956_vm12, %v15441_v32, %v6372_v43  ;;  %v18316_v17 = vcombine.high %v18315_v53, %v18315_v53  ;;  %v4109_v38 = vcombine.low %v2473_v40, %v18317_v41 }
 0x35d   :  { %v5426_v55 = vrot.slane %v5425_v51, 2  ;;  %v6374_v36 = vsel %vm5958_vm13, %v15443_v23, %v6373_v27  ;;  %v4146_v33 = vrot.slane %v16326_v26, %v12624_v13  ;;  %v6443_v63 = vsel %vm5946_vm7, %v15451_v5, %v15447_v50  ;;  %7694 = vmatpush1.bf16.msra.mxu0 %v11902_v16 }
 0x35e   :  { %v2511_v62 = vrot.slane %v18316_v17, %v12624_v13  ;;  %v5433_v35 = vrot.slane %v5432_v57, 2  ;;  %v6417_v12 = vpack.c.b16 %v6374_v36, %v6367_v56  ;;  %v4116_v28 = vrot.slane %v4109_v38, %v12624_v13  ;;  %v11905_v17 = vld [vmem:[#allocation2 + $0x430] ss:$8 sps:$4 sm:$0xff]   ;;  %7695 = vmatprep.subr.bf16.mxu0 %v11907_v44 }
 0x35f   :  { %v5427_v21 = vmax.f32 %v5425_v51, %v5426_v55  ;;  %v6444_v4 = vsel %vm5948_vm8, %v15449_v49, %v6443_v63  ;;  %v6450_v14 = vsel %vm5946_vm7, %v18310_v15, %v18308_v6  ;;  %v6239_v38 = vsel %vm5946_vm7, %v15443_v23, %v15441_v32  ;;  %v11910_v55 = vld [vmem:[#allocation2 + $0x424] ss:$8 sps:$4 sm:$0xff]  }
 0x360   :  { %v4123_v39 = vrot.slane %v2511_v62, %v12624_v13  ;;  %v11233_v29 = vcombine.high %v18317_v41, %v2511_v62  ;;  %v5434_v52 = vmax.f32 %v5432_v57, %v5433_v35  ;;  %7647 = vmatmul.mubr.bf16.vlgmr.msra.gmra.mxu1 %v6417_v12  ;;  %v6445_v40 = vsel %vm5950_vm9, %v18304_v11, %v6444_v4 }
 0x361   :  { %v6451_v56 = vsel %vm5948_vm8, %v18311_v3, %v6450_v14  ;;  %v5428_v43 = vrot.slane %v5427_v21, 1  ;;  %v6446_v27 = vsel %vm5952_vm10, %v18307_v45, %v6445_v40  ;;  %v6240_v16 = vsel %vm5948_vm8, %v15445_v31, %v6239_v38  ;;  %7696 = vmatpush1.bf16.msra.mxu0 %v11905_v17  ;;  %v11913_v40 = vld [vmem:[#allocation2 + $0x414] ss:$8 sps:$4 sm:$0xff]  }
 0x362   :  { %v4124_v7 = vcombine.low %v4116_v28, %v4123_v39  ;;  %v4139_v51 = vrot.slane %v11233_v29, %v12624_v13  ;;  %v6452_v53 = vsel %vm5950_vm9, %v18313_v48, %v6451_v56  ;;  %v5435_v57 = vrot.slane %v5434_v52, 1  ;;  %v11908_v29 = vld [vmem:[#allocation2 + $0x420] ss:$8 sps:$4 sm:$0xff]   ;;  %7697 = vmatprep.subr.bf16.mxu0 %v11910_v55 }
 0x363   :  { %v6447_v41 = vsel %vm5954_vm11, %v18309_v0, %v6446_v27  ;;  %v5429_v36 = vmax.f32 %v5427_v21, %v5428_v43  ;;  %v6241_v32 = vsel %vm5950_vm9, %v15447_v50, %v6240_v16 }
 0x364   :  { %v4131_v62 = vrot.slane %v4124_v7, %v12624_v13  ;;  %v4147_v63 = vcombine.low %v4139_v51, %v4146_v33  ;;  %v6448_v35 = vsel %vm5956_vm12, %v18305_v25, %v6447_v41  ;;  %v5436_v12 = vmax.f32 %v5434_v52, %v5435_v57 }
 0x365   :  { %v16372_v39 = vsel %vm5958_vm13, %v18306_v47, %v6448_v35  ;;  %v5773_v23 = vpack.c.bf16 %v5429_v36, %v5429_v36  ;;  %v6242_v21 = vsel %vm5952_vm10, %v15451_v5, %v6241_v32  ;;  %v6246_v52 = vsel %vm5946_vm7, %v18305_v25, %v18309_v0  ;;  %7698 = vmatpush1.bf16.msra.mxu0 %v11908_v29  ;;  %v11911_v35 = vld [vmem:[#allocation2 + $0x410] ss:$8 sps:$4 sm:$0xff]  }
 0x366   :  { %v5437_v28 = vsel %vm1122_vm4, %v4131_v62, -inf  ;;  %v4154_v44 = vrot.slane %v4147_v63, %v12624_v13  ;;  %v5774_v4 = vpack.c.bf16 %v5436_v12, %v5436_v12  ;;  %v6243_v14 = vsel %vm5954_vm11, %v15449_v49, %v6242_v21  ;;  %7699 = vmatprep.subr.bf16.mxu0 %v11913_v40 }
 0x367   :  { %v5438_v33 = vrot.slane %v5437_v28, 4  ;;  %v6321_v7 = vsel %vm5946_vm7, %v15656_v19, %v15654_v34  ;;  %v16387_v56 = vunpack.c.l.b16 %v5773_v23  ;;  %v6244_v27 = vsel %vm5956_vm12, %v18304_v11, %v6243_v14 }
 0x368   :  { %v5444_v51 = vsel %vm1122_vm4, %v4154_v44, -inf  ;;  %v16392_v17 = vunpack.c.l.b16 %v5774_v4  ;;  %v6245_v62 = vsel %vm5958_vm13, %v18307_v45, %v6244_v27  ;;  %v6247_v41 = vsel %vm5948_vm8, %v18306_v47, %v6246_v52  ;;  %v18318_v4 = vld [vmem:[#allocation17_spill] sm:$0xff]  ;;  %v11914_v27 = vld [vmem:[#allocation2 + $0x400] ss:$8 sps:$4 sm:$0xff]  }
 0x369   :  { %v5439_v43 = vmax.f32 %v5437_v28, %v5438_v33  ;;  %v5445_v57 = vrot.slane %v5444_v51, 4  ;;  %v6319_v38 = vsel %vm5956_vm12, %v16387_v56, %v16303_v22  ;;  %v6453_v36 = vsel %vm5952_vm10, %v16387_v56, %v6452_v53  ;;  %v11916_v22 = vld [vmem:[#allocation2 + $0x404] ss:$8 sps:$4 sm:$0xff]   ;;  %7700 = vmatpush1.bf16.msra.mxu0 %v11911_v35 }
 0x36a   :  { %v6248_v63 = vsel %vm5950_vm9, %v18308_v6, %v6247_v41  ;;  %v6320_v16 = vsel %vm5958_vm13, %v16392_v17, %v6319_v38  ;;  %v6454_v28 = vsel %vm5954_vm11, %v16392_v17, %v6453_v36  ;;  %v6322_v33 = vsel %vm5948_vm8, %v15658_v9, %v6321_v7  ;;  %v18320_v38 = vld [vmem:[#allocation85_spill] sm:$0xff]  ;;  %7701 = vmatprep.subr.bf16.mxu0 %v11916_v22 }
 0x36b   :  { %v5440_v55 = vrot.slane %v5439_v43, 2  ;;  %v5446_v12 = vmax.f32 %v5444_v51, %v5445_v57  ;;  %v6249_v32 = vsel %vm5952_vm10, %v18310_v15, %v6248_v63  ;;  %v6350_v23 = vpack.c.b16 %v6320_v16, %v16283_v54  ;;  %v18321_v16 = vld [vmem:[#allocation36_spill] sm:$0xff] }
 0x36c   :  { %v6250_v44 = vsel %vm5954_vm11, %v18311_v3, %v6249_v32  ;;  %v6323_v14 = vsel %vm5950_vm9, %v18318_v4, %v6322_v33  ;;  %v6328_v52 = vsel %vm5946_vm7, %v15670_v2, %v15668_v20  ;;  %v6375_v35 = vsel %vm5946_vm7, %v15447_v50, %v15445_v31  ;;  %v18323_v33 = vld [vmem:[#allocation43_spill] sm:$0xff] }
 0x36d   :  { %v5441_v53 = vmax.f32 %v5439_v43, %v5440_v55  ;;  %v5447_v21 = vrot.slane %v5446_v12, 2  ;;  %v6251_v29 = vsel %vm5956_vm12, %v18313_v48, %v6250_v44  ;;  %7583 = vmatprep.mubr.bf16.mxu0 %v6350_v23  ;;  %v18319_v43 = vld [vmem:[#allocation41_spill] sm:$0xff]  ;;  %v6329_v7 = vsel %vm5948_vm8, %v15701_v10, %v6328_v52  ;;  %7702 = vmatpush1.bf16.msra.mxu0 %v11914_v27 }
 0x36e   :  { %v6252_v40 = vsel %vm5958_vm13, %v16387_v56, %v6251_v29  ;;  %v6324_v51 = vsel %vm5952_vm10, %v18319_v43, %v6323_v14  ;;  %v6330_v36 = vsel %vm5950_vm9, %v15707_v1, %v6329_v7  ;;  %v6376_v22 = vsel %vm5948_vm8, %v15451_v5, %v6375_v35  ;;  %v18324_v29 = vld [vmem:[#allocation63_spill] sm:$0xff] }
 0x36f   :  { %v5442_v54 = vrot.slane %v5441_v53, 1  ;;  %v5448_v57 = vmax.f32 %v5446_v12, %v5447_v21  ;;  %v6282_v41 = vpack.c.b16 %v6252_v40, %v6245_v62  ;;  %v6325_v55 = vsel %vm5954_vm11, %v18320_v38, %v6324_v51  ;;  %v18322_v62 = vld [vmem:[#allocation52_spill] sm:$0xff] }
 0x370   :  { %v6326_v32 = vsel %vm5956_vm12, %v18321_v16, %v6325_v55  ;;  %v6331_v23 = vsel %vm5952_vm10, %v15893_v58, %v6330_v36  ;;  %v6377_v52 = vsel %vm5950_vm9, %v15449_v49, %v6376_v22  ;;  %v6382_v31 = vsel %vm5946_vm7, %v18308_v6, %v18306_v47 }
 0x371   :  { %v5443_v63 = vmax.f32 %v5441_v53, %v5442_v54  ;;  %v5449_v12 = vrot.slane %v5448_v57, 1  ;;  %7584 = vmatmul.mubr.bf16.gmra.mxu0 %v6282_v41  ;;  %v6327_v44 = vsel %vm5958_vm13, %v18322_v62, %v6326_v32  ;;  %v6332_v21 = vsel %vm5954_vm11, %v18323_v33, %v6331_v23 }
 0x372   :  { %v6333_v14 = vsel %vm5956_vm12, %v18324_v29, %v6332_v21  ;;  %v6378_v40 = vsel %vm5952_vm10, %v18304_v11, %v6377_v52  ;;  %v6383_v5 = vsel %vm5948_vm8, %v18310_v15, %v6382_v31  ;;  %v6457_v11 = vsel %vm5946_vm7, %v18318_v4, %v15658_v9 }
 0x373   :  { %v5775_v53 = vpack.c.bf16 %v5443_v63, %v5443_v63  ;;  %v5450_v50 = vmax.f32 %v5448_v57, %v5449_v12  ;;  %v6334_v54 = vsel %vm5958_vm13, %v15933_v42, %v6333_v14  ;;  %v6379_v49 = vsel %vm5954_vm11, %v18307_v45, %v6378_v40  ;;  %v18325_v12 = vld [vmem:[#allocation23_spill] sm:$0xff] }
 0x374   :  { %v6351_v7 = vpack.c.b16 %v6334_v54, %v6327_v44  ;;  %v6384_v47 = vsel %vm5950_vm9, %v18311_v3, %v6383_v5  ;;  %v6380_v27 = vsel %vm5956_vm12, %v18309_v0, %v6379_v49  ;;  %v6458_v0 = vsel %vm5948_vm8, %v18319_v43, %v6457_v11 }
 0x375   :  { %v16459_v51 = vunpack.c.l.b16 %v5775_v53  ;;  %v5776_v6 = vpack.c.bf16 %v5450_v50, %v5450_v50  ;;  %v6385_v57 = vsel %vm5952_vm10, %v18313_v48, %v6384_v47  ;;  %v6381_v45 = vsel %vm5958_vm13, %v18305_v25, %v6380_v27 }
 0x376   :  { %7593 = vmatprep.mubr.bf16.mxu0 %v6351_v7  ;;  %v6386_v55 = vsel %vm5954_vm11, %v16387_v56, %v6385_v57  ;;  %v6459_v32 = vsel %vm5950_vm9, %v18320_v38, %v6458_v0  ;;  %v6253_v44 = vsel %vm5946_vm7, %v15654_v34, %v18325_v12  ;;  %v18328_v12 = vld [vmem:[#allocation53_spill] sm:$0xff] }
 0x377   :  { %v6455_v41 = vsel %vm5956_vm12, %v16459_v51, %v6454_v28  ;;  %v16480_v36 = vunpack.c.l.b16 %v5776_v6  ;;  %v6387_v63 = vsel %vm5956_vm12, %v16392_v17, %v6386_v55  ;;  %v6464_v28 = vsel %vm5946_vm7, %v15707_v1, %v15701_v10  ;;  %v18326_v6 = vld [vmem:[#allocation97_spill] sm:$0xff] }
 0x378   :  { %v6388_v25 = vsel %vm5958_vm13, %v16459_v51, %v6387_v63  ;;  %v6460_v23 = vsel %vm5952_vm10, %v18321_v16, %v6459_v32  ;;  %v6465_v35 = vsel %vm5948_vm8, %v15893_v58, %v6464_v28  ;;  %v6254_v34 = vsel %vm5948_vm8, %v15656_v19, %v6253_v44 }
 0x379   :  { %v6456_v21 = vsel %vm5958_vm13, %v16480_v36, %v6455_v41  ;;  %v6418_v22 = vpack.c.b16 %v6388_v25, %v6381_v45  ;;  %v6461_v53 = vsel %vm5954_vm11, %v18322_v62, %v6460_v23  ;;  %v6466_v14 = vsel %vm5950_vm9, %v18323_v33, %v6465_v35  ;;  %v18327_v45 = vld [vmem:[#allocation99_spill] sm:$0xff] }
 0x37a   :  { %v6486_v52 = vpack.c.b16 %v6456_v21, %v16372_v39  ;;  %v6462_v31 = vsel %vm5956_vm12, %v15668_v20, %v6461_v53  ;;  %v6467_v50 = vsel %vm5952_vm10, %v18324_v29, %v6466_v14  ;;  %v6255_v5 = vsel %vm5950_vm9, %v15658_v9, %v6254_v34 }
 0x37b   :  { %v6463_v54 = vsel %vm5958_vm13, %v15670_v2, %v6462_v31  ;;  %v6468_v40 = vsel %vm5954_vm11, %v15933_v42, %v6467_v50  ;;  %v6260_v39 = vsel %vm5946_vm7, %v15668_v20, %v18322_v62  ;;  %v6256_v49 = vsel %vm5952_vm10, %v18318_v4, %v6255_v5 }
 0x37c   :  { %7656 = vmatprep.mubr.bf16.mxu1 %v6486_v52  ;;  %v6469_v7 = vsel %vm5956_vm12, %v15935_v30, %v6468_v40  ;;  %v6261_v47 = vsel %vm5948_vm8, %v15670_v2, %v6260_v39  ;;  %v3160_v27 = vcombine.high %v18326_v6, %v18326_v6  ;;  %v6257_v11 = vsel %vm5954_vm11, %v18319_v43, %v6256_v49 }
 0x37d   :  { %7657 = vmatmul.mubr.bf16.gmra.mxu1 %v6418_v22  ;;  %v6470_v57 = vsel %vm5958_vm13, %v15937_v46, %v6469_v7  ;;  %v6262_v41 = vsel %vm5950_vm9, %v15701_v10, %v6261_v47  ;;  %v3175_v55 = vcombine.high %v18327_v45, %v18327_v45  ;;  %v6258_v63 = vsel %vm5956_vm12, %v18320_v38, %v6257_v11 }
 0x37e   :  { %v6487_v0 = vpack.c.b16 %v6470_v57, %v6463_v54  ;;  %v6263_v32 = vsel %vm5952_vm10, %v15707_v1, %v6262_v41  ;;  %v3174_v28 = vrot.slane %v3160_v27, %v12624_v13  ;;  %v6259_v25 = vsel %vm5958_vm13, %v18321_v16, %v6258_v63  ;;  %v18329_v27 = vld [vmem:[#allocation32_spill] sm:$0xff] }
 0x37f   :  { %v6264_v23 = vsel %vm5954_vm11, %v15893_v58, %v6263_v32  ;;  %v3197_v35 = vrot.slane %v3175_v55, %v12624_v13  ;;  %v3205_v44 = vcombine.high %v18328_v12, %v18328_v12  ;;  %v6335_v14 = vsel %vm5946_vm7, %v15937_v46, %v15935_v30  ;;  %v18330_v41 = vld [vmem:[#allocation88_spill] sm:$0xff]  ;;  %v18331_v55 = vld [vmem:[#allocation46_spill] sm:$0xff] }
 0x380   :  { %7666 = vmatprep.mubr.bf16.mxu1 %v6487_v0  ;;  %v6265_v21 = vsel %vm5956_vm12, %v18323_v33, %v6264_v23  ;;  %v3176_v22 = vcombine.high %v3174_v28, %v3174_v28  ;;  %v3190_v53 = vrot.slane %v3174_v28, %v12624_v13  ;;  %v6336_v34 = vsel %vm5948_vm8, %v15939_v61, %v6335_v14 }
 0x381   :  { %v6266_v52 = vsel %vm5958_vm13, %v18324_v29, %v6265_v21  ;;  %v3207_v31 = vcombine.high %v3197_v35, %v3197_v35  ;;  %v4983_v50 = vcombine.low %v3197_v35, %v3205_v44  ;;  %v6337_v39 = vsel %vm5950_vm9, %v15943_v60, %v6336_v34  ;;  %v18332_v35 = vld [vmem:[#allocation58_spill] sm:$0xff]  ;;  %v18334_v34 = vld [vmem:[#allocation56_spill] sm:$0xff] }
 0x382   :  { %v6283_v54 = vpack.c.b16 %v6266_v52, %v6259_v25  ;;  %v3204_v40 = vrot.slane %v3176_v22, %v12624_v13  ;;  %v3206_v5 = vcombine.high %v3190_v53, %v3190_v53  ;;  %v6338_v47 = vsel %vm5952_vm10, %v15941_v18, %v6337_v39  ;;  %v18333_v22 = vld [vmem:[#allocation33_spill] sm:$0xff] }
 0x383   :  { %v4990_v7 = vrot.slane %v4983_v50, %v12624_v13  ;;  %v4997_v49 = vrot.slane %v3207_v31, %v12624_v13  ;;  %v6342_v6 = vsel %vm5946_vm7, %v15951_v37, %v15949_v24  ;;  %v3224_v57 = vcombine.high %v18329_v27, %v18329_v27 }
 0x384   :  { %7594 = vmatmul.mubr.bf16.gmra.mxu0 %v6283_v54  ;;  %v5006_v11 = vcombine.low %v3190_v53, %v3204_v40  ;;  %v6339_v45 = vsel %vm5954_vm11, %v18330_v41, %v6338_v47  ;;  %v3225_v0 = vcombine.high %v18331_v55, %v18331_v55  ;;  %v3232_v63 = vrot.slane %v18329_v27, %v12624_v13 }
 0x385   :  { %v4998_v32 = vcombine.low %v4990_v7, %v4997_v49  ;;  %v6389_v28 = vsel %vm5946_vm7, %v15658_v9, %v15656_v19  ;;  %v5020_v23 = vrot.slane %v3206_v5, %v12624_v13  ;;  %v6343_v12 = vsel %vm5948_vm8, %v18332_v35, %v6342_v6 }
 0x386   :  { %v5013_v25 = vrot.slane %v5006_v11, %v12624_v13  ;;  %v6390_v44 = vsel %vm5948_vm8, %v18318_v4, %v6389_v28  ;;  %v6340_v53 = vsel %vm5956_vm12, %v18333_v22, %v6339_v45  ;;  %v6396_v19 = vsel %vm5946_vm7, %v15701_v10, %v15670_v2 }
 0x387   :  { %v5005_v21 = vrot.slane %v4998_v32, %v12624_v13  ;;  %v6391_v14 = vsel %vm5950_vm9, %v18319_v43, %v6390_v44  ;;  %v6397_v31 = vsel %vm5948_vm8, %v15707_v1, %v6396_v19  ;;  %v3208_v4 = vcombine.high %v3204_v40, %v3204_v40  ;;  %v18335_v19 = vld [vmem:[#allocation35_spill] sm:$0xff] }
 0x388   :  { %v5021_v9 = vcombine.low %v5013_v25, %v5020_v23  ;;  %v6392_v52 = vsel %vm5952_vm10, %v18320_v38, %v6391_v14  ;;  %v6344_v54 = vsel %vm5950_vm9, %v18334_v34, %v6343_v12  ;;  %v6398_v5 = vsel %vm5950_vm9, %v15893_v58, %v6397_v31 }
 0x389   :  { %v5703_v50 = vsel %vm1122_vm4, %v5005_v21, -inf  ;;  %v6393_v43 = vsel %vm5954_vm11, %v18321_v16, %v6392_v52  ;;  %v6399_v1 = vsel %vm5952_vm10, %v18323_v33, %v6398_v5  ;;  %v16613_v39 = vrot.slane %v18331_v55, %v12624_v13 }
 0x38a   :  { %v5028_v2 = vrot.slane %v5021_v9, %v12624_v13  ;;  %v5704_v10 = vrot.slane %v5703_v50, 4  ;;  %v6394_v38 = vsel %vm5956_vm12, %v18322_v62, %v6393_v43  ;;  %v6400_v40 = vsel %vm5954_vm11, %v18324_v29, %v6399_v1 }
 0x38b   :  { %v3246_v16 = vrot.slane %v3224_v57, %v12624_v13  ;;  %v5029_v7 = vcombine.low %v3208_v4, %v3232_v63  ;;  %v6395_v47 = vsel %vm5958_vm13, %v15668_v20, %v6394_v38  ;;  %v6401_v62 = vsel %vm5956_vm12, %v15933_v42, %v6400_v40 }
 0x38c   :  { %v5705_v58 = vmax.f32 %v5703_v50, %v5704_v10  ;;  %v5710_v49 = vsel %vm1122_vm4, %v5028_v2, -inf  ;;  %v6402_v29 = vsel %vm5958_vm13, %v15935_v30, %v6401_v62  ;;  %v6471_v32 = vsel %vm5946_vm7, %v15943_v60, %v15939_v61  ;;  %v18336_v50 = vld [vmem:[#allocation67_spill] sm:$0xff] }
 0x38d   :  { %v5711_v33 = vrot.slane %v5710_v49, 4  ;;  %v5036_v6 = vrot.slane %v5029_v7, %v12624_v13  ;;  %v5043_v27 = vrot.slane %v3246_v16, %v12624_v13  ;;  %v6419_v57 = vpack.c.b16 %v6402_v29, %v6395_v47 }
 0x38e   :  { %v5706_v11 = vrot.slane %v5705_v58, 2  ;;  %v11243_v45 = vcombine.high %v3232_v63, %v3246_v16  ;;  %v2490_v20 = vcombine.high %v18314_v8, %v18314_v8  ;;  %v6345_v25 = vsel %vm5952_vm10, %v16241_v59, %v6344_v54 }
 0x38f   :  { %v5712_v28 = vmax.f32 %v5710_v49, %v5711_v33  ;;  %v5044_v23 = vcombine.low %v5036_v6, %v5043_v27  ;;  %7667 = vmatmul.mubr.bf16.gmra.mxu1 %v6419_v57  ;;  %v5066_v21 = vrot.slane %v16613_v39, %v12624_v13  ;;  %v6472_v63 = vsel %vm5948_vm8, %v15941_v18, %v6471_v32 }
 0x390   :  { %v5707_v12 = vmax.f32 %v5705_v58, %v5706_v11  ;;  %v5059_v44 = vrot.slane %v11243_v45, %v12624_v13  ;;  %v6341_v9 = vsel %vm5958_vm13, %v18335_v19, %v6340_v53  ;;  %v6478_v31 = vsel %vm5946_vm7, %v18334_v34, %v18332_v35 }
 0x391   :  { %v5713_v14 = vrot.slane %v5712_v28, 2  ;;  %v5051_v52 = vrot.slane %v5044_v23, %v12624_v13  ;;  %v6346_v54 = vsel %vm5954_vm11, %v18336_v50, %v6345_v25  ;;  %v6267_v5 = vsel %vm5946_vm7, %v15935_v30, %v15933_v42 }
 0x392   :  { %v5708_v4 = vrot.slane %v5707_v12, 1  ;;  %v5067_v43 = vcombine.low %v5059_v44, %v5066_v21  ;;  %v6473_v53 = vsel %vm5950_vm9, %v18330_v41, %v6472_v63  ;;  %v6268_v38 = vsel %vm5948_vm8, %v15937_v46, %v6267_v5 }
 0x393   :  { %v5714_v2 = vmax.f32 %v5712_v28, %v5713_v14  ;;  %v5717_v10 = vsel %vm1122_vm4, %v5051_v52, -inf  ;;  %v6479_v7 = vsel %vm5948_vm8, %v16241_v59, %v6478_v31  ;;  %v6269_v42 = vsel %vm5950_vm9, %v15939_v61, %v6268_v38 }
 0x394   :  { %v5709_v1 = vmax.f32 %v5707_v12, %v5708_v4  ;;  %v5074_v40 = vrot.slane %v5067_v43, %v12624_v13  ;;  %v5718_v16 = vrot.slane %v5717_v10, 4  ;;  %v6274_v30 = vsel %vm5946_vm7, %v15949_v24, %v18335_v19 }
 0x395   :  { %v5715_v58 = vrot.slane %v5714_v2, 1  ;;  %v6403_v49 = vsel %vm5946_vm7, %v15939_v61, %v15937_v46  ;;  %v6270_v29 = vsel %vm5952_vm10, %v15943_v60, %v6269_v42  ;;  %v6275_v57 = vsel %vm5948_vm8, %v15951_v37, %v6274_v30 }
 0x396   :  { %v5813_v47 = vpack.c.bf16 %v5709_v1, %v5709_v1  ;;  %v5719_v62 = vmax.f32 %v5717_v10, %v5718_v16  ;;  %v5724_v33 = vsel %vm1122_vm4, %v5074_v40, -inf  ;;  %v6271_v11 = vsel %vm5954_vm11, %v15941_v18, %v6270_v29 }
 0x397   :  { %v5716_v6 = vmax.f32 %v5714_v2, %v5715_v58  ;;  %v5725_v27 = vrot.slane %v5724_v33, 4  ;;  %v6272_v46 = vsel %vm5956_vm12, %v18330_v41, %v6271_v11  ;;  %v6276_v61 = vsel %vm5950_vm9, %v18332_v35, %v6275_v57 }
 0x398   :  { %v16671_v45 = vunpack.c.l.b16 %v5813_v47  ;;  %v5720_v32 = vrot.slane %v5719_v62, 2  ;;  %v6480_v23 = vsel %vm5950_vm9, %v18336_v50, %v6479_v7  ;;  %v6277_v12 = vsel %vm5952_vm10, %v18334_v34, %v6276_v61 }
 0x399   :  { %v5814_v28 = vpack.c.bf16 %v5716_v6, %v5716_v6  ;;  %v5726_v25 = vmax.f32 %v5724_v33, %v5725_v27  ;;  %v6273_v63 = vsel %vm5958_vm13, %v18333_v22, %v6272_v46  ;;  %v6278_v14 = vsel %vm5954_vm11, %v16241_v59, %v6277_v12 }
 0x39a   :  { %v6347_v44 = vsel %vm5956_vm12, %v16671_v45, %v6346_v54  ;;  %v5721_v21 = vmax.f32 %v5719_v62, %v5720_v32  ;;  %v6279_v4 = vsel %vm5956_vm12, %v18336_v50, %v6278_v14  ;;  %v6404_v43 = vsel %vm5948_vm8, %v15943_v60, %v6403_v49 }
 0x39b   :  { %v16687_v52 = vunpack.c.l.b16 %v5814_v28  ;;  %v5727_v31 = vrot.slane %v5726_v25, 2  ;;  %v6280_v54 = vsel %vm5958_vm13, %v16671_v45, %v6279_v4  ;;  %v6405_v2 = vsel %vm5950_vm9, %v15941_v18, %v6404_v43 }
 0x39c   :  { %v5722_v5 = vrot.slane %v5721_v21, 1  ;;  %v6410_v10 = vsel %vm5946_vm7, %v18332_v35, %v15951_v37  ;;  %v6474_v40 = vsel %vm5952_vm10, %v18333_v22, %v6473_v53  ;;  %v6481_v60 = vsel %vm5952_vm10, %v16671_v45, %v6480_v23 }
 0x39d   :  { %v6348_v38 = vsel %vm5958_vm13, %v16687_v52, %v6347_v44  ;;  %v5728_v1 = vmax.f32 %v5726_v25, %v5727_v31  ;;  %v6284_v58 = vpack.c.b16 %v6280_v54, %v6273_v63  ;;  %v6411_v18 = vsel %vm5948_vm8, %v18334_v34, %v6410_v10  ;;  %v18339_v54 = vld [vmem:[#allocation15_spill] sm:$0xff] }
 0x39e   :  { %v6352_v16 = vpack.c.b16 %v6348_v38, %v6341_v9  ;;  %v5723_v7 = vmax.f32 %v5721_v21, %v5722_v5  ;;  %v6406_v35 = vsel %vm5952_vm10, %v18330_v41, %v6405_v2  ;;  %v6412_v30 = vsel %vm5950_vm9, %v16241_v59, %v6411_v18  ;;  %v18338_v5 = vld [vmem:[#allocation42_spill] sm:$0xff] }
 0x39f   :  { %v5729_v42 = vrot.slane %v5728_v1, 1  ;;  %v2518_v53 = vrot.slane %v2490_v20, %v12624_v13  ;;  %v6475_v9 = vsel %vm5954_vm11, %v18335_v19, %v6474_v40  ;;  %v6413_v47 = vsel %vm5952_vm10, %v18336_v50, %v6412_v30 }
 0x3a0   :  { %7603 = vmatprep.mubr.bf16.mxu0 %v6352_v16  ;;  %v5815_v49 = vpack.c.bf16 %v5723_v7, %v5723_v7  ;;  %v2520_v62 = vcombine.high %v16326_v26, %v16326_v26  ;;  %v6482_v33 = vsel %vm5954_vm11, %v16687_v52, %v6481_v60  ;;  %v6414_v8 = vsel %vm5954_vm11, %v16671_v45, %v6413_v47 }
 0x3a1   :  { %v5730_v41 = vmax.f32 %v5728_v1, %v5729_v42  ;;  %7604 = vmatmul.mubr.bf16.gmra.mxu0 %v6284_v58  ;;  %v2522_v20 = vcombine.high %v2518_v53, %v2518_v53  ;;  %v6407_v6 = vsel %vm5954_vm11, %v18333_v22, %v6406_v35  ;;  %v18337_v27 = vmov 0  }
 0x3a2   :  { %v16726_v29 = vunpack.c.l.b16 %v5815_v49  ;;  %7719 = vmatprep.mubr.bf16.mxu0 %v18337_v27  ;;  %v4155_v11 = vcombine.low %v2518_v53, %v2520_v62  ;;  %v6497_v26 = vsel %vm5946_vm7, %v18311_v3, %v18310_v15  ;;  %v6415_v32 = vsel %vm5956_vm12, %v16687_v52, %v6414_v8 }
 0x3a3   :  { %v5816_v57 = vpack.c.bf16 %v5730_v41, %v5730_v41  ;;  %v4169_v46 = vrot.slane %v2522_v20, %v12624_v13  ;;  %v6498_v61 = vsel %vm5948_vm8, %v18313_v48, %v6497_v26  ;;  %v6476_v28 = vsel %vm5956_vm12, %v15949_v24, %v6475_v9  ;;  %v18342_v26 = vld [vmem:[#allocation57_spill] sm:$0xff] }
 0x3a4   :  { %v6483_v22 = vsel %vm5956_vm12, %v16726_v29, %v6482_v33  ;;  %v4162_v25 = vrot.slane %v4155_v11, %v12624_v13  ;;  %v6499_v15 = vsel %vm5950_vm9, %v16387_v56, %v6498_v61  ;;  %v6408_v23 = vsel %vm5956_vm12, %v18335_v19, %v6407_v6  ;;  %v18341_v33 = vld [vmem:[#allocation39_spill] sm:$0xff] }
 0x3a5   :  { %v6428_v3 = vunpack.c.l.b16 %v5816_v57  ;;  %v6500_v12 = vsel %vm5952_vm10, %v16392_v17, %v6499_v15  ;;  %v3253_v48 = vrot.slane %v3225_v0, %v12624_v13  ;;  %v6416_v44 = vsel %vm5958_vm13, %v16726_v29, %v6415_v32  ;;  %v18343_v57 = vld [vmem:[#allocation45_spill] sm:$0xff] }
 0x3a6   :  { %v4170_v21 = vcombine.low %v4162_v25, %v4169_v46  ;;  %v6501_v63 = vsel %vm5954_vm11, %v16459_v51, %v6500_v12  ;;  %v3255_v56 = vcombine.high %v16613_v39, %v16613_v39  ;;  %v6477_v19 = vsel %vm5958_vm13, %v15951_v37, %v6476_v28  ;;  %v18344_v25 = vld [vmem:[#allocation51_spill] sm:$0xff] }
 0x3a7   :  { %v6484_v17 = vsel %vm5958_vm13, %v6428_v3, %v6483_v22  ;;  %v6502_v14 = vsel %vm5956_vm12, %v16480_v36, %v6501_v63  ;;  %v3257_v55 = vcombine.high %v3253_v48, %v3253_v48  ;;  %v6409_v31 = vsel %vm5958_vm13, %v15949_v24, %v6408_v23  ;;  %v16802_v22 = vpop.f32.mrf.mxu1 }
 0x3a8   :  { %v6488_v0 = vpack.c.b16 %v6484_v17, %v6477_v19  ;;  %v4177_v4 = vrot.slane %v4170_v21, %v12624_v13  ;;  %v5075_v43 = vcombine.low %v3253_v48, %v3255_v56  ;;  %v6420_v51 = vpack.c.b16 %v6416_v44, %v6409_v31  ;;  %v18345_v44 = vld [vmem:[#allocation12_spill] sm:$0xff]  ;;  %v18346_v31 = vld [vmem:[#allocation11_spill] sm:$0xff] }
 0x3a9   :  { %v18340_v39 = vpack.c.b16 %v18338_v5, %v18339_v54  ;;  %v5089_v37 = vrot.slane %v3257_v55, %v12624_v13  ;;  %v6504_v49 = vsel %vm5946_vm7, %v16241_v59, %v18334_v34  ;;  %v16789_v34 = vpop.f32.mrf.mxu0  ;;  %v6513_v32 = vpack.c.b16 %v18343_v57, %v18342_v26  ;;  %v16807_v23 = vpop.f32.mrf.mxu1  ;;  %v11941_v26 = vld [vmem:[#allocation5 + $0x60] ss:$16 sps:$4 sm:$0xff]   ;;  %v11943_v57 = vld [vmem:[#allocation5 + $0x64] ss:$16 sps:$4 sm:$0xff]  }
 0x3aa   :  { %7676 = vmatprep.mubr.bf16.mxu1 %v6488_v0  ;;  %v5451_v36 = vsel %vm1122_vm4, %v4177_v4, -inf  ;;  %v5082_v2 = vrot.slane %v5075_v43, %v12624_v13  ;;  %v6505_v62 = vsel %vm5948_vm8, %v18336_v50, %v6504_v49  ;;  %v18347_v4 = vsub.s32 1, %v18346_v31  ;;  %v11934_v49 = vld [vmem:[#allocation5 + $0x2a4] ss:$16 sps:$4 sm:$0xff]  }
 0x3ab   :  { %7720 = vmatmul.mubr.bf16.vlgmr.msra.gmra.mxu0 %v18340_v39  ;;  %7677 = vmatmul.mubr.bf16.gmra.mxu1 %v6420_v51  ;;  %v5452_v10 = vrot.slane %v5451_v36, 4  ;;  %v6506_v6 = vsel %vm5950_vm9, %v16671_v45, %v6505_v62  ;;  %v16795_v61 = vpop.f32.mrf.mxu0  ;;  %v16812_v48 = vpop.f32.mrf.mxu1 }
 0x3ac   :  { %7729 = vmatprep.mubr.bf16.mxu0 %v18337_v27  ;;  %v5090_v24 = vcombine.low %v5082_v2, %v5089_v37  ;;  %v6507_v11 = vsel %vm5952_vm10, %v16687_v52, %v6506_v6  ;;  %v11917_v2 = vld [vmem:[#allocation5 + $0xe0] ss:$16 sps:$4 sm:$0xff]  }
 0x3ad   :  { %v5453_v38 = vmax.f32 %v5451_v36, %v5452_v10  ;;  %v6508_v50 = vsel %vm5954_vm11, %v16726_v29, %v6507_v11  ;;  %v16800_v52 = vpop.f32.mrf.mxu0  ;;  %v16819_v63 = vpop.f32.mrf.mxu1  ;;  %v11919_v10 = vld [vmem:[#allocation5 + $0xe4] ss:$16 sps:$4 sm:$0xff]  }
 0x3ae   :  { %v5097_v1 = vrot.slane %v5090_v24, %v12624_v13  ;;  %v6509_v45 = vsel %vm5956_vm12, %v6428_v3, %v6508_v50  ;;  %v6663_v3 = vld [vmem:[%s17529_s4] sm:$0x3]  ;;  %10753 = vmatprep.subr.bf16.mxu1 %v11919_v10  ;;  %v11940_v50 = vld [vmem:[#allocation5 + $0x284] ss:$16 sps:$4 sm:$0xff]  }
 0x3af   :  { %v5454_v40 = vrot.slane %v5453_v38, 2  ;;  %v16805_v29 = vpop.f32.mrf.mxu0  ;;  %v16817_v21 = vrot.slane %v6663_v3, %v18345_v44  ;;  %v16828_v43 = vrot.slane %v6663_v3, %v18347_v4  ;;  %v11920_v24 = vld [vmem:[#allocation5 + $0x2e0] ss:$16 sps:$4 sm:$0xff]   ;;  %10754 = vmatpush1.bf16.msra.mxu1 %v11917_v2  ;;  %v11949_v3 = vld [vmem:[#allocation5 + $0x44] ss:$16 sps:$4 sm:$0xff]  }
 0x3b0   :  { %v5731_v60 = vsel %vm1122_vm4, %v5097_v1, -inf  ;;  %v11923_v1 = vld [vmem:[#allocation5 + $0xc0] ss:$16 sps:$4 sm:$0xff]  }
 0x3b1   :  { %v5455_v16 = vmax.f32 %v5453_v38, %v5454_v40  ;;  %v5732_v7 = vrot.slane %v5731_v60, 4  ;;  %v7439_v12 = vpop.f32.mrf.mxu0  ;;  %v11922_v38 = vld [vmem:[#allocation5 + $0x2e4] ss:$16 sps:$4 sm:$0xff]  }
 0x3b2   :  { %v7440_v19 = vadd.f32 %v7439_v12, %v16817_v21  ;;  %10793 = vmatprep.subr.bf16.mxu0 %v11922_v38  ;;  %v11925_v40 = vld [vmem:[#allocation5 + $0xc4] ss:$16 sps:$4 sm:$0xff]   ;;  %v11947_v12 = vld [vmem:[#allocation5 + $0x40] ss:$16 sps:$4 sm:$0xff]  }
 0x3b3   :  { %v5456_v58 = vrot.slane %v5455_v16, 1  ;;  %v5733_v18 = vmax.f32 %v5731_v60, %v5732_v7  ;;  %10794 = vmatpush1.bf16.msra.mxu0 %v11920_v24  ;;  %10755 = vmatprep.subr.bf16.mxu1 %v11925_v40  ;;  %v11926_v7 = vld [vmem:[#allocation5 + $0x2c0] ss:$16 sps:$4 sm:$0xff]  }
 0x3b4   :  { %10756 = vmatpush1.bf16.msra.mxu1 %v11923_v1  ;;  %v11950_v38 = vld [vmem:[#allocation5 + $0x240] ss:$16 sps:$4 sm:$0xff]   ;;  %v11952_v1 = vld [vmem:[#allocation5 + $0x244] ss:$16 sps:$4 sm:$0xff]  }
 0x3b5   :  { %v5457_v42 = vmax.f32 %v5455_v16, %v5456_v58  ;;  %v5734_v35 = vrot.slane %v5733_v18, 2  ;;  %v11928_v58 = vld [vmem:[#allocation5 + $0x2c4] ss:$16 sps:$4 sm:$0xff]   ;;  %v11953_v40 = vld [vmem:[#allocation5 + $0x20] ss:$16 sps:$4 sm:$0xff]  }
 0x3b6   :  { %10795 = vmatprep.subr.bf16.mxu0 %v11928_v58 }
 0x3b7   :  { %v5777_v30 = vpack.c.bf16 %v5457_v42, %v5457_v42  ;;  %v5735_v53 = vmax.f32 %v5733_v18, %v5734_v35  ;;  %v11929_v18 = vld [vmem:[#allocation5 + $0xa0] ss:$16 sps:$4 sm:$0xff]   ;;  %v11931_v42 = vld [vmem:[#allocation5 + $0xa4] ss:$16 sps:$4 sm:$0xff]   ;;  %10796 = vmatpush1.bf16.msra.mxu0 %v11926_v7 }
 0x3b8   :  { %10757 = vmatprep.subr.bf16.mxu1 %v11931_v42  ;;  %10797 = vmatprep.subr.bf16.mxu0 %v11934_v49  ;;  %v11959_v42 = vld [vmem:[#allocation5] ss:$16 sps:$4 sm:$0xff]  }
 0x3b9   :  { %v6495_v9 = vunpack.c.l.b16 %v5777_v30  ;;  %v5736_v47 = vrot.slane %v5735_v53, 1  ;;  %10758 = vmatpush1.bf16.msra.mxu1 %v11929_v18  ;;  %v11958_v18 = vld [vmem:[#allocation5 + $0x224] ss:$16 sps:$4 sm:$0xff]  }
 0x3bb   :  { %v6503_v41 = vsel %vm5958_vm13, %v6495_v9, %v6502_v14  ;;  %v5737_v20 = vmax.f32 %v5735_v53, %v5736_v47  ;;  %v11932_v53 = vld [vmem:[#allocation5 + $0x2a0] ss:$16 sps:$4 sm:$0xff]   ;;  %v11937_v47 = vld [vmem:[#allocation5 + $0x84] ss:$16 sps:$4 sm:$0xff]  }
 0x3bc   :  { %v6512_v8 = vpack.c.b16 %v6503_v41, %v18341_v33  ;;  %v11935_v9 = vld [vmem:[#allocation5 + $0x80] ss:$16 sps:$4 sm:$0xff]   ;;  %10798 = vmatpush1.bf16.msra.mxu0 %v11932_v53  ;;  %10759 = vmatprep.subr.bf16.mxu1 %v11937_v47 }
 0x3bd   :  { %v5817_v59 = vpack.c.bf16 %v5737_v20, %v5737_v20  ;;  %10760 = vmatpush1.bf16.msra.mxu1 %v11935_v9  ;;  %10799 = vmatprep.subr.bf16.mxu0 %v11940_v50  ;;  %v11962_v50 = vld [vmem:[#allocation5 + $0x200] ss:$16 sps:$4 sm:$0xff]  }
 0x3be   :  { %7730 = vmatmul.mubr.bf16.gmra.mxu0 %v6512_v8  ;;  %10761 = vmatprep.subr.bf16.mxu1 %v11943_v57  ;;  %v11965_v57 = vld [vmem:[#allocation5 + $0x1e0] ss:$16 sps:$4 sm:$0xff]  }
 0x3bf   :  { %7739 = vmatprep.mubr.bf16.mxu0 %v18337_v27  ;;  %v6496_v46 = vunpack.c.l.b16 %v5817_v59  ;;  %v11938_v59 = vld [vmem:[#allocation5 + $0x280] ss:$16 sps:$4 sm:$0xff]  }
 0x3c0   :  { %10800 = vmatpush1.bf16.msra.mxu0 %v11938_v59 }
 0x3c1   :  { %v6510_v28 = vsel %vm5958_vm13, %v6496_v46, %v6509_v45  ;;  %10762 = vmatpush1.bf16.msra.mxu1 %v11941_v26  ;;  %v11964_v26 = vld [vmem:[#allocation5 + $0x204] ss:$16 sps:$4 sm:$0xff]  }
 0x3c2   :  { %v6514_v15 = vpack.c.b16 %v6510_v28, %v18344_v25  ;;  %v11944_v25 = vld [vmem:[#allocation5 + $0x260] ss:$16 sps:$4 sm:$0xff]   ;;  %10763 = vmatprep.subr.bf16.mxu1 %v11949_v3 }
 0x3c5   :  { %10764 = vmatpush1.bf16.msra.mxu1 %v11947_v12 }
 0x3c6   :  { %7740 = vmatmul.mubr.bf16.gmra.mxu0 %v6513_v32 }
 0x3c7   :  { %7749 = vmatprep.mubr.bf16.mxu0 %v18337_v27  ;;  %v16814_v27 = vpop.f32.mrf.mxu0 }
 0x3c9   :  { %v7443_v56 = vpop.f32.mrf.mxu0 }
 0x3ca   :  { %v7444_v51 = vadd.f32 %v7443_v56, %v16817_v21 }
 0x3cb   :  { %v7445_v55 = vpop.f32.mrf.mxu0 }
 0x3cc   :  { %v7446_v54 = vadd.f32 %v7445_v55, %v16828_v43 }
 0x3ce   :  { %7750 = vmatmul.mubr.bf16.gmra.mxu0 %v6514_v15  ;;  %v11946_v15 = vld [vmem:[#allocation5 + $0x264] ss:$16 sps:$4 sm:$0xff]  }
 0x3cf   :  { %10801 = vmatprep.subr.bf16.mxu0 %v11946_v15 }
 0x3d0   :  { %v16836_v60 = vpop.f32.mrf.mxu0  ;;  %10802 = vmatpush1.bf16.msra.mxu0 %v11944_v25  ;;  %v11967_v25 = vld [vmem:[#allocation5 + $0x1e4] ss:$16 sps:$4 sm:$0xff]  }
 0x3d1   :  { %10803 = vmatprep.subr.bf16.mxu0 %v11952_v1  ;;  %v11971_v1 = vld [vmem:[#allocation5 + $0x1c0] ss:$16 sps:$4 sm:$0xff]  }
 0x3d2   :  { %v16838_v16 = vpop.f32.mrf.mxu0 }
 0x3d4   :  { %v16840_v35 = vpop.f32.mrf.mxu0  ;;  %10804 = vmatpush1.bf16.msra.mxu0 %v11950_v38  ;;  %v11973_v38 = vld [vmem:[#allocation5 + $0x1c4] ss:$16 sps:$4 sm:$0xff]  }
 0x3d5   :  { %v7512_v17 = vpop.f32.mrf.mxu1  ;;  %10805 = vmatprep.subr.bf16.mxu0 %v11958_v18  ;;  %v11977_v18 = vld [vmem:[#allocation5 + $0x1a0] ss:$16 sps:$4 sm:$0xff]  }
 0x3d6   :  { %v16822_v14 = vadd.f32 %v7512_v17, %v7440_v19  ;;  %v16842_v30 = vpop.f32.mrf.mxu0 }
 0x3d7   :  { %v16824_v0 = vpop.f32.mrf.mxu1 }
 0x3d9   :  { %v7516_v5 = vpop.f32.mrf.mxu1 }
 0x3da   :  { %v16832_v39 = vadd.f32 %v7516_v5, %v7444_v51 }
 0x3db   :  { %v7518_v37 = vpop.f32.mrf.mxu1 }
 0x3dc   :  { %v16834_v36 = vadd.f32 %v7518_v37, %v7446_v54 }
 0x3f5   :  { %v16844_v62 = vpop.f32.mrf.mxu0 }
 0x3f7   :  { %v16846_v41 = vpop.f32.mrf.mxu0 }
 0x3f9   :  { %v16848_v33 = vpop.f32.mrf.mxu0 }
 0x3fb   :  { %v16852_v20 = vpop.f32.mrf.mxu0 }
 0x3fd   :  { %v16850_v8 = vpop.f32.mrf.mxu1 }
 0x3ff   :  { %v16854_v6 = vpop.f32.mrf.mxu1 }
 0x401   :  { %v16858_v32 = vpop.f32.mrf.mxu1 }
 0x403   :  { %v16862_v45 = vpop.f32.mrf.mxu1 }
 0x410   :  { %v16856_v11 = vpop.f32.mrf.mxu0 }
 0x412   :  { %v16860_v46 = vpop.f32.mrf.mxu0 }
 0x414   :  { %v16864_v28 = vpop.f32.mrf.mxu0 }
 0x416   :  { %v16868_v19 = vpop.f32.mrf.mxu0 }
 0x417   :  { %v16866_v56 = vpop.f32.mrf.mxu1 }
 0x419   :  { %v16870_v17 = vpop.f32.mrf.mxu1 }
 0x41b   :  { %v16877_v5 = vpop.f32.mrf.mxu1 }
 0x41d   :  { %v16885_v24 = vpop.f32.mrf.mxu1 }
 0x420   :  { %v16887_v7 = vpop.f32.mrf.mxu1 }
 0x422   :  { %v16889_v58 = vpop.f32.mrf.mxu1 }
 0x424   :  { %v16891_v53 = vpop.f32.mrf.mxu1 }
 0x426   :  { %v16893_v49 = vpop.f32.mrf.mxu1 }
 0x431   :  { %v7585_v55 = vpop.f32.mrf.mxu0 }
 0x432   :  { %v16873_v4 = vadd.f32 %v7585_v55, %v16822_v14  ;;  %v11955_v14 = vld [vmem:[#allocation5 + $0x24] ss:$16 sps:$4 sm:$0xff]  }
 0x433   :  { %v16875_v51 = vpop.f32.mrf.mxu0  ;;  %10765 = vmatprep.subr.bf16.mxu1 %v11955_v14  ;;  %v11970_v55 = vld [vmem:[#allocation5 + $0x3e4] ss:$16 sps:$4 sm:$0xff]   ;;  %v11974_v14 = vld [vmem:[#allocation5 + $0x3c0] ss:$16 sps:$4 sm:$0xff]  }
 0x434   :  { %10766 = vmatpush1.bf16.msra.mxu1 %v11953_v40 }
 0x435   :  { %v7589_v54 = vpop.f32.mrf.mxu0 }
 0x436   :  { %v16880_v37 = vadd.f32 %v7589_v54, %v16832_v39  ;;  %v11956_v39 = vld [vmem:[#allocation5 + $0x220] ss:$16 sps:$4 sm:$0xff]  }
 0x437   :  { %v7591_v2 = vpop.f32.mrf.mxu0  ;;  %10806 = vmatpush1.bf16.msra.mxu0 %v11956_v39  ;;  %v11968_v54 = vld [vmem:[#allocation5 + $0x3e0] ss:$16 sps:$4 sm:$0xff]   ;;  %v11976_v39 = vld [vmem:[#allocation5 + $0x3c4] ss:$16 sps:$4 sm:$0xff]  }
 0x438   :  { %v16883_v10 = vadd.f32 %v7591_v2, %v16834_v36  ;;  %v11961_v36 = vld [vmem:[#allocation5 + $0x4] ss:$16 sps:$4 sm:$0xff]   ;;  %10807 = vmatprep.subr.bf16.mxu0 %v11964_v26 }
 0x439   :  { %10767 = vmatprep.subr.bf16.mxu1 %v11961_v36  ;;  %v11982_v36 = vld [vmem:[#allocation5 + $0x3a4] ss:$16 sps:$4 sm:$0xff]  }
 0x43a   :  { %10768 = vmatpush1.bf16.msra.mxu1 %v11959_v42  ;;  %v11979_v42 = vld [vmem:[#allocation5 + $0x1a4] ss:$16 sps:$4 sm:$0xff]  }
 0x43b   :  { %10808 = vmatpush1.bf16.msra.mxu0 %v11962_v50  ;;  %10769 = vmatprep.subr.bf16.mxu1 %v11967_v25  ;;  %v11985_v26 = vld [vmem:[#allocation5 + $0x184] ss:$16 sps:$4 sm:$0xff]   ;;  %v11980_v25 = vld [vmem:[#allocation5 + $0x3a0] ss:$16 sps:$4 sm:$0xff]  }
 0x43c   :  { %10809 = vmatprep.subr.bf16.mxu0 %v11970_v55 }
 0x43d   :  { %v16895_v9 = vpop.f32.mrf.mxu1 }
 0x43e   :  { %10770 = vmatpush2.bf16.msra.mxu1 %v11965_v57  ;;  %v7430_v57 = vadd.f32 %v16789_v34, %v16817_v21  ;;  %v11986_v34 = vld [vmem:[#allocation5 + $0x380] ss:$16 sps:$4 sm:$0xff]  }
 0x43f   :  { %v16897_v47 = vpop.f32.mrf.mxu1  ;;  %10810 = vmatpush2.bf16.msra.mxu0 %v11968_v54  ;;  %10771 = vmatprep.subr.bf16.mxu1 %v11973_v38  ;;  %v11988_v54 = vld [vmem:[#allocation5 + $0x384] ss:$16 sps:$4 sm:$0xff]   ;;  %v7432_v38 = vadd.f32 %v16795_v61, %v16828_v43 }
 0x440   :  { %10811 = vmatprep.subr.bf16.mxu0 %v11976_v39  ;;  %v11991_v39 = vld [vmem:[#allocation5 + $0x164] ss:$16 sps:$4 sm:$0xff]   ;;  %v7503_v44 = vadd.f32 %v16802_v22, %v7430_v57  ;;  %v11989_v22 = vld [vmem:[#allocation5 + $0x160] ss:$16 sps:$4 sm:$0xff]  }
 0x441   :  { %v16901_v15 = vpop.f32.mrf.mxu1  ;;  %v11994_v61 = vld [vmem:[#allocation5 + $0x364] ss:$16 sps:$4 sm:$0xff]  }
 0x442   :  { %10772 = vmatpush2.bf16.msra.mxu1 %v11971_v1  ;;  %v11983_v1 = vld [vmem:[#allocation5 + $0x180] ss:$16 sps:$4 sm:$0xff]  }
 0x443   :  { %v16905_v3 = vpop.f32.mrf.mxu1  ;;  %10812 = vmatpush2.bf16.msra.mxu0 %v11974_v14  ;;  %10773 = vmatprep.subr.bf16.mxu1 %v11979_v42  ;;  %v7434_v14 = vadd.f32 %v16800_v52, %v16817_v21  ;;  %v7436_v42 = vadd.f32 %v16805_v29, %v16828_v43  ;;  %v7442_v52 = vadd.f32 %v16814_v27, %v16828_v43  ;;  %v12000_v27 = vld [vmem:[#allocation5 + $0x344] ss:$16 sps:$4 sm:$0xff]  }
 0x444   :  { %v16899_v59 = vpop.f32.mrf.mxu0  ;;  %10813 = vmatprep.subr.bf16.mxu0 %v11982_v36 }
 0x446   :  { %v16903_v12 = vpop.f32.mrf.mxu0  ;;  %10774 = vmatpush2.bf16.msra.mxu1 %v11977_v18  ;;  %v7505_v18 = vadd.f32 %v16807_v23, %v7432_v38  ;;  %v7450_v23 = vadd.f32 %v16836_v60, %v16817_v21  ;;  %v11995_v60 = vld [vmem:[#allocation5 + $0x140] ss:$16 sps:$4 sm:$0xff]  }
 0x447   :  { %10775 = vmatprep.subr.bf16.mxu1 %v11985_v26  ;;  %10814 = vmatpush2.bf16.msra.mxu0 %v11980_v25  ;;  %v7576_v26 = vadd.f32 %v16856_v11, %v7503_v44  ;;  %v11997_v25 = vld [vmem:[#allocation5 + $0x144] ss:$16 sps:$4 sm:$0xff]   ;;  %v7452_v44 = vadd.f32 %v16838_v16, %v16828_v43  ;;  %v7460_v16 = vadd.f32 %v16844_v62, %v16817_v21  ;;  %v11998_v62 = vld [vmem:[#allocation5 + $0x340] ss:$16 sps:$4 sm:$0xff]  }
 0x448   :  { %v16907_v2 = vpop.f32.mrf.mxu0  ;;  %10815 = vmatprep.subr.bf16.mxu0 %v11988_v54  ;;  %v7578_v29 = vadd.f32 %v16860_v46, %v7505_v18  ;;  %v7507_v54 = vadd.f32 %v16812_v48, %v7434_v14  ;;  %v7454_v46 = vadd.f32 %v16840_v35, %v16817_v21  ;;  %v7456_v48 = vadd.f32 %v16842_v30, %v16828_v43  ;;  %v12003_v30 = vld [vmem:[#allocation5 + $0x124] ss:$16 sps:$4 sm:$0xff]  }
 0x449   :  { %v7525_v18 = vadd.f32 %v16854_v6, %v7452_v44  ;;  %v12012_v44 = vld [vmem:[#allocation5 + $0x304] ss:$16 sps:$4 sm:$0xff]  }
 0x44a   :  { %v16911_v50 = vpop.f32.mrf.mxu0  ;;  %10776 = vmatpush2.bf16.msra.mxu1 %v11983_v1  ;;  %v7649_v1 = vadd.f32 %v16887_v7, %v7576_v26  ;;  %v7580_v35 = vadd.f32 %v16864_v28, %v7507_v54  ;;  %v7651_v7 = vadd.f32 %v16889_v58, %v7578_v29  ;;  %v12001_v58 = vld [vmem:[#allocation5 + $0x120] ss:$16 sps:$4 sm:$0xff]  }
 0x44b   :  { %10777 = vmatprep.subr.bf16.mxu1 %v11991_v39  ;;  %10816 = vmatpush2.bf16.msra.mxu0 %v11986_v34  ;;  %v7462_v39 = vadd.f32 %v16846_v41, %v16828_v43  ;;  %v7464_v34 = vadd.f32 %v16848_v33, %v16817_v21  ;;  %v7523_v41 = vadd.f32 %v16850_v8, %v7450_v23  ;;  %v12004_v54 = vld [vmem:[#allocation5 + $0x320] ss:$16 sps:$4 sm:$0xff]  }
 0x44c   :  { %10817 = vmatprep.subr.bf16.mxu0 %v11994_v61  ;;  %v7527_v21 = vadd.f32 %v16858_v32, %v7454_v46  ;;  %v7653_v32 = vadd.f32 %v16891_v53, %v7580_v35 }
 0x44d   :  { %v7537_v8 = vadd.f32 %v16877_v5, %v7464_v34  ;;  %v16979_v5 = vadd.f32 %v16895_v9, %v16873_v4  ;;  %v12007_v9 = vld [vmem:[#allocation5 + $0x100] ss:$16 sps:$4 sm:$0xff]  }
 0x44e   :  { %10778 = vmatpush2.bf16.msra.mxu1 %v11989_v22  ;;  %v12006_v22 = vld [vmem:[#allocation5 + $0x324] ss:$16 sps:$4 sm:$0xff]   ;;  %v7600_v53 = vadd.f32 %v16907_v2, %v7527_v21 }
 0x44f   :  { %v16909_v40 = vpop.f32.mrf.mxu1  ;;  %10779 = vmatprep.subr.bf16.mxu1 %v11997_v25 }
 0x451   :  { %v16915_v55 = vpop.f32.mrf.mxu1 }
 0x452   :  { %10780 = vmatpush2.bf16.msra.mxu1 %v11995_v60 }
 0x453   :  { %v16926_v36 = vpop.f32.mrf.mxu1  ;;  %10781 = vmatprep.subr.bf16.mxu1 %v12003_v30 }
 0x454   :  { %18348 = vst [vmem:[#allocation64_spill] sm:$0xff] %v16926_v36  ;;  %v11992_v36 = vld [vmem:[#allocation5 + $0x360] ss:$16 sps:$4 sm:$0xff]  }
 0x455   :  { %v16943_v11 = vpop.f32.mrf.mxu1  ;;  %10818 = vmatpush2.bf16.msra.mxu0 %v11992_v36 }
 0x456   :  { %10819 = vmatprep.subr.bf16.mxu0 %v12000_v27  ;;  %10782 = vmatpush2.bf16.msra.mxu1 %v12001_v58 }
 0x459   :  { %10820 = vmatpush2.bf16.msra.mxu0 %v11998_v62 }
 0x45a   :  { %10821 = vmatprep.subr.bf16.mxu0 %v12006_v22 }
 0x45d   :  { %10822 = vmatpush2.bf16.msra.mxu0 %v12004_v54 }
 0x45e   :  { %10823 = vmatprep.subr.bf16.mxu0 %v12012_v44 }
 0x461   :  { %v16919_v31 = vpop.f32.mrf.mxu0 }
 0x463   :  { %v16928_v13 = vpop.f32.mrf.mxu0 }
 0x464   :  { %18349 = vst [vmem:[#allocation62_spill] sm:$0xff] %v16928_v13  ;;  %v7509_v13 = vadd.f32 %v16819_v63, %v7436_v42  ;;  %v7515_v63 = vadd.f32 %v16824_v0, %v7442_v52  ;;  %v7466_v0 = vadd.f32 %v16852_v20, %v16828_v43  ;;  %v7529_v43 = vadd.f32 %v16862_v45, %v7456_v48  ;;  %v12009_v52 = vld [vmem:[#allocation5 + $0x104] ss:$16 sps:$4 sm:$0xff]  }
 0x465   :  { %v16932_v57 = vpop.f32.mrf.mxu0  ;;  %v7533_v20 = vadd.f32 %v16866_v56, %v7460_v16  ;;  %v7598_v56 = vadd.f32 %v16903_v12, %v7525_v18  ;;  %v16991_v12 = vadd.f32 %v16905_v3, %v16883_v10  ;;  %10783 = vmatprep.subr.bf16.mxu1 %v12009_v52 }
 0x466   :  { %v7582_v42 = vadd.f32 %v16868_v19, %v7509_v13  ;;  %v7588_v33 = vadd.f32 %v16875_v51, %v7515_v63  ;;  %v7535_v13 = vadd.f32 %v16870_v17, %v7462_v39  ;;  %v7539_v6 = vadd.f32 %v16885_v24, %v7466_v0  ;;  %v18352_v39 = vld [vmem:[#allocation64_spill] sm:$0xff]  ;;  %10784 = vmatpush2.bf16.msra.mxu1 %v12007_v9 }
 0x467   :  { %v16945_v38 = vpop.f32.mrf.mxu0  ;;  %v7596_v51 = vadd.f32 %v16899_v59, %v7523_v41  ;;  %v7602_v2 = vadd.f32 %v16911_v50, %v7529_v43  ;;  %v7606_v46 = vadd.f32 %v16919_v31, %v7533_v20  ;;  %v17005_v34 = vadd.f32 %v18352_v39, %v7600_v53 }
 0x468   :  { %v7655_v45 = vadd.f32 %v16893_v49, %v7582_v42  ;;  %v16982_v24 = vadd.f32 %v16897_v47, %v7588_v33  ;;  %v16987_v49 = vadd.f32 %v16901_v15, %v16880_v37  ;;  %v12015_v37 = vld [vmem:[#allocation5 + $0x4e4] ss:$16 sps:$4 sm:$0xff]   ;;  %v16999_v15 = vadd.f32 %v16915_v55, %v7598_v56 }
 0x469   :  { %v16994_v47 = vadd.f32 %v16909_v40, %v7596_v51  ;;  %v12010_v40 = vld [vmem:[#allocation5 + $0x300] ss:$16 sps:$4 sm:$0xff]   ;;  %v7610_v31 = vadd.f32 %v16932_v57, %v7537_v8  ;;  %v17011_v42 = vadd.f32 %v16943_v11, %v7602_v2  ;;  %10833 = vmatprep.subr.bf16.mxu1 %v12015_v37 }
 0x46a   :  { %10824 = vmatpush2.bf16.msra.mxu0 %v12010_v40 }
 0x46b   :  { %v7721_v14 = vpop.f32.mrf.mxu0  ;;  %v7678_v28 = vpop.f32.mrf.mxu1  ;;  %v18350_v10 = vld [vmem:[#allocation62_spill] sm:$0xff] }
 0x46c   :  { %v7722_v61 = vadd.f32 %v7721_v14, %v7649_v1  ;;  %v7608_v3 = vadd.f32 %v18350_v10, %v7535_v13  ;;  %v18351_v1 = vld [vmem:[#allocation13_spill] sm:$0xff]  ;;  %v7612_v14 = vadd.f32 %v16945_v38, %v7539_v6 }
 0x46d   :  { %v7723_v26 = vpop.f32.mrf.mxu0  ;;  %v7680_v36 = vpop.f32.mrf.mxu1 }
 0x46e   :  { %v7724_v19 = vadd.f32 %v7723_v26, %v7651_v7  ;;  %v7760_v17 = vmax.f32 %v7722_v61, 0.0  ;;  %v12018_v7 = vld [vmem:[#allocation5 + $0x6e4] ss:$16 sps:$4 sm:$0xff]   ;;  %v17013_v61 = vadd.f32 %v7678_v28, %v7606_v46  ;;  %v17015_v57 = vadd.f32 %v7680_v36, %v7608_v3 }
 0x46f   :  { %v7725_v25 = vpop.f32.mrf.mxu0  ;;  %v7682_v48 = vpop.f32.mrf.mxu1  ;;  %10873 = vmatprep.subr.bf16.mxu0 %v12018_v7 }
 0x470   :  { %v7761_v29 = vmax.f32 %v7724_v19, 0.0  ;;  %v7726_v59 = vadd.f32 %v7725_v25, %v7653_v32  ;;  %v17019_v26 = vadd.f32 %v7682_v48, %v7610_v31 }
 0x471   :  { %v7727_v23 = vpop.f32.mrf.mxu0  ;;  %v7684_v62 = vpop.f32.mrf.mxu1 }
 0x472   :  { %v7792_v27 = vcombine.low %v7760_v17, %v7761_v29  ;;  %v7793_v4 = vcombine.high %v7760_v17, %v7761_v29  ;;  %v7728_v63 = vadd.f32 %v7727_v23, %v7655_v45  ;;  %v7762_v50 = vmax.f32 %v7726_v59, 0.0 }
 0x473   :  { %v17024_v43 = vadd.f32 %v7684_v62, %v7612_v14 }
 0x474   :  { %v7800_v60 = vrot.slane %v7792_v27, %v18351_v1  ;;  %v7807_v16 = vrot.slane %v7793_v4, %v18351_v1  ;;  %v7763_v35 = vmax.f32 %v7728_v63, 0.0 }
 0x476   :  { %v7808_v55 = vcombine.high %v7800_v60, %v7800_v60  ;;  %v7809_v30 = vcombine.high %v7807_v16, %v7807_v16  ;;  %v7816_v0 = vrot.slane %v7800_v60, %v18351_v1  ;;  %v7842_v41 = vcombine.low %v7762_v50, %v7763_v35 }
 0x477   :  { %v7843_v18 = vcombine.high %v7762_v50, %v7763_v35  ;;  %v7823_v22 = vrot.slane %v7807_v16, %v18351_v1 }
 0x478   :  { %v7830_v21 = vrot.slane %v7808_v55, %v18351_v1  ;;  %v7837_v38 = vrot.slane %v7809_v30, %v18351_v1  ;;  %v7838_v33 = vcombine.high %v7816_v0, %v7816_v0  ;;  %v7850_v11 = vrot.slane %v7842_v41, %v18351_v1 }
 0x479   :  { %v7857_v28 = vrot.slane %v7843_v18, %v18351_v1 }
 0x47a   :  { %v7840_v20 = vcombine.high %v7830_v21, %v7830_v21  ;;  %v8188_v13 = vcombine.low %v7816_v0, %v7830_v21  ;;  %v8202_v19 = vrot.slane %v7838_v33, %v18351_v1  ;;  %v11388_v58 = vcombine.high %v7823_v22, %v7837_v38 }
 0x47b   :  { %v7858_v8 = vcombine.high %v7850_v11, %v7850_v11  ;;  %v7859_v6 = vcombine.high %v7857_v28, %v7857_v28  ;;  %v7866_v32 = vrot.slane %v7850_v11, %v18351_v1  ;;  %v8233_v25 = vrot.slane %v7837_v38, %v18351_v1 }
 0x47c   :  { %v8195_v51 = vrot.slane %v8188_v13, %v18351_v1  ;;  %v8219_v36 = vcombine.low %v7840_v20, %v7823_v22  ;;  %v7873_v52 = vrot.slane %v7857_v28, %v18351_v1  ;;  %v8257_v45 = vrot.slane %v11388_v58, %v18351_v1 }
 0x47d   :  { %v7880_v56 = vrot.slane %v7858_v8, %v18351_v1  ;;  %v17034_v17 = vrot.slane %v7859_v6, %v18351_v1  ;;  %v7888_v29 = vcombine.high %v7866_v32, %v7866_v32  ;;  %v8264_v27 = vrot.slane %v7866_v32, %v18351_v1 }
 0x47e   :  { %v8203_v54 = vcombine.low %v8195_v51, %v8202_v19  ;;  %v8204_v53 = vcombine.high %v8195_v51, %v8202_v19  ;;  %v8226_v59 = vrot.slane %v8219_v36, %v18351_v1  ;;  %v7889_v23 = vcombine.high %v7873_v52, %v7873_v52  ;;  %v7731_v37 = vpop.f32.mrf.mxu0 }
 0x47f   :  { %v7890_v44 = vcombine.high %v7880_v56, %v7880_v56  ;;  %v8281_v4 = vcombine.low %v7880_v56, %v7888_v29  ;;  %v8312_v9 = vcombine.low %v7873_v52, %v17034_v17  ;;  %v8265_v10 = vcombine.low %v8257_v45, %v8264_v27 }
 0x480   :  { %v8211_v2 = vrot.slane %v8203_v54, %v18351_v1  ;;  %v8218_v46 = vrot.slane %v8204_v53, %v18351_v1  ;;  %v8234_v48 = vcombine.low %v8226_v59, %v8233_v25  ;;  %v8235_v63 = vcombine.high %v8226_v59, %v8233_v25  ;;  %v7733_v35 = vpop.f32.mrf.mxu0 }
 0x481   :  { %v8266_v3 = vcombine.high %v8257_v45, %v8264_v27  ;;  %v8288_v60 = vrot.slane %v8281_v4, %v18351_v1  ;;  %v8295_v16 = vrot.slane %v7890_v44, %v18351_v1  ;;  %v8273_v30 = vrot.slane %v8265_v10, %v18351_v1 }
 0x482   :  { %v8242_v40 = vrot.slane %v8234_v48, %v18351_v1  ;;  %v8249_v39 = vrot.slane %v8235_v63, %v18351_v1  ;;  %v8848_v31 = vsel %vm1122_vm4, %v8211_v2, -inf  ;;  %v17047_v50 = vsel %vm1122_vm4, %v8218_v46, -inf  ;;  %v7735_v21 = vpop.f32.mrf.mxu0 }
 0x483   :  { %v8849_v14 = vrot.slane %v8848_v31, 4  ;;  %v8856_v55 = vrot.slane %v17047_v50, 4  ;;  %v8280_v0 = vrot.slane %v8266_v3, %v18351_v1  ;;  %v8296_v41 = vcombine.low %v8288_v60, %v8295_v16 }
 0x484   :  { %v8862_v7 = vsel %vm1122_vm4, %v8242_v40, -inf  ;;  %v17054_v62 = vsel %vm1122_vm4, %v8249_v39, -inf  ;;  %v8297_v18 = vcombine.high %v8288_v60, %v8295_v16  ;;  %v8319_v11 = vrot.slane %v8312_v9, %v18351_v1  ;;  %v7737_v58 = vpop.f32.mrf.mxu0 }
 0x485   :  { %v8850_v38 = vmax.f32 %v8848_v31, %v8849_v14  ;;  %v8863_v33 = vrot.slane %v8862_v7, 4  ;;  %v8870_v22 = vrot.slane %v17054_v62, 4  ;;  %v8304_v28 = vrot.slane %v8296_v41, %v18351_v1 }
 0x486   :  { %v17060_v20 = vrot.slane %v8297_v18, %v18351_v1  ;;  %v8326_v13 = vrot.slane %v7889_v23, %v18351_v1  ;;  %v8876_v19 = vsel %vm1122_vm4, %v8273_v30, -inf  ;;  %v17065_v51 = vsel %vm1122_vm4, %v8280_v0, -inf  ;;  %v7741_v56 = vpop.f32.mrf.mxu0 }
 0x487   :  { %v8851_v8 = vrot.slane %v8850_v38, 2  ;;  %v8864_v6 = vmax.f32 %v8862_v7, %v8863_v33  ;;  %v8877_v32 = vrot.slane %v8876_v19, 4  ;;  %v8884_v52 = vrot.slane %v17065_v51, 4 }
 0x488   :  { %v8327_v36 = vcombine.low %v8319_v11, %v8326_v13  ;;  %v8328_v25 = vcombine.high %v8319_v11, %v8326_v13  ;;  %v8890_v45 = vsel %vm1122_vm4, %v8304_v28, -inf  ;;  %v7732_v27 = vadd.f32 %v7731_v37, %v16979_v5  ;;  %v7743_v9 = vpop.f32.mrf.mxu0 }
 0x489   :  { %v17069_v29 = vmax.f32 %v8850_v38, %v8851_v8  ;;  %v8865_v54 = vrot.slane %v8864_v6, 2  ;;  %v8878_v53 = vmax.f32 %v8876_v19, %v8877_v32  ;;  %v8891_v59 = vrot.slane %v8890_v45, 4 }
 0x48a   :  { %v8335_v23 = vrot.slane %v8327_v36, %v18351_v1  ;;  %v17073_v44 = vrot.slane %v8328_v25, %v18351_v1  ;;  %v7734_v4 = vadd.f32 %v7733_v35, %v16982_v24  ;;  %v7764_v3 = vmax.f32 %v7732_v27, 0.0  ;;  %v7745_v30 = vpop.f32.mrf.mxu0 }
 0x48b   :  { %v8853_v2 = vrot.slane %v17069_v29, 1  ;;  %v17078_v46 = vmax.f32 %v8864_v6, %v8865_v54  ;;  %v8879_v48 = vrot.slane %v8878_v53, 2  ;;  %v8892_v63 = vmax.f32 %v8890_v45, %v8891_v59 }
 0x48c   :  { %v8904_v10 = vsel %vm1122_vm4, %v8335_v23, -inf  ;;  %v7765_v60 = vmax.f32 %v7734_v4, 0.0  ;;  %v7891_v16 = vcombine.high %v17034_v17, %v17034_v17  ;;  %v7736_v35 = vadd.f32 %v7735_v21, %v16987_v49 }
 0x48d   :  { %v17084_v39 = vmax.f32 %v8878_v53, %v8879_v48  ;;  %v8893_v5 = vrot.slane %v8892_v63, 2  ;;  %v8905_v24 = vrot.slane %v8904_v10, 4  ;;  %v7738_v14 = vadd.f32 %v7737_v58, %v16991_v12 }
 0x48e   :  { %v7892_v37 = vcombine.low %v7764_v3, %v7765_v60  ;;  %v7893_v31 = vcombine.high %v7764_v3, %v7765_v60  ;;  %v17092_v17 = vadd.f32 %v7741_v56, %v16994_v47  ;;  %v7766_v33 = vmax.f32 %v7736_v35, 0.0 }
 0x48f   :  { %v17089_v7 = vmax.f32 %v8892_v63, %v8893_v5  ;;  %v8906_v41 = vmax.f32 %v8904_v10, %v8905_v24  ;;  %v7767_v11 = vmax.f32 %v7738_v14, 0.0  ;;  %v17098_v12 = vadd.f32 %v7743_v9, %v16999_v15 }
 0x490   :  { %v7900_v18 = vrot.slane %v7892_v37, %v18351_v1  ;;  %v7907_v38 = vrot.slane %v7893_v31, %v18351_v1  ;;  %v7768_v49 = vmax.f32 %v17092_v17, 0.0  ;;  %v17101_v21 = vadd.f32 %v7745_v30, %v17005_v34 }
 0x491   :  { %v8907_v28 = vrot.slane %v8906_v41, 2  ;;  %v7942_v6 = vcombine.low %v7766_v33, %v7767_v11  ;;  %v7943_v32 = vcombine.high %v7766_v33, %v7767_v11  ;;  %v7769_v36 = vmax.f32 %v17098_v12, 0.0 }
 0x492   :  { %v7908_v13 = vcombine.high %v7900_v18, %v7900_v18  ;;  %v7909_v19 = vcombine.high %v7907_v38, %v7907_v38  ;;  %v7916_v47 = vrot.slane %v7900_v18, %v18351_v1  ;;  %v7923_v58 = vrot.slane %v7907_v38, %v18351_v1 }
 0x493   :  { %v17105_v8 = vmax.f32 %v8906_v41, %v8907_v28  ;;  %v7950_v54 = vrot.slane %v7942_v6, %v18351_v1  ;;  %v7957_v53 = vrot.slane %v7943_v32, %v18351_v1  ;;  %v7990_v59 = vcombine.low %v7768_v49, %v7769_v36 }
 0x494   :  { %v7930_v25 = vrot.slane %v7908_v13, %v18351_v1  ;;  %v7937_v15 = vrot.slane %v7909_v19, %v18351_v1  ;;  %v7939_v45 = vcombine.high %v7923_v58, %v7923_v58  ;;  %v8343_v56 = vcombine.low %v7891_v16, %v7916_v47 }
 0x495   :  { %v8388_v34 = vrot.slane %v7923_v58, %v18351_v1  ;;  %v7958_v63 = vcombine.high %v7950_v54, %v7950_v54  ;;  %v7959_v10 = vcombine.high %v7957_v53, %v7957_v53  ;;  %v7966_v3 = vrot.slane %v7950_v54, %v18351_v1 }
 0x496   :  { %v7941_v23 = vcombine.high %v7937_v15, %v7937_v15  ;;  %v8350_v27 = vrot.slane %v8343_v56, %v18351_v1  ;;  %v8357_v4 = vrot.slane %v7930_v25, %v18351_v1  ;;  %v11389_v9 = vcombine.high %v7916_v47, %v7930_v25 }
 0x497   :  { %v8405_v48 = vcombine.low %v7937_v15, %v7939_v45  ;;  %v7973_v31 = vrot.slane %v7957_v53, %v18351_v1  ;;  %v7980_v35 = vrot.slane %v7958_v63, %v18351_v1  ;;  %v7987_v14 = vrot.slane %v7959_v10, %v18351_v1 }
 0x498   :  { %v8358_v60 = vcombine.low %v8350_v27, %v8357_v4  ;;  %v8359_v16 = vcombine.high %v8350_v27, %v8357_v4  ;;  %v8381_v5 = vrot.slane %v11389_v9, %v18351_v1  ;;  %v8419_v24 = vrot.slane %v7941_v23, %v18351_v1 }
 0x499   :  { %v8412_v37 = vrot.slane %v8405_v48, %v18351_v1  ;;  %v7988_v28 = vcombine.high %v7966_v3, %v7966_v3  ;;  %v7989_v12 = vcombine.high %v7980_v35, %v7980_v35  ;;  %v8481_v10 = vrot.slane %v7987_v14, %v18351_v1 }
 0x49a   :  { %v8366_v30 = vrot.slane %v8358_v60, %v18351_v1  ;;  %v8373_v41 = vrot.slane %v8359_v16, %v18351_v1  ;;  %v8389_v18 = vcombine.low %v8381_v5, %v8388_v34  ;;  %v8390_v38 = vcombine.high %v8381_v5, %v8388_v34  ;;  %v7747_v60 = vpop.f32.mrf.mxu0 }
 0x49b   :  { %v8420_v33 = vcombine.low %v8412_v37, %v8419_v24  ;;  %v8421_v11 = vcombine.high %v8412_v37, %v8419_v24  ;;  %v8436_v34 = vcombine.low %v7966_v3, %v7980_v35  ;;  %v8450_v54 = vrot.slane %v7988_v28, %v18351_v1 }
 0x49c   :  { %v8397_v13 = vrot.slane %v8389_v18, %v18351_v1  ;;  %v8404_v19 = vrot.slane %v8390_v38, %v18351_v1  ;;  %v8918_v47 = vsel %vm1122_vm4, %v8366_v30, -inf  ;;  %v17130_v58 = vsel %vm1122_vm4, %v8373_v41, -inf }
 0x49d   :  { %v8428_v6 = vrot.slane %v8420_v33, %v18351_v1  ;;  %v17134_v32 = vrot.slane %v8421_v11, %v18351_v1  ;;  %v8919_v25 = vrot.slane %v8918_v47, 4  ;;  %v8443_v48 = vrot.slane %v8436_v34, %v18351_v1 }
 0x49e   :  { %v8932_v45 = vsel %vm1122_vm4, %v8397_v13, -inf  ;;  %v8939_v56 = vsel %vm1122_vm4, %v8404_v19, -inf  ;;  %v8467_v63 = vcombine.low %v7989_v12, %v7973_v31  ;;  %v7991_v24 = vcombine.high %v7768_v49, %v7769_v36 }
 0x49f   :  { %v17140_v53 = vmax.f32 %v8918_v47, %v8919_v25  ;;  %v8933_v23 = vrot.slane %v8932_v45, 4  ;;  %v8940_v27 = vrot.slane %v8939_v56, 4  ;;  %v17143_v4 = vsel %vm1122_vm4, %v8428_v6, -inf  ;;  %v7751_v47 = vpop.f32.mrf.mxu0 }
 0x4a0   :  { %v8451_v37 = vcombine.low %v8443_v48, %v8450_v54  ;;  %v8452_v35 = vcombine.high %v8443_v48, %v8450_v54  ;;  %v8474_v30 = vrot.slane %v8467_v63, %v18351_v1  ;;  %v7998_v41 = vrot.slane %v7990_v59, %v18351_v1 }
 0x4a1   :  { %v8934_v3 = vmax.f32 %v8932_v45, %v8933_v23  ;;  %v17149_v5 = vmax.f32 %v8939_v56, %v8940_v27  ;;  %v8005_v31 = vrot.slane %v7991_v24, %v18351_v1  ;;  %v7770_v14 = vmax.f32 %v17101_v21, 0.0 }
 0x4a2   :  { %v7748_v38 = vadd.f32 %v7747_v60, %v17011_v42  ;;  %v8459_v33 = vrot.slane %v8451_v37, %v18351_v1  ;;  %v8466_v11 = vrot.slane %v8452_v35, %v18351_v1  ;;  %v8482_v28 = vcombine.low %v8474_v30, %v8481_v10 }
 0x4a3   :  { %v8935_v18 = vrot.slane %v8934_v3, 2  ;;  %v8483_v17 = vcombine.high %v8474_v30, %v8481_v10  ;;  %v8006_v36 = vcombine.high %v7998_v41, %v7998_v41  ;;  %v8007_v12 = vcombine.high %v8005_v31, %v8005_v31  ;;  %v7753_v30 = vpop.f32.mrf.mxu0 }
 0x4a4   :  { %v8014_v13 = vrot.slane %v7998_v41, %v18351_v1  ;;  %v8490_v59 = vrot.slane %v8482_v28, %v18351_v1  ;;  %v8960_v21 = vsel %vm1122_vm4, %v8459_v33, -inf  ;;  %v17169_v42 = vsel %vm1122_vm4, %v8466_v11, -inf }
 0x4a5   :  { %v17160_v49 = vmax.f32 %v8934_v3, %v8935_v18  ;;  %v17165_v19 = vrot.slane %v8483_v17, %v18351_v1  ;;  %v8961_v6 = vrot.slane %v8960_v21, 4  ;;  %v8021_v45 = vrot.slane %v8005_v31, %v18351_v1 }
 0x4a6   :  { %v8028_v56 = vrot.slane %v8006_v36, %v18351_v1  ;;  %v8974_v34 = vsel %vm1122_vm4, %v8490_v59, -inf  ;;  %v8035_v54 = vrot.slane %v8007_v12, %v18351_v1  ;;  %v8036_v23 = vcombine.high %v8014_v13, %v8014_v13 }
 0x4a7   :  { %v7771_v27 = vmax.f32 %v7748_v38, 0.0  ;;  %v17176_v48 = vmax.f32 %v8960_v21, %v8961_v6  ;;  %v8975_v63 = vrot.slane %v8974_v34, 4  ;;  %v17187_v17 = vadd.f32 %v7751_v47, %v17013_v61 }
 0x4a8   :  { %v8038_v10 = vcombine.high %v8028_v56, %v8028_v56  ;;  %v8498_v60 = vcombine.low %v8014_v13, %v8028_v56  ;;  %v8512_v3 = vrot.slane %v8036_v23, %v18351_v1  ;;  %v8543_v24 = vrot.slane %v8035_v54, %v18351_v1 }
 0x4a9   :  { %v11390_v37 = vcombine.high %v8021_v45, %v8035_v54  ;;  %v8040_v35 = vcombine.low %v7770_v14, %v7771_v27  ;;  %v17181_v18 = vmax.f32 %v8974_v34, %v8975_v63  ;;  %v8041_v11 = vcombine.high %v7770_v14, %v7771_v27 }
 0x4aa   :  { %v8505_v31 = vrot.slane %v8498_v60, %v18351_v1  ;;  %v8529_v33 = vcombine.low %v8038_v10, %v8021_v45  ;;  %v17191_v59 = vadd.f32 %v7753_v30, %v17015_v57  ;;  %v7772_v56 = vmax.f32 %v17187_v17, 0.0 }
 0x4ab   :  { %v8567_v38 = vrot.slane %v11390_v37, %v18351_v1  ;;  %v8048_v28 = vrot.slane %v8040_v35, %v18351_v1  ;;  %v8055_v21 = vrot.slane %v8041_v11, %v18351_v1 }
 0x4ac   :  { %v8513_v36 = vcombine.low %v8505_v31, %v8512_v3  ;;  %v8514_v12 = vcombine.high %v8505_v31, %v8512_v3  ;;  %v8536_v13 = vrot.slane %v8529_v33, %v18351_v1 }
 0x4ad   :  { %v8056_v6 = vcombine.high %v8048_v28, %v8048_v28  ;;  %v8064_v45 = vrot.slane %v8048_v28, %v18351_v1  ;;  %v8057_v54 = vcombine.high %v8055_v21, %v8055_v21  ;;  %v8071_v23 = vrot.slane %v8055_v21, %v18351_v1 }
 0x4ae   :  { %v8521_v14 = vrot.slane %v8513_v36, %v18351_v1  ;;  %v8528_v34 = vrot.slane %v8514_v12, %v18351_v1  ;;  %v8544_v61 = vcombine.low %v8536_v13, %v8543_v24  ;;  %v8545_v47 = vcombine.high %v8536_v13, %v8543_v24 }
 0x4af   :  { %v8078_v27 = vrot.slane %v8056_v6, %v18351_v1  ;;  %v8086_v57 = vcombine.high %v8064_v45, %v8064_v45  ;;  %v17208_v24 = vrot.slane %v8057_v54, %v18351_v1  ;;  %v8087_v30 = vcombine.high %v8071_v23, %v8071_v23 }
 0x4b0   :  { %v8552_v63 = vrot.slane %v8544_v61, %v18351_v1  ;;  %v8559_v10 = vrot.slane %v8545_v47, %v18351_v1  ;;  %v8988_v60 = vsel %vm1122_vm4, %v8521_v14, -inf  ;;  %v17204_v3 = vsel %vm1122_vm4, %v8528_v34, -inf }
 0x4b1   :  { %v8989_v37 = vrot.slane %v8988_v60, 4  ;;  %v8996_v35 = vrot.slane %v17204_v3, 4  ;;  %v8088_v11 = vcombine.high %v8078_v27, %v8078_v27  ;;  %v8574_v28 = vrot.slane %v8064_v45, %v18351_v1 }
 0x4b2   :  { %v9002_v31 = vsel %vm1122_vm4, %v8552_v63, -inf  ;;  %v17212_v33 = vsel %vm1122_vm4, %v8559_v10, -inf  ;;  %v8591_v13 = vcombine.low %v8078_v27, %v8086_v57  ;;  %v8622_v34 = vcombine.low %v8071_v23, %v17208_v24  ;;  %v7755_v57 = vpop.f32.mrf.mxu0 }
 0x4b3   :  { %v8990_v17 = vmax.f32 %v8988_v60, %v8989_v37  ;;  %v9003_v36 = vrot.slane %v9002_v31, 4  ;;  %v9010_v12 = vrot.slane %v17212_v33, 4  ;;  %v8575_v21 = vcombine.low %v8567_v38, %v8574_v28 }
 0x4b4   :  { %v8576_v6 = vcombine.high %v8567_v38, %v8574_v28  ;;  %v8605_v14 = vrot.slane %v8088_v11, %v18351_v1  ;;  %v8598_v54 = vrot.slane %v8591_v13, %v18351_v1  ;;  %v8636_v63 = vrot.slane %v8087_v30, %v18351_v1 }
 0x4b5   :  { %v8991_v61 = vrot.slane %v8990_v17, 2  ;;  %v9004_v47 = vmax.f32 %v9002_v31, %v9003_v36  ;;  %v8583_v10 = vrot.slane %v8575_v21, %v18351_v1  ;;  %v8629_v60 = vrot.slane %v8622_v34, %v18351_v1 }
 0x4b6   :  { %v8590_v45 = vrot.slane %v8576_v6, %v18351_v1  ;;  %v7773_v27 = vmax.f32 %v17191_v59, 0.0  ;;  %v8606_v11 = vcombine.low %v8598_v54, %v8605_v14  ;;  %v8607_v23 = vcombine.high %v8598_v54, %v8605_v14  ;;  %v7757_v54 = vpop.f32.mrf.mxu0 }
 0x4b7   :  { %v17224_v38 = vmax.f32 %v8990_v17, %v8991_v61  ;;  %v9005_v37 = vrot.slane %v9004_v47, 2  ;;  %v8637_v28 = vcombine.low %v8629_v60, %v8636_v63  ;;  %v8638_v31 = vcombine.high %v8629_v60, %v8636_v63 }
 0x4b8   :  { %v9016_v36 = vsel %vm1122_vm4, %v8583_v10, -inf  ;;  %v17228_v30 = vsel %vm1122_vm4, %v8590_v45, -inf  ;;  %v8614_v6 = vrot.slane %v8606_v11, %v18351_v1  ;;  %v17235_v59 = vrot.slane %v8607_v23, %v18351_v1 }
 0x4b9   :  { %v17231_v21 = vmax.f32 %v9004_v47, %v9005_v37  ;;  %v8645_v17 = vrot.slane %v8637_v28, %v18351_v1  ;;  %v17239_v14 = vrot.slane %v8638_v31, %v18351_v1  ;;  %v9017_v34 = vrot.slane %v9016_v36, 4 }
 0x4ba   :  { %v9024_v61 = vrot.slane %v17228_v30, 4  ;;  %v9030_v10 = vsel %vm1122_vm4, %v8614_v6, -inf  ;;  %v8089_v47 = vcombine.high %v17208_v24, %v17208_v24  ;;  %v8090_v45 = vcombine.low %v7772_v56, %v7773_v27 }
 0x4bb   :  { %v9018_v60 = vmax.f32 %v9016_v36, %v9017_v34  ;;  %v9031_v37 = vrot.slane %v9030_v10, 4  ;;  %v9044_v11 = vsel %vm1122_vm4, %v8645_v17, -inf  ;;  %v8091_v23 = vcombine.high %v7772_v56, %v7773_v27 }
 0x4bc   :  { %v9045_v28 = vrot.slane %v9044_v11, 4  ;;  %v8098_v31 = vrot.slane %v8090_v45, %v18351_v1  ;;  %v7756_v41 = vadd.f32 %v7755_v57, %v17019_v26  ;;  %v7758_v9 = vadd.f32 %v7757_v54, %v17024_v43 }
 0x4bd   :  { %v9019_v16 = vrot.slane %v9018_v60, 2  ;;  %v9032_v25 = vmax.f32 %v9030_v10, %v9031_v37  ;;  %v8105_v6 = vrot.slane %v8091_v23, %v18351_v1  ;;  %v17254_v24 = vmax.f32 %v17047_v50, %v8856_v55 }
 0x4be   :  { %v9046_v36 = vmax.f32 %v9044_v11, %v9045_v28  ;;  %v8106_v34 = vcombine.high %v8098_v31, %v8098_v31  ;;  %v8114_v56 = vrot.slane %v8098_v31, %v18351_v1  ;;  %v7774_v27 = vmax.f32 %v7756_v41, 0.0 }
 0x4bf   :  { %v17257_v17 = vmax.f32 %v9018_v60, %v9019_v16  ;;  %v9033_v45 = vrot.slane %v9032_v25, 2  ;;  %v8107_v26 = vcombine.high %v8105_v6, %v8105_v6  ;;  %v8121_v43 = vrot.slane %v8105_v6, %v18351_v1 }
 0x4c0   :  { %v9047_v57 = vrot.slane %v9046_v36, 2  ;;  %v8128_v54 = vrot.slane %v8106_v34, %v18351_v1  ;;  %v8653_v10 = vcombine.low %v8089_v47, %v8114_v56  ;;  %v7775_v37 = vmax.f32 %v7758_v9, 0.0 }
 0x4c1   :  { %v17262_v50 = vmax.f32 %v9032_v25, %v9033_v45  ;;  %v8135_v55 = vrot.slane %v8107_v26, %v18351_v1  ;;  %v8137_v11 = vcombine.high %v8121_v43, %v8121_v43  ;;  %v8698_v6 = vrot.slane %v8121_v43, %v18351_v1 }
 0x4c2   :  { %v17265_v28 = vmax.f32 %v9046_v36, %v9047_v57  ;;  %v8660_v16 = vrot.slane %v8653_v10, %v18351_v1  ;;  %v8667_v41 = vrot.slane %v8128_v54, %v18351_v1  ;;  %v11391_v60 = vcombine.high %v8114_v56, %v8128_v54 }
 0x4c3   :  { %v8139_v31 = vcombine.high %v8135_v55, %v8135_v55  ;;  %v8715_v34 = vcombine.low %v8135_v55, %v8137_v11  ;;  %v8140_v47 = vcombine.low %v7774_v27, %v7775_v37  ;;  %v8141_v45 = vcombine.high %v7774_v27, %v7775_v37 }
 0x4c4   :  { %v8668_v9 = vcombine.low %v8660_v16, %v8667_v41  ;;  %v8669_v15 = vcombine.high %v8660_v16, %v8667_v41  ;;  %v8691_v25 = vrot.slane %v11391_v60, %v18351_v1  ;;  %v8858_v10 = vrot.slane %v17254_v24, 2 }
 0x4c5   :  { %v8722_v26 = vrot.slane %v8715_v34, %v18351_v1  ;;  %v8729_v36 = vrot.slane %v8139_v31, %v18351_v1  ;;  %v8148_v57 = vrot.slane %v8140_v47, %v18351_v1  ;;  %v8155_v16 = vrot.slane %v8141_v45, %v18351_v1 }
 0x4c6   :  { %v8676_v56 = vrot.slane %v8668_v9, %v18351_v1  ;;  %v8683_v54 = vrot.slane %v8669_v15, %v18351_v1  ;;  %v8699_v43 = vcombine.low %v8691_v25, %v8698_v6  ;;  %v8700_v55 = vcombine.high %v8691_v25, %v8698_v6 }
 0x4c7   :  { %v8730_v11 = vcombine.low %v8722_v26, %v8729_v36  ;;  %v8731_v23 = vcombine.high %v8722_v26, %v8729_v36  ;;  %v8156_v41 = vcombine.high %v8148_v57, %v8148_v57  ;;  %v8157_v45 = vcombine.high %v8155_v16, %v8155_v16 }
 0x4c8   :  { %v8707_v27 = vrot.slane %v8699_v43, %v18351_v1  ;;  %v8714_v37 = vrot.slane %v8700_v55, %v18351_v1  ;;  %v9058_v60 = vsel %vm1122_vm4, %v8676_v56, -inf  ;;  %v17282_v31 = vsel %vm1122_vm4, %v8683_v54, -inf }
 0x4c9   :  { %v8738_v34 = vrot.slane %v8730_v11, %v18351_v1  ;;  %v17286_v15 = vrot.slane %v8731_v23, %v18351_v1  ;;  %v9059_v6 = vrot.slane %v9058_v60, 4  ;;  %v8164_v26 = vrot.slane %v8148_v57, %v18351_v1 }
 0x4ca   :  { %v9072_v9 = vsel %vm1122_vm4, %v8707_v27, -inf  ;;  %v9079_v25 = vsel %vm1122_vm4, %v8714_v37, -inf  ;;  %v8171_v55 = vrot.slane %v8155_v16, %v18351_v1  ;;  %v8178_v11 = vrot.slane %v8156_v41, %v18351_v1 }
 0x4cb   :  { %v17292_v36 = vmax.f32 %v9058_v60, %v9059_v6  ;;  %v9073_v56 = vrot.slane %v9072_v9, 4  ;;  %v9080_v54 = vrot.slane %v9079_v25, 4  ;;  %v17295_v43 = vsel %vm1122_vm4, %v8738_v34, -inf }
 0x4cc   :  { %v8185_v27 = vrot.slane %v8157_v45, %v18351_v1  ;;  %v8186_v57 = vcombine.high %v8164_v26, %v8164_v26  ;;  %v8187_v60 = vcombine.high %v8178_v11, %v8178_v11  ;;  %v8746_v6 = vcombine.low %v8164_v26, %v8178_v11 }
 0x4cd   :  { %v9074_v47 = vmax.f32 %v9072_v9, %v9073_v56  ;;  %v17302_v63 = vmax.f32 %v9079_v25, %v9080_v54  ;;  %v8859_v34 = vmax.f32 %v17254_v24, %v8858_v10  ;;  %v8871_v16 = vmax.f32 %v17054_v62, %v8870_v22 }
 0x4ce   :  { %v8791_v13 = vrot.slane %v8185_v27, %v18351_v1  ;;  %v8760_v23 = vrot.slane %v8186_v57, %v18351_v1  ;;  %v8885_v41 = vmax.f32 %v17065_v51, %v8884_v52  ;;  %v8753_v9 = vrot.slane %v8746_v6, %v18351_v1 }
 0x4cf   :  { %v9075_v0 = vrot.slane %v9074_v47, 2  ;;  %v8777_v25 = vcombine.low %v8187_v60, %v8171_v55  ;;  %v8860_v45 = vrot.slane %v8859_v34, 1  ;;  %v8997_v26 = vmax.f32 %v17204_v3, %v8996_v35 }
 0x4d0   :  { %v8872_v10 = vrot.slane %v8871_v16, 2  ;;  %v8886_v56 = vrot.slane %v8885_v41, 2  ;;  %v9011_v62 = vmax.f32 %v17212_v33, %v9010_v12  ;;  %v8761_v22 = vcombine.low %v8753_v9, %v8760_v23 }
 0x4d1   :  { %v17317_v24 = vmax.f32 %v9074_v47, %v9075_v0  ;;  %v8762_v54 = vcombine.high %v8753_v9, %v8760_v23  ;;  %v8784_v51 = vrot.slane %v8777_v25, %v18351_v1  ;;  %v8861_v52 = vmax.f32 %v8859_v34, %v8860_v45 }
 0x4d2   :  { %v8873_v11 = vmax.f32 %v8871_v16, %v8872_v10  ;;  %v8887_v55 = vmax.f32 %v8885_v41, %v8886_v56  ;;  %v8998_v27 = vrot.slane %v8997_v26, 2  ;;  %v9012_v57 = vrot.slane %v9011_v62, 2 }
 0x4d3   :  { %v8769_v60 = vrot.slane %v8761_v22, %v18351_v1  ;;  %v8776_v0 = vrot.slane %v8762_v54, %v18351_v1  ;;  %v8792_v3 = vcombine.low %v8784_v51, %v8791_v13  ;;  %v8793_v35 = vcombine.high %v8784_v51, %v8791_v13 }
 0x4d4   :  { %v8874_v47 = vrot.slane %v8873_v11, 1  ;;  %v8888_v6 = vrot.slane %v8887_v55, 1  ;;  %v8999_v37 = vmax.f32 %v8997_v26, %v8998_v27  ;;  %v9013_v40 = vmax.f32 %v9011_v62, %v9012_v57 }
 0x4d5   :  { %v8800_v33 = vrot.slane %v8792_v3, %v18351_v1  ;;  %v17327_v12 = vrot.slane %v8793_v35, %v18351_v1  ;;  %v9100_v23 = vsel %vm1122_vm4, %v8769_v60, -inf  ;;  %v17331_v34 = vsel %vm1122_vm4, %v8776_v0, -inf }
 0x4d6   :  { %v9101_v16 = vrot.slane %v9100_v23, 4  ;;  %v9108_v41 = vrot.slane %v17331_v34, 4  ;;  %v8875_v9 = vmax.f32 %v8873_v11, %v8874_v47  ;;  %v17334_v25 = vmax.f32 %v8887_v55, %v8888_v6 }
 0x4d7   :  { %v9114_v13 = vsel %vm1122_vm4, %v8800_v33, -inf  ;;  %v9000_v45 = vrot.slane %v8999_v37, 1  ;;  %v9014_v26 = vrot.slane %v9013_v40, 1  ;;  %v9025_v1 = vmax.f32 %v17228_v30, %v9024_v61 }
 0x4d8   :  { %v17340_v10 = vmax.f32 %v9100_v23, %v9101_v16  ;;  %v9115_v56 = vrot.slane %v9114_v13, 4  ;;  %v9130_v62 = vmax.f32 %v8861_v52, %v8875_v9  ;;  %v8854_v22 = vmax.f32 %v17069_v29, %v8853_v2 }
 0x4d9   :  { %v9001_v54 = vmax.f32 %v8999_v37, %v9000_v45  ;;  %v9015_v51 = vmax.f32 %v9013_v40, %v9014_v26  ;;  %v9026_v11 = vrot.slane %v9025_v1, 2  ;;  %v18353_v55 = vrot.slane %v17078_v46, 1 }
 0x4da   :  { %v9103_v57 = vrot.slane %v17340_v10, 2  ;;  %v17349_v60 = vmax.f32 %v9114_v13, %v9115_v56  ;;  %v9131_v30 = vmax.f32 %v9130_v62, %v17334_v25  ;;  %v18354_v61 = vrot.slane %v17084_v39, 1 }
 0x4db   :  { %v8868_v27 = vmax.f32 %v17078_v46, %v18353_v55  ;;  %v9027_v0 = vmax.f32 %v9025_v1, %v9026_v11  ;;  %v9134_v3 = vmax.f32 %v9001_v54, %v9015_v51  ;;  %v18355_v29 = vrot.slane %v17224_v38, 1 }
 0x4dc   :  { %v8882_v52 = vmax.f32 %v17084_v39, %v18354_v61  ;;  %v18356_v40 = vrot.slane %v17231_v21, 1  ;;  %v18357_v37 = vrot.slane %v17257_v17, 1  ;;  %v8897_v6 = vsel %vm1122_vm4, %v17060_v20, -inf }
 0x4dd   :  { %v8994_v2 = vmax.f32 %v17224_v38, %v18355_v29  ;;  %v9128_v47 = vmax.f32 %v8854_v22, %v8868_v27  ;;  %v8911_v39 = vsel %vm1122_vm4, %v17073_v44, -inf  ;;  %v9028_v33 = vrot.slane %v9027_v0, 1 }
 0x4de   :  { %v9008_v46 = vmax.f32 %v17231_v21, %v18356_v40  ;;  %v9022_v35 = vmax.f32 %v17257_v17, %v18357_v37  ;;  %v8898_v16 = vrot.slane %v8897_v6, 4  ;;  %v8912_v9 = vrot.slane %v8911_v39, 4 }
 0x4df   :  { %v9129_v38 = vmax.f32 %v9128_v47, %v8882_v52  ;;  %v9037_v13 = vsel %vm1122_vm4, %v17235_v59, -inf  ;;  %v9051_v21 = vsel %vm1122_vm4, %v17239_v14, -inf  ;;  %v8895_v17 = vrot.slane %v17089_v7, 1 }
 0x4e0   :  { %v9132_v23 = vmax.f32 %v8994_v2, %v9008_v46  ;;  %v17373_v45 = vmax.f32 %v9027_v0, %v9028_v33  ;;  %v8899_v20 = vmax.f32 %v8897_v6, %v8898_v16  ;;  %v8913_v1 = vmax.f32 %v8911_v39, %v8912_v9  ;;  %v12013_v46 = vld [vmem:[#allocation5 + $0x4e0] ss:$16 sps:$4 sm:$0xff]   ;;  %v12021_v16 = vld [vmem:[#allocation5 + $0x4c4] ss:$16 sps:$4 sm:$0xff]  }
 0x4e1   :  { %v9038_v56 = vrot.slane %v9037_v13, 4  ;;  %v9052_v44 = vrot.slane %v9051_v21, 4  ;;  %v8896_v62 = vmax.f32 %v17089_v7, %v8895_v17  ;;  %v8909_v22 = vrot.slane %v17105_v8, 1 }
 0x4e2   :  { %v9133_v26 = vmax.f32 %v9132_v23, %v9022_v35  ;;  %v9135_v54 = vmax.f32 %v9134_v3, %v17373_v45  ;;  %v8900_v51 = vrot.slane %v8899_v20, 2  ;;  %v8914_v11 = vrot.slane %v8913_v1, 2 }
 0x4e3   :  { %v9039_v55 = vmax.f32 %v9037_v13, %v9038_v56  ;;  %v9053_v27 = vmax.f32 %v9051_v21, %v9052_v44  ;;  %v8910_v61 = vmax.f32 %v17105_v8, %v8909_v22  ;;  %v9035_v7 = vrot.slane %v17262_v50, 1 }
 0x4e4   :  { %v9164_v59 = vsel %vm5946_vm7, %v9133_v26, %v9129_v38  ;;  %v9165_v0 = vsel %vm5946_vm7, %v9135_v54, %v9131_v30  ;;  %v8901_v29 = vmax.f32 %v8899_v20, %v8900_v51  ;;  %v8915_v2 = vmax.f32 %v8913_v1, %v8914_v11  ;;  %v12019_v1 = vld [vmem:[#allocation5 + $0x4c0] ss:$16 sps:$4 sm:$0xff]  }
 0x4e5   :  { %v17379_v14 = vpack.c.bf16 %v9164_v59, %v9164_v59  ;;  %v17384_v40 = vpack.c.bf16 %v9165_v0, %v9165_v0  ;;  %v9040_v3 = vrot.slane %v9039_v55, 2  ;;  %v9054_v37 = vrot.slane %v9053_v27, 2  ;;  %v12027_v59 = vld [vmem:[#allocation5 + $0x4a4] ss:$16 sps:$4 sm:$0xff]  }
 0x4e6   :  { %v9049_v47 = vrot.slane %v17265_v28, 1  ;;  %v8902_v6 = vrot.slane %v8901_v29, 1  ;;  %v8916_v39 = vrot.slane %v8915_v2, 1  ;;  %v9036_v33 = vmax.f32 %v17262_v50, %v9035_v7 }
 0x4e7   :  { %v9136_v23 = vmax.f32 %v8882_v52, %v8896_v62  ;;  %10785 = vmatprep.mubr.bf16.mxu1 %v17384_v40  ;;  %v9041_v8 = vmax.f32 %v9039_v55, %v9040_v3  ;;  %v9055_v30 = vmax.f32 %v9053_v27, %v9054_v37  ;;  %v18358_v38 = vrot.slane %v17130_v58, 4 }
 0x4e8   :  { %v9050_v9 = vmax.f32 %v17265_v28, %v9049_v47  ;;  %10786 = vmatmul.mubr.bf16.vlgmr.msra.gmra.mxu1 %v17379_v14  ;;  %v8903_v21 = vmax.f32 %v8901_v29, %v8902_v6  ;;  %v8917_v17 = vmax.f32 %v8915_v2, %v8916_v39  ;;  %v9140_v20 = vmax.f32 %v9022_v35, %v9036_v33  ;;  %v12033_v47 = vld [vmem:[#allocation5 + $0x484] ss:$16 sps:$4 sm:$0xff]  }
 0x4e9   :  { %v8927_v13 = vmax.f32 %v17130_v58, %v18358_v38  ;;  %v9137_v26 = vmax.f32 %v9136_v23, %v8910_v61  ;;  %10834 = vmatpush1.bf16.msra.mxu1 %v12013_v46  ;;  %v9042_v50 = vrot.slane %v9041_v8, 1  ;;  %v9056_v52 = vrot.slane %v9055_v30, 1  ;;  %v12025_v46 = vld [vmem:[#allocation5 + $0x4a0] ss:$16 sps:$4 sm:$0xff]  }
 0x4ea   :  { %v8942_v44 = vrot.slane %v17149_v5, 2  ;;  %v9138_v62 = vmax.f32 %v17334_v25, %v8903_v21  ;;  %v9141_v28 = vmax.f32 %v9140_v20, %v9050_v9  ;;  %10835 = vmatprep.subr.bf16.mxu1 %v12021_v16  ;;  %v8953_v58 = vsel %vm1122_vm4, %v17134_v32, -inf  ;;  %v12016_v20 = vld [vmem:[#allocation5 + $0x6e0] ss:$16 sps:$4 sm:$0xff]  }
 0x4eb   :  { %v8928_v56 = vrot.slane %v8927_v13, 2  ;;  %v18359_v22 = vrot.slane %v17282_v31, 4  ;;  %v9043_v35 = vmax.f32 %v9041_v8, %v9042_v50  ;;  %v9057_v51 = vmax.f32 %v9055_v30, %v9056_v52 }
 0x4ec   :  { %v8943_v55 = vmax.f32 %v17149_v5, %v8942_v44  ;;  %v9139_v27 = vmax.f32 %v9138_v62, %v8917_v17  ;;  %v9172_v61 = vsel %vm5946_vm7, %v9141_v28, %v9137_v26  ;;  %v8954_v0 = vrot.slane %v8953_v58, 4  ;;  %v12031_v17 = vld [vmem:[#allocation5 + $0x480] ss:$16 sps:$4 sm:$0xff]   ;;  %v12024_v44 = vld [vmem:[#allocation5 + $0x6c4] ss:$16 sps:$4 sm:$0xff]  }
 0x4ed   :  { %v9067_v54 = vmax.f32 %v17282_v31, %v18359_v22  ;;  %v8929_v11 = vmax.f32 %v8927_v13, %v8928_v56  ;;  %v9142_v29 = vmax.f32 %v17373_v45, %v9043_v35  ;;  %v17404_v2 = vpack.c.bf16 %v9172_v61, %v9172_v61  ;;  %10836 = vmatpush1.bf16.msra.mxu1 %v12019_v1  ;;  %v12022_v61 = vld [vmem:[#allocation5 + $0x6c0] ss:$16 sps:$4 sm:$0xff]  }
 0x4ee   :  { %v8944_v7 = vrot.slane %v8943_v55, 1  ;;  %v8955_v31 = vmax.f32 %v8953_v58, %v8954_v0  ;;  %v9082_v37 = vrot.slane %v17302_v63, 2  ;;  %v9093_v5 = vsel %vm1122_vm4, %v17286_v15, -inf  ;;  %10837 = vmatprep.subr.bf16.mxu1 %v12027_v59 }
 0x4ef   :  { %v9068_v25 = vrot.slane %v9067_v54, 2  ;;  %v8930_v32 = vrot.slane %v8929_v11, 1  ;;  %v9143_v6 = vmax.f32 %v9142_v29, %v9057_v51  ;;  %v9094_v23 = vrot.slane %v9093_v5, 4 }
 0x4f0   :  { %v8945_v33 = vmax.f32 %v8943_v55, %v8944_v7  ;;  %v8956_v45 = vrot.slane %v8955_v31, 2  ;;  %v9083_v8 = vmax.f32 %v17302_v63, %v9082_v37  ;;  %v18360_v30 = vrot.slane %v17169_v42, 4  ;;  %v12039_v63 = vld [vmem:[#allocation5 + $0x464] ss:$16 sps:$4 sm:$0xff]  }
 0x4f1   :  { %v9069_v3 = vmax.f32 %v9067_v54, %v9068_v25  ;;  %v8931_v39 = vmax.f32 %v8929_v11, %v8930_v32  ;;  %v9173_v38 = vsel %vm5946_vm7, %v9143_v6, %v9139_v27  ;;  %v9095_v13 = vmax.f32 %v9093_v5, %v9094_v23  ;;  %10838 = vmatpush1.bf16.msra.mxu1 %v12025_v46  ;;  %v12037_v27 = vld [vmem:[#allocation5 + $0x460] ss:$16 sps:$4 sm:$0xff]   ;;  %v12045_v25 = vld [vmem:[#allocation5 + $0x444] ss:$16 sps:$4 sm:$0xff]  }
 0x4f2   :  { %v8969_v9 = vmax.f32 %v17169_v42, %v18360_v30  ;;  %v8981_v15 = vsel %vm1122_vm4, %v17165_v19, -inf  ;;  %v17416_v26 = vpack.c.bf16 %v9173_v38, %v9173_v38  ;;  %v8957_v50 = vmax.f32 %v8955_v31, %v8956_v45  ;;  %10839 = vmatprep.subr.bf16.mxu1 %v12033_v47  ;;  %v12030_v32 = vld [vmem:[#allocation5 + $0x6a4] ss:$16 sps:$4 sm:$0xff]   ;;  %v12043_v23 = vld [vmem:[#allocation5 + $0x440] ss:$16 sps:$4 sm:$0xff]  }
 0x4f3   :  { %v9070_v16 = vrot.slane %v9069_v3, 1  ;;  %v9146_v21 = vmax.f32 %v8931_v39, %v8945_v33  ;;  %v9084_v1 = vrot.slane %v9083_v8, 1  ;;  %v9096_v56 = vrot.slane %v9095_v13, 2  ;;  %v12028_v45 = vld [vmem:[#allocation5 + $0x6a0] ss:$16 sps:$4 sm:$0xff]  }
 0x4f4   :  { %v8970_v42 = vrot.slane %v8969_v9, 2  ;;  %v8982_v62 = vrot.slane %v8981_v15, 4  ;;  %v9109_v28 = vmax.f32 %v17331_v34, %v9108_v41  ;;  %10825 = vmatprep.mubr.bf16.mxu0 %v17416_v26  ;;  %v8958_v19 = vrot.slane %v8957_v50, 1 }
 0x4f5   :  { %v9071_v52 = vmax.f32 %v9069_v3, %v9070_v16  ;;  %v9085_v58 = vmax.f32 %v9083_v8, %v9084_v1  ;;  %v9121_v22 = vsel %vm1122_vm4, %v17327_v12, -inf  ;;  %v18361_v54 = vrot.slane %v17140_v53, 2  ;;  %10826 = vmatmul.mubr.bf16.vlgmr.msra.gmra.mxu0 %v17404_v2  ;;  %10840 = vmatpush1.bf16.msra.mxu1 %v12031_v17  ;;  %v12051_v8 = vld [vmem:[#allocation5 + $0x424] ss:$16 sps:$4 sm:$0xff]  }
 0x4f6   :  { %v9097_v35 = vmax.f32 %v9095_v13, %v9096_v56  ;;  %v8971_v51 = vmax.f32 %v8969_v9, %v8970_v42  ;;  %v8983_v11 = vmax.f32 %v8981_v15, %v8982_v62  ;;  %v9110_v55 = vrot.slane %v9109_v28, 2  ;;  %10874 = vmatpush1.bf16.msra.mxu0 %v12016_v20  ;;  %10841 = vmatprep.subr.bf16.mxu1 %v12039_v63 }
 0x4f7   :  { %v8922_v59 = vmax.f32 %v17140_v53, %v18361_v54  ;;  %v8959_v34 = vmax.f32 %v8957_v50, %v8958_v19  ;;  %v9150_v41 = vmax.f32 %v9071_v52, %v9085_v58  ;;  %v9122_v0 = vrot.slane %v9121_v22, 4  ;;  %10875 = vmatprep.subr.bf16.mxu0 %v12024_v44  ;;  %v12036_v52 = vld [vmem:[#allocation5 + $0x684] ss:$16 sps:$4 sm:$0xff]  }
 0x4f8   :  { %v9098_v29 = vrot.slane %v9097_v35, 1  ;;  %v8972_v53 = vrot.slane %v8971_v51, 1  ;;  %v8984_v7 = vrot.slane %v8983_v11, 2  ;;  %v9111_v46 = vmax.f32 %v9109_v28, %v9110_v55  ;;  %v12057_v54 = vld [vmem:[#allocation5 + $0x404] ss:$16 sps:$4 sm:$0xff]  }
 0x4f9   :  { %v8923_v12 = vrot.slane %v8922_v59, 1  ;;  %v9147_v31 = vmax.f32 %v9146_v21, %v8959_v34  ;;  %v9123_v3 = vmax.f32 %v9121_v22, %v9122_v0  ;;  %v8937_v5 = vrot.slane %v17160_v49, 1  ;;  %10842 = vmatpush1.bf16.msra.mxu1 %v12037_v27  ;;  %v12034_v22 = vld [vmem:[#allocation5 + $0x680] ss:$16 sps:$4 sm:$0xff]  }
 0x4fa   :  { %v9099_v47 = vmax.f32 %v9097_v35, %v9098_v29  ;;  %v8973_v6 = vmax.f32 %v8971_v51, %v8972_v53  ;;  %v8985_v39 = vmax.f32 %v8983_v11, %v8984_v7  ;;  %v9112_v33 = vrot.slane %v9111_v46, 1  ;;  %10876 = vmatpush1.bf16.msra.mxu0 %v12022_v61  ;;  %10843 = vmatprep.subr.bf16.mxu1 %v12045_v25  ;;  %v12042_v11 = vld [vmem:[#allocation5 + $0x664] ss:$16 sps:$4 sm:$0xff]  }
 0x4fb   :  { %v17428_v37 = vmax.f32 %v8922_v59, %v8923_v12  ;;  %v9124_v16 = vrot.slane %v9123_v3, 2  ;;  %v8938_v30 = vmax.f32 %v17160_v49, %v8937_v5  ;;  %v18362_v9 = vrot.slane %v17143_v4, 4  ;;  %10877 = vmatprep.subr.bf16.mxu0 %v12030_v32  ;;  %v12055_v12 = vld [vmem:[#allocation5 + $0x400] ss:$16 sps:$4 sm:$0xff]   ;;  %v12048_v5 = vld [vmem:[#allocation5 + $0x644] ss:$16 sps:$4 sm:$0xff]  }
 0x4fc   :  { %v18363_v13 = vrot.slane %v17292_v36, 2  ;;  %v9151_v15 = vmax.f32 %v9150_v41, %v9099_v47  ;;  %v8986_v17 = vrot.slane %v8985_v39, 1  ;;  %v9113_v20 = vmax.f32 %v9111_v46, %v9112_v33  ;;  %v12040_v46 = vld [vmem:[#allocation5 + $0x660] ss:$16 sps:$4 sm:$0xff]  }
 0x4fd   :  { %v8948_v38 = vmax.f32 %v17143_v4, %v18362_v9  ;;  %v9154_v50 = vmax.f32 %v8959_v34, %v8973_v6  ;;  %v9125_v1 = vmax.f32 %v9123_v3, %v9124_v16  ;;  %v9077_v44 = vrot.slane %v17317_v24, 1  ;;  %10844 = vmatpush1.bf16.msra.mxu1 %v12043_v23  ;;  %v12049_v4 = vld [vmem:[#allocation5 + $0x420] ss:$16 sps:$4 sm:$0xff]  }
 0x4fe   :  { %v9062_v21 = vmax.f32 %v17292_v36, %v18363_v13  ;;  %v9181_v49 = vsel %vm5946_vm7, %v9151_v15, %v9147_v31  ;;  %v8987_v42 = vmax.f32 %v8985_v39, %v8986_v17  ;;  %v9158_v62 = vmax.f32 %v9099_v47, %v9113_v20  ;;  %10878 = vmatpush1.bf16.msra.mxu0 %v12028_v45  ;;  %v12063_v31 = vld [vmem:[#allocation5 + $0x5e4] ss:$16 sps:$4 sm:$0xff]   ;;  %v12061_v16 = vld [vmem:[#allocation5 + $0x5e0] ss:$16 sps:$4 sm:$0xff]  }
 0x4ff   :  { %v8949_v63 = vrot.slane %v8948_v38, 2  ;;  %v18364_v28 = vrot.slane %v17295_v43, 4  ;;  %v17443_v19 = vpack.c.bf16 %v9181_v49, %v9181_v49  ;;  %v9126_v58 = vrot.slane %v9125_v1, 1  ;;  %10845 = vmatprep.subr.bf16.mxu1 %v12051_v8  ;;  %10879 = vmatprep.subr.bf16.mxu0 %v12036_v52  ;;  %v12067_v52 = vld [vmem:[#allocation5 + $0x5c0] ss:$16 sps:$4 sm:$0xff]  }
 0x500   :  { %v9063_v56 = vrot.slane %v9062_v21, 1  ;;  %v9155_v51 = vmax.f32 %v9154_v50, %v8987_v42  ;;  %v9078_v55 = vmax.f32 %v17317_v24, %v9077_v44  ;;  %v9144_v34 = vmax.f32 %v17428_v37, %v8938_v30  ;;  %v12075_v44 = vld [vmem:[#allocation5 + $0x5a4] ss:$16 sps:$4 sm:$0xff]  }
 0x501   :  { %v9088_v36 = vmax.f32 %v17295_v43, %v18364_v28  ;;  %v8950_v59 = vmax.f32 %v8948_v38, %v8949_v63  ;;  %10865 = vmatprep.mubr.bf16.mxu1 %v17443_v19  ;;  %v9127_v43 = vmax.f32 %v9125_v1, %v9126_v58  ;;  %v18365_v61 = vrot.slane %v17176_v48, 2  ;;  %10846 = vmatpush1.bf16.msra.mxu1 %v12049_v4  ;;  %v12069_v38 = vld [vmem:[#allocation5 + $0x5c4] ss:$16 sps:$4 sm:$0xff]   ;;  %v12058_v4 = vld [vmem:[#allocation5 + $0x600] ss:$16 sps:$4 sm:$0xff]  }
 0x502   :  { %v9064_v35 = vmax.f32 %v9062_v21, %v9063_v56  ;;  %v8977_v25 = vrot.slane %v17181_v18, 2  ;;  %v9104_v24 = vmax.f32 %v17340_v10, %v9103_v57  ;;  %v9117_v53 = vrot.slane %v17349_v60, 2  ;;  %10880 = vmatpush1.bf16.msra.mxu0 %v12034_v22  ;;  %10847 = vmatprep.subr.bf16.mxu1 %v12057_v54  ;;  %v12052_v56 = vld [vmem:[#allocation5 + $0x620] ss:$16 sps:$4 sm:$0xff]   ;;  %v12060_v49 = vld [vmem:[#allocation5 + $0x604] ss:$16 sps:$4 sm:$0xff]  }
 0x503   :  { %v9089_v27 = vrot.slane %v9088_v36, 2  ;;  %v8951_v41 = vrot.slane %v8950_v59, 1  ;;  %v8964_v0 = vmax.f32 %v17176_v48, %v18365_v61  ;;  %v9159_v7 = vmax.f32 %v9158_v62, %v9127_v43  ;;  %10881 = vmatprep.subr.bf16.mxu0 %v12042_v11  ;;  %v12073_v62 = vld [vmem:[#allocation5 + $0x5a0] ss:$16 sps:$4 sm:$0xff]   ;;  %v12081_v28 = vld [vmem:[#allocation5 + $0x584] ss:$16 sps:$4 sm:$0xff]  }
 0x504   :  { %v9148_v32 = vmax.f32 %v9064_v35, %v9078_v55  ;;  %v8978_v48 = vmax.f32 %v17181_v18, %v8977_v25  ;;  %v9105_v6 = vrot.slane %v9104_v24, 1  ;;  %v9118_v39 = vmax.f32 %v17349_v60, %v9117_v53  ;;  %v12046_v18 = vld [vmem:[#allocation5 + $0x640] ss:$16 sps:$4 sm:$0xff]   ;;  %v12054_v60 = vld [vmem:[#allocation5 + $0x624] ss:$16 sps:$4 sm:$0xff]  }
 0x505   :  { %v9090_v29 = vmax.f32 %v9088_v36, %v9089_v27  ;;  %v8952_v3 = vmax.f32 %v8950_v59, %v8951_v41  ;;  %v8965_v37 = vrot.slane %v8964_v0, 1  ;;  %v9189_v33 = vsel %vm5946_vm7, %v9159_v7, %v9155_v51  ;;  %10848 = vmatpush1.bf16.msra.mxu1 %v12055_v12  ;;  %v12066_v36 = vld [vmem:[#allocation5 + $0x7e4] ss:$16 sps:$4 sm:$0xff]   ;;  %v12079_v58 = vld [vmem:[#allocation5 + $0x580] ss:$16 sps:$4 sm:$0xff]  }
 0x506   :  { %v8979_v23 = vrot.slane %v8978_v48, 1  ;;  %v17459_v45 = vpack.c.bf16 %v9189_v33, %v9189_v33  ;;  %v9106_v30 = vmax.f32 %v9104_v24, %v9105_v6  ;;  %v9119_v9 = vrot.slane %v9118_v39, 1  ;;  %10882 = vmatpush1.bf16.msra.mxu0 %v12040_v46  ;;  %10849 = vmatprep.subr.bf16.mxu1 %v12063_v31  ;;  %v12064_v22 = vld [vmem:[#allocation5 + $0x7e0] ss:$16 sps:$4 sm:$0xff]   ;;  %v12087_v54 = vld [vmem:[#allocation5 + $0x564] ss:$16 sps:$4 sm:$0xff]  }
 0x507   :  { %v9091_v47 = vrot.slane %v9090_v29, 1  ;;  %v9145_v10 = vmax.f32 %v9144_v34, %v8952_v3  ;;  %v8966_v57 = vmax.f32 %v8964_v0, %v8965_v37  ;;  %10883 = vmatprep.subr.bf16.mxu0 %v12048_v5  ;;  %v12072_v59 = vld [vmem:[#allocation5 + $0x7c4] ss:$16 sps:$4 sm:$0xff]   ;;  %v12085_v35 = vld [vmem:[#allocation5 + $0x560] ss:$16 sps:$4 sm:$0xff]  }
 0x508   :  { %v8980_v13 = vmax.f32 %v8978_v48, %v8979_v23  ;;  %10905 = vmatprep.mubr.bf16.mxu0 %v17459_v45  ;;  %v9120_v17 = vmax.f32 %v9118_v39, %v9119_v9  ;;  %v12070_v51 = vld [vmem:[#allocation5 + $0x7c0] ss:$16 sps:$4 sm:$0xff]   ;;  %v12093_v11 = vld [vmem:[#allocation5 + $0x544] ss:$16 sps:$4 sm:$0xff]   ;;  %v12111_v24 = vld [vmem:[#allocation5 + $0xec] ss:$16 sps:$4 sm:$0xff]  }
 0x509   :  { %v9092_v8 = vmax.f32 %v9090_v29, %v9091_v47  ;;  %v9152_v21 = vmax.f32 %v8952_v3, %v8966_v57  ;;  %10850 = vmatpush2.bf16.msra.mxu1 %v12061_v16  ;;  %v12078_v55 = vld [vmem:[#allocation5 + $0x7a4] ss:$16 sps:$4 sm:$0xff]   ;;  %v12091_v27 = vld [vmem:[#allocation5 + $0x540] ss:$16 sps:$4 sm:$0xff]   ;;  %v12109_v7 = vld [vmem:[#allocation5 + $0xe8] ss:$16 sps:$4 sm:$0xff]  }
 0x50a   :  { %10884 = vmatpush1.bf16.msra.mxu0 %v12046_v18  ;;  %10851 = vmatprep.subr.bf16.mxu1 %v12069_v38  ;;  %v12076_v34 = vld [vmem:[#allocation5 + $0x7a0] ss:$16 sps:$4 sm:$0xff]   ;;  %v12099_v43 = vld [vmem:[#allocation5 + $0x524] ss:$16 sps:$4 sm:$0xff]   ;;  %v12117_v3 = vld [vmem:[#allocation5 + $0xcc] ss:$16 sps:$4 sm:$0xff]  }
 0x50b   :  { %v9149_v15 = vmax.f32 %v9148_v32, %v9092_v8  ;;  %v9156_v20 = vmax.f32 %v9092_v8, %v9106_v30  ;;  %v9153_v50 = vmax.f32 %v9152_v21, %v8980_v13  ;;  %10885 = vmatprep.subr.bf16.mxu0 %v12054_v60  ;;  %v12084_v41 = vld [vmem:[#allocation5 + $0x784] ss:$16 sps:$4 sm:$0xff]   ;;  %v12097_v61 = vld [vmem:[#allocation5 + $0x520] ss:$16 sps:$4 sm:$0xff]   ;;  %v12115_v48 = vld [vmem:[#allocation5 + $0xc8] ss:$16 sps:$4 sm:$0xff]  }
 0x50c   :  { %v12082_v0 = vld [vmem:[#allocation5 + $0x780] ss:$16 sps:$4 sm:$0xff]   ;;  %v12105_v25 = vld [vmem:[#allocation5 + $0x504] ss:$16 sps:$4 sm:$0xff]   ;;  %v12123_v47 = vld [vmem:[#allocation5 + $0xac] ss:$16 sps:$4 sm:$0xff]  }
 0x50d   :  { %v9180_v1 = vsel %vm5946_vm7, %v9149_v15, %v9145_v10  ;;  %v9157_v63 = vmax.f32 %v9156_v20, %v9120_v17  ;;  %10852 = vmatpush2.bf16.msra.mxu1 %v12067_v52  ;;  %v12090_v12 = vld [vmem:[#allocation5 + $0x764] ss:$16 sps:$4 sm:$0xff]   ;;  %v12103_v29 = vld [vmem:[#allocation5 + $0x500] ss:$16 sps:$4 sm:$0xff]   ;;  %v12121_v39 = vld [vmem:[#allocation5 + $0xa8] ss:$16 sps:$4 sm:$0xff]  }
 0x50e   :  { %10886 = vmatpush1.bf16.msra.mxu0 %v12052_v56  ;;  %10853 = vmatprep.subr.bf16.mxu1 %v12075_v44  ;;  %v12088_v32 = vld [vmem:[#allocation5 + $0x760] ss:$16 sps:$4 sm:$0xff]   ;;  %v12096_v53 = vld [vmem:[#allocation5 + $0x744] ss:$16 sps:$4 sm:$0xff]   ;;  %v17466_v31 = vpack.c.bf16 %v9180_v1, %v9180_v1  ;;  %v12129_v10 = vld [vmem:[#allocation5 + $0x8c] ss:$16 sps:$4 sm:$0xff]  }
 0x50f   :  { %v17464_v42 = vsel %vm5946_vm7, %v9157_v63, %v9153_v50  ;;  %10887 = vmatprep.subr.bf16.mxu0 %v12060_v49  ;;  %v12094_v46 = vld [vmem:[#allocation5 + $0x740] ss:$16 sps:$4 sm:$0xff]   ;;  %v12102_v37 = vld [vmem:[#allocation5 + $0x724] ss:$16 sps:$4 sm:$0xff]   ;;  %v12114_v57 = vld [vmem:[#allocation5 + $0x2ec] ss:$16 sps:$4 sm:$0xff]  }
 0x510   :  { %v12100_v5 = vld [vmem:[#allocation5 + $0x720] ss:$16 sps:$4 sm:$0xff]   ;;  %v12108_v6 = vld [vmem:[#allocation5 + $0x704] ss:$16 sps:$4 sm:$0xff]   ;;  %v12127_v23 = vld [vmem:[#allocation5 + $0x88] ss:$16 sps:$4 sm:$0xff]  }
 0x511   :  { %10854 = vmatpush2.bf16.msra.mxu1 %v12073_v62  ;;  %v12106_v33 = vld [vmem:[#allocation5 + $0x700] ss:$16 sps:$4 sm:$0xff]   ;;  %v12112_v16 = vld [vmem:[#allocation5 + $0x2e8] ss:$16 sps:$4 sm:$0xff]   ;;  %v12120_v8 = vld [vmem:[#allocation5 + $0x2cc] ss:$16 sps:$4 sm:$0xff]  }
 0x512   :  { %10888 = vmatpush1.bf16.msra.mxu0 %v12058_v4  ;;  %10855 = vmatprep.subr.bf16.mxu1 %v12081_v28  ;;  %v12135_v30 = vld [vmem:[#allocation5 + $0x6c] ss:$16 sps:$4 sm:$0xff]   ;;  %v12133_v9 = vld [vmem:[#allocation5 + $0x68] ss:$16 sps:$4 sm:$0xff]  }
 0x513   :  { %10889 = vmatprep.subr.bf16.mxu0 %v12066_v36  ;;  %v12118_v18 = vld [vmem:[#allocation5 + $0x2c8] ss:$16 sps:$4 sm:$0xff]   ;;  %v12141_v38 = vld [vmem:[#allocation5 + $0x4c] ss:$16 sps:$4 sm:$0xff]  }
 0x514   :  { %v12126_v13 = vld [vmem:[#allocation5 + $0x2ac] ss:$16 sps:$4 sm:$0xff]   ;;  %v12139_v21 = vld [vmem:[#allocation5 + $0x48] ss:$16 sps:$4 sm:$0xff]  }
 0x515   :  { %10856 = vmatpush2.bf16.msra.mxu1 %v12079_v58  ;;  %v12124_v60 = vld [vmem:[#allocation5 + $0x2a8] ss:$16 sps:$4 sm:$0xff]   ;;  %v12147_v15 = vld [vmem:[#allocation5 + $0x2c] ss:$16 sps:$4 sm:$0xff]  }
 0x516   :  { %10890 = vmatpush2.bf16.msra.mxu0 %v12064_v22  ;;  %10857 = vmatprep.subr.bf16.mxu1 %v12087_v54  ;;  %v12132_v17 = vld [vmem:[#allocation5 + $0x28c] ss:$16 sps:$4 sm:$0xff]   ;;  %v12145_v20 = vld [vmem:[#allocation5 + $0x28] ss:$16 sps:$4 sm:$0xff]  }
 0x517   :  { %10891 = vmatprep.subr.bf16.mxu0 %v12072_v59  ;;  %v12130_v50 = vld [vmem:[#allocation5 + $0x288] ss:$16 sps:$4 sm:$0xff]   ;;  %v12153_v52 = vld [vmem:[#allocation5 + $0xc] ss:$16 sps:$4 sm:$0xff]  }
 0x518   :  { %v12151_v1 = vld [vmem:[#allocation5 + $0x8] ss:$16 sps:$4 sm:$0xff]   ;;  %v12159_v56 = vld [vmem:[#allocation5 + $0x1ec] ss:$16 sps:$4 sm:$0xff]  }
 0x519   :  { %10858 = vmatpush2.bf16.msra.mxu1 %v12085_v35  ;;  %v12136_v63 = vld [vmem:[#allocation5 + $0x268] ss:$16 sps:$4 sm:$0xff]   ;;  %v12144_v44 = vld [vmem:[#allocation5 + $0x24c] ss:$16 sps:$4 sm:$0xff]  }
 0x51a   :  { %10892 = vmatpush2.bf16.msra.mxu0 %v12070_v51  ;;  %10859 = vmatprep.subr.bf16.mxu1 %v12093_v11  ;;  %v12157_v49 = vld [vmem:[#allocation5 + $0x1e8] ss:$16 sps:$4 sm:$0xff]   ;;  %v12165_v62 = vld [vmem:[#allocation5 + $0x1cc] ss:$16 sps:$4 sm:$0xff]  }
 0x51b   :  { %10893 = vmatprep.subr.bf16.mxu0 %v12078_v55  ;;  %v12150_v4 = vld [vmem:[#allocation5 + $0x22c] ss:$16 sps:$4 sm:$0xff]   ;;  %v12163_v28 = vld [vmem:[#allocation5 + $0x1c8] ss:$16 sps:$4 sm:$0xff]  }
 0x51c   :  { %v12148_v36 = vld [vmem:[#allocation5 + $0x228] ss:$16 sps:$4 sm:$0xff]   ;;  %v12171_v58 = vld [vmem:[#allocation5 + $0x1ac] ss:$16 sps:$4 sm:$0xff]  }
 0x51d   :  { %10860 = vmatpush2.bf16.msra.mxu1 %v12091_v27  ;;  %v12156_v22 = vld [vmem:[#allocation5 + $0x20c] ss:$16 sps:$4 sm:$0xff]   ;;  %v12169_v54 = vld [vmem:[#allocation5 + $0x1a8] ss:$16 sps:$4 sm:$0xff]  }
 0x51e   :  { %10894 = vmatpush2.bf16.msra.mxu0 %v12076_v34  ;;  %10861 = vmatprep.subr.bf16.mxu1 %v12099_v43  ;;  %v12154_v59 = vld [vmem:[#allocation5 + $0x208] ss:$16 sps:$4 sm:$0xff]   ;;  %v12177_v35 = vld [vmem:[#allocation5 + $0x18c] ss:$16 sps:$4 sm:$0xff]  }
 0x51f   :  { %10895 = vmatprep.subr.bf16.mxu0 %v12084_v41  ;;  %v12162_v51 = vld [vmem:[#allocation5 + $0x3ec] ss:$16 sps:$4 sm:$0xff]   ;;  %v12175_v11 = vld [vmem:[#allocation5 + $0x188] ss:$16 sps:$4 sm:$0xff]  }
 0x520   :  { %v12160_v55 = vld [vmem:[#allocation5 + $0x3e8] ss:$16 sps:$4 sm:$0xff]   ;;  %v12183_v27 = vld [vmem:[#allocation5 + $0x16c] ss:$16 sps:$4 sm:$0xff]  }
 0x521   :  { %10862 = vmatpush2.bf16.msra.mxu1 %v12097_v61  ;;  %v12168_v34 = vld [vmem:[#allocation5 + $0x3cc] ss:$16 sps:$4 sm:$0xff]   ;;  %v12181_v43 = vld [vmem:[#allocation5 + $0x168] ss:$16 sps:$4 sm:$0xff]  }
 0x522   :  { %10896 = vmatpush2.bf16.msra.mxu0 %v12082_v0  ;;  %10863 = vmatprep.subr.bf16.mxu1 %v12105_v25  ;;  %v12166_v41 = vld [vmem:[#allocation5 + $0x3c8] ss:$16 sps:$4 sm:$0xff]   ;;  %v12189_v61 = vld [vmem:[#allocation5 + $0x14c] ss:$16 sps:$4 sm:$0xff]  }
 0x523   :  { %10897 = vmatprep.subr.bf16.mxu0 %v12090_v12  ;;  %v12174_v0 = vld [vmem:[#allocation5 + $0x3ac] ss:$16 sps:$4 sm:$0xff]   ;;  %v12187_v25 = vld [vmem:[#allocation5 + $0x148] ss:$16 sps:$4 sm:$0xff]  }
 0x524   :  { %v12172_v12 = vld [vmem:[#allocation5 + $0x3a8] ss:$16 sps:$4 sm:$0xff]  }
 0x525   :  { %10864 = vmatpush2.bf16.msra.mxu1 %v12103_v29  ;;  %v12195_v29 = vld [vmem:[#allocation5 + $0x12c] ss:$16 sps:$4 sm:$0xff]  }
 0x526   :  { %10898 = vmatpush2.bf16.msra.mxu0 %v12088_v32  ;;  %10913 = vmatprep.subr.bf16.mxu1 %v12111_v24  ;;  %v12180_v32 = vld [vmem:[#allocation5 + $0x38c] ss:$16 sps:$4 sm:$0xff]   ;;  %v12193_v24 = vld [vmem:[#allocation5 + $0x128] ss:$16 sps:$4 sm:$0xff]  }
 0x527   :  { %10899 = vmatprep.subr.bf16.mxu0 %v12096_v53  ;;  %v12178_v53 = vld [vmem:[#allocation5 + $0x388] ss:$16 sps:$4 sm:$0xff]  }
 0x528   :  { %10866 = vmatmul.mubr.bf16.vlgmr.msra.gmra.mxu1 %v17466_v31 }
 0x529   :  { %10914 = vmatpush1.bf16.msra.mxu1 %v12109_v7  ;;  %10945 = vmatprep.mubr.bf16.mxu1 %v17384_v40  ;;  %v17472_v40 = vpack.c.bf16 %v17464_v42, %v17464_v42  ;;  %v12142_v42 = vld [vmem:[#allocation5 + $0x248] ss:$16 sps:$4 sm:$0xff]   ;;  %v12201_v7 = vld [vmem:[#allocation5 + $0x10c] ss:$16 sps:$4 sm:$0xff]  }
 0x52a   :  { %10900 = vmatpush2.bf16.msra.mxu0 %v12094_v46  ;;  %10915 = vmatprep.subr.bf16.mxu1 %v12117_v3  ;;  %v12186_v46 = vld [vmem:[#allocation5 + $0x36c] ss:$16 sps:$4 sm:$0xff]   ;;  %v12199_v3 = vld [vmem:[#allocation5 + $0x108] ss:$16 sps:$4 sm:$0xff]  }
 0x52b   :  { %10901 = vmatprep.subr.bf16.mxu0 %v12102_v37  ;;  %v12184_v37 = vld [vmem:[#allocation5 + $0x368] ss:$16 sps:$4 sm:$0xff]  }
 0x52d   :  { %10916 = vmatpush1.bf16.msra.mxu1 %v12115_v48  ;;  %v12207_v48 = vld [vmem:[#allocation5 + $0x4ec] ss:$16 sps:$4 sm:$0xff]  }
 0x52e   :  { %10902 = vmatpush2.bf16.msra.mxu0 %v12100_v5  ;;  %10917 = vmatprep.subr.bf16.mxu1 %v12123_v47  ;;  %v12192_v5 = vld [vmem:[#allocation5 + $0x34c] ss:$16 sps:$4 sm:$0xff]   ;;  %v12205_v47 = vld [vmem:[#allocation5 + $0x4e8] ss:$16 sps:$4 sm:$0xff]  }
 0x52f   :  { %10903 = vmatprep.subr.bf16.mxu0 %v12108_v6  ;;  %v12190_v6 = vld [vmem:[#allocation5 + $0x348] ss:$16 sps:$4 sm:$0xff]  }
 0x531   :  { %10918 = vmatpush1.bf16.msra.mxu1 %v12121_v39  ;;  %v12213_v39 = vld [vmem:[#allocation5 + $0x4cc] ss:$16 sps:$4 sm:$0xff]  }
 0x532   :  { %10904 = vmatpush2.bf16.msra.mxu0 %v12106_v33  ;;  %10919 = vmatprep.subr.bf16.mxu1 %v12129_v10  ;;  %v12198_v33 = vld [vmem:[#allocation5 + $0x32c] ss:$16 sps:$4 sm:$0xff]   ;;  %v12211_v10 = vld [vmem:[#allocation5 + $0x4c8] ss:$16 sps:$4 sm:$0xff]  }
 0x533   :  { %10954 = vmatprep.subr.bf16.mxu0 %v12114_v57  ;;  %v12196_v57 = vld [vmem:[#allocation5 + $0x328] ss:$16 sps:$4 sm:$0xff]  }
 0x535   :  { %10906 = vmatmul.mubr.bf16.vlgmr.msra.gmra.mxu0 %v17472_v40  ;;  %10920 = vmatpush1.bf16.msra.mxu1 %v12127_v23  ;;  %v12219_v23 = vld [vmem:[#allocation5 + $0x4ac] ss:$16 sps:$4 sm:$0xff]  }
 0x536   :  { %10955 = vmatpush1.bf16.msra.mxu0 %v12112_v16  ;;  %10986 = vmatprep.mubr.bf16.mxu0 %v17416_v26  ;;  %v12138_v26 = vld [vmem:[#allocation5 + $0x26c] ss:$16 sps:$4 sm:$0xff]  }
 0x537   :  { %10956 = vmatprep.subr.bf16.mxu0 %v12120_v8  ;;  %10921 = vmatprep.subr.bf16.mxu1 %v12135_v30  ;;  %v12204_v16 = vld [vmem:[#allocation5 + $0x30c] ss:$16 sps:$4 sm:$0xff]   ;;  %v12217_v8 = vld [vmem:[#allocation5 + $0x4a8] ss:$16 sps:$4 sm:$0xff]  }
 0x538   :  { %v12202_v30 = vld [vmem:[#allocation5 + $0x308] ss:$16 sps:$4 sm:$0xff]  }
 0x539   :  { %10922 = vmatpush1.bf16.msra.mxu1 %v12133_v9  ;;  %v12225_v9 = vld [vmem:[#allocation5 + $0x48c] ss:$16 sps:$4 sm:$0xff]  }
 0x53a   :  { %10957 = vmatpush1.bf16.msra.mxu0 %v12118_v18  ;;  %10923 = vmatprep.subr.bf16.mxu1 %v12141_v38  ;;  %v12210_v18 = vld [vmem:[#allocation5 + $0x6ec] ss:$16 sps:$4 sm:$0xff]   ;;  %v12208_v38 = vld [vmem:[#allocation5 + $0x6e8] ss:$16 sps:$4 sm:$0xff]  }
 0x53b   :  { %10958 = vmatprep.subr.bf16.mxu0 %v12126_v13  ;;  %v12231_v13 = vld [vmem:[#allocation5 + $0x46c] ss:$16 sps:$4 sm:$0xff]  }
 0x53d   :  { %10924 = vmatpush1.bf16.msra.mxu1 %v12139_v21  ;;  %v12229_v21 = vld [vmem:[#allocation5 + $0x468] ss:$16 sps:$4 sm:$0xff]  }
 0x53e   :  { %10959 = vmatpush1.bf16.msra.mxu0 %v12124_v60  ;;  %10925 = vmatprep.subr.bf16.mxu1 %v12147_v15  ;;  %v12214_v60 = vld [vmem:[#allocation5 + $0x6c8] ss:$16 sps:$4 sm:$0xff]   ;;  %v12237_v15 = vld [vmem:[#allocation5 + $0x44c] ss:$16 sps:$4 sm:$0xff]  }
 0x53f   :  { %10960 = vmatprep.subr.bf16.mxu0 %v12132_v17  ;;  %v12222_v17 = vld [vmem:[#allocation5 + $0x6ac] ss:$16 sps:$4 sm:$0xff]  }
 0x541   :  { %10926 = vmatpush1.bf16.msra.mxu1 %v12145_v20  ;;  %v12235_v20 = vld [vmem:[#allocation5 + $0x448] ss:$16 sps:$4 sm:$0xff]  }
 0x542   :  { %10961 = vmatpush1.bf16.msra.mxu0 %v12130_v50  ;;  %10927 = vmatprep.subr.bf16.mxu1 %v12153_v52  ;;  %v12220_v50 = vld [vmem:[#allocation5 + $0x6a8] ss:$16 sps:$4 sm:$0xff]   ;;  %v12243_v52 = vld [vmem:[#allocation5 + $0x42c] ss:$16 sps:$4 sm:$0xff]  }
 0x543   :  { %10962 = vmatprep.subr.bf16.mxu0 %v12138_v26  ;;  %v12228_v26 = vld [vmem:[#allocation5 + $0x68c] ss:$16 sps:$4 sm:$0xff]  }
 0x545   :  { %10928 = vmatpush1.bf16.msra.mxu1 %v12151_v1  ;;  %v12226_v1 = vld [vmem:[#allocation5 + $0x688] ss:$16 sps:$4 sm:$0xff]  }
 0x546   :  { %10963 = vmatpush1.bf16.msra.mxu0 %v12136_v63  ;;  %10929 = vmatprep.subr.bf16.mxu1 %v12159_v56  ;;  %v12249_v63 = vld [vmem:[#allocation5 + $0x40c] ss:$16 sps:$4 sm:$0xff]   ;;  %v12247_v56 = vld [vmem:[#allocation5 + $0x408] ss:$16 sps:$4 sm:$0xff]  }
 0x547   :  { %10964 = vmatprep.subr.bf16.mxu0 %v12144_v44  ;;  %v12232_v44 = vld [vmem:[#allocation5 + $0x668] ss:$16 sps:$4 sm:$0xff]  }
 0x549   :  { %10930 = vmatpush2.bf16.msra.mxu1 %v12157_v49  ;;  %v12255_v49 = vld [vmem:[#allocation5 + $0x5ec] ss:$16 sps:$4 sm:$0xff]  }
 0x54a   :  { %10965 = vmatpush1.bf16.msra.mxu0 %v12142_v42  ;;  %10931 = vmatprep.subr.bf16.mxu1 %v12165_v62  ;;  %v12240_v42 = vld [vmem:[#allocation5 + $0x64c] ss:$16 sps:$4 sm:$0xff]   ;;  %v12253_v62 = vld [vmem:[#allocation5 + $0x5e8] ss:$16 sps:$4 sm:$0xff]  }
 0x54b   :  { %10966 = vmatprep.subr.bf16.mxu0 %v12150_v4  ;;  %v12238_v4 = vld [vmem:[#allocation5 + $0x648] ss:$16 sps:$4 sm:$0xff]  }
 0x54d   :  { %10932 = vmatpush2.bf16.msra.mxu1 %v12163_v28  ;;  %v12261_v28 = vld [vmem:[#allocation5 + $0x5cc] ss:$16 sps:$4 sm:$0xff]  }
 0x54e   :  { %10967 = vmatpush1.bf16.msra.mxu0 %v12148_v36  ;;  %10933 = vmatprep.subr.bf16.mxu1 %v12171_v58  ;;  %v12246_v36 = vld [vmem:[#allocation5 + $0x62c] ss:$16 sps:$4 sm:$0xff]   ;;  %v12259_v58 = vld [vmem:[#allocation5 + $0x5c8] ss:$16 sps:$4 sm:$0xff]  }
 0x54f   :  { %10968 = vmatprep.subr.bf16.mxu0 %v12156_v22  ;;  %v12244_v22 = vld [vmem:[#allocation5 + $0x628] ss:$16 sps:$4 sm:$0xff]  }
 0x551   :  { %10934 = vmatpush2.bf16.msra.mxu1 %v12169_v54  ;;  %v12267_v54 = vld [vmem:[#allocation5 + $0x5ac] ss:$16 sps:$4 sm:$0xff]  }
 0x552   :  { %10969 = vmatpush1.bf16.msra.mxu0 %v12154_v59  ;;  %10935 = vmatprep.subr.bf16.mxu1 %v12177_v35  ;;  %v12252_v59 = vld [vmem:[#allocation5 + $0x60c] ss:$16 sps:$4 sm:$0xff]   ;;  %v12265_v35 = vld [vmem:[#allocation5 + $0x5a8] ss:$16 sps:$4 sm:$0xff]  }
 0x553   :  { %10970 = vmatprep.subr.bf16.mxu0 %v12162_v51  ;;  %v12250_v51 = vld [vmem:[#allocation5 + $0x608] ss:$16 sps:$4 sm:$0xff]  }
 0x555   :  { %10936 = vmatpush2.bf16.msra.mxu1 %v12175_v11  ;;  %v12273_v11 = vld [vmem:[#allocation5 + $0x58c] ss:$16 sps:$4 sm:$0xff]  }
 0x556   :  { %10971 = vmatpush2.bf16.msra.mxu0 %v12160_v55  ;;  %10937 = vmatprep.subr.bf16.mxu1 %v12183_v27  ;;  %v12258_v55 = vld [vmem:[#allocation5 + $0x7ec] ss:$16 sps:$4 sm:$0xff]   ;;  %v12271_v27 = vld [vmem:[#allocation5 + $0x588] ss:$16 sps:$4 sm:$0xff]  }
 0x557   :  { %10972 = vmatprep.subr.bf16.mxu0 %v12168_v34  ;;  %v12256_v34 = vld [vmem:[#allocation5 + $0x7e8] ss:$16 sps:$4 sm:$0xff]  }
 0x559   :  { %10938 = vmatpush2.bf16.msra.mxu1 %v12181_v43  ;;  %v12279_v43 = vld [vmem:[#allocation5 + $0x56c] ss:$16 sps:$4 sm:$0xff]  }
 0x55a   :  { %10973 = vmatpush2.bf16.msra.mxu0 %v12166_v41  ;;  %10939 = vmatprep.subr.bf16.mxu1 %v12189_v61  ;;  %v12264_v41 = vld [vmem:[#allocation5 + $0x7cc] ss:$16 sps:$4 sm:$0xff]   ;;  %v12277_v61 = vld [vmem:[#allocation5 + $0x568] ss:$16 sps:$4 sm:$0xff]  }
 0x55b   :  { %10974 = vmatprep.subr.bf16.mxu0 %v12174_v0  ;;  %v12262_v0 = vld [vmem:[#allocation5 + $0x7c8] ss:$16 sps:$4 sm:$0xff]  }
 0x55d   :  { %10940 = vmatpush2.bf16.msra.mxu1 %v12187_v25  ;;  %v12285_v25 = vld [vmem:[#allocation5 + $0x54c] ss:$16 sps:$4 sm:$0xff]  }
 0x55e   :  { %10975 = vmatpush2.bf16.msra.mxu0 %v12172_v12  ;;  %10941 = vmatprep.subr.bf16.mxu1 %v12195_v29  ;;  %v12270_v12 = vld [vmem:[#allocation5 + $0x7ac] ss:$16 sps:$4 sm:$0xff]   ;;  %v12283_v29 = vld [vmem:[#allocation5 + $0x548] ss:$16 sps:$4 sm:$0xff]  }
 0x55f   :  { %10976 = vmatprep.subr.bf16.mxu0 %v12180_v32  ;;  %v12268_v32 = vld [vmem:[#allocation5 + $0x7a8] ss:$16 sps:$4 sm:$0xff]  }
 0x561   :  { %10942 = vmatpush2.bf16.msra.mxu1 %v12193_v24  ;;  %v12291_v24 = vld [vmem:[#allocation5 + $0x52c] ss:$16 sps:$4 sm:$0xff]  }
 0x562   :  { %10977 = vmatpush2.bf16.msra.mxu0 %v12178_v53  ;;  %10943 = vmatprep.subr.bf16.mxu1 %v12201_v7  ;;  %v12276_v53 = vld [vmem:[#allocation5 + $0x78c] ss:$16 sps:$4 sm:$0xff]   ;;  %v12289_v7 = vld [vmem:[#allocation5 + $0x528] ss:$16 sps:$4 sm:$0xff]  }
 0x563   :  { %10978 = vmatprep.subr.bf16.mxu0 %v12186_v46  ;;  %v12274_v46 = vld [vmem:[#allocation5 + $0x788] ss:$16 sps:$4 sm:$0xff]  }
 0x565   :  { %10944 = vmatpush2.bf16.msra.mxu1 %v12199_v3  ;;  %v12297_v3 = vld [vmem:[#allocation5 + $0x50c] ss:$16 sps:$4 sm:$0xff]  }
 0x566   :  { %10979 = vmatpush2.bf16.msra.mxu0 %v12184_v37  ;;  %10995 = vmatprep.subr.bf16.mxu1 %v12207_v48  ;;  %v12282_v37 = vld [vmem:[#allocation5 + $0x76c] ss:$16 sps:$4 sm:$0xff]   ;;  %v12295_v48 = vld [vmem:[#allocation5 + $0x508] ss:$16 sps:$4 sm:$0xff]  }
 0x567   :  { %10980 = vmatprep.subr.bf16.mxu0 %v12192_v5  ;;  %v12280_v5 = vld [vmem:[#allocation5 + $0x768] ss:$16 sps:$4 sm:$0xff]  }
 0x568   :  { %10946 = vmatmul.mubr.bf16.vlgmr.msra.gmra.mxu1 %v17379_v14  ;;  %v12223_v14 = vld [vmem:[#allocation5 + $0x488] ss:$16 sps:$4 sm:$0xff]  }
 0x569   :  { %10996 = vmatpush1.bf16.msra.mxu1 %v12205_v47  ;;  %11027 = vmatprep.mubr.bf16.mxu1 %v17443_v19  ;;  %v12216_v19 = vld [vmem:[#allocation5 + $0x6cc] ss:$16 sps:$4 sm:$0xff]  }
 0x56a   :  { %10981 = vmatpush2.bf16.msra.mxu0 %v12190_v6  ;;  %10997 = vmatprep.subr.bf16.mxu1 %v12213_v39  ;;  %v12288_v47 = vld [vmem:[#allocation5 + $0x74c] ss:$16 sps:$4 sm:$0xff]   ;;  %v12286_v6 = vld [vmem:[#allocation5 + $0x748] ss:$16 sps:$4 sm:$0xff]  }
 0x56b   :  { %10982 = vmatprep.subr.bf16.mxu0 %v12198_v33  ;;  %v12294_v39 = vld [vmem:[#allocation5 + $0x72c] ss:$16 sps:$4 sm:$0xff]  }
 0x56d   :  { %10998 = vmatpush1.bf16.msra.mxu1 %v12211_v10  ;;  %v12292_v10 = vld [vmem:[#allocation5 + $0x728] ss:$16 sps:$4 sm:$0xff]  }
 0x56e   :  { %10983 = vmatpush2.bf16.msra.mxu0 %v12196_v57  ;;  %10999 = vmatprep.subr.bf16.mxu1 %v12219_v23  ;;  %v12300_v23 = vld [vmem:[#allocation5 + $0x70c] ss:$16 sps:$4 sm:$0xff]  }
 0x56f   :  { %10984 = vmatprep.subr.bf16.mxu0 %v12204_v16  ;;  %v17484_v16 = vld [vmem:[%s17531_s6] sm:$0xf] }
 0x571   :  { %11000 = vmatpush1.bf16.msra.mxu1 %v12217_v8 }
 0x572   :  { %10985 = vmatpush2.bf16.msra.mxu0 %v12202_v30  ;;  %11001 = vmatprep.subr.bf16.mxu1 %v12225_v9  ;;  %v12298_v30 = vld [vmem:[#allocation5 + $0x708] ss:$16 sps:$4 sm:$0xff]  }
 0x573   :  { %11036 = vmatprep.subr.bf16.mxu0 %v12210_v18  ;;  %v18366_v9 = vld [vmem:[#allocation12_spill] sm:$0xff] }
 0x574   :  { %v9461_v18 = vrot.slane %v17484_v16, %v18366_v9 }
 0x575   :  { %10987 = vmatmul.mubr.bf16.vlgmr.msra.gmra.mxu0 %v17404_v2  ;;  %11002 = vmatpush1.bf16.msra.mxu1 %v12223_v14  ;;  %v12241_v2 = vld [vmem:[#allocation5 + $0x428] ss:$16 sps:$4 sm:$0xff]  }
 0x576   :  { %11037 = vmatpush1.bf16.msra.mxu0 %v12208_v38  ;;  %11068 = vmatprep.mubr.bf16.mxu0 %v17459_v45  ;;  %v12234_v45 = vld [vmem:[#allocation5 + $0x66c] ss:$16 sps:$4 sm:$0xff]  }
 0x577   :  { %11038 = vmatprep.subr.bf16.mxu0 %v12216_v19  ;;  %11003 = vmatprep.subr.bf16.mxu1 %v12231_v13 }
 0x579   :  { %11004 = vmatpush1.bf16.msra.mxu1 %v12229_v21 }
 0x57a   :  { %11039 = vmatpush1.bf16.msra.mxu0 %v12214_v60  ;;  %11005 = vmatprep.subr.bf16.mxu1 %v12237_v15 }
 0x57b   :  { %11040 = vmatprep.subr.bf16.mxu0 %v12222_v17 }
 0x57d   :  { %11006 = vmatpush1.bf16.msra.mxu1 %v12235_v20 }
 0x57e   :  { %11041 = vmatpush1.bf16.msra.mxu0 %v12220_v50  ;;  %11007 = vmatprep.subr.bf16.mxu1 %v12243_v52 }
 0x57f   :  { %11042 = vmatprep.subr.bf16.mxu0 %v12228_v26 }
 0x581   :  { %11008 = vmatpush1.bf16.msra.mxu1 %v12241_v2 }
 0x582   :  { %11043 = vmatpush1.bf16.msra.mxu0 %v12226_v1  ;;  %11009 = vmatprep.subr.bf16.mxu1 %v12249_v63 }
 0x583   :  { %11044 = vmatprep.subr.bf16.mxu0 %v12234_v45 }
 0x585   :  { %11010 = vmatpush1.bf16.msra.mxu1 %v12247_v56  ;;  %v12301_v56 = vld [vmem:[%s17532_s7 + $0x38] sm:$0xff]  }
 0x586   :  { %11045 = vmatpush1.bf16.msra.mxu0 %v12232_v44  ;;  %11011 = vmatprep.subr.bf16.mxu1 %v12255_v49  ;;  %v12302_v44 = vld [vmem:[%s17532_s7 + $0x30] sm:$0xff]   ;;  %v12303_v49 = vld [vmem:[%s17532_s7 + $0x28] sm:$0xff]  }
 0x587   :  { %11046 = vmatprep.subr.bf16.mxu0 %v12240_v42  ;;  %v12304_v42 = vld [vmem:[%s17532_s7 + $0x20] sm:$0xff]  }
 0x589   :  { %11012 = vmatpush2.bf16.msra.mxu1 %v12253_v62  ;;  %v12305_v62 = vld [vmem:[%s17532_s7 + $0x18] sm:$0xff]  }
 0x58a   :  { %11047 = vmatpush1.bf16.msra.mxu0 %v12238_v4  ;;  %11013 = vmatprep.subr.bf16.mxu1 %v12261_v28  ;;  %v12306_v4 = vld [vmem:[%s17532_s7 + $0x10] sm:$0xff]   ;;  %v12307_v28 = vld [vmem:[%s17532_s7 + $0x8] sm:$0xff]  }
 0x58b   :  { %11048 = vmatprep.subr.bf16.mxu0 %v12246_v36  ;;  %v12308_v36 = vld [vmem:[%s17532_s7] sm:$0xff]  }
 0x58d   :  { %11014 = vmatpush2.bf16.msra.mxu1 %v12259_v58 }
 0x58e   :  { %11049 = vmatpush1.bf16.msra.mxu0 %v12244_v22  ;;  %11015 = vmatprep.subr.bf16.mxu1 %v12267_v54 }
 0x58f   :  { %11050 = vmatprep.subr.bf16.mxu0 %v12252_v59  ;;  %v18367_v59 = vld [vmem:[#allocation11_spill] sm:$0xff] }
 0x591   :  { %11016 = vmatpush2.bf16.msra.mxu1 %v12265_v35  ;;  %v18368_v35 = vsub.s32 2, %v18367_v59 }
 0x592   :  { %11051 = vmatpush1.bf16.msra.mxu0 %v12250_v51  ;;  %11017 = vmatprep.subr.bf16.mxu1 %v12273_v11 }
 0x593   :  { %11052 = vmatprep.subr.bf16.mxu0 %v12258_v55  ;;  %v9465_v51 = vrot.slane %v17484_v16, %v18368_v35 }
 0x595   :  { %11018 = vmatpush2.bf16.msra.mxu1 %v12271_v27 }
 0x596   :  { %11053 = vmatpush2.bf16.msra.mxu0 %v12256_v34  ;;  %11019 = vmatprep.subr.bf16.mxu1 %v12279_v43 }
 0x597   :  { %11054 = vmatprep.subr.bf16.mxu0 %v12264_v41 }
 0x599   :  { %11020 = vmatpush2.bf16.msra.mxu1 %v12277_v61 }
 0x59a   :  { %11055 = vmatpush2.bf16.msra.mxu0 %v12262_v0  ;;  %11021 = vmatprep.subr.bf16.mxu1 %v12285_v25 }
 0x59b   :  { %11056 = vmatprep.subr.bf16.mxu0 %v12270_v12  ;;  %v18369_v12 = vsub.s32 3, %v18367_v59 }
 0x59d   :  { %11022 = vmatpush2.bf16.msra.mxu1 %v12283_v29  ;;  %v9469_v29 = vrot.slane %v17484_v16, %v18369_v12 }
 0x59e   :  { %11057 = vmatpush2.bf16.msra.mxu0 %v12268_v32  ;;  %11023 = vmatprep.subr.bf16.mxu1 %v12291_v24 }
 0x59f   :  { %11058 = vmatprep.subr.bf16.mxu0 %v12276_v53 }
 0x5a1   :  { %11024 = vmatpush2.bf16.msra.mxu1 %v12289_v7 }
 0x5a2   :  { %11059 = vmatpush2.bf16.msra.mxu0 %v12274_v46  ;;  %11025 = vmatprep.subr.bf16.mxu1 %v12297_v3 }
 0x5a3   :  { %11060 = vmatprep.subr.bf16.mxu0 %v12282_v37 }
 0x5a5   :  { %11026 = vmatpush2.bf16.msra.mxu1 %v12295_v48 }
 0x5a6   :  { %11061 = vmatpush2.bf16.msra.mxu0 %v12280_v5 }
 0x5a7   :  { %11062 = vmatprep.subr.bf16.mxu0 %v12288_v47 }
 0x5a8   :  { %11028 = vmatmul.mubr.bf16.vlgmr.msra.gmra.mxu1 %v17466_v31  ;;  %v10787_v33 = vpop.f32.mrf.mxu1 }
 0x5a9   :  { %v10788_v31 = vadd.f32 %v10787_v33, %v9461_v18 }
 0x5aa   :  { %11063 = vmatpush2.bf16.msra.mxu0 %v12286_v6  ;;  %v10789_v57 = vpop.f32.mrf.mxu1 }
 0x5ab   :  { %11064 = vmatprep.subr.bf16.mxu0 %v12294_v39 }
 0x5ac   :  { %v10790_v8 = vpop.f32.mrf.mxu1 }
 0x5ae   :  { %11065 = vmatpush2.bf16.msra.mxu0 %v12292_v10  ;;  %v10791_v14 = vpop.f32.mrf.mxu1 }
 0x5af   :  { %11066 = vmatprep.subr.bf16.mxu0 %v12300_v23 }
 0x5b2   :  { %11067 = vmatpush2.bf16.msra.mxu0 %v12298_v30 }
 0x5b5   :  { %11069 = vmatmul.mubr.bf16.vlgmr.msra.gmra.mxu0 %v17472_v40  ;;  %v10827_v38 = vpop.f32.mrf.mxu0  ;;  %v12401_v40 = vmov 0.0  }
 0x5b6   :  { %v10828_v19 = vadd.f32 %v10827_v38, %v10788_v31  ;;  %11668 = vmatprep.subr.bf16.mxu1 %v12401_v40  ;;  %11684 = vmatprep.mubr.msk.bf16.mxu1 %vm12402_vm14, %v12401_v40 }
 0x5b7   :  { %v10829_v13 = vpop.f32.mrf.mxu0  ;;  %11669 = vmatpush3.bf16.msra.mxu1 %v12301_v56 }
 0x5b8   :  { %11670 = vmatprep.subr.bf16.mxu1 %v12401_v40  ;;  %v11650_v13 = vld [vmem:[%s17533_s8] ss:$0 sm:$0xff] }
 0x5b9   :  { %v10830_v21 = vpop.f32.mrf.mxu0 }
 0x5bb   :  { %v10831_v60 = vpop.f32.mrf.mxu0  ;;  %11671 = vmatpush3.bf16.msra.mxu1 %v12302_v44 }
 0x5bc   :  { %11672 = vmatprep.subr.bf16.mxu1 %v12401_v40 }
 0x5bf   :  { %11673 = vmatpush3.bf16.msra.mxu1 %v12303_v49 }
 0x5c0   :  { %11674 = vmatprep.subr.bf16.mxu1 %v12401_v40 }
 0x5c3   :  { %11675 = vmatpush3.bf16.msra.mxu1 %v12304_v42 }
 0x5c4   :  { %11676 = vmatprep.subr.bf16.mxu1 %v12401_v40 }
 0x5c7   :  { %11677 = vmatpush3.bf16.msra.mxu1 %v12305_v62 }
 0x5c8   :  { %11678 = vmatprep.subr.bf16.mxu1 %v12401_v40 }
 0x5cb   :  { %11679 = vmatpush3.bf16.msra.mxu1 %v12306_v4 }
 0x5cc   :  { %11680 = vmatprep.subr.bf16.mxu1 %v12401_v40 }
 0x5cf   :  { %11681 = vmatpush3.bf16.msra.mxu1 %v12307_v28 }
 0x5d0   :  { %11682 = vmatprep.subr.bf16.mxu1 %v12401_v40 }
 0x5d3   :  { %11683 = vmatpush3.bf16.msra.mxu1 %v12308_v36 }
 0x5e8   :  { %v10867_v15 = vpop.f32.mrf.mxu1 }
 0x5e9   :  { %v10868_v17 = vadd.f32 %v10867_v15, %v10828_v19 }
 0x5ea   :  { %v10869_v20 = vpop.f32.mrf.mxu1 }
 0x5ec   :  { %v10870_v50 = vpop.f32.mrf.mxu1 }
 0x5ee   :  { %v10871_v52 = vpop.f32.mrf.mxu1 }
 0x5f5   :  { %v10907_v26 = vpop.f32.mrf.mxu0 }
 0x5f6   :  { %v10908_v2 = vadd.f32 %v10907_v26, %v10868_v17 }
 0x5f7   :  { %v10909_v1 = vpop.f32.mrf.mxu0 }
 0x5f8   :  { %v11648_v0 = vmul.f32 -1.442695, %v10908_v2 }
 0x5f9   :  { %v10910_v63 = vpop.f32.mrf.mxu0 }
 0x5fa   :  { %12309 = vpow2.f32 %v11648_v0 }
 0x5fb   :  { %v10911_v45 = vpop.f32.mrf.mxu0 }
 0x607   :  { %v12310_v46 = vpop.eup %12309 }
 0x608   :  { %v11080_v48 = vadd.f32 1.0, %v12310_v46 }
 0x60a   :  { %12311 = vrcp.f32 %v11080_v48 }
 0x617   :  { %v12312_v16 = vpop.eup %12311 }
 0x628   :  { %v10947_v58 = vpop.f32.mrf.mxu1 }
 0x629   :  { %v10948_v55 = vadd.f32 %v10947_v58, %v9465_v51 }
 0x62a   :  { %v10949_v22 = vpop.f32.mrf.mxu1 }
 0x62b   :  { %v10950_v53 = vadd.f32 %v10949_v22, %v9469_v29 }
 0x62c   :  { %v10951_v54 = vpop.f32.mrf.mxu1 }
 0x62e   :  { %v10952_v11 = vpop.f32.mrf.mxu1 }
 0x635   :  { %v10988_v27 = vpop.f32.mrf.mxu0 }
 0x636   :  { %v10989_v34 = vadd.f32 %v10988_v27, %v10948_v55 }
 0x637   :  { %v10990_v43 = vpop.f32.mrf.mxu0 }
 0x638   :  { %v10991_v3 = vadd.f32 %v10990_v43, %v10950_v53 }
 0x639   :  { %v10992_v41 = vpop.f32.mrf.mxu0 }
 0x63b   :  { %v10993_v61 = vpop.f32.mrf.mxu0 }
 0x668   :  { %v11029_v25 = vpop.f32.mrf.mxu1 }
 0x669   :  { %v11030_v37 = vadd.f32 %v11029_v25, %v10989_v34 }
 0x66a   :  { %v11031_v32 = vpop.f32.mrf.mxu1 }
 0x66b   :  { %v11032_v5 = vadd.f32 %v11031_v32, %v10991_v3 }
 0x66c   :  { %v11033_v24 = vpop.f32.mrf.mxu1 }
 0x66e   :  { %v11034_v7 = vpop.f32.mrf.mxu1 }
 0x675   :  { %v11070_v47 = vpop.f32.mrf.mxu0 }
 0x676   :  { %v11071_v6 = vadd.f32 %v11070_v47, %v11030_v37 }
 0x677   :  { %v11072_v39 = vpop.f32.mrf.mxu0 }
 0x678   :  { %12313 = vtanh.f32 %v11071_v6  ;;  %v11073_v33 = vadd.f32 %v11072_v39, %v11032_v5 }
 0x679   :  { %v11074_v10 = vpop.f32.mrf.mxu0 }
 0x67a   :  { %v11649_v57 = vmul.f32 -1.442695, %v11073_v33 }
 0x67b   :  { %v11075_v23 = vpop.f32.mrf.mxu0 }
 0x67c   :  { %12315 = vpow2.f32 %v11649_v57 }
 0x685   :  { %v12314_v8 = vpop.eup %12313 }
 0x686   :  { %v11090_v30 = vmul.f32 %v12314_v8, %v12312_v16 }
 0x688   :  { %12317 = vtanh.f32 %v11090_v30 }
 0x689   :  { %v12316_v9 = vpop.eup %12315 }
 0x68a   :  { %v11087_v18 = vadd.f32 1.0, %v12316_v9 }
 0x68c   :  { %12319 = vrcp.f32 %v11087_v18 }
 0x695   :  { %v12318_v14 = vpop.eup %12317 }
 0x699   :  { %v12320_v31 = vpop.eup %12319 }
 0x69a   :  { %v11092_v38 = vmul.f32 %v12320_v31, %v12318_v14 }
 0x69c   :  { %v11093_v19 = vpack.c.bf16 %v11092_v38, %v11092_v38 }
 0x69e   :  { %11685 = vmatmul.mubr.bf16.vlgmr.msra.gmra.mxu1 %v11093_v19 }
 0x75e   :  { %v11199_v21 = vpop.f32.mrf.mxu1 }
 0x75f   :  { %v11200_v60 = vadd.f32 %v11650_v13, %v11199_v21 }
 0x760   :  { %v11686_v15 = vpop.f32.mrf.mxu1 }
 0x761   :  { %11205 = vst [vmem:[#allocation7] sm:$0x3] %v11200_v60 }
 0x762   :  { %v11202_v17 = vpop.f32.mrf.mxu1 }
 0x763   :  { %12378 = shalt.err (!%p12375_p0)
}
 0x764   :  { %11215 = dma.vmem_to_hbm [thread:$0]  %s11213_s27, 32, %s17534_s9, [#allocation4]   ;;  %v11687_v20 = vpop.f32.mrf.mxu1 }
 0x765   :  { %12391 = dma.done.wait [#allocation4], 32  }
 0x766   :  { %12392 = vsyncadd [#allocation4], 4294967264 }
 0x767   :  { %11219 = vsyncpa [#allocation3], 1 }
 0x768   :  { %11220 = vsyncpa [#allocation6], 1 }
 0x769   :  { %11221 = vsyncpa [#allocation4], 1 }

</bundles_post_ra>
